<compile_context>
chip_gen: v6e
topology: v6e:2x2x1
jax: 0.10.0
libtpu: 0.0.40
codegen_flags: <defaults>
</compile_context>

<pallas_src>
from functools import partial

import numpy as np
import jax
import jax.numpy as jnp
from jax.experimental import pallas as pl
from jax.experimental.pallas import tpu as pltpu

NUM_CLASSES = 5

_VMEM_SPEC = pl.BlockSpec(memory_space=pltpu.MemorySpace.VMEM)


# ----------------------------------------------------------------------------
# Pallas kernels
# ----------------------------------------------------------------------------
def _mm_bn_kernel(x_ref, w_ref, s_ref, b_ref, o_ref, *, relu):
    # out = maybe_relu((x @ w) * scale + bias), single K block, f32 epilogue.
    acc = jnp.dot(x_ref[...], w_ref[...], preferred_element_type=jnp.float32)
    out = acc * s_ref[...] + b_ref[...]
    if relu:
        out = jnp.maximum(out, 0.0)
    o_ref[...] = out.astype(o_ref.dtype)


def _mm_bn_res_kernel(x_ref, w_ref, s_ref, b_ref, r_ref, o_ref, *, relu):
    # Same, plus residual add before the activation (BasicBlock tail, no down).
    acc = jnp.dot(x_ref[...], w_ref[...], preferred_element_type=jnp.float32)
    out = acc * s_ref[...] + b_ref[...] + r_ref[...].astype(jnp.float32)
    if relu:
        out = jnp.maximum(out, 0.0)
    o_ref[...] = out.astype(o_ref.dtype)


def _mm_bn_down_res_kernel(x_ref, w_ref, s_ref, b_ref,
                           xd_ref, wd_ref, sd_ref, bd_ref, o_ref):
    # BasicBlock tail with fused 1x1 downsample branch:
    #   relu( BN2(conv2(y)) + BNd(down(x)) )
    main = jnp.dot(x_ref[...], w_ref[...], preferred_element_type=jnp.float32)
    main = main * s_ref[...] + b_ref[...]
    iden = jnp.dot(xd_ref[...], wd_ref[...], preferred_element_type=jnp.float32)
    iden = iden * sd_ref[...] + bd_ref[...]
    o_ref[...] = jnp.maximum(main + iden, 0.0).astype(o_ref.dtype)


def _mm_bn_head_kernel(x_ref, w_ref, s_ref, b_ref, w3_ref, o_ref):
    # dec2 (conv3x3 + BN + ReLU) with dec3 (1x1 classifier, bias=False) folded
    # into the finalize as a second matmul on the resident activation.
    acc = jnp.dot(x_ref[...], w_ref[...], preferred_element_type=jnp.float32)
    y = jnp.maximum(acc * s_ref[...] + b_ref[...], 0.0)
    o_ref[...] = jnp.dot(y.astype(w3_ref.dtype), w3_ref[...],
                         preferred_element_type=jnp.float32).astype(o_ref.dtype)


def _max9_kernel(*refs):
    # Pairwise max over the 9 taps of a 3x3/s2 pooling window (VPU),
    # all operands presented as lane-dense 2-D (rows, lanes) views.
    taps, o_ref = refs[:-1], refs[-1]
    m = taps[0][...]
    for t in taps[1:]:
        m = jnp.maximum(m, t[...])
    o_ref[...] = m


def _bilerp_mm_kernel(src_ref, wh_ref, bw_ref, o_ref):
    # Separable bilinear resize as two matmuls with compile-time interp
    # matrices; output is a lane-dense (N*H_out, W_out*C) slab.
    rows = jnp.dot(wh_ref[...], src_ref[...], preferred_element_type=jnp.float32)
    o_ref[...] = jnp.dot(rows, bw_ref[...], preferred_element_type=jnp.float32)


# ----------------------------------------------------------------------------
# Fused matmul (conv core): single K block, <=2 M tiles ("parallel" for v7x)
# ----------------------------------------------------------------------------
def fused_matmul(x, w, scale, bias, *, relu=True, residual=None,
                 down=None, head_w=None, out_dtype=jnp.bfloat16):
    M, K = x.shape
    N = w.shape[1]
    scale = scale.reshape(1, N).astype(jnp.float32)
    bias = bias.reshape(1, N).astype(jnp.float32)

    # Split only large-M convs (stem / layer1) in two so v7x can shard across
    # both TensorCores; everything else is a single grid step (min dispatch).
    tm = M // 2 if (M >= 512 and M % 16 == 0) else M
    grid = (M // tm,)

    def row_spec(cols):
        return pl.BlockSpec((tm, cols), lambda i: (i, 0))

    def full_spec(arr):
        return pl.BlockSpec(arr.shape, lambda i: (0, 0))

    args = [x, w, scale, bias]
    in_specs = [row_spec(K), full_spec(w), full_spec(scale), full_spec(bias)]
    n_out = N

    if head_w is not None:
        args.append(head_w)
        in_specs.append(full_spec(head_w))
        n_out = head_w.shape[1]
        kernel = _mm_bn_head_kernel
    elif down is not None:
        xd, wd, sd, bd = down
        sd = sd.reshape(1, N).astype(jnp.float32)
        bd = bd.reshape(1, N).astype(jnp.float32)
        args += [xd, wd, sd, bd]
        in_specs += [row_spec(xd.shape[1]), full_spec(wd),
                     full_spec(sd), full_spec(bd)]
        kernel = _mm_bn_down_res_kernel
    elif residual is not None:
        args.append(residual)
        in_specs.append(row_spec(N))
        kernel = partial(_mm_bn_res_kernel, relu=relu)
    else:
        kernel = partial(_mm_bn_kernel, relu=relu)

    return pl.pallas_call(
        kernel,
        out_shape=jax.ShapeDtypeStruct((M, n_out), out_dtype),
        grid=grid,
        in_specs=in_specs,
        out_specs=pl.BlockSpec((tm, n_out), lambda i: (i, 0)),
        compiler_params=pltpu.CompilerParams(
            dimension_semantics=("parallel",)),
    )(*args)


# ----------------------------------------------------------------------------
# Conv / pool / resize built on the kernels (slices & reshapes are XLA glue)
# ----------------------------------------------------------------------------
def _im2col(x, kh, kw, stride, dilation, padding):
    """Shifted-tap extraction -> (N*Ho*Wo, kh*kw*C) patch matrix (bf16)."""
    N, H, W, C = x.shape
    if padding > 0:
        x = jnp.pad(x, ((0, 0), (padding, padding), (padding, padding), (0, 0)))
    Hp, Wp = H + 2 * padding, W + 2 * padding
    Ho = (Hp - dilation * (kh - 1) - 1) // stride + 1
    Wo = (Wp - dilation * (kw - 1) - 1) // stride + 1
    cols = []
    for i in range(kh):
        for j in range(kw):
            cols.append(
                jax.lax.slice(
                    x,
                    (0, i * dilation, j * dilation, 0),
                    (N, i * dilation + (Ho - 1) * stride + 1,
                     j * dilation + (Wo - 1) * stride + 1, C),
                    (1, stride, stride, 1)))
    patches = cols[0] if len(cols) == 1 else jnp.concatenate(cols, axis=-1)
    return patches.reshape(N * Ho * Wo, kh * kw * C), (N, Ho, Wo)


def conv_bn_act(x, w, scale, bias, *, kh, kw, stride=1, dilation=1, padding=0,
                relu=True, residual=None, down=None, head_w=None,
                out_dtype=jnp.bfloat16):
    x = x.astype(jnp.bfloat16)
    patches, (N, Ho, Wo) = _im2col(x, kh, kw, stride, dilation, padding)
    res_mat = None
    if residual is not None:
        res_mat = residual.astype(jnp.bfloat16).reshape(N * Ho * Wo, -1)
    out = fused_matmul(patches, w, scale, bias, relu=relu, residual=res_mat,
                       down=down, head_w=head_w, out_dtype=out_dtype)
    return out.reshape(N, Ho, Wo, out.shape[1])


def maxpool_3x3_s2_p1(x):
    N, H, W, C = x.shape
    k, stride, pad = 3, 2, 1
    xp = jnp.pad(x, ((0, 0), (pad, pad), (pad, pad), (0, 0)),
                 constant_values=-jnp.inf)
    Ho = (H + 2 * pad - k) // stride + 1
    Wo = (W + 2 * pad - k) // stride + 1
    taps = []
    for i in range(k):
        for j in range(k):
            t = jax.lax.slice(
                xp, (0, i, j, 0),
                (N, i + (Ho - 1) * stride + 1, j + (Wo - 1) * stride + 1, C),
                (1, stride, stride, 1))
            taps.append(t.reshape(N * Ho, Wo * C))      # lane-dense 2-D view
    out = pl.pallas_call(
        _max9_kernel,
        out_shape=jax.ShapeDtypeStruct((N * Ho, Wo * C), x.dtype),
        in_specs=[_VMEM_SPEC] * len(taps),
        out_specs=_VMEM_SPEC,
    )(*taps)
    return out.reshape(N, Ho, Wo, C)


def _bilinear_corners(out_size, in_size):
    # PyTorch F.interpolate(mode='bilinear', align_corners=False) indices/weights.
    scale = in_size / out_size
    i = np.arange(out_size)
    src = np.maximum((i + 0.5) * scale - 0.5, 0.0)
    i0f = np.floor(src)
    lam = (src - i0f).astype(np.float32)
    i0 = np.minimum(i0f.astype(np.int32), in_size - 1)
    i1 = np.minimum(i0 + 1, in_size - 1)
    return i0, i1, lam


def _interp_matrix(out_size, in_size):
    i0, i1, lam = _bilinear_corners(out_size, in_size)
    m = np.zeros((out_size, in_size), np.float32)
    np.add.at(m, (np.arange(out_size), i0), 1.0 - lam)
    np.add.at(m, (np.arange(out_size), i1), lam)
    return m


def bilinear_resize(x, H_out, W_out):
    """(N, h, w, C) -> (N, H_out, W_out, C), align_corners=False.
    Done as out2d = Wh_big @ src2d @ Bw with compile-time interp matrices:
    one Pallas call, lane-dense (N*H_out, W_out*C) output, no corner gathers."""
    N, h, w, C = x.shape
    Wh = _interp_matrix(H_out, h)                       # (H_out, h)
    Ww = _interp_matrix(W_out, w)                       # (W_out, w)
    wh_big = np.kron(np.eye(N, dtype=np.float32), Wh)   # (N*H_out, N*h)
    bw = np.kron(Ww.T, np.eye(C, dtype=np.float32))     # (w*C, W_out*C)

    src2d = x.reshape(N * h, w * C).astype(jnp.float32)
    out2d = pl.pallas_call(
        _bilerp_mm_kernel,
        out_shape=jax.ShapeDtypeStruct((N * H_out, W_out * C), jnp.float32),
        in_specs=[_VMEM_SPEC] * 3,
        out_specs=_VMEM_SPEC,
    )(src2d, jnp.asarray(wh_big), jnp.asarray(bw))
    return out2d.reshape(N, H_out, W_out, C)


# ----------------------------------------------------------------------------
# Parameters (deterministic, synthetic) — tiny BasicBlock ResNet, blocks=(1,1,1,2)
# Weights flattened HWIO -> (K, Cout) bf16 once; BN folded to f32 (1,C) scale/bias.
# ----------------------------------------------------------------------------
def init_params(key, num_classes=NUM_CLASSES, decoder_dilation=6):
    keys = iter(jax.random.split(key, 256))

    def conv_w(cin, cout, k):
        fan = k * k * cin
        w = jax.random.normal(next(keys), (k, k, cin, cout), jnp.float32)
        w = (w / np.sqrt(fan)).reshape(k * k * cin, cout)
        return w.astype(jnp.bfloat16)

    def bn(c):
        gamma = 1.0 + 0.1 * jax.random.normal(next(keys), (c,), jnp.float32)
        beta = 0.1 * jax.random.normal(next(keys), (c,), jnp.float32)
        mean = 0.1 * jax.random.normal(next(keys), (c,), jnp.float32)
        var = 1.0 + 0.1 * jax.random.uniform(next(keys), (c,), jnp.float32)
        scale = gamma / jnp.sqrt(var + 1e-5)
        bias = beta - mean * scale
        return scale.reshape(1, c), bias.reshape(1, c)

    p = {}
    stem_c = 8
    p['stem'] = (conv_w(3, stem_c, 7), bn(stem_c))

    widths = (8, 16, 32, 64)
    blocks = (1, 1, 1, 2)
    strides = (1, 2, 2, 1)      # layer4: stride forced to 1 by _apply_dilation_2_stride_1
    dilations = (1, 1, 1, 2)    # layer4: 3x3 convs get dilation=2, padding=2

    layers = []
    cin = stem_c
    for planes, nblk, stride, dil in zip(widths, blocks, strides, dilations):
        layer = []
        for b in range(nblk):
            s = stride if b == 0 else 1
            need_down = (b == 0) and (stride != 1 or cin != planes)
            blk = {
                'stride': s,
                'dilation': dil,
                'conv1': (conv_w(cin, planes, 3), bn(planes)),
                'conv2': (conv_w(planes, planes, 3), bn(planes)),
                'down': (conv_w(cin, planes, 1), bn(planes)) if need_down else None,
                'down_stride': s,
            }
            layer.append(blk)
            cin = planes
        layers.append(layer)
    p['layers'] = layers

    num_features = cin  # == resnet.layer4[-1].conv1.in_channels
    p['dec1'] = (conv_w(num_features, 256, 3), bn(256))
    p['dec2'] = (conv_w(256, 256, 3), bn(256))
    p['dec3'] = conv_w(256, num_classes, 1)     # classifier, bias=False in spec
    p['decoder_dilation'] = decoder_dilation
    return p


# ----------------------------------------------------------------------------
# Forward pass (mirrors Model.forward)
# ----------------------------------------------------------------------------
def _basic_block(x, blk):
    dil = blk['dilation']
    w1, (s1, b1) = blk['conv1']
    y = conv_bn_act(x, w1, s1, b1, kh=3, kw=3, stride=blk['stride'],
                    dilation=dil, padding=dil, relu=True)
    w2, (s2, b2) = blk['conv2']
    if blk['down'] is not None:
        wd, (sd, bd) = blk['down']
        xd, _ = _im2col(x.astype(jnp.bfloat16), 1, 1, blk['down_stride'], 1, 0)
        return conv_bn_act(y, w2, s2, b2, kh=3, kw=3, stride=1,
                           dilation=dil, padding=dil, down=(xd, wd, sd, bd))
    return conv_bn_act(y, w2, s2, b2, kh=3, kw=3, stride=1,
                       dilation=dil, padding=dil, relu=True, residual=x)


def forward(params, x_nchw):
    x = jnp.transpose(x_nchw, (0, 2, 3, 1)).astype(jnp.float32)  # NCHW -> NHWC
    H_in, W_in = x.shape[1], x.shape[2]

    # stem: conv7x7/s2 + BN + ReLU, then maxpool 3x3/s2
    w, (s, b) = params['stem']
    x = conv_bn_act(x, w, s, b, kh=7, kw=7, stride=2, padding=3, relu=True)
    x = maxpool_3x3_s2_p1(x)

    # residual layers 1..4
    for layer in params['layers']:
        for blk in layer:
            x = _basic_block(x, blk)

    # decoder: conv3x3(dil) BN ReLU, [conv3x3(dil) BN ReLU + conv1x1] fused
    d = params['decoder_dilation']
    w, (s, b) = params['dec1']
    x = conv_bn_act(x, w, s, b, kh=3, kw=3, dilation=d, padding=d, relu=True)
    w, (s, b) = params['dec2']
    x = conv_bn_act(x, w, s, b, kh=3, kw=3, dilation=d, padding=d, relu=True,
                    head_w=params['dec3'], out_dtype=jnp.float32)

    # bilinear upsample to the input resolution (align_corners=False)
    x = bilinear_resize(x, H_in, W_in)
    return jnp.transpose(x, (0, 3, 1, 2))  # NHWC -> NCHW


# ----------------------------------------------------------------------------
if __name__ == "__main__":
    key = jax.random.PRNGKey(0)
    k_param, k_x = jax.random.split(key)
    params = init_params(k_param, num_classes=NUM_CLASSES, decoder_dilation=6)

    x = jax.random.normal(k_x, (2, 3, 64, 64), jnp.float32)  # NCHW, like PyTorch

    fwd = jax.jit(lambda inp: forward(params, inp))
    out = jax.block_until_ready(fwd(x))

    assert out.shape == (2, NUM_CLASSES, 64, 64), out.shape
    assert bool(jnp.all(jnp.isfinite(out)))
    print("KERNEL_OK")
</pallas_src>

<mosaic_0001>
module attributes {stable_mosaic.version = 11 : i64} {
  func.func @_mm_bn_kernel(%arg0: i32, %arg1: memref<1024x147xbf16, #tpu.memory_space<vmem>>, %arg2: memref<147x8xbf16, #tpu.memory_space<vmem>>, %arg3: memref<1x8xf32, #tpu.memory_space<vmem>>, %arg4: memref<1x8xf32, #tpu.memory_space<vmem>>, %arg5: memref<1024x8xbf16, #tpu.memory_space<vmem>>) attributes {dimension_semantics = [#tpu.dimension_semantics<parallel>], iteration_bounds = array<i64: 2>, scalar_prefetch = 0 : i64, scratch_operands = 0 : i64, tpu.core_type = #tpu.core_type<tc>, window_params = [{transform_indices = @transform_0, window_bounds = array<i64: 1024, 147>}, {pipeline_mode = #tpu.pipeline_mode<synchronous>, transform_indices = @transform_1, window_bounds = array<i64: 147, 8>}, {pipeline_mode = #tpu.pipeline_mode<synchronous>, transform_indices = @transform_2, window_bounds = array<i64: 1, 8>}, {pipeline_mode = #tpu.pipeline_mode<synchronous>, transform_indices = @transform_3, window_bounds = array<i64: 1, 8>}, {transform_indices = @transform_4, window_bounds = array<i64: 1024, 8>}]} {
    %c0 = arith.constant 0 : index
    %c0_0 = arith.constant 0 : index
    %0 = vector.load %arg1[%c0, %c0_0] : memref<1024x147xbf16, #tpu.memory_space<vmem>>, vector<1024x147xbf16>
    %c0_1 = arith.constant 0 : index
    %c0_2 = arith.constant 0 : index
    %1 = vector.load %arg2[%c0_1, %c0_2] : memref<147x8xbf16, #tpu.memory_space<vmem>>, vector<147x8xbf16>
    %cst = arith.constant dense<0.000000e+00> : vector<1024x8xf32>
    %2 = tpu.matmul %0, %1, %cst {dimension_numbers = #tpu.dot_dimension_numbers<[1], [0], [0], [1], [0, 0, 1, 1], [], []>} : vector<1024x147xbf16>, vector<147x8xbf16>, vector<1024x8xf32> -> vector<1024x8xf32>
    %c0_3 = arith.constant 0 : index
    %c0_4 = arith.constant 0 : index
    %3 = vector.load %arg3[%c0_3, %c0_4] : memref<1x8xf32, #tpu.memory_space<vmem>>, vector<1x8xf32>
    %4 = vector.broadcast %3 : vector<1x8xf32> to vector<1024x8xf32>
    %5 = arith.mulf %2, %4 : vector<1024x8xf32>
    %c0_5 = arith.constant 0 : index
    %c0_6 = arith.constant 0 : index
    %6 = vector.load %arg4[%c0_5, %c0_6] : memref<1x8xf32, #tpu.memory_space<vmem>>, vector<1x8xf32>
    %7 = vector.broadcast %6 : vector<1x8xf32> to vector<1024x8xf32>
    %8 = arith.addf %5, %7 : vector<1024x8xf32>
    %cst_7 = arith.constant 0.000000e+00 : f32
    %9 = vector.broadcast %cst_7 : f32 to vector<1024x8xf32>
    %10 = arith.maximumf %8, %9 : vector<1024x8xf32>
    %11 = arith.truncf %10 : vector<1024x8xf32> to vector<1024x8xbf16>
    %c0_8 = arith.constant 0 : index
    %c0_9 = arith.constant 0 : index
    %12 = vector.load %arg5[%c0_8, %c0_9] : memref<1024x8xbf16, #tpu.memory_space<vmem>>, vector<1024x8xbf16>
    tpu.vector_store %arg5[%c0_8, %c0_9], %11 {strides = array<i32>} : memref<1024x8xbf16, #tpu.memory_space<vmem>>, vector<1024x8xbf16>,
    return
  }
  func.func @transform_0(%arg0: i32) -> (i32, i32) {
    %c0_i32 = arith.constant 0 : i32
    %c0_i32_0 = arith.constant 0 : i32
    return %arg0, %c0_i32 : i32, i32
  }
  func.func @transform_1(%arg0: i32) -> (i32, i32) {
    %c0_i32 = arith.constant 0 : i32
    %c0_i32_0 = arith.constant 0 : i32
    %c0_i32_1 = arith.constant 0 : i32
    return %c0_i32, %c0_i32_0 : i32, i32
  }
  func.func @transform_2(%arg0: i32) -> (i32, i32) {
    %c0_i32 = arith.constant 0 : i32
    %c0_i32_0 = arith.constant 0 : i32
    %c0_i32_1 = arith.constant 0 : i32
    return %c0_i32, %c0_i32_0 : i32, i32
  }
  func.func @transform_3(%arg0: i32) -> (i32, i32) {
    %c0_i32 = arith.constant 0 : i32
    %c0_i32_0 = arith.constant 0 : i32
    %c0_i32_1 = arith.constant 0 : i32
    return %c0_i32, %c0_i32_0 : i32, i32
  }
  func.func @transform_4(%arg0: i32) -> (i32, i32) {
    %c0_i32 = arith.constant 0 : i32
    %c0_i32_0 = arith.constant 0 : i32
    return %arg0, %c0_i32 : i32, i32
  }
}

module attributes {stable_mosaic.version = 11 : i64} {
  func.func @_max9_kernel(%arg0: memref<32x128xbf16, #tpu.memory_space<vmem>>, %arg1: memref<32x128xbf16, #tpu.memory_space<vmem>>, %arg2: memref<32x128xbf16, #tpu.memory_space<vmem>>, %arg3: memref<32x128xbf16, #tpu.memory_space<vmem>>, %arg4: memref<32x128xbf16, #tpu.memory_space<vmem>>, %arg5: memref<32x128xbf16, #tpu.memory_space<vmem>>, %arg6: memref<32x128xbf16, #tpu.memory_space<vmem>>, %arg7: memref<32x128xbf16, #tpu.memory_space<vmem>>, %arg8: memref<32x128xbf16, #tpu.memory_space<vmem>>, %arg9: memref<32x128xbf16, #tpu.memory_space<vmem>>) attributes {dimension_semantics = [], scalar_prefetch = 0 : i64, scratch_operands = 0 : i64, tpu.core_type = #tpu.core_type<tc>} {
    %c0 = arith.constant 0 : index
    %c0_0 = arith.constant 0 : index
    %0 = vector.load %arg0[%c0, %c0_0] : memref<32x128xbf16, #tpu.memory_space<vmem>>, vector<32x128xbf16>
    %c0_1 = arith.constant 0 : index
    %c0_2 = arith.constant 0 : index
    %1 = vector.load %arg1[%c0_1, %c0_2] : memref<32x128xbf16, #tpu.memory_space<vmem>>, vector<32x128xbf16>
    %2 = arith.maximumf %0, %1 : vector<32x128xbf16>
    %c0_3 = arith.constant 0 : index
    %c0_4 = arith.constant 0 : index
    %3 = vector.load %arg2[%c0_3, %c0_4] : memref<32x128xbf16, #tpu.memory_space<vmem>>, vector<32x128xbf16>
    %4 = arith.maximumf %2, %3 : vector<32x128xbf16>
    %c0_5 = arith.constant 0 : index
    %c0_6 = arith.constant 0 : index
    %5 = vector.load %arg3[%c0_5, %c0_6] : memref<32x128xbf16, #tpu.memory_space<vmem>>, vector<32x128xbf16>
    %6 = arith.maximumf %4, %5 : vector<32x128xbf16>
    %c0_7 = arith.constant 0 : index
    %c0_8 = arith.constant 0 : index
    %7 = vector.load %arg4[%c0_7, %c0_8] : memref<32x128xbf16, #tpu.memory_space<vmem>>, vector<32x128xbf16>
    %8 = arith.maximumf %6, %7 : vector<32x128xbf16>
    %c0_9 = arith.constant 0 : index
    %c0_10 = arith.constant 0 : index
    %9 = vector.load %arg5[%c0_9, %c0_10] : memref<32x128xbf16, #tpu.memory_space<vmem>>, vector<32x128xbf16>
    %10 = arith.maximumf %8, %9 : vector<32x128xbf16>
    %c0_11 = arith.constant 0 : index
    %c0_12 = arith.constant 0 : index
    %11 = vector.load %arg6[%c0_11, %c0_12] : memref<32x128xbf16, #tpu.memory_space<vmem>>, vector<32x128xbf16>
    %12 = arith.maximumf %10, %11 : vector<32x128xbf16>
    %c0_13 = arith.constant 0 : index
    %c0_14 = arith.constant 0 : index
    %13 = vector.load %arg7[%c0_13, %c0_14] : memref<32x128xbf16, #tpu.memory_space<vmem>>, vector<32x128xbf16>
    %14 = arith.maximumf %12, %13 : vector<32x128xbf16>
    %c0_15 = arith.constant 0 : index
    %c0_16 = arith.constant 0 : index
    %15 = vector.load %arg8[%c0_15, %c0_16] : memref<32x128xbf16, #tpu.memory_space<vmem>>, vector<32x128xbf16>
    %16 = arith.maximumf %14, %15 : vector<32x128xbf16>
    %c0_17 = arith.constant 0 : index
    %c0_18 = arith.constant 0 : index
    %17 = vector.load %arg9[%c0_17, %c0_18] : memref<32x128xbf16, #tpu.memory_space<vmem>>, vector<32x128xbf16>
    tpu.vector_store %arg9[%c0_17, %c0_18], %16 {strides = array<i32>} : memref<32x128xbf16, #tpu.memory_space<vmem>>, vector<32x128xbf16>,
    return
  }
}

module attributes {stable_mosaic.version = 11 : i64} {
  func.func @_mm_bn_kernel(%arg0: i32, %arg1: memref<256x72xbf16, #tpu.memory_space<vmem>>, %arg2: memref<72x8xbf16, #tpu.memory_space<vmem>>, %arg3: memref<1x8xf32, #tpu.memory_space<vmem>>, %arg4: memref<1x8xf32, #tpu.memory_space<vmem>>, %arg5: memref<256x8xbf16, #tpu.memory_space<vmem>>) attributes {dimension_semantics = [#tpu.dimension_semantics<parallel>], iteration_bounds = array<i64: 2>, scalar_prefetch = 0 : i64, scratch_operands = 0 : i64, tpu.core_type = #tpu.core_type<tc>, window_params = [{transform_indices = @transform_0, window_bounds = array<i64: 256, 72>}, {pipeline_mode = #tpu.pipeline_mode<synchronous>, transform_indices = @transform_1, window_bounds = array<i64: 72, 8>}, {pipeline_mode = #tpu.pipeline_mode<synchronous>, transform_indices = @transform_2, window_bounds = array<i64: 1, 8>}, {pipeline_mode = #tpu.pipeline_mode<synchronous>, transform_indices = @transform_3, window_bounds = array<i64: 1, 8>}, {transform_indices = @transform_4, window_bounds = array<i64: 256, 8>}]} {
    %c0 = arith.constant 0 : index
    %c0_0 = arith.constant 0 : index
    %0 = vector.load %arg1[%c0, %c0_0] : memref<256x72xbf16, #tpu.memory_space<vmem>>, vector<256x72xbf16>
    %c0_1 = arith.constant 0 : index
    %c0_2 = arith.constant 0 : index
    %1 = vector.load %arg2[%c0_1, %c0_2] : memref<72x8xbf16, #tpu.memory_space<vmem>>, vector<72x8xbf16>
    %cst = arith.constant dense<0.000000e+00> : vector<256x8xf32>
    %2 = tpu.matmul %0, %1, %cst {dimension_numbers = #tpu.dot_dimension_numbers<[1], [0], [0], [1], [0, 0, 1, 1], [], []>} : vector<256x72xbf16>, vector<72x8xbf16>, vector<256x8xf32> -> vector<256x8xf32>
    %c0_3 = arith.constant 0 : index
    %c0_4 = arith.constant 0 : index
    %3 = vector.load %arg3[%c0_3, %c0_4] : memref<1x8xf32, #tpu.memory_space<vmem>>, vector<1x8xf32>
    %4 = vector.broadcast %3 : vector<1x8xf32> to vector<256x8xf32>
    %5 = arith.mulf %2, %4 : vector<256x8xf32>
    %c0_5 = arith.constant 0 : index
    %c0_6 = arith.constant 0 : index
    %6 = vector.load %arg4[%c0_5, %c0_6] : memref<1x8xf32, #tpu.memory_space<vmem>>, vector<1x8xf32>
    %7 = vector.broadcast %6 : vector<1x8xf32> to vector<256x8xf32>
    %8 = arith.addf %5, %7 : vector<256x8xf32>
    %cst_7 = arith.constant 0.000000e+00 : f32
    %9 = vector.broadcast %cst_7 : f32 to vector<256x8xf32>
    %10 = arith.maximumf %8, %9 : vector<256x8xf32>
    %11 = arith.truncf %10 : vector<256x8xf32> to vector<256x8xbf16>
    %c0_8 = arith.constant 0 : index
    %c0_9 = arith.constant 0 : index
    %12 = vector.load %arg5[%c0_8, %c0_9] : memref<256x8xbf16, #tpu.memory_space<vmem>>, vector<256x8xbf16>
    tpu.vector_store %arg5[%c0_8, %c0_9], %11 {strides = array<i32>} : memref<256x8xbf16, #tpu.memory_space<vmem>>, vector<256x8xbf16>,
    return
  }
  func.func @transform_0(%arg0: i32) -> (i32, i32) {
    %c0_i32 = arith.constant 0 : i32
    %c0_i32_0 = arith.constant 0 : i32
    return %arg0, %c0_i32 : i32, i32
  }
  func.func @transform_1(%arg0: i32) -> (i32, i32) {
    %c0_i32 = arith.constant 0 : i32
    %c0_i32_0 = arith.constant 0 : i32
    %c0_i32_1 = arith.constant 0 : i32
    return %c0_i32, %c0_i32_0 : i32, i32
  }
  func.func @transform_2(%arg0: i32) -> (i32, i32) {
    %c0_i32 = arith.constant 0 : i32
    %c0_i32_0 = arith.constant 0 : i32
    %c0_i32_1 = arith.constant 0 : i32
    return %c0_i32, %c0_i32_0 : i32, i32
  }
  func.func @transform_3(%arg0: i32) -> (i32, i32) {
    %c0_i32 = arith.constant 0 : i32
    %c0_i32_0 = arith.constant 0 : i32
    %c0_i32_1 = arith.constant 0 : i32
    return %c0_i32, %c0_i32_0 : i32, i32
  }
  func.func @transform_4(%arg0: i32) -> (i32, i32) {
    %c0_i32 = arith.constant 0 : i32
    %c0_i32_0 = arith.constant 0 : i32
    return %arg0, %c0_i32 : i32, i32
  }
}

module attributes {stable_mosaic.version = 11 : i64} {
  func.func @_mm_bn_res_kernel(%arg0: i32, %arg1: memref<256x72xbf16, #tpu.memory_space<vmem>>, %arg2: memref<72x8xbf16, #tpu.memory_space<vmem>>, %arg3: memref<1x8xf32, #tpu.memory_space<vmem>>, %arg4: memref<1x8xf32, #tpu.memory_space<vmem>>, %arg5: memref<256x8xbf16, #tpu.memory_space<vmem>>, %arg6: memref<256x8xbf16, #tpu.memory_space<vmem>>) attributes {dimension_semantics = [#tpu.dimension_semantics<parallel>], iteration_bounds = array<i64: 2>, scalar_prefetch = 0 : i64, scratch_operands = 0 : i64, tpu.core_type = #tpu.core_type<tc>, window_params = [{transform_indices = @transform_0, window_bounds = array<i64: 256, 72>}, {pipeline_mode = #tpu.pipeline_mode<synchronous>, transform_indices = @transform_1, window_bounds = array<i64: 72, 8>}, {pipeline_mode = #tpu.pipeline_mode<synchronous>, transform_indices = @transform_2, window_bounds = array<i64: 1, 8>}, {pipeline_mode = #tpu.pipeline_mode<synchronous>, transform_indices = @transform_3, window_bounds = array<i64: 1, 8>}, {transform_indices = @transform_4, window_bounds = array<i64: 256, 8>}, {transform_indices = @transform_5, window_bounds = array<i64: 256, 8>}]} {
    %c0 = arith.constant 0 : index
    %c0_0 = arith.constant 0 : index
    %0 = vector.load %arg1[%c0, %c0_0] : memref<256x72xbf16, #tpu.memory_space<vmem>>, vector<256x72xbf16>
    %c0_1 = arith.constant 0 : index
    %c0_2 = arith.constant 0 : index
    %1 = vector.load %arg2[%c0_1, %c0_2] : memref<72x8xbf16, #tpu.memory_space<vmem>>, vector<72x8xbf16>
    %cst = arith.constant dense<0.000000e+00> : vector<256x8xf32>
    %2 = tpu.matmul %0, %1, %cst {dimension_numbers = #tpu.dot_dimension_numbers<[1], [0], [0], [1], [0, 0, 1, 1], [], []>} : vector<256x72xbf16>, vector<72x8xbf16>, vector<256x8xf32> -> vector<256x8xf32>
    %c0_3 = arith.constant 0 : index
    %c0_4 = arith.constant 0 : index
    %3 = vector.load %arg3[%c0_3, %c0_4] : memref<1x8xf32, #tpu.memory_space<vmem>>, vector<1x8xf32>
    %4 = vector.broadcast %3 : vector<1x8xf32> to vector<256x8xf32>
    %5 = arith.mulf %2, %4 : vector<256x8xf32>
    %c0_5 = arith.constant 0 : index
    %c0_6 = arith.constant 0 : index
    %6 = vector.load %arg4[%c0_5, %c0_6] : memref<1x8xf32, #tpu.memory_space<vmem>>, vector<1x8xf32>
    %7 = vector.broadcast %6 : vector<1x8xf32> to vector<256x8xf32>
    %8 = arith.addf %5, %7 : vector<256x8xf32>
    %c0_7 = arith.constant 0 : index
    %c0_8 = arith.constant 0 : index
    %9 = vector.load %arg5[%c0_7, %c0_8] : memref<256x8xbf16, #tpu.memory_space<vmem>>, vector<256x8xbf16>
    %10 = arith.extf %9 : vector<256x8xbf16> to vector<256x8xf32>
    %11 = arith.addf %8, %10 : vector<256x8xf32>
    %cst_9 = arith.constant 0.000000e+00 : f32
    %12 = vector.broadcast %cst_9 : f32 to vector<256x8xf32>
    %13 = arith.maximumf %11, %12 : vector<256x8xf32>
    %14 = arith.truncf %13 : vector<256x8xf32> to vector<256x8xbf16>
    %c0_10 = arith.constant 0 : index
    %c0_11 = arith.constant 0 : index
    %15 = vector.load %arg6[%c0_10, %c0_11] : memref<256x8xbf16, #tpu.memory_space<vmem>>, vector<256x8xbf16>
    tpu.vector_store %arg6[%c0_10, %c0_11], %14 {strides = array<i32>} : memref<256x8xbf16, #tpu.memory_space<vmem>>, vector<256x8xbf16>,
    return
  }
  func.func @transform_0(%arg0: i32) -> (i32, i32) {
    %c0_i32 = arith.constant 0 : i32
    %c0_i32_0 = arith.constant 0 : i32
    return %arg0, %c0_i32 : i32, i32
  }
  func.func @transform_1(%arg0: i32) -> (i32, i32) {
    %c0_i32 = arith.constant 0 : i32
    %c0_i32_0 = arith.constant 0 : i32
    %c0_i32_1 = arith.constant 0 : i32
    return %c0_i32, %c0_i32_0 : i32, i32
  }
  func.func @transform_2(%arg0: i32) -> (i32, i32) {
    %c0_i32 = arith.constant 0 : i32
    %c0_i32_0 = arith.constant 0 : i32
    %c0_i32_1 = arith.constant 0 : i32
    return %c0_i32, %c0_i32_0 : i32, i32
  }
  func.func @transform_3(%arg0: i32) -> (i32, i32) {
    %c0_i32 = arith.constant 0 : i32
    %c0_i32_0 = arith.constant 0 : i32
    %c0_i32_1 = arith.constant 0 : i32
    return %c0_i32, %c0_i32_0 : i32, i32
  }
  func.func @transform_4(%arg0: i32) -> (i32, i32) {
    %c0_i32 = arith.constant 0 : i32
    %c0_i32_0 = arith.constant 0 : i32
    return %arg0, %c0_i32 : i32, i32
  }
  func.func @transform_5(%arg0: i32) -> (i32, i32) {
    %c0_i32 = arith.constant 0 : i32
    %c0_i32_0 = arith.constant 0 : i32
    return %arg0, %c0_i32 : i32, i32
  }
}

module attributes {stable_mosaic.version = 11 : i64} {
  func.func @_mm_bn_kernel(%arg0: i32, %arg1: memref<128x72xbf16, #tpu.memory_space<vmem>>, %arg2: memref<72x16xbf16, #tpu.memory_space<vmem>>, %arg3: memref<1x16xf32, #tpu.memory_space<vmem>>, %arg4: memref<1x16xf32, #tpu.memory_space<vmem>>, %arg5: memref<128x16xbf16, #tpu.memory_space<vmem>>) attributes {dimension_semantics = [#tpu.dimension_semantics<parallel>], iteration_bounds = array<i64: 1>, scalar_prefetch = 0 : i64, scratch_operands = 0 : i64, tpu.core_type = #tpu.core_type<tc>, window_params = [{transform_indices = @transform_0, window_bounds = array<i64: 128, 72>}, {pipeline_mode = #tpu.pipeline_mode<synchronous>, transform_indices = @transform_1, window_bounds = array<i64: 72, 16>}, {pipeline_mode = #tpu.pipeline_mode<synchronous>, transform_indices = @transform_2, window_bounds = array<i64: 1, 16>}, {pipeline_mode = #tpu.pipeline_mode<synchronous>, transform_indices = @transform_3, window_bounds = array<i64: 1, 16>}, {transform_indices = @transform_4, window_bounds = array<i64: 128, 16>}]} {
    %c0 = arith.constant 0 : index
    %c0_0 = arith.constant 0 : index
    %0 = vector.load %arg1[%c0, %c0_0] : memref<128x72xbf16, #tpu.memory_space<vmem>>, vector<128x72xbf16>
    %c0_1 = arith.constant 0 : index
    %c0_2 = arith.constant 0 : index
    %1 = vector.load %arg2[%c0_1, %c0_2] : memref<72x16xbf16, #tpu.memory_space<vmem>>, vector<72x16xbf16>
    %cst = arith.constant dense<0.000000e+00> : vector<128x16xf32>
    %2 = tpu.matmul %0, %1, %cst {dimension_numbers = #tpu.dot_dimension_numbers<[1], [0], [0], [1], [0, 0, 1, 1], [], []>} : vector<128x72xbf16>, vector<72x16xbf16>, vector<128x16xf32> -> vector<128x16xf32>
    %c0_3 = arith.constant 0 : index
    %c0_4 = arith.constant 0 : index
    %3 = vector.load %arg3[%c0_3, %c0_4] : memref<1x16xf32, #tpu.memory_space<vmem>>, vector<1x16xf32>
    %4 = vector.broadcast %3 : vector<1x16xf32> to vector<128x16xf32>
    %5 = arith.mulf %2, %4 : vector<128x16xf32>
    %c0_5 = arith.constant 0 : index
    %c0_6 = arith.constant 0 : index
    %6 = vector.load %arg4[%c0_5, %c0_6] : memref<1x16xf32, #tpu.memory_space<vmem>>, vector<1x16xf32>
    %7 = vector.broadcast %6 : vector<1x16xf32> to vector<128x16xf32>
    %8 = arith.addf %5, %7 : vector<128x16xf32>
    %cst_7 = arith.constant 0.000000e+00 : f32
    %9 = vector.broadcast %cst_7 : f32 to vector<128x16xf32>
    %10 = arith.maximumf %8, %9 : vector<128x16xf32>
    %11 = arith.truncf %10 : vector<128x16xf32> to vector<128x16xbf16>
    %c0_8 = arith.constant 0 : index
    %c0_9 = arith.constant 0 : index
    %12 = vector.load %arg5[%c0_8, %c0_9] : memref<128x16xbf16, #tpu.memory_space<vmem>>, vector<128x16xbf16>
    tpu.vector_store %arg5[%c0_8, %c0_9], %11 {strides = array<i32>} : memref<128x16xbf16, #tpu.memory_space<vmem>>, vector<128x16xbf16>,
    return
  }
  func.func @transform_0(%arg0: i32) -> (i32, i32) {
    %c0_i32 = arith.constant 0 : i32
    %c0_i32_0 = arith.constant 0 : i32
    return %arg0, %c0_i32 : i32, i32
  }
  func.func @transform_1(%arg0: i32) -> (i32, i32) {
    %c0_i32 = arith.constant 0 : i32
    %c0_i32_0 = arith.constant 0 : i32
    %c0_i32_1 = arith.constant 0 : i32
    return %c0_i32, %c0_i32_0 : i32, i32
  }
  func.func @transform_2(%arg0: i32) -> (i32, i32) {
    %c0_i32 = arith.constant 0 : i32
    %c0_i32_0 = arith.constant 0 : i32
    %c0_i32_1 = arith.constant 0 : i32
    return %c0_i32, %c0_i32_0 : i32, i32
  }
  func.func @transform_3(%arg0: i32) -> (i32, i32) {
    %c0_i32 = arith.constant 0 : i32
    %c0_i32_0 = arith.constant 0 : i32
    %c0_i32_1 = arith.constant 0 : i32
    return %c0_i32, %c0_i32_0 : i32, i32
  }
  func.func @transform_4(%arg0: i32) -> (i32, i32) {
    %c0_i32 = arith.constant 0 : i32
    %c0_i32_0 = arith.constant 0 : i32
    return %arg0, %c0_i32 : i32, i32
  }
}

module attributes {stable_mosaic.version = 11 : i64} {
  func.func @_mm_bn_down_res_kernel(%arg0: i32, %arg1: memref<128x144xbf16, #tpu.memory_space<vmem>>, %arg2: memref<144x16xbf16, #tpu.memory_space<vmem>>, %arg3: memref<1x16xf32, #tpu.memory_space<vmem>>, %arg4: memref<1x16xf32, #tpu.memory_space<vmem>>, %arg5: memref<128x8xbf16, #tpu.memory_space<vmem>>, %arg6: memref<8x16xbf16, #tpu.memory_space<vmem>>, %arg7: memref<1x16xf32, #tpu.memory_space<vmem>>, %arg8: memref<1x16xf32, #tpu.memory_space<vmem>>, %arg9: memref<128x16xbf16, #tpu.memory_space<vmem>>) attributes {dimension_semantics = [#tpu.dimension_semantics<parallel>], iteration_bounds = array<i64: 1>, scalar_prefetch = 0 : i64, scratch_operands = 0 : i64, tpu.core_type = #tpu.core_type<tc>, window_params = [{transform_indices = @transform_0, window_bounds = array<i64: 128, 144>}, {pipeline_mode = #tpu.pipeline_mode<synchronous>, transform_indices = @transform_1, window_bounds = array<i64: 144, 16>}, {pipeline_mode = #tpu.pipeline_mode<synchronous>, transform_indices = @transform_2, window_bounds = array<i64: 1, 16>}, {pipeline_mode = #tpu.pipeline_mode<synchronous>, transform_indices = @transform_3, window_bounds = array<i64: 1, 16>}, {transform_indices = @transform_4, window_bounds = array<i64: 128, 8>}, {pipeline_mode = #tpu.pipeline_mode<synchronous>, transform_indices = @transform_5, window_bounds = array<i64: 8, 16>}, {pipeline_mode = #tpu.pipeline_mode<synchronous>, transform_indices = @transform_6, window_bounds = array<i64: 1, 16>}, {pipeline_mode = #tpu.pipeline_mode<synchronous>, transform_indices = @transform_7, window_bounds = array<i64: 1, 16>}, {transform_indices = @transform_8, window_bounds = array<i64: 128, 16>}]} {
    %c0 = arith.constant 0 : index
    %c0_0 = arith.constant 0 : index
    %0 = vector.load %arg1[%c0, %c0_0] : memref<128x144xbf16, #tpu.memory_space<vmem>>, vector<128x144xbf16>
    %c0_1 = arith.constant 0 : index
    %c0_2 = arith.constant 0 : index
    %1 = vector.load %arg2[%c0_1, %c0_2] : memref<144x16xbf16, #tpu.memory_space<vmem>>, vector<144x16xbf16>
    %cst = arith.constant dense<0.000000e+00> : vector<128x16xf32>
    %2 = tpu.matmul %0, %1, %cst {dimension_numbers = #tpu.dot_dimension_numbers<[1], [0], [0], [1], [0, 0, 1, 1], [], []>} : vector<128x144xbf16>, vector<144x16xbf16>, vector<128x16xf32> -> vector<128x16xf32>
    %c0_3 = arith.constant 0 : index
    %c0_4 = arith.constant 0 : index
    %3 = vector.load %arg3[%c0_3, %c0_4] : memref<1x16xf32, #tpu.memory_space<vmem>>, vector<1x16xf32>
    %4 = vector.broadcast %3 : vector<1x16xf32> to vector<128x16xf32>
    %5 = arith.mulf %2, %4 : vector<128x16xf32>
    %c0_5 = arith.constant 0 : index
    %c0_6 = arith.constant 0 : index
    %6 = vector.load %arg4[%c0_5, %c0_6] : memref<1x16xf32, #tpu.memory_space<vmem>>, vector<1x16xf32>
    %7 = vector.broadcast %6 : vector<1x16xf32> to vector<128x16xf32>
    %8 = arith.addf %5, %7 : vector<128x16xf32>
    %c0_7 = arith.constant 0 : index
    %c0_8 = arith.constant 0 : index
    %9 = vector.load %arg5[%c0_7, %c0_8] : memref<128x8xbf16, #tpu.memory_space<vmem>>, vector<128x8xbf16>
    %c0_9 = arith.constant 0 : index
    %c0_10 = arith.constant 0 : index
    %10 = vector.load %arg6[%c0_9, %c0_10] : memref<8x16xbf16, #tpu.memory_space<vmem>>, vector<8x16xbf16>
    %cst_11 = arith.constant dense<0.000000e+00> : vector<128x16xf32>
    %11 = tpu.matmul %9, %10, %cst_11 {dimension_numbers = #tpu.dot_dimension_numbers<[1], [0], [0], [1], [0, 0, 1, 1], [], []>} : vector<128x8xbf16>, vector<8x16xbf16>, vector<128x16xf32> -> vector<128x16xf32>
    %c0_12 = arith.constant 0 : index
    %c0_13 = arith.constant 0 : index
    %12 = vector.load %arg7[%c0_12, %c0_13] : memref<1x16xf32, #tpu.memory_space<vmem>>, vector<1x16xf32>
    %13 = vector.broadcast %12 : vector<1x16xf32> to vector<128x16xf32>
    %14 = arith.mulf %11, %13 : vector<128x16xf32>
    %c0_14 = arith.constant 0 : index
    %c0_15 = arith.constant 0 : index
    %15 = vector.load %arg8[%c0_14, %c0_15] : memref<1x16xf32, #tpu.memory_space<vmem>>, vector<1x16xf32>
    %16 = vector.broadcast %15 : vector<1x16xf32> to vector<128x16xf32>
    %17 = arith.addf %14, %16 : vector<128x16xf32>
    %18 = arith.addf %8, %17 : vector<128x16xf32>
    %cst_16 = arith.constant 0.000000e+00 : f32
    %19 = vector.broadcast %cst_16 : f32 to vector<128x16xf32>
    %20 = arith.maximumf %18, %19 : vector<128x16xf32>
    %21 = arith.truncf %20 : vector<128x16xf32> to vector<128x16xbf16>
    %c0_17 = arith.constant 0 : index
    %c0_18 = arith.constant 0 : index
    %22 = vector.load %arg9[%c0_17, %c0_18] : memref<128x16xbf16, #tpu.memory_space<vmem>>, vector<128x16xbf16>
    tpu.vector_store %arg9[%c0_17, %c0_18], %21 {strides = array<i32>} : memref<128x16xbf16, #tpu.memory_space<vmem>>, vector<128x16xbf16>,
    return
  }
  func.func @transform_0(%arg0: i32) -> (i32, i32) {
    %c0_i32 = arith.constant 0 : i32
    %c0_i32_0 = arith.constant 0 : i32
    return %arg0, %c0_i32 : i32, i32
  }
  func.func @transform_1(%arg0: i32) -> (i32, i32) {
    %c0_i32 = arith.constant 0 : i32
    %c0_i32_0 = arith.constant 0 : i32
    %c0_i32_1 = arith.constant 0 : i32
    return %c0_i32, %c0_i32_0 : i32, i32
  }
  func.func @transform_2(%arg0: i32) -> (i32, i32) {
    %c0_i32 = arith.constant 0 : i32
    %c0_i32_0 = arith.constant 0 : i32
    %c0_i32_1 = arith.constant 0 : i32
    return %c0_i32, %c0_i32_0 : i32, i32
  }
  func.func @transform_3(%arg0: i32) -> (i32, i32) {
    %c0_i32 = arith.constant 0 : i32
    %c0_i32_0 = arith.constant 0 : i32
    %c0_i32_1 = arith.constant 0 : i32
    return %c0_i32, %c0_i32_0 : i32, i32
  }
  func.func @transform_4(%arg0: i32) -> (i32, i32) {
    %c0_i32 = arith.constant 0 : i32
    %c0_i32_0 = arith.constant 0 : i32
    return %arg0, %c0_i32 : i32, i32
  }
  func.func @transform_5(%arg0: i32) -> (i32, i32) {
    %c0_i32 = arith.constant 0 : i32
    %c0_i32_0 = arith.constant 0 : i32
    %c0_i32_1 = arith.constant 0 : i32
    return %c0_i32, %c0_i32_0 : i32, i32
  }
  func.func @transform_6(%arg0: i32) -> (i32, i32) {
    %c0_i32 = arith.constant 0 : i32
    %c0_i32_0 = arith.constant 0 : i32
    %c0_i32_1 = arith.constant 0 : i32
    return %c0_i32, %c0_i32_0 : i32, i32
  }
  func.func @transform_7(%arg0: i32) -> (i32, i32) {
    %c0_i32 = arith.constant 0 : i32
    %c0_i32_0 = arith.constant 0 : i32
    %c0_i32_1 = arith.constant 0 : i32
    return %c0_i32, %c0_i32_0 : i32, i32
  }
  func.func @transform_8(%arg0: i32) -> (i32, i32) {
    %c0_i32 = arith.constant 0 : i32
    %c0_i32_0 = arith.constant 0 : i32
    return %arg0, %c0_i32 : i32, i32
  }
}

module attributes {stable_mosaic.version = 11 : i64} {
  func.func @_mm_bn_kernel(%arg0: i32, %arg1: memref<32x144xbf16, #tpu.memory_space<vmem>>, %arg2: memref<144x32xbf16, #tpu.memory_space<vmem>>, %arg3: memref<1x32xf32, #tpu.memory_space<vmem>>, %arg4: memref<1x32xf32, #tpu.memory_space<vmem>>, %arg5: memref<32x32xbf16, #tpu.memory_space<vmem>>) attributes {dimension_semantics = [#tpu.dimension_semantics<parallel>], iteration_bounds = array<i64: 1>, scalar_prefetch = 0 : i64, scratch_operands = 0 : i64, tpu.core_type = #tpu.core_type<tc>, window_params = [{transform_indices = @transform_0, window_bounds = array<i64: 32, 144>}, {pipeline_mode = #tpu.pipeline_mode<synchronous>, transform_indices = @transform_1, window_bounds = array<i64: 144, 32>}, {pipeline_mode = #tpu.pipeline_mode<synchronous>, transform_indices = @transform_2, window_bounds = array<i64: 1, 32>}, {pipeline_mode = #tpu.pipeline_mode<synchronous>, transform_indices = @transform_3, window_bounds = array<i64: 1, 32>}, {transform_indices = @transform_4, window_bounds = array<i64: 32, 32>}]} {
    %c0 = arith.constant 0 : index
    %c0_0 = arith.constant 0 : index
    %0 = vector.load %arg1[%c0, %c0_0] : memref<32x144xbf16, #tpu.memory_space<vmem>>, vector<32x144xbf16>
    %c0_1 = arith.constant 0 : index
    %c0_2 = arith.constant 0 : index
    %1 = vector.load %arg2[%c0_1, %c0_2] : memref<144x32xbf16, #tpu.memory_space<vmem>>, vector<144x32xbf16>
    %cst = arith.constant dense<0.000000e+00> : vector<32x32xf32>
    %2 = tpu.matmul %0, %1, %cst {dimension_numbers = #tpu.dot_dimension_numbers<[1], [0], [0], [1], [0, 0, 1, 1], [], []>} : vector<32x144xbf16>, vector<144x32xbf16>, vector<32x32xf32> -> vector<32x32xf32>
    %c0_3 = arith.constant 0 : index
    %c0_4 = arith.constant 0 : index
    %3 = vector.load %arg3[%c0_3, %c0_4] : memref<1x32xf32, #tpu.memory_space<vmem>>, vector<1x32xf32>
    %4 = vector.broadcast %3 : vector<1x32xf32> to vector<32x32xf32>
    %5 = arith.mulf %2, %4 : vector<32x32xf32>
    %c0_5 = arith.constant 0 : index
    %c0_6 = arith.constant 0 : index
    %6 = vector.load %arg4[%c0_5, %c0_6] : memref<1x32xf32, #tpu.memory_space<vmem>>, vector<1x32xf32>
    %7 = vector.broadcast %6 : vector<1x32xf32> to vector<32x32xf32>
    %8 = arith.addf %5, %7 : vector<32x32xf32>
    %cst_7 = arith.constant 0.000000e+00 : f32
    %9 = vector.broadcast %cst_7 : f32 to vector<32x32xf32>
    %10 = arith.maximumf %8, %9 : vector<32x32xf32>
    %11 = arith.truncf %10 : vector<32x32xf32> to vector<32x32xbf16>
    %c0_8 = arith.constant 0 : index
    %c0_9 = arith.constant 0 : index
    %12 = vector.load %arg5[%c0_8, %c0_9] : memref<32x32xbf16, #tpu.memory_space<vmem>>, vector<32x32xbf16>
    tpu.vector_store %arg5[%c0_8, %c0_9], %11 {strides = array<i32>} : memref<32x32xbf16, #tpu.memory_space<vmem>>, vector<32x32xbf16>,
    return
  }
  func.func @transform_0(%arg0: i32) -> (i32, i32) {
    %c0_i32 = arith.constant 0 : i32
    %c0_i32_0 = arith.constant 0 : i32
    return %arg0, %c0_i32 : i32, i32
  }
  func.func @transform_1(%arg0: i32) -> (i32, i32) {
    %c0_i32 = arith.constant 0 : i32
    %c0_i32_0 = arith.constant 0 : i32
    %c0_i32_1 = arith.constant 0 : i32
    return %c0_i32, %c0_i32_0 : i32, i32
  }
  func.func @transform_2(%arg0: i32) -> (i32, i32) {
    %c0_i32 = arith.constant 0 : i32
    %c0_i32_0 = arith.constant 0 : i32
    %c0_i32_1 = arith.constant 0 : i32
    return %c0_i32, %c0_i32_0 : i32, i32
  }
  func.func @transform_3(%arg0: i32) -> (i32, i32) {
    %c0_i32 = arith.constant 0 : i32
    %c0_i32_0 = arith.constant 0 : i32
    %c0_i32_1 = arith.constant 0 : i32
    return %c0_i32, %c0_i32_0 : i32, i32
  }
  func.func @transform_4(%arg0: i32) -> (i32, i32) {
    %c0_i32 = arith.constant 0 : i32
    %c0_i32_0 = arith.constant 0 : i32
    return %arg0, %c0_i32 : i32, i32
  }
}

module attributes {stable_mosaic.version = 11 : i64} {
  func.func @_mm_bn_down_res_kernel(%arg0: i32, %arg1: memref<32x288xbf16, #tpu.memory_space<vmem>>, %arg2: memref<288x32xbf16, #tpu.memory_space<vmem>>, %arg3: memref<1x32xf32, #tpu.memory_space<vmem>>, %arg4: memref<1x32xf32, #tpu.memory_space<vmem>>, %arg5: memref<32x16xbf16, #tpu.memory_space<vmem>>, %arg6: memref<16x32xbf16, #tpu.memory_space<vmem>>, %arg7: memref<1x32xf32, #tpu.memory_space<vmem>>, %arg8: memref<1x32xf32, #tpu.memory_space<vmem>>, %arg9: memref<32x32xbf16, #tpu.memory_space<vmem>>) attributes {dimension_semantics = [#tpu.dimension_semantics<parallel>], iteration_bounds = array<i64: 1>, scalar_prefetch = 0 : i64, scratch_operands = 0 : i64, tpu.core_type = #tpu.core_type<tc>, window_params = [{transform_indices = @transform_0, window_bounds = array<i64: 32, 288>}, {pipeline_mode = #tpu.pipeline_mode<synchronous>, transform_indices = @transform_1, window_bounds = array<i64: 288, 32>}, {pipeline_mode = #tpu.pipeline_mode<synchronous>, transform_indices = @transform_2, window_bounds = array<i64: 1, 32>}, {pipeline_mode = #tpu.pipeline_mode<synchronous>, transform_indices = @transform_3, window_bounds = array<i64: 1, 32>}, {transform_indices = @transform_4, window_bounds = array<i64: 32, 16>}, {pipeline_mode = #tpu.pipeline_mode<synchronous>, transform_indices = @transform_5, window_bounds = array<i64: 16, 32>}, {pipeline_mode = #tpu.pipeline_mode<synchronous>, transform_indices = @transform_6, window_bounds = array<i64: 1, 32>}, {pipeline_mode = #tpu.pipeline_mode<synchronous>, transform_indices = @transform_7, window_bounds = array<i64: 1, 32>}, {transform_indices = @transform_8, window_bounds = array<i64: 32, 32>}]} {
    %c0 = arith.constant 0 : index
    %c0_0 = arith.constant 0 : index
    %0 = vector.load %arg1[%c0, %c0_0] : memref<32x288xbf16, #tpu.memory_space<vmem>>, vector<32x288xbf16>
    %c0_1 = arith.constant 0 : index
    %c0_2 = arith.constant 0 : index
    %1 = vector.load %arg2[%c0_1, %c0_2] : memref<288x32xbf16, #tpu.memory_space<vmem>>, vector<288x32xbf16>
    %cst = arith.constant dense<0.000000e+00> : vector<32x32xf32>
    %2 = tpu.matmul %0, %1, %cst {dimension_numbers = #tpu.dot_dimension_numbers<[1], [0], [0], [1], [0, 0, 1, 1], [], []>} : vector<32x288xbf16>, vector<288x32xbf16>, vector<32x32xf32> -> vector<32x32xf32>
    %c0_3 = arith.constant 0 : index
    %c0_4 = arith.constant 0 : index
    %3 = vector.load %arg3[%c0_3, %c0_4] : memref<1x32xf32, #tpu.memory_space<vmem>>, vector<1x32xf32>
    %4 = vector.broadcast %3 : vector<1x32xf32> to vector<32x32xf32>
    %5 = arith.mulf %2, %4 : vector<32x32xf32>
    %c0_5 = arith.constant 0 : index
    %c0_6 = arith.constant 0 : index
    %6 = vector.load %arg4[%c0_5, %c0_6] : memref<1x32xf32, #tpu.memory_space<vmem>>, vector<1x32xf32>
    %7 = vector.broadcast %6 : vector<1x32xf32> to vector<32x32xf32>
    %8 = arith.addf %5, %7 : vector<32x32xf32>
    %c0_7 = arith.constant 0 : index
    %c0_8 = arith.constant 0 : index
    %9 = vector.load %arg5[%c0_7, %c0_8] : memref<32x16xbf16, #tpu.memory_space<vmem>>, vector<32x16xbf16>
    %c0_9 = arith.constant 0 : index
    %c0_10 = arith.constant 0 : index
    %10 = vector.load %arg6[%c0_9, %c0_10] : memref<16x32xbf16, #tpu.memory_space<vmem>>, vector<16x32xbf16>
    %cst_11 = arith.constant dense<0.000000e+00> : vector<32x32xf32>
    %11 = tpu.matmul %9, %10, %cst_11 {dimension_numbers = #tpu.dot_dimension_numbers<[1], [0], [0], [1], [0, 0, 1, 1], [], []>} : vector<32x16xbf16>, vector<16x32xbf16>, vector<32x32xf32> -> vector<32x32xf32>
    %c0_12 = arith.constant 0 : index
    %c0_13 = arith.constant 0 : index
    %12 = vector.load %arg7[%c0_12, %c0_13] : memref<1x32xf32, #tpu.memory_space<vmem>>, vector<1x32xf32>
    %13 = vector.broadcast %12 : vector<1x32xf32> to vector<32x32xf32>
    %14 = arith.mulf %11, %13 : vector<32x32xf32>
    %c0_14 = arith.constant 0 : index
    %c0_15 = arith.constant 0 : index
    %15 = vector.load %arg8[%c0_14, %c0_15] : memref<1x32xf32, #tpu.memory_space<vmem>>, vector<1x32xf32>
    %16 = vector.broadcast %15 : vector<1x32xf32> to vector<32x32xf32>
    %17 = arith.addf %14, %16 : vector<32x32xf32>
    %18 = arith.addf %8, %17 : vector<32x32xf32>
    %cst_16 = arith.constant 0.000000e+00 : f32
    %19 = vector.broadcast %cst_16 : f32 to vector<32x32xf32>
    %20 = arith.maximumf %18, %19 : vector<32x32xf32>
    %21 = arith.truncf %20 : vector<32x32xf32> to vector<32x32xbf16>
    %c0_17 = arith.constant 0 : index
    %c0_18 = arith.constant 0 : index
    %22 = vector.load %arg9[%c0_17, %c0_18] : memref<32x32xbf16, #tpu.memory_space<vmem>>, vector<32x32xbf16>
    tpu.vector_store %arg9[%c0_17, %c0_18], %21 {strides = array<i32>} : memref<32x32xbf16, #tpu.memory_space<vmem>>, vector<32x32xbf16>,
    return
  }
  func.func @transform_0(%arg0: i32) -> (i32, i32) {
    %c0_i32 = arith.constant 0 : i32
    %c0_i32_0 = arith.constant 0 : i32
    return %arg0, %c0_i32 : i32, i32
  }
  func.func @transform_1(%arg0: i32) -> (i32, i32) {
    %c0_i32 = arith.constant 0 : i32
    %c0_i32_0 = arith.constant 0 : i32
    %c0_i32_1 = arith.constant 0 : i32
    return %c0_i32, %c0_i32_0 : i32, i32
  }
  func.func @transform_2(%arg0: i32) -> (i32, i32) {
    %c0_i32 = arith.constant 0 : i32
    %c0_i32_0 = arith.constant 0 : i32
    %c0_i32_1 = arith.constant 0 : i32
    return %c0_i32, %c0_i32_0 : i32, i32
  }
  func.func @transform_3(%arg0: i32) -> (i32, i32) {
    %c0_i32 = arith.constant 0 : i32
    %c0_i32_0 = arith.constant 0 : i32
    %c0_i32_1 = arith.constant 0 : i32
    return %c0_i32, %c0_i32_0 : i32, i32
  }
  func.func @transform_4(%arg0: i32) -> (i32, i32) {
    %c0_i32 = arith.constant 0 : i32
    %c0_i32_0 = arith.constant 0 : i32
    return %arg0, %c0_i32 : i32, i32
  }
  func.func @transform_5(%arg0: i32) -> (i32, i32) {
    %c0_i32 = arith.constant 0 : i32
    %c0_i32_0 = arith.constant 0 : i32
    %c0_i32_1 = arith.constant 0 : i32
    return %c0_i32, %c0_i32_0 : i32, i32
  }
  func.func @transform_6(%arg0: i32) -> (i32, i32) {
    %c0_i32 = arith.constant 0 : i32
    %c0_i32_0 = arith.constant 0 : i32
    %c0_i32_1 = arith.constant 0 : i32
    return %c0_i32, %c0_i32_0 : i32, i32
  }
  func.func @transform_7(%arg0: i32) -> (i32, i32) {
    %c0_i32 = arith.constant 0 : i32
    %c0_i32_0 = arith.constant 0 : i32
    %c0_i32_1 = arith.constant 0 : i32
    return %c0_i32, %c0_i32_0 : i32, i32
  }
  func.func @transform_8(%arg0: i32) -> (i32, i32) {
    %c0_i32 = arith.constant 0 : i32
    %c0_i32_0 = arith.constant 0 : i32
    return %arg0, %c0_i32 : i32, i32
  }
}

module attributes {stable_mosaic.version = 11 : i64} {
  func.func @_mm_bn_kernel(%arg0: i32, %arg1: memref<32x288xbf16, #tpu.memory_space<vmem>>, %arg2: memref<288x64xbf16, #tpu.memory_space<vmem>>, %arg3: memref<1x64xf32, #tpu.memory_space<vmem>>, %arg4: memref<1x64xf32, #tpu.memory_space<vmem>>, %arg5: memref<32x64xbf16, #tpu.memory_space<vmem>>) attributes {dimension_semantics = [#tpu.dimension_semantics<parallel>], iteration_bounds = array<i64: 1>, scalar_prefetch = 0 : i64, scratch_operands = 0 : i64, tpu.core_type = #tpu.core_type<tc>, window_params = [{transform_indices = @transform_0, window_bounds = array<i64: 32, 288>}, {pipeline_mode = #tpu.pipeline_mode<synchronous>, transform_indices = @transform_1, window_bounds = array<i64: 288, 64>}, {pipeline_mode = #tpu.pipeline_mode<synchronous>, transform_indices = @transform_2, window_bounds = array<i64: 1, 64>}, {pipeline_mode = #tpu.pipeline_mode<synchronous>, transform_indices = @transform_3, window_bounds = array<i64: 1, 64>}, {transform_indices = @transform_4, window_bounds = array<i64: 32, 64>}]} {
    %c0 = arith.constant 0 : index
    %c0_0 = arith.constant 0 : index
    %0 = vector.load %arg1[%c0, %c0_0] : memref<32x288xbf16, #tpu.memory_space<vmem>>, vector<32x288xbf16>
    %c0_1 = arith.constant 0 : index
    %c0_2 = arith.constant 0 : index
    %1 = vector.load %arg2[%c0_1, %c0_2] : memref<288x64xbf16, #tpu.memory_space<vmem>>, vector<288x64xbf16>
    %cst = arith.constant dense<0.000000e+00> : vector<32x64xf32>
    %2 = tpu.matmul %0, %1, %cst {dimension_numbers = #tpu.dot_dimension_numbers<[1], [0], [0], [1], [0, 0, 1, 1], [], []>} : vector<32x288xbf16>, vector<288x64xbf16>, vector<32x64xf32> -> vector<32x64xf32>
    %c0_3 = arith.constant 0 : index
    %c0_4 = arith.constant 0 : index
    %3 = vector.load %arg3[%c0_3, %c0_4] : memref<1x64xf32, #tpu.memory_space<vmem>>, vector<1x64xf32>
    %4 = vector.broadcast %3 : vector<1x64xf32> to vector<32x64xf32>
    %5 = arith.mulf %2, %4 : vector<32x64xf32>
    %c0_5 = arith.constant 0 : index
    %c0_6 = arith.constant 0 : index
    %6 = vector.load %arg4[%c0_5, %c0_6] : memref<1x64xf32, #tpu.memory_space<vmem>>, vector<1x64xf32>
    %7 = vector.broadcast %6 : vector<1x64xf32> to vector<32x64xf32>
    %8 = arith.addf %5, %7 : vector<32x64xf32>
    %cst_7 = arith.constant 0.000000e+00 : f32
    %9 = vector.broadcast %cst_7 : f32 to vector<32x64xf32>
    %10 = arith.maximumf %8, %9 : vector<32x64xf32>
    %11 = arith.truncf %10 : vector<32x64xf32> to vector<32x64xbf16>
    %c0_8 = arith.constant 0 : index
    %c0_9 = arith.constant 0 : index
    %12 = vector.load %arg5[%c0_8, %c0_9] : memref<32x64xbf16, #tpu.memory_space<vmem>>, vector<32x64xbf16>
    tpu.vector_store %arg5[%c0_8, %c0_9], %11 {strides = array<i32>} : memref<32x64xbf16, #tpu.memory_space<vmem>>, vector<32x64xbf16>,
    return
  }
  func.func @transform_0(%arg0: i32) -> (i32, i32) {
    %c0_i32 = arith.constant 0 : i32
    %c0_i32_0 = arith.constant 0 : i32
    return %arg0, %c0_i32 : i32, i32
  }
  func.func @transform_1(%arg0: i32) -> (i32, i32) {
    %c0_i32 = arith.constant 0 : i32
    %c0_i32_0 = arith.constant 0 : i32
    %c0_i32_1 = arith.constant 0 : i32
    return %c0_i32, %c0_i32_0 : i32, i32
  }
  func.func @transform_2(%arg0: i32) -> (i32, i32) {
    %c0_i32 = arith.constant 0 : i32
    %c0_i32_0 = arith.constant 0 : i32
    %c0_i32_1 = arith.constant 0 : i32
    return %c0_i32, %c0_i32_0 : i32, i32
  }
  func.func @transform_3(%arg0: i32) -> (i32, i32) {
    %c0_i32 = arith.constant 0 : i32
    %c0_i32_0 = arith.constant 0 : i32
    %c0_i32_1 = arith.constant 0 : i32
    return %c0_i32, %c0_i32_0 : i32, i32
  }
  func.func @transform_4(%arg0: i32) -> (i32, i32) {
    %c0_i32 = arith.constant 0 : i32
    %c0_i32_0 = arith.constant 0 : i32
    return %arg0, %c0_i32 : i32, i32
  }
}

module attributes {stable_mosaic.version = 11 : i64} {
  func.func @_mm_bn_down_res_kernel(%arg0: i32, %arg1: memref<32x576xbf16, #tpu.memory_space<vmem>>, %arg2: memref<576x64xbf16, #tpu.memory_space<vmem>>, %arg3: memref<1x64xf32, #tpu.memory_space<vmem>>, %arg4: memref<1x64xf32, #tpu.memory_space<vmem>>, %arg5: memref<32x32xbf16, #tpu.memory_space<vmem>>, %arg6: memref<32x64xbf16, #tpu.memory_space<vmem>>, %arg7: memref<1x64xf32, #tpu.memory_space<vmem>>, %arg8: memref<1x64xf32, #tpu.memory_space<vmem>>, %arg9: memref<32x64xbf16, #tpu.memory_space<vmem>>) attributes {dimension_semantics = [#tpu.dimension_semantics<parallel>], iteration_bounds = array<i64: 1>, scalar_prefetch = 0 : i64, scratch_operands = 0 : i64, tpu.core_type = #tpu.core_type<tc>, window_params = [{transform_indices = @transform_0, window_bounds = array<i64: 32, 576>}, {pipeline_mode = #tpu.pipeline_mode<synchronous>, transform_indices = @transform_1, window_bounds = array<i64: 576, 64>}, {pipeline_mode = #tpu.pipeline_mode<synchronous>, transform_indices = @transform_2, window_bounds = array<i64: 1, 64>}, {pipeline_mode = #tpu.pipeline_mode<synchronous>, transform_indices = @transform_3, window_bounds = array<i64: 1, 64>}, {transform_indices = @transform_4, window_bounds = array<i64: 32, 32>}, {pipeline_mode = #tpu.pipeline_mode<synchronous>, transform_indices = @transform_5, window_bounds = array<i64: 32, 64>}, {pipeline_mode = #tpu.pipeline_mode<synchronous>, transform_indices = @transform_6, window_bounds = array<i64: 1, 64>}, {pipeline_mode = #tpu.pipeline_mode<synchronous>, transform_indices = @transform_7, window_bounds = array<i64: 1, 64>}, {transform_indices = @transform_8, window_bounds = array<i64: 32, 64>}]} {
    %c0 = arith.constant 0 : index
    %c0_0 = arith.constant 0 : index
    %0 = vector.load %arg1[%c0, %c0_0] : memref<32x576xbf16, #tpu.memory_space<vmem>>, vector<32x576xbf16>
    %c0_1 = arith.constant 0 : index
    %c0_2 = arith.constant 0 : index
    %1 = vector.load %arg2[%c0_1, %c0_2] : memref<576x64xbf16, #tpu.memory_space<vmem>>, vector<576x64xbf16>
    %cst = arith.constant dense<0.000000e+00> : vector<32x64xf32>
    %2 = tpu.matmul %0, %1, %cst {dimension_numbers = #tpu.dot_dimension_numbers<[1], [0], [0], [1], [0, 0, 1, 1], [], []>} : vector<32x576xbf16>, vector<576x64xbf16>, vector<32x64xf32> -> vector<32x64xf32>
    %c0_3 = arith.constant 0 : index
    %c0_4 = arith.constant 0 : index
    %3 = vector.load %arg3[%c0_3, %c0_4] : memref<1x64xf32, #tpu.memory_space<vmem>>, vector<1x64xf32>
    %4 = vector.broadcast %3 : vector<1x64xf32> to vector<32x64xf32>
    %5 = arith.mulf %2, %4 : vector<32x64xf32>
    %c0_5 = arith.constant 0 : index
    %c0_6 = arith.constant 0 : index
    %6 = vector.load %arg4[%c0_5, %c0_6] : memref<1x64xf32, #tpu.memory_space<vmem>>, vector<1x64xf32>
    %7 = vector.broadcast %6 : vector<1x64xf32> to vector<32x64xf32>
    %8 = arith.addf %5, %7 : vector<32x64xf32>
    %c0_7 = arith.constant 0 : index
    %c0_8 = arith.constant 0 : index
    %9 = vector.load %arg5[%c0_7, %c0_8] : memref<32x32xbf16, #tpu.memory_space<vmem>>, vector<32x32xbf16>
    %c0_9 = arith.constant 0 : index
    %c0_10 = arith.constant 0 : index
    %10 = vector.load %arg6[%c0_9, %c0_10] : memref<32x64xbf16, #tpu.memory_space<vmem>>, vector<32x64xbf16>
    %cst_11 = arith.constant dense<0.000000e+00> : vector<32x64xf32>
    %11 = tpu.matmul %9, %10, %cst_11 {dimension_numbers = #tpu.dot_dimension_numbers<[1], [0], [0], [1], [0, 0, 1, 1], [], []>} : vector<32x32xbf16>, vector<32x64xbf16>, vector<32x64xf32> -> vector<32x64xf32>
    %c0_12 = arith.constant 0 : index
    %c0_13 = arith.constant 0 : index
    %12 = vector.load %arg7[%c0_12, %c0_13] : memref<1x64xf32, #tpu.memory_space<vmem>>, vector<1x64xf32>
    %13 = vector.broadcast %12 : vector<1x64xf32> to vector<32x64xf32>
    %14 = arith.mulf %11, %13 : vector<32x64xf32>
    %c0_14 = arith.constant 0 : index
    %c0_15 = arith.constant 0 : index
    %15 = vector.load %arg8[%c0_14, %c0_15] : memref<1x64xf32, #tpu.memory_space<vmem>>, vector<1x64xf32>
    %16 = vector.broadcast %15 : vector<1x64xf32> to vector<32x64xf32>
    %17 = arith.addf %14, %16 : vector<32x64xf32>
    %18 = arith.addf %8, %17 : vector<32x64xf32>
    %cst_16 = arith.constant 0.000000e+00 : f32
    %19 = vector.broadcast %cst_16 : f32 to vector<32x64xf32>
    %20 = arith.maximumf %18, %19 : vector<32x64xf32>
    %21 = arith.truncf %20 : vector<32x64xf32> to vector<32x64xbf16>
    %c0_17 = arith.constant 0 : index
    %c0_18 = arith.constant 0 : index
    %22 = vector.load %arg9[%c0_17, %c0_18] : memref<32x64xbf16, #tpu.memory_space<vmem>>, vector<32x64xbf16>
    tpu.vector_store %arg9[%c0_17, %c0_18], %21 {strides = array<i32>} : memref<32x64xbf16, #tpu.memory_space<vmem>>, vector<32x64xbf16>,
    return
  }
  func.func @transform_0(%arg0: i32) -> (i32, i32) {
    %c0_i32 = arith.constant 0 : i32
    %c0_i32_0 = arith.constant 0 : i32
    return %arg0, %c0_i32 : i32, i32
  }
  func.func @transform_1(%arg0: i32) -> (i32, i32) {
    %c0_i32 = arith.constant 0 : i32
    %c0_i32_0 = arith.constant 0 : i32
    %c0_i32_1 = arith.constant 0 : i32
    return %c0_i32, %c0_i32_0 : i32, i32
  }
  func.func @transform_2(%arg0: i32) -> (i32, i32) {
    %c0_i32 = arith.constant 0 : i32
    %c0_i32_0 = arith.constant 0 : i32
    %c0_i32_1 = arith.constant 0 : i32
    return %c0_i32, %c0_i32_0 : i32, i32
  }
  func.func @transform_3(%arg0: i32) -> (i32, i32) {
    %c0_i32 = arith.constant 0 : i32
    %c0_i32_0 = arith.constant 0 : i32
    %c0_i32_1 = arith.constant 0 : i32
    return %c0_i32, %c0_i32_0 : i32, i32
  }
  func.func @transform_4(%arg0: i32) -> (i32, i32) {
    %c0_i32 = arith.constant 0 : i32
    %c0_i32_0 = arith.constant 0 : i32
    return %arg0, %c0_i32 : i32, i32
  }
  func.func @transform_5(%arg0: i32) -> (i32, i32) {
    %c0_i32 = arith.constant 0 : i32
    %c0_i32_0 = arith.constant 0 : i32
    %c0_i32_1 = arith.constant 0 : i32
    return %c0_i32, %c0_i32_0 : i32, i32
  }
  func.func @transform_6(%arg0: i32) -> (i32, i32) {
    %c0_i32 = arith.constant 0 : i32
    %c0_i32_0 = arith.constant 0 : i32
    %c0_i32_1 = arith.constant 0 : i32
    return %c0_i32, %c0_i32_0 : i32, i32
  }
  func.func @transform_7(%arg0: i32) -> (i32, i32) {
    %c0_i32 = arith.constant 0 : i32
    %c0_i32_0 = arith.constant 0 : i32
    %c0_i32_1 = arith.constant 0 : i32
    return %c0_i32, %c0_i32_0 : i32, i32
  }
  func.func @transform_8(%arg0: i32) -> (i32, i32) {
    %c0_i32 = arith.constant 0 : i32
    %c0_i32_0 = arith.constant 0 : i32
    return %arg0, %c0_i32 : i32, i32
  }
}

module attributes {stable_mosaic.version = 11 : i64} {
  func.func @_mm_bn_kernel(%arg0: i32, %arg1: memref<32x576xbf16, #tpu.memory_space<vmem>>, %arg2: memref<576x64xbf16, #tpu.memory_space<vmem>>, %arg3: memref<1x64xf32, #tpu.memory_space<vmem>>, %arg4: memref<1x64xf32, #tpu.memory_space<vmem>>, %arg5: memref<32x64xbf16, #tpu.memory_space<vmem>>) attributes {dimension_semantics = [#tpu.dimension_semantics<parallel>], iteration_bounds = array<i64: 1>, scalar_prefetch = 0 : i64, scratch_operands = 0 : i64, tpu.core_type = #tpu.core_type<tc>, window_params = [{transform_indices = @transform_0, window_bounds = array<i64: 32, 576>}, {pipeline_mode = #tpu.pipeline_mode<synchronous>, transform_indices = @transform_1, window_bounds = array<i64: 576, 64>}, {pipeline_mode = #tpu.pipeline_mode<synchronous>, transform_indices = @transform_2, window_bounds = array<i64: 1, 64>}, {pipeline_mode = #tpu.pipeline_mode<synchronous>, transform_indices = @transform_3, window_bounds = array<i64: 1, 64>}, {transform_indices = @transform_4, window_bounds = array<i64: 32, 64>}]} {
    %c0 = arith.constant 0 : index
    %c0_0 = arith.constant 0 : index
    %0 = vector.load %arg1[%c0, %c0_0] : memref<32x576xbf16, #tpu.memory_space<vmem>>, vector<32x576xbf16>
    %c0_1 = arith.constant 0 : index
    %c0_2 = arith.constant 0 : index
    %1 = vector.load %arg2[%c0_1, %c0_2] : memref<576x64xbf16, #tpu.memory_space<vmem>>, vector<576x64xbf16>
    %cst = arith.constant dense<0.000000e+00> : vector<32x64xf32>
    %2 = tpu.matmul %0, %1, %cst {dimension_numbers = #tpu.dot_dimension_numbers<[1], [0], [0], [1], [0, 0, 1, 1], [], []>} : vector<32x576xbf16>, vector<576x64xbf16>, vector<32x64xf32> -> vector<32x64xf32>
    %c0_3 = arith.constant 0 : index
    %c0_4 = arith.constant 0 : index
    %3 = vector.load %arg3[%c0_3, %c0_4] : memref<1x64xf32, #tpu.memory_space<vmem>>, vector<1x64xf32>
    %4 = vector.broadcast %3 : vector<1x64xf32> to vector<32x64xf32>
    %5 = arith.mulf %2, %4 : vector<32x64xf32>
    %c0_5 = arith.constant 0 : index
    %c0_6 = arith.constant 0 : index
    %6 = vector.load %arg4[%c0_5, %c0_6] : memref<1x64xf32, #tpu.memory_space<vmem>>, vector<1x64xf32>
    %7 = vector.broadcast %6 : vector<1x64xf32> to vector<32x64xf32>
    %8 = arith.addf %5, %7 : vector<32x64xf32>
    %cst_7 = arith.constant 0.000000e+00 : f32
    %9 = vector.broadcast %cst_7 : f32 to vector<32x64xf32>
    %10 = arith.maximumf %8, %9 : vector<32x64xf32>
    %11 = arith.truncf %10 : vector<32x64xf32> to vector<32x64xbf16>
    %c0_8 = arith.constant 0 : index
    %c0_9 = arith.constant 0 : index
    %12 = vector.load %arg5[%c0_8, %c0_9] : memref<32x64xbf16, #tpu.memory_space<vmem>>, vector<32x64xbf16>
    tpu.vector_store %arg5[%c0_8, %c0_9], %11 {strides = array<i32>} : memref<32x64xbf16, #tpu.memory_space<vmem>>, vector<32x64xbf16>,
    return
  }
  func.func @transform_0(%arg0: i32) -> (i32, i32) {
    %c0_i32 = arith.constant 0 : i32
    %c0_i32_0 = arith.constant 0 : i32
    return %arg0, %c0_i32 : i32, i32
  }
  func.func @transform_1(%arg0: i32) -> (i32, i32) {
    %c0_i32 = arith.constant 0 : i32
    %c0_i32_0 = arith.constant 0 : i32
    %c0_i32_1 = arith.constant 0 : i32
    return %c0_i32, %c0_i32_0 : i32, i32
  }
  func.func @transform_2(%arg0: i32) -> (i32, i32) {
    %c0_i32 = arith.constant 0 : i32
    %c0_i32_0 = arith.constant 0 : i32
    %c0_i32_1 = arith.constant 0 : i32
    return %c0_i32, %c0_i32_0 : i32, i32
  }
  func.func @transform_3(%arg0: i32) -> (i32, i32) {
    %c0_i32 = arith.constant 0 : i32
    %c0_i32_0 = arith.constant 0 : i32
    %c0_i32_1 = arith.constant 0 : i32
    return %c0_i32, %c0_i32_0 : i32, i32
  }
  func.func @transform_4(%arg0: i32) -> (i32, i32) {
    %c0_i32 = arith.constant 0 : i32
    %c0_i32_0 = arith.constant 0 : i32
    return %arg0, %c0_i32 : i32, i32
  }
}

module attributes {stable_mosaic.version = 11 : i64} {
  func.func @_mm_bn_res_kernel(%arg0: i32, %arg1: memref<32x576xbf16, #tpu.memory_space<vmem>>, %arg2: memref<576x64xbf16, #tpu.memory_space<vmem>>, %arg3: memref<1x64xf32, #tpu.memory_space<vmem>>, %arg4: memref<1x64xf32, #tpu.memory_space<vmem>>, %arg5: memref<32x64xbf16, #tpu.memory_space<vmem>>, %arg6: memref<32x64xbf16, #tpu.memory_space<vmem>>) attributes {dimension_semantics = [#tpu.dimension_semantics<parallel>], iteration_bounds = array<i64: 1>, scalar_prefetch = 0 : i64, scratch_operands = 0 : i64, tpu.core_type = #tpu.core_type<tc>, window_params = [{transform_indices = @transform_0, window_bounds = array<i64: 32, 576>}, {pipeline_mode = #tpu.pipeline_mode<synchronous>, transform_indices = @transform_1, window_bounds = array<i64: 576, 64>}, {pipeline_mode = #tpu.pipeline_mode<synchronous>, transform_indices = @transform_2, window_bounds = array<i64: 1, 64>}, {pipeline_mode = #tpu.pipeline_mode<synchronous>, transform_indices = @transform_3, window_bounds = array<i64: 1, 64>}, {transform_indices = @transform_4, window_bounds = array<i64: 32, 64>}, {transform_indices = @transform_5, window_bounds = array<i64: 32, 64>}]} {
    %c0 = arith.constant 0 : index
    %c0_0 = arith.constant 0 : index
    %0 = vector.load %arg1[%c0, %c0_0] : memref<32x576xbf16, #tpu.memory_space<vmem>>, vector<32x576xbf16>
    %c0_1 = arith.constant 0 : index
    %c0_2 = arith.constant 0 : index
    %1 = vector.load %arg2[%c0_1, %c0_2] : memref<576x64xbf16, #tpu.memory_space<vmem>>, vector<576x64xbf16>
    %cst = arith.constant dense<0.000000e+00> : vector<32x64xf32>
    %2 = tpu.matmul %0, %1, %cst {dimension_numbers = #tpu.dot_dimension_numbers<[1], [0], [0], [1], [0, 0, 1, 1], [], []>} : vector<32x576xbf16>, vector<576x64xbf16>, vector<32x64xf32> -> vector<32x64xf32>
    %c0_3 = arith.constant 0 : index
    %c0_4 = arith.constant 0 : index
    %3 = vector.load %arg3[%c0_3, %c0_4] : memref<1x64xf32, #tpu.memory_space<vmem>>, vector<1x64xf32>
    %4 = vector.broadcast %3 : vector<1x64xf32> to vector<32x64xf32>
    %5 = arith.mulf %2, %4 : vector<32x64xf32>
    %c0_5 = arith.constant 0 : index
    %c0_6 = arith.constant 0 : index
    %6 = vector.load %arg4[%c0_5, %c0_6] : memref<1x64xf32, #tpu.memory_space<vmem>>, vector<1x64xf32>
    %7 = vector.broadcast %6 : vector<1x64xf32> to vector<32x64xf32>
    %8 = arith.addf %5, %7 : vector<32x64xf32>
    %c0_7 = arith.constant 0 : index
    %c0_8 = arith.constant 0 : index
    %9 = vector.load %arg5[%c0_7, %c0_8] : memref<32x64xbf16, #tpu.memory_space<vmem>>, vector<32x64xbf16>
    %10 = arith.extf %9 : vector<32x64xbf16> to vector<32x64xf32>
    %11 = arith.addf %8, %10 : vector<32x64xf32>
    %cst_9 = arith.constant 0.000000e+00 : f32
    %12 = vector.broadcast %cst_9 : f32 to vector<32x64xf32>
    %13 = arith.maximumf %11, %12 : vector<32x64xf32>
    %14 = arith.truncf %13 : vector<32x64xf32> to vector<32x64xbf16>
    %c0_10 = arith.constant 0 : index
    %c0_11 = arith.constant 0 : index
    %15 = vector.load %arg6[%c0_10, %c0_11] : memref<32x64xbf16, #tpu.memory_space<vmem>>, vector<32x64xbf16>
    tpu.vector_store %arg6[%c0_10, %c0_11], %14 {strides = array<i32>} : memref<32x64xbf16, #tpu.memory_space<vmem>>, vector<32x64xbf16>,
    return
  }
  func.func @transform_0(%arg0: i32) -> (i32, i32) {
    %c0_i32 = arith.constant 0 : i32
    %c0_i32_0 = arith.constant 0 : i32
    return %arg0, %c0_i32 : i32, i32
  }
  func.func @transform_1(%arg0: i32) -> (i32, i32) {
    %c0_i32 = arith.constant 0 : i32
    %c0_i32_0 = arith.constant 0 : i32
    %c0_i32_1 = arith.constant 0 : i32
    return %c0_i32, %c0_i32_0 : i32, i32
  }
  func.func @transform_2(%arg0: i32) -> (i32, i32) {
    %c0_i32 = arith.constant 0 : i32
    %c0_i32_0 = arith.constant 0 : i32
    %c0_i32_1 = arith.constant 0 : i32
    return %c0_i32, %c0_i32_0 : i32, i32
  }
  func.func @transform_3(%arg0: i32) -> (i32, i32) {
    %c0_i32 = arith.constant 0 : i32
    %c0_i32_0 = arith.constant 0 : i32
    %c0_i32_1 = arith.constant 0 : i32
    return %c0_i32, %c0_i32_0 : i32, i32
  }
  func.func @transform_4(%arg0: i32) -> (i32, i32) {
    %c0_i32 = arith.constant 0 : i32
    %c0_i32_0 = arith.constant 0 : i32
    return %arg0, %c0_i32 : i32, i32
  }
  func.func @transform_5(%arg0: i32) -> (i32, i32) {
    %c0_i32 = arith.constant 0 : i32
    %c0_i32_0 = arith.constant 0 : i32
    return %arg0, %c0_i32 : i32, i32
  }
}

module attributes {stable_mosaic.version = 11 : i64} {
  func.func @_mm_bn_kernel(%arg0: i32, %arg1: memref<32x576xbf16, #tpu.memory_space<vmem>>, %arg2: memref<576x256xbf16, #tpu.memory_space<vmem>>, %arg3: memref<1x256xf32, #tpu.memory_space<vmem>>, %arg4: memref<1x256xf32, #tpu.memory_space<vmem>>, %arg5: memref<32x256xbf16, #tpu.memory_space<vmem>>) attributes {dimension_semantics = [#tpu.dimension_semantics<parallel>], iteration_bounds = array<i64: 1>, scalar_prefetch = 0 : i64, scratch_operands = 0 : i64, tpu.core_type = #tpu.core_type<tc>, window_params = [{transform_indices = @transform_0, window_bounds = array<i64: 32, 576>}, {pipeline_mode = #tpu.pipeline_mode<synchronous>, transform_indices = @transform_1, window_bounds = array<i64: 576, 256>}, {pipeline_mode = #tpu.pipeline_mode<synchronous>, transform_indices = @transform_2, window_bounds = array<i64: 1, 256>}, {pipeline_mode = #tpu.pipeline_mode<synchronous>, transform_indices = @transform_3, window_bounds = array<i64: 1, 256>}, {transform_indices = @transform_4, window_bounds = array<i64: 32, 256>}]} {
    %c0 = arith.constant 0 : index
    %c0_0 = arith.constant 0 : index
    %0 = vector.load %arg1[%c0, %c0_0] : memref<32x576xbf16, #tpu.memory_space<vmem>>, vector<32x576xbf16>
    %c0_1 = arith.constant 0 : index
    %c0_2 = arith.constant 0 : index
    %1 = vector.load %arg2[%c0_1, %c0_2] : memref<576x256xbf16, #tpu.memory_space<vmem>>, vector<576x256xbf16>
    %cst = arith.constant dense<0.000000e+00> : vector<32x256xf32>
    %2 = tpu.matmul %0, %1, %cst {dimension_numbers = #tpu.dot_dimension_numbers<[1], [0], [0], [1], [0, 0, 1, 1], [], []>} : vector<32x576xbf16>, vector<576x256xbf16>, vector<32x256xf32> -> vector<32x256xf32>
    %c0_3 = arith.constant 0 : index
    %c0_4 = arith.constant 0 : index
    %3 = vector.load %arg3[%c0_3, %c0_4] : memref<1x256xf32, #tpu.memory_space<vmem>>, vector<1x256xf32>
    %4 = vector.broadcast %3 : vector<1x256xf32> to vector<32x256xf32>
    %5 = arith.mulf %2, %4 : vector<32x256xf32>
    %c0_5 = arith.constant 0 : index
    %c0_6 = arith.constant 0 : index
    %6 = vector.load %arg4[%c0_5, %c0_6] : memref<1x256xf32, #tpu.memory_space<vmem>>, vector<1x256xf32>
    %7 = vector.broadcast %6 : vector<1x256xf32> to vector<32x256xf32>
    %8 = arith.addf %5, %7 : vector<32x256xf32>
    %cst_7 = arith.constant 0.000000e+00 : f32
    %9 = vector.broadcast %cst_7 : f32 to vector<32x256xf32>
    %10 = arith.maximumf %8, %9 : vector<32x256xf32>
    %11 = arith.truncf %10 : vector<32x256xf32> to vector<32x256xbf16>
    %c0_8 = arith.constant 0 : index
    %c0_9 = arith.constant 0 : index
    %12 = vector.load %arg5[%c0_8, %c0_9] : memref<32x256xbf16, #tpu.memory_space<vmem>>, vector<32x256xbf16>
    tpu.vector_store %arg5[%c0_8, %c0_9], %11 {strides = array<i32>} : memref<32x256xbf16, #tpu.memory_space<vmem>>, vector<32x256xbf16>,
    return
  }
  func.func @transform_0(%arg0: i32) -> (i32, i32) {
    %c0_i32 = arith.constant 0 : i32
    %c0_i32_0 = arith.constant 0 : i32
    return %arg0, %c0_i32 : i32, i32
  }
  func.func @transform_1(%arg0: i32) -> (i32, i32) {
    %c0_i32 = arith.constant 0 : i32
    %c0_i32_0 = arith.constant 0 : i32
    %c0_i32_1 = arith.constant 0 : i32
    return %c0_i32, %c0_i32_0 : i32, i32
  }
  func.func @transform_2(%arg0: i32) -> (i32, i32) {
    %c0_i32 = arith.constant 0 : i32
    %c0_i32_0 = arith.constant 0 : i32
    %c0_i32_1 = arith.constant 0 : i32
    return %c0_i32, %c0_i32_0 : i32, i32
  }
  func.func @transform_3(%arg0: i32) -> (i32, i32) {
    %c0_i32 = arith.constant 0 : i32
    %c0_i32_0 = arith.constant 0 : i32
    %c0_i32_1 = arith.constant 0 : i32
    return %c0_i32, %c0_i32_0 : i32, i32
  }
  func.func @transform_4(%arg0: i32) -> (i32, i32) {
    %c0_i32 = arith.constant 0 : i32
    %c0_i32_0 = arith.constant 0 : i32
    return %arg0, %c0_i32 : i32, i32
  }
}

module attributes {stable_mosaic.version = 11 : i64} {
  func.func @_bilerp_mm_kernel(%arg0: memref<8x20xf32, #tpu.memory_space<vmem>>, %arg1: memref<128x8xf32, #tpu.memory_space<vmem>>, %arg2: memref<20x320xf32, #tpu.memory_space<vmem>>, %arg3: memref<128x320xf32, #tpu.memory_space<vmem>>) attributes {dimension_semantics = [], scalar_prefetch = 0 : i64, scratch_operands = 0 : i64, tpu.core_type = #tpu.core_type<tc>} {
    %c0 = arith.constant 0 : index
    %c0_0 = arith.constant 0 : index
    %0 = vector.load %arg1[%c0, %c0_0] : memref<128x8xf32, #tpu.memory_space<vmem>>, vector<128x8xf32>
    %c0_1 = arith.constant 0 : index
    %c0_2 = arith.constant 0 : index
    %1 = vector.load %arg0[%c0_1, %c0_2] : memref<8x20xf32, #tpu.memory_space<vmem>>, vector<8x20xf32>
    %cst = arith.constant dense<0.000000e+00> : vector<128x20xf32>
    %2 = tpu.matmul %0, %1, %cst {dimension_numbers = #tpu.dot_dimension_numbers<[1], [0], [0], [1], [0, 0, 1, 1], [], []>} : vector<128x8xf32>, vector<8x20xf32>, vector<128x20xf32> -> vector<128x20xf32>
    %c0_3 = arith.constant 0 : index
    %c0_4 = arith.constant 0 : index
    %3 = vector.load %arg2[%c0_3, %c0_4] : memref<20x320xf32, #tpu.memory_space<vmem>>, vector<20x320xf32>
    %cst_5 = arith.constant dense<0.000000e+00> : vector<128x320xf32>
    %4 = tpu.matmul %2, %3, %cst_5 {dimension_numbers = #tpu.dot_dimension_numbers<[1], [0], [0], [1], [0, 0, 1, 1], [], []>} : vector<128x20xf32>, vector<20x320xf32>, vector<128x320xf32> -> vector<128x320xf32>
    %c0_6 = arith.constant 0 : index
    %c0_7 = arith.constant 0 : index
    %5 = vector.load %arg3[%c0_6, %c0_7] : memref<128x320xf32, #tpu.memory_space<vmem>>, vector<128x320xf32>
    tpu.vector_store %arg3[%c0_6, %c0_7], %4 {strides = array<i32>} : memref<128x320xf32, #tpu.memory_space<vmem>>, vector<128x320xf32>,
    return
  }
}

module attributes {stable_mosaic.version = 11 : i64} {
  func.func @_mm_bn_head_kernel(%arg0: i32, %arg1: memref<32x2304xbf16, #tpu.memory_space<vmem>>, %arg2: memref<2304x256xbf16, #tpu.memory_space<vmem>>, %arg3: memref<1x256xf32, #tpu.memory_space<vmem>>, %arg4: memref<1x256xf32, #tpu.memory_space<vmem>>, %arg5: memref<256x5xbf16, #tpu.memory_space<vmem>>, %arg6: memref<32x5xf32, #tpu.memory_space<vmem>>) attributes {dimension_semantics = [#tpu.dimension_semantics<parallel>], iteration_bounds = array<i64: 1>, scalar_prefetch = 0 : i64, scratch_operands = 0 : i64, tpu.core_type = #tpu.core_type<tc>, window_params = [{transform_indices = @transform_0, window_bounds = array<i64: 32, 2304>}, {pipeline_mode = #tpu.pipeline_mode<synchronous>, transform_indices = @transform_1, window_bounds = array<i64: 2304, 256>}, {pipeline_mode = #tpu.pipeline_mode<synchronous>, transform_indices = @transform_2, window_bounds = array<i64: 1, 256>}, {pipeline_mode = #tpu.pipeline_mode<synchronous>, transform_indices = @transform_3, window_bounds = array<i64: 1, 256>}, {pipeline_mode = #tpu.pipeline_mode<synchronous>, transform_indices = @transform_4, window_bounds = array<i64: 256, 5>}, {transform_indices = @transform_5, window_bounds = array<i64: 32, 5>}]} {
    %c0 = arith.constant 0 : index
    %c0_0 = arith.constant 0 : index
    %0 = vector.load %arg1[%c0, %c0_0] : memref<32x2304xbf16, #tpu.memory_space<vmem>>, vector<32x2304xbf16>
    %c0_1 = arith.constant 0 : index
    %c0_2 = arith.constant 0 : index
    %1 = vector.load %arg2[%c0_1, %c0_2] : memref<2304x256xbf16, #tpu.memory_space<vmem>>, vector<2304x256xbf16>
    %cst = arith.constant dense<0.000000e+00> : vector<32x256xf32>
    %2 = tpu.matmul %0, %1, %cst {dimension_numbers = #tpu.dot_dimension_numbers<[1], [0], [0], [1], [0, 0, 1, 1], [], []>} : vector<32x2304xbf16>, vector<2304x256xbf16>, vector<32x256xf32> -> vector<32x256xf32>
    %c0_3 = arith.constant 0 : index
    %c0_4 = arith.constant 0 : index
    %3 = vector.load %arg3[%c0_3, %c0_4] : memref<1x256xf32, #tpu.memory_space<vmem>>, vector<1x256xf32>
    %4 = vector.broadcast %3 : vector<1x256xf32> to vector<32x256xf32>
    %5 = arith.mulf %2, %4 : vector<32x256xf32>
    %c0_5 = arith.constant 0 : index
    %c0_6 = arith.constant 0 : index
    %6 = vector.load %arg4[%c0_5, %c0_6] : memref<1x256xf32, #tpu.memory_space<vmem>>, vector<1x256xf32>
    %7 = vector.broadcast %6 : vector<1x256xf32> to vector<32x256xf32>
    %8 = arith.addf %5, %7 : vector<32x256xf32>
    %cst_7 = arith.constant 0.000000e+00 : f32
    %9 = vector.broadcast %cst_7 : f32 to vector<32x256xf32>
    %10 = arith.maximumf %8, %9 : vector<32x256xf32>
    %11 = arith.truncf %10 : vector<32x256xf32> to vector<32x256xbf16>
    %c0_8 = arith.constant 0 : index
    %c0_9 = arith.constant 0 : index
    %12 = vector.load %arg5[%c0_8, %c0_9] : memref<256x5xbf16, #tpu.memory_space<vmem>>, vector<256x5xbf16>
    %cst_10 = arith.constant dense<0.000000e+00> : vector<32x5xf32>
    %13 = tpu.matmul %11, %12, %cst_10 {dimension_numbers = #tpu.dot_dimension_numbers<[1], [0], [0], [1], [0, 0, 1, 1], [], []>} : vector<32x256xbf16>, vector<256x5xbf16>, vector<32x5xf32> -> vector<32x5xf32>
    %c0_11 = arith.constant 0 : index
    %c0_12 = arith.constant 0 : index
    %14 = vector.load %arg6[%c0_11, %c0_12] : memref<32x5xf32, #tpu.memory_space<vmem>>, vector<32x5xf32>
    tpu.vector_store %arg6[%c0_11, %c0_12], %13 {strides = array<i32>} : memref<32x5xf32, #tpu.memory_space<vmem>>, vector<32x5xf32>,
    return
  }
  func.func @transform_0(%arg0: i32) -> (i32, i32) {
    %c0_i32 = arith.constant 0 : i32
    %c0_i32_0 = arith.constant 0 : i32
    return %arg0, %c0_i32 : i32, i32
  }
  func.func @transform_1(%arg0: i32) -> (i32, i32) {
    %c0_i32 = arith.constant 0 : i32
    %c0_i32_0 = arith.constant 0 : i32
    %c0_i32_1 = arith.constant 0 : i32
    return %c0_i32, %c0_i32_0 : i32, i32
  }
  func.func @transform_2(%arg0: i32) -> (i32, i32) {
    %c0_i32 = arith.constant 0 : i32
    %c0_i32_0 = arith.constant 0 : i32
    %c0_i32_1 = arith.constant 0 : i32
    return %c0_i32, %c0_i32_0 : i32, i32
  }
  func.func @transform_3(%arg0: i32) -> (i32, i32) {
    %c0_i32 = arith.constant 0 : i32
    %c0_i32_0 = arith.constant 0 : i32
    %c0_i32_1 = arith.constant 0 : i32
    return %c0_i32, %c0_i32_0 : i32, i32
  }
  func.func @transform_4(%arg0: i32) -> (i32, i32) {
    %c0_i32 = arith.constant 0 : i32
    %c0_i32_0 = arith.constant 0 : i32
    %c0_i32_1 = arith.constant 0 : i32
    return %c0_i32, %c0_i32_0 : i32, i32
  }
  func.func @transform_5(%arg0: i32) -> (i32, i32) {
    %c0_i32 = arith.constant 0 : i32
    %c0_i32_0 = arith.constant 0 : i32
    return %arg0, %c0_i32 : i32, i32
  }
}

</mosaic_0001>

<bundles_post_ra>
// kernel: _lambda_.15
= control target key start
LH: loop header
LB: loop body
LE: loop exit
PB: predicated region body
PF: predicated region fallthrough
CT: control target
= control target key end

     0   :  { %s3551_s15 = smov 0   ;;  %s4346_s0 = inlined_call_operand.vmem [shape: bf16[2048,147], index: 0, kind: input, shape index: {}]   ;;  %s4347_s1 = inlined_call_operand.vmem [shape: bf16[147,8], index: 1, kind: input, shape index: {}]   ;;  %s4348_s2 = inlined_call_operand.vmem [shape: f32[1,8], index: 2, kind: input, shape index: {}]   ;;  %s4349_s3 = inlined_call_operand.vmem [shape: f32[1,8], index: 3, kind: input, shape index: {}]   ;;  %s4350_s4 = inlined_call_operand.vmem [shape: bf16[2048,8], index: 4, kind: output, shape index: {}]  }
   0x1 LB: > { %s2825_s16 = sadd.s32 4294967295, %s3522_s15   ;;  %p2829_p0 = scmp.ge.s32.totalorder %s3522_s15, 1  ;;  %s3522_s15 = sphi %s3551_s15, %s14_s15  }
   0x2   : > { %p164_p1 = scmp.lt.s32.totalorder %s3522_s15, 3 }
   0x4   : > { %p165_p2 = pnand %p2829_p0, %p164_p1 }
   0x5   : > { %s2830_s23 = sshll.u32 (!%p165_p2), %s2825_s16, 7 }
   0x6   : > { %168 = sbr.rel (%p165_p2) target bundleno = 506 (0x1fa), region = 36  ;;  %p192_p3 = scmp.lt.s32.totalorder (!%p165_p2), %s2830_s23, 255 }
   0xb   : > { %v3328_v0 = vld [vmem:[%s4347_s1 + $0x38] sm:$0xff]   ;;  %v3524_v1 = vmov 0   ;;  %v3329_v2 = vld [vmem:[%s4347_s1 + $0x30] sm:$0xff]   ;;  %v3330_v3 = vld [vmem:[%s4347_s1 + $0x28] sm:$0xff]   ;;  %s4352_s23 = smov (!%p192_p3, %s2830_s23), 255  ;;  %vm985_vm0 = vcmask 154624  }
   0xc   : > { %1185 = vmatprep.subr.bf16.mxu0 %v3524_v1  ;;  %3298 = vmatprep.subr.bf16.mxu1 %v3524_v1  ;;  %v3331_v4 = vld [vmem:[%s4347_s1 + $0x20] sm:$0xff]   ;;  %s3169_s26 = sshll.u32 %s4352_s23, 3  ;;  %v3332_v5 = vld [vmem:[%s4347_s1 + $0x18] sm:$0xff]   ;;  %v3333_v8 = vld [vmem:[%s4347_s1 + $0x10] sm:$0xff]   ;;  %vm1178_vm1 = vcmask 1040384   ;;  %vm1179_vm2 = vcmask 1041408  }
   0xd   : > { %1186 = vmatpush1.bf16.msra.mxu0 %v3328_v0  ;;  %3308 = vmatpush1.bf16.msra.mxu1 %v3328_v0  ;;  %s3577_s29 = scalar_lea.vmem %s4346_s0, %s3169_s26  ;;  %v3334_v9 = vld [vmem:[%s4347_s1 + $0x8] sm:$0xff]   ;;  %v3525_v10 = vmov 65535   ;;  %v3335_v12 = vld [vmem:[%s4347_s1] sm:$0xff]   ;;  %s2834_s21 = sshll.u32 %s4352_s23, 2  ;;  %vm2640_vm3 = vcmask 60416  }
   0xe   : > { %1187 = vmatprep.subr.bf16.mxu0 %v3524_v1  ;;  %3299 = vmatprep.subr.bf16.mxu1 %v3524_v1  ;;  %v3340_v6 = vld [vmem:[%s3577_s29 + $0x4] ss:$8 sps:$4 sm:$0xff]   ;;  %v1180_v11 = vsel %vm1178_vm1, 4294967295, %v3525_v10  ;;  %v3336_v13 = vld [vmem:[%s4347_s1 + $0x48] ss:$0 sps:$4 sm:$0x33]   ;;  %s3779_s23 = scalar_lea.vmem %s4350_s4, %s2834_s21 }
   0xf   : > { %v3343_v7 = vld [vmem:[%s3577_s29 + $0x204] ss:$8 sps:$4 sm:$0xff]   ;;  %2973 = vmatprep.mubr.msk.bf16.mxu0 %vm985_vm0, %v3340_v6  ;;  %v1181_v14 = vsel %vm1179_vm2, %v1180_v11, 0  ;;  %v3338_v17 = vld [vmem:[%s3577_s29] ss:$8 sps:$4 sm:$0xff]  }
  0x10   : > { %3005 = vmatprep.mubr.msk.bf16.mxu1 %vm985_vm0, %v3343_v7  ;;  %v1183_v15 = vand.u32 %v3336_v13, %v1181_v14  ;;  %v3337_v16 = vld [vmem:[%s4347_s1 + $0x40] sm:$0xff]   ;;  %v3344_v19 = vld [vmem:[%s3577_s29 + $0x14] ss:$8 sps:$4 sm:$0xff]   ;;  %v3348_v21 = vld [vmem:[%s3577_s29 + $0x10] ss:$8 sps:$4 sm:$0xff]  }
  0x11   : > { %1188 = vmatpush1.bf16.msra.mxu0 %v3329_v2  ;;  %3309 = vmatpush1.bf16.msra.mxu1 %v3329_v2  ;;  %v3341_v18 = vld [vmem:[%s3577_s29 + $0x200] ss:$8 sps:$4 sm:$0xff]   ;;  %v3346_v20 = vld [vmem:[%s3577_s29 + $0x214] ss:$8 sps:$4 sm:$0xff]   ;;  %v3349_v22 = vld [vmem:[%s3577_s29 + $0x210] ss:$8 sps:$4 sm:$0xff]  }
  0x12   : > { %1189 = vmatprep.subr.bf16.mxu0 %v3524_v1  ;;  %3300 = vmatprep.subr.bf16.mxu1 %v3524_v1  ;;  %v3350_v23 = vld [vmem:[%s3577_s29 + $0x24] ss:$8 sps:$4 sm:$0xff]   ;;  %v3354_v25 = vld [vmem:[%s3577_s29 + $0x20] ss:$8 sps:$4 sm:$0xff]   ;;  %v3356_v27 = vld [vmem:[%s3577_s29 + $0x34] ss:$8 sps:$4 sm:$0xff]  }
  0x13   : > { %v3352_v24 = vld [vmem:[%s3577_s29 + $0x224] ss:$8 sps:$4 sm:$0xff]   ;;  %v3355_v26 = vld [vmem:[%s3577_s29 + $0x220] ss:$8 sps:$4 sm:$0xff]   ;;  %v3358_v28 = vld [vmem:[%s3577_s29 + $0x234] ss:$8 sps:$4 sm:$0xff]  }
  0x14   : > { %v3360_v29 = vld [vmem:[%s3577_s29 + $0x30] ss:$8 sps:$4 sm:$0xff]   ;;  %v3362_v31 = vld [vmem:[%s3577_s29 + $0x44] ss:$8 sps:$4 sm:$0xff]   ;;  %v3366_v33 = vld [vmem:[%s3577_s29 + $0x40] ss:$8 sps:$4 sm:$0xff]  }
  0x15   : > { %1190 = vmatpush1.bf16.msra.mxu0 %v3330_v3  ;;  %3310 = vmatpush1.bf16.msra.mxu1 %v3330_v3  ;;  %v3361_v30 = vld [vmem:[%s3577_s29 + $0x230] ss:$8 sps:$4 sm:$0xff]   ;;  %v3364_v32 = vld [vmem:[%s3577_s29 + $0x244] ss:$8 sps:$4 sm:$0xff]   ;;  %v3367_v34 = vld [vmem:[%s3577_s29 + $0x240] ss:$8 sps:$4 sm:$0xff]  }
  0x16   : > { %1191 = vmatprep.subr.bf16.mxu0 %v3524_v1  ;;  %3301 = vmatprep.subr.bf16.mxu1 %v3524_v1  ;;  %v3368_v35 = vld [vmem:[%s3577_s29 + $0x54] ss:$8 sps:$4 sm:$0xff]   ;;  %v3372_v37 = vld [vmem:[%s3577_s29 + $0x50] ss:$8 sps:$4 sm:$0xff]   ;;  %v3374_v39 = vld [vmem:[%s3577_s29 + $0x64] ss:$8 sps:$4 sm:$0xff]  }
  0x17   : > { %v3370_v36 = vld [vmem:[%s3577_s29 + $0x254] ss:$8 sps:$4 sm:$0xff]   ;;  %v3373_v38 = vld [vmem:[%s3577_s29 + $0x250] ss:$8 sps:$4 sm:$0xff]   ;;  %v3376_v40 = vld [vmem:[%s3577_s29 + $0x264] ss:$8 sps:$4 sm:$0xff]  }
  0x18   : > { %v3378_v41 = vld [vmem:[%s3577_s29 + $0x60] ss:$8 sps:$4 sm:$0xff]   ;;  %v3380_v43 = vld [vmem:[%s3577_s29 + $0x74] ss:$8 sps:$4 sm:$0xff]   ;;  %v3384_v45 = vld [vmem:[%s3577_s29 + $0x70] ss:$8 sps:$4 sm:$0xff]  }
  0x19   : > { %1192 = vmatpush1.bf16.msra.mxu0 %v3331_v4  ;;  %3311 = vmatpush1.bf16.msra.mxu1 %v3331_v4  ;;  %v3379_v42 = vld [vmem:[%s3577_s29 + $0x260] ss:$8 sps:$4 sm:$0xff]   ;;  %v3382_v44 = vld [vmem:[%s3577_s29 + $0x274] ss:$8 sps:$4 sm:$0xff]   ;;  %v3385_v46 = vld [vmem:[%s3577_s29 + $0x270] ss:$8 sps:$4 sm:$0xff]  }
  0x1a   : > { %1193 = vmatprep.subr.bf16.mxu0 %v3524_v1  ;;  %3302 = vmatprep.subr.bf16.mxu1 %v3524_v1  ;;  %v3386_v47 = vld [vmem:[%s3577_s29 + $0x84] ss:$8 sps:$4 sm:$0xff]   ;;  %v3390_v49 = vld [vmem:[%s3577_s29 + $0x80] ss:$8 sps:$4 sm:$0xff]   ;;  %v3392_v51 = vld [vmem:[%s3577_s29 + $0x94] ss:$8 sps:$4 sm:$0xff]  }
  0x1b   : > { %v3388_v48 = vld [vmem:[%s3577_s29 + $0x284] ss:$8 sps:$4 sm:$0xff]   ;;  %v3391_v50 = vld [vmem:[%s3577_s29 + $0x280] ss:$8 sps:$4 sm:$0xff]   ;;  %v3394_v52 = vld [vmem:[%s3577_s29 + $0x294] ss:$8 sps:$4 sm:$0xff]  }
  0x1c   : > { %v3396_v53 = vld [vmem:[%s3577_s29 + $0x90] ss:$8 sps:$4 sm:$0xff]   ;;  %v3398_v55 = vld [vmem:[%s3577_s29 + $0xa4] ss:$8 sps:$4 sm:$0xff]   ;;  %v3402_v57 = vld [vmem:[%s3577_s29 + $0xa0] ss:$8 sps:$4 sm:$0xff]  }
  0x1d   : > { %1194 = vmatpush1.bf16.msra.mxu0 %v3332_v5  ;;  %3312 = vmatpush1.bf16.msra.mxu1 %v3332_v5  ;;  %v3397_v54 = vld [vmem:[%s3577_s29 + $0x290] ss:$8 sps:$4 sm:$0xff]   ;;  %v3400_v56 = vld [vmem:[%s3577_s29 + $0x2a4] ss:$8 sps:$4 sm:$0xff]   ;;  %v3403_v58 = vld [vmem:[%s3577_s29 + $0x2a0] ss:$8 sps:$4 sm:$0xff]  }
  0x1e   : > { %1195 = vmatprep.subr.bf16.mxu0 %v3524_v1  ;;  %3303 = vmatprep.subr.bf16.mxu1 %v3524_v1  ;;  %v3404_v59 = vld [vmem:[%s3577_s29 + $0xb4] ss:$8 sps:$4 sm:$0xff]   ;;  %v3408_v61 = vld [vmem:[%s3577_s29 + $0xb0] ss:$8 sps:$4 sm:$0xff]   ;;  %v3410_v63 = vld [vmem:[%s3577_s29 + $0xc4] ss:$8 sps:$4 sm:$0xff]  }
  0x1f   : > { %v3406_v60 = vld [vmem:[%s3577_s29 + $0x2b4] ss:$8 sps:$4 sm:$0xff]   ;;  %v3409_v62 = vld [vmem:[%s3577_s29 + $0x2b0] ss:$8 sps:$4 sm:$0xff]   ;;  %v3412_v0 = vld [vmem:[%s3577_s29 + $0x2c4] ss:$8 sps:$4 sm:$0xff]  }
  0x20   : > { %v3415_v2 = vld [vmem:[%s3577_s29 + $0x2c0] ss:$8 sps:$4 sm:$0xff]   ;;  %v3416_v3 = vld [vmem:[%s3577_s29 + $0xd4] ss:$8 sps:$4 sm:$0xff]   ;;  %v3420_v5 = vld [vmem:[%s3577_s29 + $0xd0] ss:$8 sps:$4 sm:$0xff]  }
  0x21   : > { %1196 = vmatpush1.bf16.msra.mxu0 %v3333_v8  ;;  %3313 = vmatpush1.bf16.msra.mxu1 %v3333_v8  ;;  %v3418_v4 = vld [vmem:[%s3577_s29 + $0x2d4] ss:$8 sps:$4 sm:$0xff]   ;;  %v3421_v6 = vld [vmem:[%s3577_s29 + $0x2d0] ss:$8 sps:$4 sm:$0xff]   ;;  %v3422_v7 = vld [vmem:[%s3577_s29 + $0xe4] ss:$8 sps:$4 sm:$0xff]  }
  0x22   : > { %1197 = vmatprep.subr.bf16.mxu0 %v3524_v1  ;;  %3304 = vmatprep.subr.bf16.mxu1 %v3524_v1  ;;  %v3424_v8 = vld [vmem:[%s3577_s29 + $0x2e4] ss:$8 sps:$4 sm:$0xff]   ;;  %v3427_v10 = vld [vmem:[%s3577_s29 + $0x2e0] ss:$8 sps:$4 sm:$0xff]   ;;  %v3428_v11 = vld [vmem:[%s3577_s29 + $0xf4] ss:$8 sps:$4 sm:$0xff]  }
  0x23   : > { %v3432_v13 = vld [vmem:[%s3577_s29 + $0xf0] ss:$8 sps:$4 sm:$0xff]  }
  0x24   : > { %v3433_v14 = vld [vmem:[%s3577_s29 + $0x2f0] ss:$8 sps:$4 sm:$0xff]  }
  0x25   : > { %1198 = vmatpush1.bf16.msra.mxu0 %v3334_v9  ;;  %3314 = vmatpush1.bf16.msra.mxu1 %v3334_v9  ;;  %v3426_v9 = vld [vmem:[%s3577_s29 + $0xe0] ss:$8 sps:$4 sm:$0xff]  }
  0x26   : > { %1199 = vmatprep.subr.bf16.mxu0 %v3524_v1  ;;  %3305 = vmatprep.subr.bf16.mxu1 %v3524_v1 }
  0x29   : > { %1200 = vmatpush1.bf16.msra.mxu0 %v3335_v12  ;;  %3315 = vmatpush1.bf16.msra.mxu1 %v3335_v12  ;;  %v3430_v12 = vld [vmem:[%s3577_s29 + $0x2f4] ss:$8 sps:$4 sm:$0xff]  }
  0x2a   : > { %1213 = vmatprep.subr.bf16.mxu0 %v3524_v1  ;;  %3306 = vmatprep.subr.bf16.mxu1 %v3524_v1 }
  0x2d   : > { %1214 = vmatpush2.bf16.msra.mxu0 %v1183_v15  ;;  %3316 = vmatpush2.bf16.msra.mxu1 %v1183_v15  ;;  %v3434_v15 = vld [vmem:[%s3577_s29 + $0x104] ss:$8 sps:$4 sm:$0xff]  }
  0x2e   : > { %1215 = vmatprep.subr.bf16.mxu0 %v3524_v1  ;;  %3307 = vmatprep.subr.bf16.mxu1 %v3524_v1  ;;  %v3414_v1 = vld [vmem:[%s3577_s29 + $0xc0] ss:$8 sps:$4 sm:$0xff]  }
  0x31   : > { %1216 = vmatpush2.bf16.msra.mxu0 %v3337_v16  ;;  %3317 = vmatpush2.bf16.msra.mxu1 %v3337_v16  ;;  %v3436_v16 = vld [vmem:[%s3577_s29 + $0x304] ss:$8 sps:$4 sm:$0xff]  }
  0x34   : > { %1218 = vmatmul.mubr.bf16.vlgmr.msra.gmra.mxu0 %v3338_v17  ;;  %1474 = vmatmul.mubr.bf16.vlgmr.msra.gmra.mxu1 %v3341_v18  ;;  %v3438_v17 = vld [vmem:[%s3577_s29 + $0x100] ss:$8 sps:$4 sm:$0xff]  }
  0x35   : > { %2974 = vmatprep.mubr.msk.bf16.mxu0 %vm985_vm0, %v3344_v19  ;;  %3006 = vmatprep.mubr.msk.bf16.mxu1 %vm985_vm0, %v3346_v20  ;;  %v3439_v18 = vld [vmem:[%s3577_s29 + $0x300] ss:$8 sps:$4 sm:$0xff]   ;;  %v3440_v19 = vld [vmem:[%s3577_s29 + $0x114] ss:$8 sps:$4 sm:$0xff]  }
  0x36   : > { %v3442_v20 = vld [vmem:[%s3577_s29 + $0x314] ss:$8 sps:$4 sm:$0xff]  }
  0x3c   : > { %1226 = vmatmul.mubr.bf16.gmra.mxu0 %v3348_v21  ;;  %1482 = vmatmul.mubr.bf16.gmra.mxu1 %v3349_v22  ;;  %v3444_v21 = vld [vmem:[%s3577_s29 + $0x110] ss:$8 sps:$4 sm:$0xff]  }
  0x3d   : > { %2975 = vmatprep.mubr.msk.bf16.mxu0 %vm985_vm0, %v3350_v23  ;;  %3007 = vmatprep.mubr.msk.bf16.mxu1 %vm985_vm0, %v3352_v24  ;;  %v3445_v22 = vld [vmem:[%s3577_s29 + $0x310] ss:$8 sps:$4 sm:$0xff]   ;;  %v3446_v23 = vld [vmem:[%s3577_s29 + $0x124] ss:$8 sps:$4 sm:$0xff]  }
  0x3e   : > { %v3448_v24 = vld [vmem:[%s3577_s29 + $0x324] ss:$8 sps:$4 sm:$0xff]  }
  0x44   : > { %1234 = vmatmul.mubr.bf16.gmra.mxu0 %v3354_v25  ;;  %1490 = vmatmul.mubr.bf16.gmra.mxu1 %v3355_v26  ;;  %v3450_v25 = vld [vmem:[%s3577_s29 + $0x120] ss:$8 sps:$4 sm:$0xff]  }
  0x45   : > { %2976 = vmatprep.mubr.msk.bf16.mxu0 %vm985_vm0, %v3356_v27  ;;  %3008 = vmatprep.mubr.msk.bf16.mxu1 %vm985_vm0, %v3358_v28  ;;  %v3451_v26 = vld [vmem:[%s3577_s29 + $0x320] ss:$8 sps:$4 sm:$0xff]   ;;  %v3452_v27 = vld [vmem:[%s3577_s29 + $0x134] ss:$8 sps:$4 sm:$0xff]  }
  0x46   : > { %v3454_v28 = vld [vmem:[%s3577_s29 + $0x334] ss:$8 sps:$4 sm:$0xff]  }
  0x4c   : > { %1242 = vmatmul.mubr.bf16.gmra.mxu0 %v3360_v29  ;;  %1498 = vmatmul.mubr.bf16.gmra.mxu1 %v3361_v30  ;;  %v3456_v29 = vld [vmem:[%s3577_s29 + $0x130] ss:$8 sps:$4 sm:$0xff]  }
  0x4d   : > { %2977 = vmatprep.mubr.msk.bf16.mxu0 %vm985_vm0, %v3362_v31  ;;  %3009 = vmatprep.mubr.msk.bf16.mxu1 %vm985_vm0, %v3364_v32  ;;  %v3457_v30 = vld [vmem:[%s3577_s29 + $0x330] ss:$8 sps:$4 sm:$0xff]   ;;  %v3458_v31 = vld [vmem:[%s3577_s29 + $0x144] ss:$8 sps:$4 sm:$0xff]  }
  0x4e   : > { %v3460_v32 = vld [vmem:[%s3577_s29 + $0x344] ss:$8 sps:$4 sm:$0xff]  }
  0x54   : > { %1250 = vmatmul.mubr.bf16.gmra.mxu0 %v3366_v33  ;;  %1506 = vmatmul.mubr.bf16.gmra.mxu1 %v3367_v34  ;;  %v3462_v33 = vld [vmem:[%s3577_s29 + $0x140] ss:$8 sps:$4 sm:$0xff]  }
  0x55   : > { %2978 = vmatprep.mubr.msk.bf16.mxu0 %vm985_vm0, %v3368_v35  ;;  %3010 = vmatprep.mubr.msk.bf16.mxu1 %vm985_vm0, %v3370_v36  ;;  %v3463_v34 = vld [vmem:[%s3577_s29 + $0x340] ss:$8 sps:$4 sm:$0xff]   ;;  %v3464_v35 = vld [vmem:[%s3577_s29 + $0x154] ss:$8 sps:$4 sm:$0xff]  }
  0x56   : > { %v3466_v36 = vld [vmem:[%s3577_s29 + $0x354] ss:$8 sps:$4 sm:$0xff]  }
  0x5c   : > { %1258 = vmatmul.mubr.bf16.gmra.mxu0 %v3372_v37  ;;  %1514 = vmatmul.mubr.bf16.gmra.mxu1 %v3373_v38  ;;  %v3468_v37 = vld [vmem:[%s3577_s29 + $0x150] ss:$8 sps:$4 sm:$0xff]  }
  0x5d   : > { %2979 = vmatprep.mubr.msk.bf16.mxu0 %vm985_vm0, %v3374_v39  ;;  %3011 = vmatprep.mubr.msk.bf16.mxu1 %vm985_vm0, %v3376_v40  ;;  %v3469_v38 = vld [vmem:[%s3577_s29 + $0x350] ss:$8 sps:$4 sm:$0xff]   ;;  %v3470_v39 = vld [vmem:[%s3577_s29 + $0x164] ss:$8 sps:$4 sm:$0xff]  }
  0x5e   : > { %v3472_v40 = vld [vmem:[%s3577_s29 + $0x364] ss:$8 sps:$4 sm:$0xff]  }
  0x64   : > { %1266 = vmatmul.mubr.bf16.gmra.mxu0 %v3378_v41  ;;  %1522 = vmatmul.mubr.bf16.gmra.mxu1 %v3379_v42  ;;  %v3474_v41 = vld [vmem:[%s3577_s29 + $0x160] ss:$8 sps:$4 sm:$0xff]  }
  0x65   : > { %2980 = vmatprep.mubr.msk.bf16.mxu0 %vm985_vm0, %v3380_v43  ;;  %3012 = vmatprep.mubr.msk.bf16.mxu1 %vm985_vm0, %v3382_v44  ;;  %v3475_v42 = vld [vmem:[%s3577_s29 + $0x360] ss:$8 sps:$4 sm:$0xff]   ;;  %v3476_v43 = vld [vmem:[%s3577_s29 + $0x174] ss:$8 sps:$4 sm:$0xff]  }
  0x66   : > { %v3478_v44 = vld [vmem:[%s3577_s29 + $0x374] ss:$8 sps:$4 sm:$0xff]  }
  0x6c   : > { %1274 = vmatmul.mubr.bf16.gmra.mxu0 %v3384_v45  ;;  %1530 = vmatmul.mubr.bf16.gmra.mxu1 %v3385_v46  ;;  %v3480_v45 = vld [vmem:[%s3577_s29 + $0x170] ss:$8 sps:$4 sm:$0xff]  }
  0x6d   : > { %2981 = vmatprep.mubr.msk.bf16.mxu0 %vm985_vm0, %v3386_v47  ;;  %3013 = vmatprep.mubr.msk.bf16.mxu1 %vm985_vm0, %v3388_v48  ;;  %v3481_v46 = vld [vmem:[%s3577_s29 + $0x370] ss:$8 sps:$4 sm:$0xff]   ;;  %v3482_v47 = vld [vmem:[%s3577_s29 + $0x184] ss:$8 sps:$4 sm:$0xff]  }
  0x6e   : > { %v3484_v48 = vld [vmem:[%s3577_s29 + $0x384] ss:$8 sps:$4 sm:$0xff]  }
  0x74   : > { %1282 = vmatmul.mubr.bf16.gmra.mxu0 %v3390_v49  ;;  %1538 = vmatmul.mubr.bf16.gmra.mxu1 %v3391_v50  ;;  %v253_v49 = vld [vmem:[%s3577_s29 + $0x180] sm:$0xff]  ;;  %v254_v50 = vld [vmem:[%s3577_s29 + $0x188] sm:$0xff] }
  0x75   : > { %2982 = vmatprep.mubr.msk.bf16.mxu0 %vm985_vm0, %v3392_v51  ;;  %3014 = vmatprep.mubr.msk.bf16.mxu1 %vm985_vm0, %v3394_v52  ;;  %v317_v51 = vld [vmem:[%s3577_s29 + $0x380] sm:$0xff]  ;;  %v318_v52 = vld [vmem:[%s3577_s29 + $0x388] sm:$0xff] }
  0x7c   : > { %1290 = vmatmul.mubr.bf16.gmra.mxu0 %v3396_v53  ;;  %1546 = vmatmul.mubr.bf16.gmra.mxu1 %v3397_v54  ;;  %v2883_v53 = vcombine.low %v253_v49, %v254_v50  ;;  %v2947_v54 = vcombine.low %v317_v51, %v318_v52 }
  0x7d   : > { %2983 = vmatprep.mubr.msk.bf16.mxu0 %vm985_vm0, %v3398_v55  ;;  %3015 = vmatprep.mubr.msk.bf16.mxu1 %vm985_vm0, %v3400_v56  ;;  %v3486_v55 = vld [vmem:[%s3577_s29 + $0x194] ss:$8 sps:$4 sm:$0xff]  }
  0x7e   : > { %v3488_v56 = vld [vmem:[%s3577_s29 + $0x394] ss:$8 sps:$4 sm:$0xff]  }
  0x84   : > { %1298 = vmatmul.mubr.bf16.gmra.mxu0 %v3402_v57  ;;  %1554 = vmatmul.mubr.bf16.gmra.mxu1 %v3403_v58  ;;  %v3754_v57 = vld [vmem:[%s4348_s2] ss:$0 sm:$0xff] }
  0x85   : > { %2984 = vmatprep.mubr.msk.bf16.mxu0 %vm985_vm0, %v3404_v59  ;;  %3016 = vmatprep.mubr.msk.bf16.mxu1 %vm985_vm0, %v3406_v60  ;;  %v3759_v59 = vld [vmem:[%s4349_s3] ss:$0 sm:$0xff] }
  0x8c   : > { %1306 = vmatmul.mubr.bf16.gmra.mxu0 %v3408_v61  ;;  %1562 = vmatmul.mubr.bf16.gmra.mxu1 %v3409_v62  ;;  %v255_v61 = vld [vmem:[%s3577_s29 + $0x190] sm:$0xff] }
  0x8d   : > { %2985 = vmatprep.mubr.msk.bf16.mxu0 %vm985_vm0, %v3410_v63  ;;  %3017 = vmatprep.mubr.msk.bf16.mxu1 %vm985_vm0, %v3412_v0  ;;  %v256_v0 = vld [vmem:[%s3577_s29 + $0x198] sm:$0xff] }
  0x94   : > { %1314 = vmatmul.mubr.bf16.gmra.mxu0 %v3414_v1  ;;  %1570 = vmatmul.mubr.bf16.gmra.mxu1 %v3415_v2  ;;  %v319_v1 = vld [vmem:[%s3577_s29 + $0x390] sm:$0xff]  ;;  %v320_v2 = vld [vmem:[%s3577_s29 + $0x398] sm:$0xff] }
  0x95   : > { %2986 = vmatprep.mubr.msk.bf16.mxu0 %vm985_vm0, %v3416_v3  ;;  %3018 = vmatprep.mubr.msk.bf16.mxu1 %vm985_vm0, %v3418_v4 }
  0x9c   : > { %1322 = vmatmul.mubr.bf16.gmra.mxu0 %v3420_v5  ;;  %1578 = vmatmul.mubr.bf16.gmra.mxu1 %v3421_v6 }
  0x9d   : > { %2987 = vmatprep.mubr.msk.bf16.mxu0 %vm985_vm0, %v3422_v7  ;;  %3019 = vmatprep.mubr.msk.bf16.mxu1 %vm985_vm0, %v3424_v8 }
  0xa4   : > { %1330 = vmatmul.mubr.bf16.gmra.mxu0 %v3426_v9  ;;  %1586 = vmatmul.mubr.bf16.gmra.mxu1 %v3427_v10  ;;  %v2885_v9 = vcombine.low %v255_v61, %v256_v0  ;;  %v2949_v10 = vcombine.low %v319_v1, %v320_v2  ;;  %v260_v0 = vld [vmem:[%s3577_s29 + $0x1b8] sm:$0xff]  ;;  %v323_v1 = vld [vmem:[%s3577_s29 + $0x3b0] sm:$0xff] }
  0xa5   : > { %2988 = vmatprep.mubr.msk.bf16.mxu0 %vm985_vm0, %v3428_v11  ;;  %3020 = vmatprep.mubr.msk.bf16.mxu1 %vm985_vm0, %v3430_v12  ;;  %v324_v2 = vld [vmem:[%s3577_s29 + $0x3b8] sm:$0xff] }
  0xac   : > { %1338 = vmatmul.mubr.bf16.gmra.mxu0 %v3432_v13  ;;  %1594 = vmatmul.mubr.bf16.gmra.mxu1 %v3433_v14 }
  0xad   : > { %2989 = vmatprep.mubr.msk.bf16.mxu0 %vm985_vm0, %v3434_v15  ;;  %3021 = vmatprep.mubr.msk.bf16.mxu1 %vm985_vm0, %v3436_v16  ;;  %v3490_v15 = vld [vmem:[%s3577_s29 + $0x1a4] ss:$8 sps:$4 sm:$0xff]  }
  0xae   : > { %v3492_v16 = vld [vmem:[%s3577_s29 + $0x3a4] ss:$8 sps:$4 sm:$0xff]  }
  0xb4   : > { %1346 = vmatmul.mubr.bf16.gmra.mxu0 %v3438_v17  ;;  %1602 = vmatmul.mubr.bf16.gmra.mxu1 %v3439_v18 }
  0xb5   : > { %2990 = vmatprep.mubr.msk.bf16.mxu0 %vm985_vm0, %v3440_v19  ;;  %3022 = vmatprep.mubr.msk.bf16.mxu1 %vm985_vm0, %v3442_v20 }
  0xbc   : > { %1354 = vmatmul.mubr.bf16.gmra.mxu0 %v3444_v21  ;;  %1610 = vmatmul.mubr.bf16.gmra.mxu1 %v3445_v22 }
  0xbd   : > { %2991 = vmatprep.mubr.msk.bf16.mxu0 %vm985_vm0, %v3446_v23  ;;  %3023 = vmatprep.mubr.msk.bf16.mxu1 %vm985_vm0, %v3448_v24 }
  0xc4   : > { %1362 = vmatmul.mubr.bf16.gmra.mxu0 %v3450_v25  ;;  %1618 = vmatmul.mubr.bf16.gmra.mxu1 %v3451_v26  ;;  %v257_v25 = vld [vmem:[%s3577_s29 + $0x1a0] sm:$0xff] }
  0xc5   : > { %2992 = vmatprep.mubr.msk.bf16.mxu0 %vm985_vm0, %v3452_v27  ;;  %3024 = vmatprep.mubr.msk.bf16.mxu1 %vm985_vm0, %v3454_v28 }
  0xcc   : > { %1370 = vmatmul.mubr.bf16.gmra.mxu0 %v3456_v29  ;;  %1626 = vmatmul.mubr.bf16.gmra.mxu1 %v3457_v30  ;;  %v258_v30 = vld [vmem:[%s3577_s29 + $0x1a8] sm:$0xff] }
  0xcd   : > { %2993 = vmatprep.mubr.msk.bf16.mxu0 %vm985_vm0, %v3458_v31  ;;  %3025 = vmatprep.mubr.msk.bf16.mxu1 %vm985_vm0, %v3460_v32  ;;  %v321_v31 = vld [vmem:[%s3577_s29 + $0x3a0] sm:$0xff]  ;;  %v322_v32 = vld [vmem:[%s3577_s29 + $0x3a8] sm:$0xff] }
  0xd4   : > { %1378 = vmatmul.mubr.bf16.gmra.mxu0 %v3462_v33  ;;  %1634 = vmatmul.mubr.bf16.gmra.mxu1 %v3463_v34 }
  0xd5   : > { %2994 = vmatprep.mubr.msk.bf16.mxu0 %vm985_vm0, %v3464_v35  ;;  %3026 = vmatprep.mubr.msk.bf16.mxu1 %vm985_vm0, %v3466_v36 }
  0xdc   : > { %1386 = vmatmul.mubr.bf16.gmra.mxu0 %v3468_v37  ;;  %1642 = vmatmul.mubr.bf16.gmra.mxu1 %v3469_v38 }
  0xdd   : > { %2995 = vmatprep.mubr.msk.bf16.mxu0 %vm985_vm0, %v3470_v39  ;;  %3027 = vmatprep.mubr.msk.bf16.mxu1 %vm985_vm0, %v3472_v40 }
  0xe4   : > { %1394 = vmatmul.mubr.bf16.gmra.mxu0 %v3474_v41  ;;  %1650 = vmatmul.mubr.bf16.gmra.mxu1 %v3475_v42  ;;  %v2887_v41 = vcombine.low %v257_v25, %v258_v30  ;;  %v2951_v42 = vcombine.low %v321_v31, %v322_v32  ;;  %v262_v32 = vld [vmem:[%s3577_s29 + $0x1c8] sm:$0xff] }
  0xe5   : > { %2996 = vmatprep.mubr.msk.bf16.mxu0 %vm985_vm0, %v3476_v43  ;;  %3028 = vmatprep.mubr.msk.bf16.mxu1 %vm985_vm0, %v3478_v44 }
  0xec   : > { %1402 = vmatmul.mubr.bf16.gmra.mxu0 %v3480_v45  ;;  %1658 = vmatmul.mubr.bf16.gmra.mxu1 %v3481_v46 }
  0xed   : > { %2997 = vmatprep.mubr.msk.bf16.mxu0 %vm985_vm0, %v3482_v47  ;;  %3029 = vmatprep.mubr.msk.bf16.mxu1 %vm985_vm0, %v3484_v48  ;;  %v3494_v47 = vld [vmem:[%s3577_s29 + $0x1b4] ss:$8 sps:$4 sm:$0xff]  }
  0xee   : > { %v3496_v48 = vld [vmem:[%s3577_s29 + $0x3b4] ss:$8 sps:$4 sm:$0xff]  }
  0xf4   : > { %v1219_v58 = vpop.f32.mrf.mxu0  ;;  %1410 = vmatmul.mubr.bf16.gmra.mxu0 %v2883_v53  ;;  %v1475_v60 = vpop.f32.mrf.mxu1  ;;  %1666 = vmatmul.mubr.bf16.gmra.mxu1 %v2947_v54 }
  0xf5   : > { %v1737_v62 = vmul.f32 %v3754_v57, %v1219_v58  ;;  %v1801_v63 = vmul.f32 %v3754_v57, %v1475_v60  ;;  %2998 = vmatprep.mubr.msk.bf16.mxu0 %vm985_vm0, %v3486_v55  ;;  %3030 = vmatprep.mubr.msk.bf16.mxu1 %vm985_vm0, %v3488_v56  ;;  %v259_v58 = vld [vmem:[%s3577_s29 + $0x1b0] sm:$0xff] }
  0xf6   : > { %v1221_v3 = vpop.f32.mrf.mxu0  ;;  %v1477_v4 = vpop.f32.mrf.mxu1 }
  0xf7   : > { %v1872_v5 = vadd.f32 %v3759_v59, %v1737_v62  ;;  %v1936_v6 = vadd.f32 %v3759_v59, %v1801_v63 }
  0xf8   : > { %v1222_v7 = vpop.f32.mrf.mxu0  ;;  %v1478_v8 = vpop.f32.mrf.mxu1 }
  0xf9   : > { %v2000_v11 = vmax.f32 %v1872_v5, 0.0  ;;  %v2064_v12 = vmax.f32 %v1936_v6, 0.0  ;;  %v1738_v13 = vmul.f32 %v3754_v57, %v1222_v7  ;;  %v1802_v14 = vmul.f32 %v3754_v57, %v1478_v8 }
  0xfa   : > { %v1224_v17 = vpop.f32.mrf.mxu0  ;;  %v1480_v18 = vpop.f32.mrf.mxu1 }
  0xfb   : > { %v3170_v19 = vpack.c.bf16 %v2000_v11, %v2000_v11  ;;  %v3234_v20 = vpack.c.bf16 %v2064_v12, %v2064_v12  ;;  %v1873_v21 = vadd.f32 %v3759_v59, %v1738_v13  ;;  %v1937_v22 = vadd.f32 %v3759_v59, %v1802_v14  ;;  %v3498_v17 = vld [vmem:[%s3577_s29 + $0x1c4] ss:$8 sps:$4 sm:$0xff]  }
  0xfc   : > { %v1227_v23 = vpop.f32.mrf.mxu0  ;;  %1418 = vmatmul.mubr.bf16.gmra.mxu0 %v2885_v9  ;;  %v1483_v24 = vpop.f32.mrf.mxu1  ;;  %1674 = vmatmul.mubr.bf16.gmra.mxu1 %v2949_v10  ;;  %v2889_v11 = vcombine.low %v259_v58, %v260_v0  ;;  %v2953_v12 = vcombine.low %v323_v1, %v324_v2  ;;  %v3500_v18 = vld [vmem:[%s3577_s29 + $0x3c4] ss:$8 sps:$4 sm:$0xff]   ;;  %v264_v2 = vld [vmem:[%s3577_s29 + $0x1d8] sm:$0xff] }
  0xfd   : > { %2641 = vst.msk [vmem:[%s3779_s23] sm:$0xf] %vm2640_vm3, %v3170_v19  ;;  %2705 = vst.msk [vmem:[%s3779_s23 + $0x100] sm:$0xf] %vm2640_vm3, %v3234_v20  ;;  %v2001_v26 = vmax.f32 %v1873_v21, 0.0  ;;  %v2065_v27 = vmax.f32 %v1937_v22, 0.0  ;;  %v1739_v28 = vmul.f32 %v3754_v57, %v1227_v23  ;;  %v1803_v29 = vmul.f32 %v3754_v57, %v1483_v24  ;;  %2999 = vmatprep.mubr.msk.bf16.mxu0 %vm985_vm0, %v3490_v15 }
  0xfe   : > { %3031 = vmatprep.mubr.msk.bf16.mxu1 %vm985_vm0, %v3492_v16  ;;  %v1229_v33 = vpop.f32.mrf.mxu0  ;;  %v1485_v34 = vpop.f32.mrf.mxu1 }
  0xff   : > { %v3171_v35 = vpack.c.bf16 %v2001_v26, %v2001_v26  ;;  %v3235_v36 = vpack.c.bf16 %v2065_v27, %v2065_v27  ;;  %v1874_v37 = vadd.f32 %v3759_v59, %v1739_v28  ;;  %v1938_v38 = vadd.f32 %v3759_v59, %v1803_v29  ;;  %v261_v27 = vld [vmem:[%s3577_s29 + $0x1c0] sm:$0xff]  ;;  %v326_v34 = vld [vmem:[%s3577_s29 + $0x3c8] sm:$0xff] }
 0x100   : > { %v1230_v39 = vpop.f32.mrf.mxu0  ;;  %v1486_v40 = vpop.f32.mrf.mxu1  ;;  %v325_v33 = vld [vmem:[%s3577_s29 + $0x3c0] sm:$0xff] }
 0x101   : > { %2642 = vst.msk [vmem:[%s3779_s23 + $0x4] sm:$0xf] %vm2640_vm3, %v3171_v35  ;;  %2706 = vst.msk [vmem:[%s3779_s23 + $0x104] sm:$0xf] %vm2640_vm3, %v3235_v36  ;;  %v2002_v43 = vmax.f32 %v1874_v37, 0.0  ;;  %v2066_v44 = vmax.f32 %v1938_v38, 0.0  ;;  %v1740_v45 = vmul.f32 %v3754_v57, %v1230_v39  ;;  %v1804_v46 = vmul.f32 %v3754_v57, %v1486_v40 }
 0x102   : > { %v1232_v49 = vpop.f32.mrf.mxu0  ;;  %v1488_v50 = vpop.f32.mrf.mxu1 }
 0x103   : > { %v3172_v51 = vpack.c.bf16 %v2002_v43, %v2002_v43  ;;  %v3236_v52 = vpack.c.bf16 %v2066_v44, %v2066_v44  ;;  %v1875_v53 = vadd.f32 %v3759_v59, %v1740_v45  ;;  %v1939_v54 = vadd.f32 %v3759_v59, %v1804_v46  ;;  %v3502_v49 = vld [vmem:[%s3577_s29 + $0x1d4] ss:$8 sps:$4 sm:$0xff]  }
 0x104   : > { %v1235_v55 = vpop.f32.mrf.mxu0  ;;  %1426 = vmatmul.mubr.bf16.gmra.mxu0 %v2887_v41  ;;  %v1491_v56 = vpop.f32.mrf.mxu1  ;;  %1682 = vmatmul.mubr.bf16.gmra.mxu1 %v2951_v42  ;;  %v2891_v43 = vcombine.low %v261_v27, %v262_v32  ;;  %v2955_v44 = vcombine.low %v325_v33, %v326_v34  ;;  %v3504_v50 = vld [vmem:[%s3577_s29 + $0x3d4] ss:$8 sps:$4 sm:$0xff]   ;;  %v266_v34 = vld [vmem:[%s3577_s29 + $0x1e8] sm:$0xff] }
 0x105   : > { %2643 = vst.msk [vmem:[%s3779_s23 + $0x8] sm:$0xf] %vm2640_vm3, %v3172_v51  ;;  %2707 = vst.msk [vmem:[%s3779_s23 + $0x108] sm:$0xf] %vm2640_vm3, %v3236_v52  ;;  %v2003_v60 = vmax.f32 %v1875_v53, 0.0  ;;  %v2067_v61 = vmax.f32 %v1939_v54, 0.0  ;;  %v1741_v62 = vmul.f32 %v3754_v57, %v1235_v55  ;;  %v1805_v63 = vmul.f32 %v3754_v57, %v1491_v56  ;;  %3000 = vmatprep.mubr.msk.bf16.mxu0 %vm985_vm0, %v3494_v47 }
 0x106   : > { %3032 = vmatprep.mubr.msk.bf16.mxu1 %vm985_vm0, %v3496_v48  ;;  %v1237_v3 = vpop.f32.mrf.mxu0  ;;  %v1493_v4 = vpop.f32.mrf.mxu1 }
 0x107   : > { %v3173_v5 = vpack.c.bf16 %v2003_v60, %v2003_v60  ;;  %v3237_v6 = vpack.c.bf16 %v2067_v61, %v2067_v61  ;;  %v1876_v7 = vadd.f32 %v3759_v59, %v1741_v62  ;;  %v1940_v8 = vadd.f32 %v3759_v59, %v1805_v63  ;;  %v263_v61 = vld [vmem:[%s3577_s29 + $0x1d0] sm:$0xff]  ;;  %v328_v4 = vld [vmem:[%s3577_s29 + $0x3d8] sm:$0xff] }
 0x108   : > { %v1238_v9 = vpop.f32.mrf.mxu0  ;;  %v1494_v10 = vpop.f32.mrf.mxu1  ;;  %v327_v3 = vld [vmem:[%s3577_s29 + $0x3d0] sm:$0xff] }
 0x109   : > { %2644 = vst.msk [vmem:[%s3779_s23 + $0xc] sm:$0xf] %vm2640_vm3, %v3173_v5  ;;  %2708 = vst.msk [vmem:[%s3779_s23 + $0x10c] sm:$0xf] %vm2640_vm3, %v3237_v6  ;;  %v2004_v13 = vmax.f32 %v1876_v7, 0.0  ;;  %v2068_v14 = vmax.f32 %v1940_v8, 0.0  ;;  %v1742_v15 = vmul.f32 %v3754_v57, %v1238_v9  ;;  %v1806_v16 = vmul.f32 %v3754_v57, %v1494_v10 }
 0x10a   : > { %v1240_v19 = vpop.f32.mrf.mxu0  ;;  %v1496_v20 = vpop.f32.mrf.mxu1 }
 0x10b   : > { %v3174_v21 = vpack.c.bf16 %v2004_v13, %v2004_v13  ;;  %v3238_v22 = vpack.c.bf16 %v2068_v14, %v2068_v14  ;;  %v1877_v23 = vadd.f32 %v3759_v59, %v1742_v15  ;;  %v1941_v24 = vadd.f32 %v3759_v59, %v1806_v16  ;;  %v3506_v19 = vld [vmem:[%s3577_s29 + $0x1e4] ss:$8 sps:$4 sm:$0xff]  }
 0x10c   : > { %v1243_v25 = vpop.f32.mrf.mxu0  ;;  %1434 = vmatmul.mubr.bf16.gmra.mxu0 %v2889_v11  ;;  %v1499_v26 = vpop.f32.mrf.mxu1  ;;  %1690 = vmatmul.mubr.bf16.gmra.mxu1 %v2953_v12  ;;  %v2893_v13 = vcombine.low %v263_v61, %v264_v2  ;;  %v2957_v14 = vcombine.low %v327_v3, %v328_v4  ;;  %v3508_v20 = vld [vmem:[%s3577_s29 + $0x3e4] ss:$8 sps:$4 sm:$0xff]   ;;  %v268_v4 = vld [vmem:[%s3577_s29 + $0x1f8] sm:$0xff] }
 0x10d   : > { %2645 = vst.msk [vmem:[%s3779_s23 + $0x10] sm:$0xf] %vm2640_vm3, %v3174_v21  ;;  %2709 = vst.msk [vmem:[%s3779_s23 + $0x110] sm:$0xf] %vm2640_vm3, %v3238_v22  ;;  %v2005_v28 = vmax.f32 %v1877_v23, 0.0  ;;  %v2069_v29 = vmax.f32 %v1941_v24, 0.0  ;;  %v1743_v30 = vmul.f32 %v3754_v57, %v1243_v25  ;;  %v1807_v31 = vmul.f32 %v3754_v57, %v1499_v26  ;;  %3001 = vmatprep.mubr.msk.bf16.mxu0 %vm985_vm0, %v3498_v17 }
 0x10e   : > { %3033 = vmatprep.mubr.msk.bf16.mxu1 %vm985_vm0, %v3500_v18  ;;  %v1245_v35 = vpop.f32.mrf.mxu0  ;;  %v1501_v36 = vpop.f32.mrf.mxu1 }
 0x10f   : > { %v3175_v37 = vpack.c.bf16 %v2005_v28, %v2005_v28  ;;  %v3239_v38 = vpack.c.bf16 %v2069_v29, %v2069_v29  ;;  %v1878_v39 = vadd.f32 %v3759_v59, %v1743_v30  ;;  %v1942_v40 = vadd.f32 %v3759_v59, %v1807_v31  ;;  %v265_v29 = vld [vmem:[%s3577_s29 + $0x1e0] sm:$0xff]  ;;  %v330_v36 = vld [vmem:[%s3577_s29 + $0x3e8] sm:$0xff] }
 0x110   : > { %v1246_v41 = vpop.f32.mrf.mxu0  ;;  %v1502_v42 = vpop.f32.mrf.mxu1  ;;  %v329_v35 = vld [vmem:[%s3577_s29 + $0x3e0] sm:$0xff] }
 0x111   : > { %2646 = vst.msk [vmem:[%s3779_s23 + $0x14] sm:$0xf] %vm2640_vm3, %v3175_v37  ;;  %2710 = vst.msk [vmem:[%s3779_s23 + $0x114] sm:$0xf] %vm2640_vm3, %v3239_v38  ;;  %v2006_v45 = vmax.f32 %v1878_v39, 0.0  ;;  %v2070_v46 = vmax.f32 %v1942_v40, 0.0  ;;  %v1744_v47 = vmul.f32 %v3754_v57, %v1246_v41  ;;  %v1808_v48 = vmul.f32 %v3754_v57, %v1502_v42 }
 0x112   : > { %v1248_v51 = vpop.f32.mrf.mxu0  ;;  %v1504_v52 = vpop.f32.mrf.mxu1 }
 0x113   : > { %v3176_v53 = vpack.c.bf16 %v2006_v45, %v2006_v45  ;;  %v3240_v54 = vpack.c.bf16 %v2070_v46, %v2070_v46  ;;  %v1879_v55 = vadd.f32 %v3759_v59, %v1744_v47  ;;  %v1943_v56 = vadd.f32 %v3759_v59, %v1808_v48  ;;  %v3510_v51 = vld [vmem:[%s3577_s29 + $0x1f4] ss:$8 sps:$4 sm:$0xff]  }
 0x114   : > { %v1251_v58 = vpop.f32.mrf.mxu0  ;;  %1442 = vmatmul.mubr.bf16.gmra.mxu0 %v2891_v43  ;;  %v1507_v60 = vpop.f32.mrf.mxu1  ;;  %1698 = vmatmul.mubr.bf16.gmra.mxu1 %v2955_v44  ;;  %v2895_v45 = vcombine.low %v265_v29, %v266_v34  ;;  %v2959_v46 = vcombine.low %v329_v35, %v330_v36  ;;  %v3512_v52 = vld [vmem:[%s3577_s29 + $0x3f4] ss:$8 sps:$4 sm:$0xff]  }
 0x115   : > { %2647 = vst.msk [vmem:[%s3779_s23 + $0x18] sm:$0xf] %vm2640_vm3, %v3176_v53  ;;  %2711 = vst.msk [vmem:[%s3779_s23 + $0x118] sm:$0xf] %vm2640_vm3, %v3240_v54  ;;  %v2007_v62 = vmax.f32 %v1879_v55, 0.0  ;;  %v2071_v63 = vmax.f32 %v1943_v56, 0.0  ;;  %v1745_v0 = vmul.f32 %v3754_v57, %v1251_v58  ;;  %v1809_v1 = vmul.f32 %v3754_v57, %v1507_v60  ;;  %3002 = vmatprep.mubr.msk.bf16.mxu0 %vm985_vm0, %v3502_v49 }
 0x116   : > { %3034 = vmatprep.mubr.msk.bf16.mxu1 %vm985_vm0, %v3504_v50  ;;  %v1253_v5 = vpop.f32.mrf.mxu0  ;;  %v1509_v6 = vpop.f32.mrf.mxu1 }
 0x117   : > { %v3177_v7 = vpack.c.bf16 %v2007_v62, %v2007_v62  ;;  %v3241_v8 = vpack.c.bf16 %v2071_v63, %v2071_v63  ;;  %v1880_v9 = vadd.f32 %v3759_v59, %v1745_v0  ;;  %v1944_v10 = vadd.f32 %v3759_v59, %v1809_v1  ;;  %v267_v63 = vld [vmem:[%s3577_s29 + $0x1f0] sm:$0xff]  ;;  %v332_v6 = vld [vmem:[%s3577_s29 + $0x3f8] sm:$0xff] }
 0x118   : > { %v1254_v11 = vpop.f32.mrf.mxu0  ;;  %v1510_v12 = vpop.f32.mrf.mxu1  ;;  %v331_v5 = vld [vmem:[%s3577_s29 + $0x3f0] sm:$0xff] }
 0x119   : > { %2648 = vst.msk [vmem:[%s3779_s23 + $0x1c] sm:$0xf] %vm2640_vm3, %v3177_v7  ;;  %2712 = vst.msk [vmem:[%s3779_s23 + $0x11c] sm:$0xf] %vm2640_vm3, %v3241_v8  ;;  %v2008_v15 = vmax.f32 %v1880_v9, 0.0  ;;  %v2072_v16 = vmax.f32 %v1944_v10, 0.0  ;;  %v1746_v17 = vmul.f32 %v3754_v57, %v1254_v11  ;;  %v1810_v18 = vmul.f32 %v3754_v57, %v1510_v12 }
 0x11a   : > { %v1256_v21 = vpop.f32.mrf.mxu0  ;;  %v1512_v22 = vpop.f32.mrf.mxu1 }
 0x11b   : > { %v3178_v23 = vpack.c.bf16 %v2008_v15, %v2008_v15  ;;  %v3242_v24 = vpack.c.bf16 %v2072_v16, %v2072_v16  ;;  %v1881_v25 = vadd.f32 %v3759_v59, %v1746_v17  ;;  %v1945_v26 = vadd.f32 %v3759_v59, %v1810_v18 }
 0x11c   : > { %v1259_v27 = vpop.f32.mrf.mxu0  ;;  %1450 = vmatmul.mubr.bf16.gmra.mxu0 %v2893_v13  ;;  %v1515_v28 = vpop.f32.mrf.mxu1  ;;  %1706 = vmatmul.mubr.bf16.gmra.mxu1 %v2957_v14  ;;  %v2897_v15 = vcombine.low %v267_v63, %v268_v4  ;;  %v2961_v16 = vcombine.low %v331_v5, %v332_v6 }
 0x11d   : > { %2649 = vst.msk [vmem:[%s3779_s23 + $0x20] sm:$0xf] %vm2640_vm3, %v3178_v23  ;;  %2713 = vst.msk [vmem:[%s3779_s23 + $0x120] sm:$0xf] %vm2640_vm3, %v3242_v24  ;;  %v2009_v30 = vmax.f32 %v1881_v25, 0.0  ;;  %v2073_v31 = vmax.f32 %v1945_v26, 0.0  ;;  %v1747_v32 = vmul.f32 %v3754_v57, %v1259_v27  ;;  %v1811_v33 = vmul.f32 %v3754_v57, %v1515_v28  ;;  %3003 = vmatprep.mubr.msk.bf16.mxu0 %vm985_vm0, %v3506_v19 }
 0x11e   : > { %3035 = vmatprep.mubr.msk.bf16.mxu1 %vm985_vm0, %v3508_v20  ;;  %v1261_v37 = vpop.f32.mrf.mxu0  ;;  %v1517_v38 = vpop.f32.mrf.mxu1 }
 0x11f   : > { %v3179_v39 = vpack.c.bf16 %v2009_v30, %v2009_v30  ;;  %v3243_v40 = vpack.c.bf16 %v2073_v31, %v2073_v31  ;;  %v1882_v41 = vadd.f32 %v3759_v59, %v1747_v32  ;;  %v1946_v42 = vadd.f32 %v3759_v59, %v1811_v33 }
 0x120   : > { %v1262_v43 = vpop.f32.mrf.mxu0  ;;  %v1518_v44 = vpop.f32.mrf.mxu1 }
 0x121   : > { %2650 = vst.msk [vmem:[%s3779_s23 + $0x24] sm:$0xf] %vm2640_vm3, %v3179_v39  ;;  %2714 = vst.msk [vmem:[%s3779_s23 + $0x124] sm:$0xf] %vm2640_vm3, %v3243_v40  ;;  %v2010_v47 = vmax.f32 %v1882_v41, 0.0  ;;  %v2074_v48 = vmax.f32 %v1946_v42, 0.0  ;;  %v1748_v49 = vmul.f32 %v3754_v57, %v1262_v43  ;;  %v1812_v50 = vmul.f32 %v3754_v57, %v1518_v44 }
 0x122   : > { %v1264_v53 = vpop.f32.mrf.mxu0  ;;  %v1520_v54 = vpop.f32.mrf.mxu1 }
 0x123   : > { %v3180_v55 = vpack.c.bf16 %v2010_v47, %v2010_v47  ;;  %v3244_v56 = vpack.c.bf16 %v2074_v48, %v2074_v48  ;;  %v1883_v58 = vadd.f32 %v3759_v59, %v1748_v49  ;;  %v1947_v60 = vadd.f32 %v3759_v59, %v1812_v50 }
 0x124   : > { %v1267_v61 = vpop.f32.mrf.mxu0  ;;  %1458 = vmatmul.mubr.bf16.gmra.mxu0 %v2895_v45  ;;  %v1523_v62 = vpop.f32.mrf.mxu1  ;;  %1714 = vmatmul.mubr.bf16.gmra.mxu1 %v2959_v46 }
 0x125   : > { %2651 = vst.msk [vmem:[%s3779_s23 + $0x28] sm:$0xf] %vm2640_vm3, %v3180_v55  ;;  %2715 = vst.msk [vmem:[%s3779_s23 + $0x128] sm:$0xf] %vm2640_vm3, %v3244_v56  ;;  %v2011_v0 = vmax.f32 %v1883_v58, 0.0  ;;  %v2075_v1 = vmax.f32 %v1947_v60, 0.0  ;;  %v1749_v2 = vmul.f32 %v3754_v57, %v1267_v61  ;;  %v1813_v3 = vmul.f32 %v3754_v57, %v1523_v62  ;;  %3004 = vmatprep.mubr.msk.bf16.mxu0 %vm985_vm0, %v3510_v51 }
 0x126   : > { %3036 = vmatprep.mubr.msk.bf16.mxu1 %vm985_vm0, %v3512_v52  ;;  %v1269_v7 = vpop.f32.mrf.mxu0  ;;  %v1525_v8 = vpop.f32.mrf.mxu1 }
 0x127   : > { %v3181_v9 = vpack.c.bf16 %v2011_v0, %v2011_v0  ;;  %v3245_v10 = vpack.c.bf16 %v2075_v1, %v2075_v1  ;;  %v1884_v11 = vadd.f32 %v3759_v59, %v1749_v2  ;;  %v1948_v12 = vadd.f32 %v3759_v59, %v1813_v3 }
 0x128   : > { %v1270_v13 = vpop.f32.mrf.mxu0  ;;  %v1526_v14 = vpop.f32.mrf.mxu1 }
 0x129   : > { %2652 = vst.msk [vmem:[%s3779_s23 + $0x2c] sm:$0xf] %vm2640_vm3, %v3181_v9  ;;  %2716 = vst.msk [vmem:[%s3779_s23 + $0x12c] sm:$0xf] %vm2640_vm3, %v3245_v10  ;;  %v2012_v17 = vmax.f32 %v1884_v11, 0.0  ;;  %v2076_v18 = vmax.f32 %v1948_v12, 0.0  ;;  %v1750_v19 = vmul.f32 %v3754_v57, %v1270_v13  ;;  %v1814_v20 = vmul.f32 %v3754_v57, %v1526_v14 }
 0x12a   : > { %v1272_v21 = vpop.f32.mrf.mxu0  ;;  %v1528_v22 = vpop.f32.mrf.mxu1 }
 0x12b   : > { %v3182_v23 = vpack.c.bf16 %v2012_v17, %v2012_v17  ;;  %v3246_v24 = vpack.c.bf16 %v2076_v18, %v2076_v18  ;;  %v1885_v25 = vadd.f32 %v3759_v59, %v1750_v19  ;;  %v1949_v26 = vadd.f32 %v3759_v59, %v1814_v20 }
 0x12c   : > { %v1275_v27 = vpop.f32.mrf.mxu0  ;;  %1466 = vmatmul.mubr.bf16.gmra.mxu0 %v2897_v15  ;;  %v1531_v28 = vpop.f32.mrf.mxu1  ;;  %1722 = vmatmul.mubr.bf16.gmra.mxu1 %v2961_v16 }
 0x12d   : > { %2653 = vst.msk [vmem:[%s3779_s23 + $0x30] sm:$0xf] %vm2640_vm3, %v3182_v23  ;;  %2717 = vst.msk [vmem:[%s3779_s23 + $0x130] sm:$0xf] %vm2640_vm3, %v3246_v24  ;;  %v2013_v29 = vmax.f32 %v1885_v25, 0.0  ;;  %v2077_v30 = vmax.f32 %v1949_v26, 0.0  ;;  %v1751_v31 = vmul.f32 %v3754_v57, %v1275_v27  ;;  %v1815_v32 = vmul.f32 %v3754_v57, %v1531_v28 }
 0x12e   : > { %v1277_v33 = vpop.f32.mrf.mxu0  ;;  %v1533_v34 = vpop.f32.mrf.mxu1 }
 0x12f   : > { %v3183_v35 = vpack.c.bf16 %v2013_v29, %v2013_v29  ;;  %v3247_v36 = vpack.c.bf16 %v2077_v30, %v2077_v30  ;;  %v1886_v37 = vadd.f32 %v3759_v59, %v1751_v31  ;;  %v1950_v38 = vadd.f32 %v3759_v59, %v1815_v32 }
 0x130   : > { %v1278_v39 = vpop.f32.mrf.mxu0  ;;  %v1534_v40 = vpop.f32.mrf.mxu1 }
 0x131   : > { %2654 = vst.msk [vmem:[%s3779_s23 + $0x34] sm:$0xf] %vm2640_vm3, %v3183_v35  ;;  %2718 = vst.msk [vmem:[%s3779_s23 + $0x134] sm:$0xf] %vm2640_vm3, %v3247_v36  ;;  %v2014_v41 = vmax.f32 %v1886_v37, 0.0  ;;  %v2078_v42 = vmax.f32 %v1950_v38, 0.0  ;;  %v1752_v43 = vmul.f32 %v3754_v57, %v1278_v39  ;;  %v1816_v44 = vmul.f32 %v3754_v57, %v1534_v40 }
 0x132   : > { %v1280_v45 = vpop.f32.mrf.mxu0  ;;  %v1536_v46 = vpop.f32.mrf.mxu1 }
 0x133   : > { %v3184_v47 = vpack.c.bf16 %v2014_v41, %v2014_v41  ;;  %v3248_v48 = vpack.c.bf16 %v2078_v42, %v2078_v42  ;;  %v1887_v49 = vadd.f32 %v3759_v59, %v1752_v43  ;;  %v1951_v50 = vadd.f32 %v3759_v59, %v1816_v44 }
 0x134   : > { %v1283_v51 = vpop.f32.mrf.mxu0  ;;  %v1539_v52 = vpop.f32.mrf.mxu1 }
 0x135   : > { %2655 = vst.msk [vmem:[%s3779_s23 + $0x38] sm:$0xf] %vm2640_vm3, %v3184_v47  ;;  %2719 = vst.msk [vmem:[%s3779_s23 + $0x138] sm:$0xf] %vm2640_vm3, %v3248_v48  ;;  %v2015_v53 = vmax.f32 %v1887_v49, 0.0  ;;  %v2079_v54 = vmax.f32 %v1951_v50, 0.0  ;;  %v1753_v55 = vmul.f32 %v3754_v57, %v1283_v51  ;;  %v1817_v56 = vmul.f32 %v3754_v57, %v1539_v52 }
 0x136   : > { %v1285_v58 = vpop.f32.mrf.mxu0  ;;  %v1541_v60 = vpop.f32.mrf.mxu1 }
 0x137   : > { %v3185_v61 = vpack.c.bf16 %v2015_v53, %v2015_v53  ;;  %v3249_v62 = vpack.c.bf16 %v2079_v54, %v2079_v54  ;;  %v1888_v63 = vadd.f32 %v3759_v59, %v1753_v55  ;;  %v1952_v0 = vadd.f32 %v3759_v59, %v1817_v56 }
 0x138   : > { %v1286_v1 = vpop.f32.mrf.mxu0  ;;  %v1542_v2 = vpop.f32.mrf.mxu1 }
 0x139   : > { %2656 = vst.msk [vmem:[%s3779_s23 + $0x3c] sm:$0xf] %vm2640_vm3, %v3185_v61  ;;  %2720 = vst.msk [vmem:[%s3779_s23 + $0x13c] sm:$0xf] %vm2640_vm3, %v3249_v62  ;;  %v2016_v3 = vmax.f32 %v1888_v63, 0.0  ;;  %v2080_v4 = vmax.f32 %v1952_v0, 0.0  ;;  %v1754_v5 = vmul.f32 %v3754_v57, %v1286_v1  ;;  %v1818_v6 = vmul.f32 %v3754_v57, %v1542_v2 }
 0x13a   : > { %v1288_v7 = vpop.f32.mrf.mxu0  ;;  %v1544_v8 = vpop.f32.mrf.mxu1 }
 0x13b   : > { %v3186_v9 = vpack.c.bf16 %v2016_v3, %v2016_v3  ;;  %v3250_v10 = vpack.c.bf16 %v2080_v4, %v2080_v4  ;;  %v1889_v11 = vadd.f32 %v3759_v59, %v1754_v5  ;;  %v1953_v12 = vadd.f32 %v3759_v59, %v1818_v6 }
 0x13c   : > { %v1291_v13 = vpop.f32.mrf.mxu0  ;;  %v1547_v14 = vpop.f32.mrf.mxu1 }
 0x13d   : > { %2657 = vst.msk [vmem:[%s3779_s23 + $0x40] sm:$0xf] %vm2640_vm3, %v3186_v9  ;;  %2721 = vst.msk [vmem:[%s3779_s23 + $0x140] sm:$0xf] %vm2640_vm3, %v3250_v10  ;;  %v2017_v15 = vmax.f32 %v1889_v11, 0.0  ;;  %v2081_v16 = vmax.f32 %v1953_v12, 0.0  ;;  %v1755_v17 = vmul.f32 %v3754_v57, %v1291_v13  ;;  %v1819_v18 = vmul.f32 %v3754_v57, %v1547_v14 }
 0x13e   : > { %v1293_v19 = vpop.f32.mrf.mxu0  ;;  %v1549_v20 = vpop.f32.mrf.mxu1 }
 0x13f   : > { %v3187_v21 = vpack.c.bf16 %v2017_v15, %v2017_v15  ;;  %v3251_v22 = vpack.c.bf16 %v2081_v16, %v2081_v16  ;;  %v1890_v23 = vadd.f32 %v3759_v59, %v1755_v17  ;;  %v1954_v24 = vadd.f32 %v3759_v59, %v1819_v18 }
 0x140   : > { %v1294_v25 = vpop.f32.mrf.mxu0  ;;  %v1550_v26 = vpop.f32.mrf.mxu1 }
 0x141   : > { %2658 = vst.msk [vmem:[%s3779_s23 + $0x44] sm:$0xf] %vm2640_vm3, %v3187_v21  ;;  %2722 = vst.msk [vmem:[%s3779_s23 + $0x144] sm:$0xf] %vm2640_vm3, %v3251_v22  ;;  %v2018_v27 = vmax.f32 %v1890_v23, 0.0  ;;  %v2082_v28 = vmax.f32 %v1954_v24, 0.0  ;;  %v1756_v29 = vmul.f32 %v3754_v57, %v1294_v25  ;;  %v1820_v30 = vmul.f32 %v3754_v57, %v1550_v26 }
 0x142   : > { %v1296_v31 = vpop.f32.mrf.mxu0  ;;  %v1552_v32 = vpop.f32.mrf.mxu1 }
 0x143   : > { %v3188_v33 = vpack.c.bf16 %v2018_v27, %v2018_v27  ;;  %v3252_v34 = vpack.c.bf16 %v2082_v28, %v2082_v28  ;;  %v1891_v35 = vadd.f32 %v3759_v59, %v1756_v29  ;;  %v1955_v36 = vadd.f32 %v3759_v59, %v1820_v30 }
 0x144   : > { %v1299_v37 = vpop.f32.mrf.mxu0  ;;  %v1555_v38 = vpop.f32.mrf.mxu1 }
 0x145   : > { %2659 = vst.msk [vmem:[%s3779_s23 + $0x48] sm:$0xf] %vm2640_vm3, %v3188_v33  ;;  %2723 = vst.msk [vmem:[%s3779_s23 + $0x148] sm:$0xf] %vm2640_vm3, %v3252_v34  ;;  %v2019_v39 = vmax.f32 %v1891_v35, 0.0  ;;  %v2083_v40 = vmax.f32 %v1955_v36, 0.0  ;;  %v1757_v41 = vmul.f32 %v3754_v57, %v1299_v37  ;;  %v1821_v42 = vmul.f32 %v3754_v57, %v1555_v38 }
 0x146   : > { %v1301_v43 = vpop.f32.mrf.mxu0  ;;  %v1557_v44 = vpop.f32.mrf.mxu1 }
 0x147   : > { %v3189_v45 = vpack.c.bf16 %v2019_v39, %v2019_v39  ;;  %v3253_v46 = vpack.c.bf16 %v2083_v40, %v2083_v40  ;;  %v1892_v47 = vadd.f32 %v3759_v59, %v1757_v41  ;;  %v1956_v48 = vadd.f32 %v3759_v59, %v1821_v42 }
 0x148   : > { %v1302_v49 = vpop.f32.mrf.mxu0  ;;  %v1558_v50 = vpop.f32.mrf.mxu1 }
 0x149   : > { %2660 = vst.msk [vmem:[%s3779_s23 + $0x4c] sm:$0xf] %vm2640_vm3, %v3189_v45  ;;  %2724 = vst.msk [vmem:[%s3779_s23 + $0x14c] sm:$0xf] %vm2640_vm3, %v3253_v46  ;;  %v2020_v51 = vmax.f32 %v1892_v47, 0.0  ;;  %v2084_v52 = vmax.f32 %v1956_v48, 0.0  ;;  %v1758_v53 = vmul.f32 %v3754_v57, %v1302_v49  ;;  %v1822_v54 = vmul.f32 %v3754_v57, %v1558_v50 }
 0x14a   : > { %v1304_v55 = vpop.f32.mrf.mxu0  ;;  %v1560_v56 = vpop.f32.mrf.mxu1 }
 0x14b   : > { %v3190_v58 = vpack.c.bf16 %v2020_v51, %v2020_v51  ;;  %v3254_v60 = vpack.c.bf16 %v2084_v52, %v2084_v52  ;;  %v1893_v61 = vadd.f32 %v3759_v59, %v1758_v53  ;;  %v1957_v62 = vadd.f32 %v3759_v59, %v1822_v54 }
 0x14c   : > { %v1307_v63 = vpop.f32.mrf.mxu0  ;;  %v1563_v0 = vpop.f32.mrf.mxu1 }
 0x14d   : > { %2661 = vst.msk [vmem:[%s3779_s23 + $0x50] sm:$0xf] %vm2640_vm3, %v3190_v58  ;;  %2725 = vst.msk [vmem:[%s3779_s23 + $0x150] sm:$0xf] %vm2640_vm3, %v3254_v60  ;;  %v2021_v1 = vmax.f32 %v1893_v61, 0.0  ;;  %v2085_v2 = vmax.f32 %v1957_v62, 0.0  ;;  %v1759_v3 = vmul.f32 %v3754_v57, %v1307_v63  ;;  %v1823_v4 = vmul.f32 %v3754_v57, %v1563_v0 }
 0x14e   : > { %v1309_v5 = vpop.f32.mrf.mxu0  ;;  %v1565_v6 = vpop.f32.mrf.mxu1 }
 0x14f   : > { %v3191_v7 = vpack.c.bf16 %v2021_v1, %v2021_v1  ;;  %v3255_v8 = vpack.c.bf16 %v2085_v2, %v2085_v2  ;;  %v1894_v9 = vadd.f32 %v3759_v59, %v1759_v3  ;;  %v1958_v10 = vadd.f32 %v3759_v59, %v1823_v4 }
 0x150   : > { %v1310_v11 = vpop.f32.mrf.mxu0  ;;  %v1566_v12 = vpop.f32.mrf.mxu1 }
 0x151   : > { %2662 = vst.msk [vmem:[%s3779_s23 + $0x54] sm:$0xf] %vm2640_vm3, %v3191_v7  ;;  %2726 = vst.msk [vmem:[%s3779_s23 + $0x154] sm:$0xf] %vm2640_vm3, %v3255_v8  ;;  %v2022_v13 = vmax.f32 %v1894_v9, 0.0  ;;  %v2086_v14 = vmax.f32 %v1958_v10, 0.0  ;;  %v1760_v15 = vmul.f32 %v3754_v57, %v1310_v11  ;;  %v1824_v16 = vmul.f32 %v3754_v57, %v1566_v12 }
 0x152   : > { %v1312_v17 = vpop.f32.mrf.mxu0  ;;  %v1568_v18 = vpop.f32.mrf.mxu1 }
 0x153   : > { %v3192_v19 = vpack.c.bf16 %v2022_v13, %v2022_v13  ;;  %v3256_v20 = vpack.c.bf16 %v2086_v14, %v2086_v14  ;;  %v1895_v21 = vadd.f32 %v3759_v59, %v1760_v15  ;;  %v1959_v22 = vadd.f32 %v3759_v59, %v1824_v16 }
 0x154   : > { %v1315_v23 = vpop.f32.mrf.mxu0  ;;  %v1571_v24 = vpop.f32.mrf.mxu1 }
 0x155   : > { %2663 = vst.msk [vmem:[%s3779_s23 + $0x58] sm:$0xf] %vm2640_vm3, %v3192_v19  ;;  %2727 = vst.msk [vmem:[%s3779_s23 + $0x158] sm:$0xf] %vm2640_vm3, %v3256_v20  ;;  %v2023_v25 = vmax.f32 %v1895_v21, 0.0  ;;  %v2087_v26 = vmax.f32 %v1959_v22, 0.0  ;;  %v1761_v27 = vmul.f32 %v3754_v57, %v1315_v23  ;;  %v1825_v28 = vmul.f32 %v3754_v57, %v1571_v24 }
 0x156   : > { %v1317_v29 = vpop.f32.mrf.mxu0  ;;  %v1573_v30 = vpop.f32.mrf.mxu1 }
 0x157   : > { %v3193_v31 = vpack.c.bf16 %v2023_v25, %v2023_v25  ;;  %v3257_v32 = vpack.c.bf16 %v2087_v26, %v2087_v26  ;;  %v1896_v33 = vadd.f32 %v3759_v59, %v1761_v27  ;;  %v1960_v34 = vadd.f32 %v3759_v59, %v1825_v28 }
 0x158   : > { %v1318_v35 = vpop.f32.mrf.mxu0  ;;  %v1574_v36 = vpop.f32.mrf.mxu1 }
 0x159   : > { %2664 = vst.msk [vmem:[%s3779_s23 + $0x5c] sm:$0xf] %vm2640_vm3, %v3193_v31  ;;  %2728 = vst.msk [vmem:[%s3779_s23 + $0x15c] sm:$0xf] %vm2640_vm3, %v3257_v32  ;;  %v2024_v37 = vmax.f32 %v1896_v33, 0.0  ;;  %v2088_v38 = vmax.f32 %v1960_v34, 0.0  ;;  %v1762_v39 = vmul.f32 %v3754_v57, %v1318_v35  ;;  %v1826_v40 = vmul.f32 %v3754_v57, %v1574_v36 }
 0x15a   : > { %v1320_v41 = vpop.f32.mrf.mxu0  ;;  %v1576_v42 = vpop.f32.mrf.mxu1 }
 0x15b   : > { %v3194_v43 = vpack.c.bf16 %v2024_v37, %v2024_v37  ;;  %v3258_v44 = vpack.c.bf16 %v2088_v38, %v2088_v38  ;;  %v1897_v45 = vadd.f32 %v3759_v59, %v1762_v39  ;;  %v1961_v46 = vadd.f32 %v3759_v59, %v1826_v40 }
 0x15c   : > { %v1323_v47 = vpop.f32.mrf.mxu0  ;;  %v1579_v48 = vpop.f32.mrf.mxu1 }
 0x15d   : > { %2665 = vst.msk [vmem:[%s3779_s23 + $0x60] sm:$0xf] %vm2640_vm3, %v3194_v43  ;;  %2729 = vst.msk [vmem:[%s3779_s23 + $0x160] sm:$0xf] %vm2640_vm3, %v3258_v44  ;;  %v2025_v49 = vmax.f32 %v1897_v45, 0.0  ;;  %v2089_v50 = vmax.f32 %v1961_v46, 0.0  ;;  %v1763_v51 = vmul.f32 %v3754_v57, %v1323_v47  ;;  %v1827_v52 = vmul.f32 %v3754_v57, %v1579_v48 }
 0x15e   : > { %v1325_v53 = vpop.f32.mrf.mxu0  ;;  %v1581_v54 = vpop.f32.mrf.mxu1  ;;  %v4063_v44 = vld [vmem:[%s4349_s3] ss:$0 sm:$0xff] }
 0x15f   : > { %v3195_v55 = vpack.c.bf16 %v2025_v49, %v2025_v49  ;;  %v3259_v56 = vpack.c.bf16 %v2089_v50, %v2089_v50  ;;  %v1898_v58 = vadd.f32 %v3759_v59, %v1763_v51  ;;  %v1962_v60 = vadd.f32 %v3759_v59, %v1827_v52 }
 0x160   : > { %v1326_v61 = vpop.f32.mrf.mxu0  ;;  %v1582_v62 = vpop.f32.mrf.mxu1 }
 0x161   : > { %2666 = vst.msk [vmem:[%s3779_s23 + $0x64] sm:$0xf] %vm2640_vm3, %v3195_v55  ;;  %2730 = vst.msk [vmem:[%s3779_s23 + $0x164] sm:$0xf] %vm2640_vm3, %v3259_v56  ;;  %v2026_v63 = vmax.f32 %v1898_v58, 0.0  ;;  %v2090_v0 = vmax.f32 %v1962_v60, 0.0  ;;  %v1764_v1 = vmul.f32 %v3754_v57, %v1326_v61  ;;  %v1828_v2 = vmul.f32 %v3754_v57, %v1582_v62 }
 0x162   : > { %v1328_v3 = vpop.f32.mrf.mxu0  ;;  %v1584_v4 = vpop.f32.mrf.mxu1 }
 0x163   : > { %v3196_v5 = vpack.c.bf16 %v2026_v63, %v2026_v63  ;;  %v3260_v6 = vpack.c.bf16 %v2090_v0, %v2090_v0  ;;  %v1899_v7 = vadd.f32 %v3759_v59, %v1764_v1  ;;  %v1963_v8 = vadd.f32 %v3759_v59, %v1828_v2 }
 0x164   : > { %v1331_v9 = vpop.f32.mrf.mxu0  ;;  %v1587_v10 = vpop.f32.mrf.mxu1 }
 0x165   : > { %2667 = vst.msk [vmem:[%s3779_s23 + $0x68] sm:$0xf] %vm2640_vm3, %v3196_v5  ;;  %2731 = vst.msk [vmem:[%s3779_s23 + $0x168] sm:$0xf] %vm2640_vm3, %v3260_v6  ;;  %v2027_v11 = vmax.f32 %v1899_v7, 0.0  ;;  %v2091_v12 = vmax.f32 %v1963_v8, 0.0  ;;  %v1765_v13 = vmul.f32 %v3754_v57, %v1331_v9  ;;  %v1829_v14 = vmul.f32 %v3754_v57, %v1587_v10 }
 0x166   : > { %v1333_v15 = vpop.f32.mrf.mxu0  ;;  %v1589_v16 = vpop.f32.mrf.mxu1 }
 0x167   : > { %v3197_v17 = vpack.c.bf16 %v2027_v11, %v2027_v11  ;;  %v3261_v18 = vpack.c.bf16 %v2091_v12, %v2091_v12  ;;  %v1900_v19 = vadd.f32 %v3759_v59, %v1765_v13  ;;  %v1964_v20 = vadd.f32 %v3759_v59, %v1829_v14 }
 0x168   : > { %v1334_v21 = vpop.f32.mrf.mxu0  ;;  %v1590_v22 = vpop.f32.mrf.mxu1 }
 0x169   : > { %2668 = vst.msk [vmem:[%s3779_s23 + $0x6c] sm:$0xf] %vm2640_vm3, %v3197_v17  ;;  %2732 = vst.msk [vmem:[%s3779_s23 + $0x16c] sm:$0xf] %vm2640_vm3, %v3261_v18  ;;  %v2028_v23 = vmax.f32 %v1900_v19, 0.0  ;;  %v2092_v24 = vmax.f32 %v1964_v20, 0.0  ;;  %v1766_v25 = vmul.f32 %v3754_v57, %v1334_v21  ;;  %v1830_v26 = vmul.f32 %v3754_v57, %v1590_v22 }
 0x16a   : > { %v1336_v27 = vpop.f32.mrf.mxu0  ;;  %v1592_v28 = vpop.f32.mrf.mxu1 }
 0x16b   : > { %v3198_v29 = vpack.c.bf16 %v2028_v23, %v2028_v23  ;;  %v3262_v30 = vpack.c.bf16 %v2092_v24, %v2092_v24  ;;  %v1901_v31 = vadd.f32 %v3759_v59, %v1766_v25  ;;  %v1965_v32 = vadd.f32 %v3759_v59, %v1830_v26 }
 0x16c   : > { %v1339_v33 = vpop.f32.mrf.mxu0  ;;  %v1595_v34 = vpop.f32.mrf.mxu1 }
 0x16d   : > { %2669 = vst.msk [vmem:[%s3779_s23 + $0x70] sm:$0xf] %vm2640_vm3, %v3198_v29  ;;  %2733 = vst.msk [vmem:[%s3779_s23 + $0x170] sm:$0xf] %vm2640_vm3, %v3262_v30  ;;  %v2029_v35 = vmax.f32 %v1901_v31, 0.0  ;;  %v2093_v36 = vmax.f32 %v1965_v32, 0.0  ;;  %v1767_v37 = vmul.f32 %v3754_v57, %v1339_v33  ;;  %v1831_v38 = vmul.f32 %v3754_v57, %v1595_v34 }
 0x16e   : > { %v1341_v39 = vpop.f32.mrf.mxu0  ;;  %v1597_v40 = vpop.f32.mrf.mxu1 }
 0x16f   : > { %v3199_v41 = vpack.c.bf16 %v2029_v35, %v2029_v35  ;;  %v3263_v42 = vpack.c.bf16 %v2093_v36, %v2093_v36  ;;  %v1902_v43 = vadd.f32 %v3759_v59, %v1767_v37  ;;  %v1966_v45 = vadd.f32 %v4063_v44, %v1831_v38  ;;  %v4073_v59 = vld [vmem:[%s4348_s2] ss:$0 sm:$0xff] }
 0x170   : > { %v1342_v46 = vpop.f32.mrf.mxu0  ;;  %v1598_v47 = vpop.f32.mrf.mxu1 }
 0x171   : > { %2670 = vst.msk [vmem:[%s3779_s23 + $0x74] sm:$0xf] %vm2640_vm3, %v3199_v41  ;;  %2734 = vst.msk [vmem:[%s3779_s23 + $0x174] sm:$0xf] %vm2640_vm3, %v3263_v42  ;;  %v2030_v57 = vmax.f32 %v1902_v43, 0.0  ;;  %v2094_v48 = vmax.f32 %v1966_v45, 0.0  ;;  %v1768_v49 = vmul.f32 %v4073_v59, %v1342_v46  ;;  %v1832_v50 = vmul.f32 %v4073_v59, %v1598_v47 }
 0x172   : > { %v1344_v51 = vpop.f32.mrf.mxu0  ;;  %v1600_v52 = vpop.f32.mrf.mxu1 }
 0x173   : > { %v3200_v53 = vpack.c.bf16 %v2030_v57, %v2030_v57  ;;  %v3264_v54 = vpack.c.bf16 %v2094_v48, %v2094_v48  ;;  %v1903_v55 = vadd.f32 %v4063_v44, %v1768_v49  ;;  %v1967_v56 = vadd.f32 %v4063_v44, %v1832_v50 }
 0x174   : > { %v1347_v58 = vpop.f32.mrf.mxu0  ;;  %v1603_v60 = vpop.f32.mrf.mxu1 }
 0x175   : > { %2671 = vst.msk [vmem:[%s3779_s23 + $0x78] sm:$0xf] %vm2640_vm3, %v3200_v53  ;;  %2735 = vst.msk [vmem:[%s3779_s23 + $0x178] sm:$0xf] %vm2640_vm3, %v3264_v54  ;;  %v2031_v61 = vmax.f32 %v1903_v55, 0.0  ;;  %v2095_v62 = vmax.f32 %v1967_v56, 0.0  ;;  %v1769_v63 = vmul.f32 %v4073_v59, %v1347_v58  ;;  %v1833_v0 = vmul.f32 %v4073_v59, %v1603_v60 }
 0x176   : > { %v1349_v1 = vpop.f32.mrf.mxu0  ;;  %v1605_v2 = vpop.f32.mrf.mxu1 }
 0x177   : > { %v3201_v3 = vpack.c.bf16 %v2031_v61, %v2031_v61  ;;  %v3265_v4 = vpack.c.bf16 %v2095_v62, %v2095_v62  ;;  %v1904_v5 = vadd.f32 %v4063_v44, %v1769_v63  ;;  %v1968_v6 = vadd.f32 %v4063_v44, %v1833_v0 }
 0x178   : > { %v1350_v7 = vpop.f32.mrf.mxu0  ;;  %v1606_v8 = vpop.f32.mrf.mxu1 }
 0x179   : > { %2672 = vst.msk [vmem:[%s3779_s23 + $0x7c] sm:$0xf] %vm2640_vm3, %v3201_v3  ;;  %2736 = vst.msk [vmem:[%s3779_s23 + $0x17c] sm:$0xf] %vm2640_vm3, %v3265_v4  ;;  %v2032_v9 = vmax.f32 %v1904_v5, 0.0  ;;  %v2096_v10 = vmax.f32 %v1968_v6, 0.0  ;;  %v1770_v11 = vmul.f32 %v4073_v59, %v1350_v7  ;;  %v1834_v12 = vmul.f32 %v4073_v59, %v1606_v8 }
 0x17a   : > { %v1352_v13 = vpop.f32.mrf.mxu0  ;;  %v1608_v14 = vpop.f32.mrf.mxu1 }
 0x17b   : > { %v3202_v15 = vpack.c.bf16 %v2032_v9, %v2032_v9  ;;  %v3266_v16 = vpack.c.bf16 %v2096_v10, %v2096_v10  ;;  %v1905_v17 = vadd.f32 %v4063_v44, %v1770_v11  ;;  %v1969_v18 = vadd.f32 %v4063_v44, %v1834_v12 }
 0x17c   : > { %v1355_v19 = vpop.f32.mrf.mxu0  ;;  %v1611_v20 = vpop.f32.mrf.mxu1 }
 0x17d   : > { %2673 = vst.msk [vmem:[%s3779_s23 + $0x80] sm:$0xf] %vm2640_vm3, %v3202_v15  ;;  %2737 = vst.msk [vmem:[%s3779_s23 + $0x180] sm:$0xf] %vm2640_vm3, %v3266_v16  ;;  %v2033_v21 = vmax.f32 %v1905_v17, 0.0  ;;  %v2097_v22 = vmax.f32 %v1969_v18, 0.0  ;;  %v1771_v23 = vmul.f32 %v4073_v59, %v1355_v19  ;;  %v1835_v24 = vmul.f32 %v4073_v59, %v1611_v20 }
 0x17e   : > { %v1357_v25 = vpop.f32.mrf.mxu0  ;;  %v1613_v26 = vpop.f32.mrf.mxu1 }
 0x17f   : > { %v3203_v27 = vpack.c.bf16 %v2033_v21, %v2033_v21  ;;  %v3267_v28 = vpack.c.bf16 %v2097_v22, %v2097_v22  ;;  %v1906_v29 = vadd.f32 %v4063_v44, %v1771_v23  ;;  %v1970_v30 = vadd.f32 %v4063_v44, %v1835_v24 }
 0x180   : > { %v1358_v31 = vpop.f32.mrf.mxu0  ;;  %v1614_v32 = vpop.f32.mrf.mxu1 }
 0x181   : > { %2674 = vst.msk [vmem:[%s3779_s23 + $0x84] sm:$0xf] %vm2640_vm3, %v3203_v27  ;;  %2738 = vst.msk [vmem:[%s3779_s23 + $0x184] sm:$0xf] %vm2640_vm3, %v3267_v28  ;;  %v2034_v33 = vmax.f32 %v1906_v29, 0.0  ;;  %v2098_v34 = vmax.f32 %v1970_v30, 0.0  ;;  %v1772_v35 = vmul.f32 %v4073_v59, %v1358_v31  ;;  %v1836_v36 = vmul.f32 %v4073_v59, %v1614_v32 }
 0x182   : > { %v1360_v37 = vpop.f32.mrf.mxu0  ;;  %v1616_v38 = vpop.f32.mrf.mxu1 }
 0x183   : > { %v3204_v39 = vpack.c.bf16 %v2034_v33, %v2034_v33  ;;  %v3268_v40 = vpack.c.bf16 %v2098_v34, %v2098_v34  ;;  %v1907_v41 = vadd.f32 %v4063_v44, %v1772_v35  ;;  %v1971_v42 = vadd.f32 %v4063_v44, %v1836_v36 }
 0x184   : > { %v1363_v43 = vpop.f32.mrf.mxu0  ;;  %v1619_v45 = vpop.f32.mrf.mxu1 }
 0x185   : > { %2675 = vst.msk [vmem:[%s3779_s23 + $0x88] sm:$0xf] %vm2640_vm3, %v3204_v39  ;;  %2739 = vst.msk [vmem:[%s3779_s23 + $0x188] sm:$0xf] %vm2640_vm3, %v3268_v40  ;;  %v2035_v46 = vmax.f32 %v1907_v41, 0.0  ;;  %v2099_v47 = vmax.f32 %v1971_v42, 0.0  ;;  %v1773_v57 = vmul.f32 %v4073_v59, %v1363_v43  ;;  %v1837_v48 = vmul.f32 %v4073_v59, %v1619_v45 }
 0x186   : > { %v1365_v49 = vpop.f32.mrf.mxu0  ;;  %v1621_v50 = vpop.f32.mrf.mxu1 }
 0x187   : > { %v3205_v51 = vpack.c.bf16 %v2035_v46, %v2035_v46  ;;  %v3269_v52 = vpack.c.bf16 %v2099_v47, %v2099_v47  ;;  %v1908_v53 = vadd.f32 %v4063_v44, %v1773_v57  ;;  %v1972_v54 = vadd.f32 %v4063_v44, %v1837_v48 }
 0x188   : > { %v1366_v55 = vpop.f32.mrf.mxu0  ;;  %v1622_v56 = vpop.f32.mrf.mxu1 }
 0x189   : > { %2676 = vst.msk [vmem:[%s3779_s23 + $0x8c] sm:$0xf] %vm2640_vm3, %v3205_v51  ;;  %2740 = vst.msk [vmem:[%s3779_s23 + $0x18c] sm:$0xf] %vm2640_vm3, %v3269_v52  ;;  %v2036_v58 = vmax.f32 %v1908_v53, 0.0  ;;  %v2100_v60 = vmax.f32 %v1972_v54, 0.0  ;;  %v1774_v61 = vmul.f32 %v4073_v59, %v1366_v55  ;;  %v1838_v62 = vmul.f32 %v4073_v59, %v1622_v56 }
 0x18a   : > { %v1368_v63 = vpop.f32.mrf.mxu0  ;;  %v1624_v0 = vpop.f32.mrf.mxu1 }
 0x18b   : > { %v3206_v1 = vpack.c.bf16 %v2036_v58, %v2036_v58  ;;  %v3270_v2 = vpack.c.bf16 %v2100_v60, %v2100_v60  ;;  %v1909_v3 = vadd.f32 %v4063_v44, %v1774_v61  ;;  %v1973_v4 = vadd.f32 %v4063_v44, %v1838_v62 }
 0x18c   : > { %v1371_v5 = vpop.f32.mrf.mxu0  ;;  %v1627_v6 = vpop.f32.mrf.mxu1 }
 0x18d   : > { %2677 = vst.msk [vmem:[%s3779_s23 + $0x90] sm:$0xf] %vm2640_vm3, %v3206_v1  ;;  %2741 = vst.msk [vmem:[%s3779_s23 + $0x190] sm:$0xf] %vm2640_vm3, %v3270_v2  ;;  %v2037_v7 = vmax.f32 %v1909_v3, 0.0  ;;  %v2101_v8 = vmax.f32 %v1973_v4, 0.0  ;;  %v1775_v9 = vmul.f32 %v4073_v59, %v1371_v5  ;;  %v1839_v10 = vmul.f32 %v4073_v59, %v1627_v6 }
 0x18e   : > { %v1373_v11 = vpop.f32.mrf.mxu0  ;;  %v1629_v12 = vpop.f32.mrf.mxu1 }
 0x18f   : > { %v3207_v13 = vpack.c.bf16 %v2037_v7, %v2037_v7  ;;  %v3271_v14 = vpack.c.bf16 %v2101_v8, %v2101_v8  ;;  %v1910_v15 = vadd.f32 %v4063_v44, %v1775_v9  ;;  %v1974_v16 = vadd.f32 %v4063_v44, %v1839_v10 }
 0x190   : > { %v1374_v17 = vpop.f32.mrf.mxu0  ;;  %v1630_v18 = vpop.f32.mrf.mxu1 }
 0x191   : > { %2678 = vst.msk [vmem:[%s3779_s23 + $0x94] sm:$0xf] %vm2640_vm3, %v3207_v13  ;;  %2742 = vst.msk [vmem:[%s3779_s23 + $0x194] sm:$0xf] %vm2640_vm3, %v3271_v14  ;;  %v2038_v19 = vmax.f32 %v1910_v15, 0.0  ;;  %v2102_v20 = vmax.f32 %v1974_v16, 0.0  ;;  %v1776_v21 = vmul.f32 %v4073_v59, %v1374_v17  ;;  %v1840_v22 = vmul.f32 %v4073_v59, %v1630_v18 }
 0x192   : > { %v1376_v23 = vpop.f32.mrf.mxu0  ;;  %v1632_v24 = vpop.f32.mrf.mxu1 }
 0x193   : > { %v3208_v25 = vpack.c.bf16 %v2038_v19, %v2038_v19  ;;  %v3272_v26 = vpack.c.bf16 %v2102_v20, %v2102_v20  ;;  %v1911_v27 = vadd.f32 %v4063_v44, %v1776_v21  ;;  %v1975_v28 = vadd.f32 %v4063_v44, %v1840_v22 }
 0x194   : > { %v1379_v29 = vpop.f32.mrf.mxu0  ;;  %v1635_v30 = vpop.f32.mrf.mxu1 }
 0x195   : > { %2679 = vst.msk [vmem:[%s3779_s23 + $0x98] sm:$0xf] %vm2640_vm3, %v3208_v25  ;;  %2743 = vst.msk [vmem:[%s3779_s23 + $0x198] sm:$0xf] %vm2640_vm3, %v3272_v26  ;;  %v2039_v31 = vmax.f32 %v1911_v27, 0.0  ;;  %v2103_v32 = vmax.f32 %v1975_v28, 0.0  ;;  %v1777_v33 = vmul.f32 %v4073_v59, %v1379_v29  ;;  %v1841_v34 = vmul.f32 %v4073_v59, %v1635_v30 }
 0x196   : > { %v1381_v35 = vpop.f32.mrf.mxu0  ;;  %v1637_v36 = vpop.f32.mrf.mxu1 }
 0x197   : > { %v3209_v37 = vpack.c.bf16 %v2039_v31, %v2039_v31  ;;  %v3273_v38 = vpack.c.bf16 %v2103_v32, %v2103_v32  ;;  %v1912_v39 = vadd.f32 %v4063_v44, %v1777_v33  ;;  %v1976_v40 = vadd.f32 %v4063_v44, %v1841_v34 }
 0x198   : > { %v1382_v41 = vpop.f32.mrf.mxu0  ;;  %v1638_v42 = vpop.f32.mrf.mxu1 }
 0x199   : > { %2680 = vst.msk [vmem:[%s3779_s23 + $0x9c] sm:$0xf] %vm2640_vm3, %v3209_v37  ;;  %2744 = vst.msk [vmem:[%s3779_s23 + $0x19c] sm:$0xf] %vm2640_vm3, %v3273_v38  ;;  %v2040_v43 = vmax.f32 %v1912_v39, 0.0  ;;  %v2104_v45 = vmax.f32 %v1976_v40, 0.0  ;;  %v1778_v46 = vmul.f32 %v4073_v59, %v1382_v41  ;;  %v1842_v47 = vmul.f32 %v4073_v59, %v1638_v42 }
 0x19a   : > { %v1384_v57 = vpop.f32.mrf.mxu0  ;;  %v1640_v48 = vpop.f32.mrf.mxu1 }
 0x19b   : > { %v3210_v49 = vpack.c.bf16 %v2040_v43, %v2040_v43  ;;  %v3274_v50 = vpack.c.bf16 %v2104_v45, %v2104_v45  ;;  %v1913_v51 = vadd.f32 %v4063_v44, %v1778_v46  ;;  %v1977_v52 = vadd.f32 %v4063_v44, %v1842_v47 }
 0x19c   : > { %v1387_v53 = vpop.f32.mrf.mxu0  ;;  %v1643_v54 = vpop.f32.mrf.mxu1 }
 0x19d   : > { %2681 = vst.msk [vmem:[%s3779_s23 + $0xa0] sm:$0xf] %vm2640_vm3, %v3210_v49  ;;  %2745 = vst.msk [vmem:[%s3779_s23 + $0x1a0] sm:$0xf] %vm2640_vm3, %v3274_v50  ;;  %v2041_v55 = vmax.f32 %v1913_v51, 0.0  ;;  %v2105_v56 = vmax.f32 %v1977_v52, 0.0  ;;  %v1779_v58 = vmul.f32 %v4073_v59, %v1387_v53  ;;  %v1843_v60 = vmul.f32 %v4073_v59, %v1643_v54 }
 0x19e   : > { %v1389_v61 = vpop.f32.mrf.mxu0  ;;  %v1645_v62 = vpop.f32.mrf.mxu1 }
 0x19f   : > { %v3211_v63 = vpack.c.bf16 %v2041_v55, %v2041_v55  ;;  %v3275_v0 = vpack.c.bf16 %v2105_v56, %v2105_v56  ;;  %v1914_v1 = vadd.f32 %v4063_v44, %v1779_v58  ;;  %v1978_v2 = vadd.f32 %v4063_v44, %v1843_v60 }
 0x1a0   : > { %v1390_v3 = vpop.f32.mrf.mxu0  ;;  %v1646_v4 = vpop.f32.mrf.mxu1 }
 0x1a1   : > { %2682 = vst.msk [vmem:[%s3779_s23 + $0xa4] sm:$0xf] %vm2640_vm3, %v3211_v63  ;;  %2746 = vst.msk [vmem:[%s3779_s23 + $0x1a4] sm:$0xf] %vm2640_vm3, %v3275_v0  ;;  %v2042_v5 = vmax.f32 %v1914_v1, 0.0  ;;  %v2106_v6 = vmax.f32 %v1978_v2, 0.0  ;;  %v1780_v7 = vmul.f32 %v4073_v59, %v1390_v3  ;;  %v1844_v8 = vmul.f32 %v4073_v59, %v1646_v4 }
 0x1a2   : > { %v1392_v9 = vpop.f32.mrf.mxu0  ;;  %v1648_v10 = vpop.f32.mrf.mxu1 }
 0x1a3   : > { %v3212_v11 = vpack.c.bf16 %v2042_v5, %v2042_v5  ;;  %v3276_v12 = vpack.c.bf16 %v2106_v6, %v2106_v6  ;;  %v1915_v13 = vadd.f32 %v4063_v44, %v1780_v7  ;;  %v1979_v14 = vadd.f32 %v4063_v44, %v1844_v8 }
 0x1a4   : > { %v1395_v15 = vpop.f32.mrf.mxu0  ;;  %v1651_v16 = vpop.f32.mrf.mxu1 }
 0x1a5   : > { %2683 = vst.msk [vmem:[%s3779_s23 + $0xa8] sm:$0xf] %vm2640_vm3, %v3212_v11  ;;  %2747 = vst.msk [vmem:[%s3779_s23 + $0x1a8] sm:$0xf] %vm2640_vm3, %v3276_v12  ;;  %v2043_v17 = vmax.f32 %v1915_v13, 0.0  ;;  %v2107_v18 = vmax.f32 %v1979_v14, 0.0  ;;  %v1781_v19 = vmul.f32 %v4073_v59, %v1395_v15  ;;  %v1845_v20 = vmul.f32 %v4073_v59, %v1651_v16 }
 0x1a6   : > { %v1397_v21 = vpop.f32.mrf.mxu0  ;;  %v1653_v22 = vpop.f32.mrf.mxu1 }
 0x1a7   : > { %v3213_v23 = vpack.c.bf16 %v2043_v17, %v2043_v17  ;;  %v3277_v24 = vpack.c.bf16 %v2107_v18, %v2107_v18  ;;  %v1916_v25 = vadd.f32 %v4063_v44, %v1781_v19  ;;  %v1980_v26 = vadd.f32 %v4063_v44, %v1845_v20 }
 0x1a8   : > { %v1398_v27 = vpop.f32.mrf.mxu0  ;;  %v1654_v28 = vpop.f32.mrf.mxu1 }
 0x1a9   : > { %2684 = vst.msk [vmem:[%s3779_s23 + $0xac] sm:$0xf] %vm2640_vm3, %v3213_v23  ;;  %2748 = vst.msk [vmem:[%s3779_s23 + $0x1ac] sm:$0xf] %vm2640_vm3, %v3277_v24  ;;  %v2044_v29 = vmax.f32 %v1916_v25, 0.0  ;;  %v2108_v30 = vmax.f32 %v1980_v26, 0.0  ;;  %v1782_v31 = vmul.f32 %v4073_v59, %v1398_v27  ;;  %v1846_v32 = vmul.f32 %v4073_v59, %v1654_v28 }
 0x1aa   : > { %v1400_v33 = vpop.f32.mrf.mxu0  ;;  %v1656_v34 = vpop.f32.mrf.mxu1 }
 0x1ab   : > { %v3214_v35 = vpack.c.bf16 %v2044_v29, %v2044_v29  ;;  %v3278_v36 = vpack.c.bf16 %v2108_v30, %v2108_v30  ;;  %v1917_v37 = vadd.f32 %v4063_v44, %v1782_v31  ;;  %v1981_v38 = vadd.f32 %v4063_v44, %v1846_v32 }
 0x1ac   : > { %v1403_v39 = vpop.f32.mrf.mxu0  ;;  %v1659_v40 = vpop.f32.mrf.mxu1 }
 0x1ad   : > { %2685 = vst.msk [vmem:[%s3779_s23 + $0xb0] sm:$0xf] %vm2640_vm3, %v3214_v35  ;;  %2749 = vst.msk [vmem:[%s3779_s23 + $0x1b0] sm:$0xf] %vm2640_vm3, %v3278_v36  ;;  %v2045_v41 = vmax.f32 %v1917_v37, 0.0  ;;  %v2109_v42 = vmax.f32 %v1981_v38, 0.0  ;;  %v1783_v43 = vmul.f32 %v4073_v59, %v1403_v39  ;;  %v1847_v45 = vmul.f32 %v4073_v59, %v1659_v40 }
 0x1ae   : > { %v1405_v46 = vpop.f32.mrf.mxu0  ;;  %v1661_v47 = vpop.f32.mrf.mxu1 }
 0x1af   : > { %v3215_v57 = vpack.c.bf16 %v2045_v41, %v2045_v41  ;;  %v3279_v48 = vpack.c.bf16 %v2109_v42, %v2109_v42  ;;  %v1918_v49 = vadd.f32 %v4063_v44, %v1783_v43  ;;  %v1982_v50 = vadd.f32 %v4063_v44, %v1847_v45 }
 0x1b0   : > { %v1406_v51 = vpop.f32.mrf.mxu0  ;;  %v1662_v52 = vpop.f32.mrf.mxu1 }
 0x1b1   : > { %2686 = vst.msk [vmem:[%s3779_s23 + $0xb4] sm:$0xf] %vm2640_vm3, %v3215_v57  ;;  %2750 = vst.msk [vmem:[%s3779_s23 + $0x1b4] sm:$0xf] %vm2640_vm3, %v3279_v48  ;;  %v2046_v53 = vmax.f32 %v1918_v49, 0.0  ;;  %v2110_v54 = vmax.f32 %v1982_v50, 0.0  ;;  %v1784_v55 = vmul.f32 %v4073_v59, %v1406_v51  ;;  %v1848_v56 = vmul.f32 %v4073_v59, %v1662_v52 }
 0x1b2   : > { %v1408_v58 = vpop.f32.mrf.mxu0  ;;  %v1664_v60 = vpop.f32.mrf.mxu1 }
 0x1b3   : > { %v3216_v61 = vpack.c.bf16 %v2046_v53, %v2046_v53  ;;  %v3280_v62 = vpack.c.bf16 %v2110_v54, %v2110_v54  ;;  %v1919_v63 = vadd.f32 %v4063_v44, %v1784_v55  ;;  %v1983_v0 = vadd.f32 %v4063_v44, %v1848_v56 }
 0x1b4   : > { %v1411_v1 = vpop.f32.mrf.mxu0  ;;  %v1667_v2 = vpop.f32.mrf.mxu1 }
 0x1b5   : > { %2687 = vst.msk [vmem:[%s3779_s23 + $0xb8] sm:$0xf] %vm2640_vm3, %v3216_v61  ;;  %2751 = vst.msk [vmem:[%s3779_s23 + $0x1b8] sm:$0xf] %vm2640_vm3, %v3280_v62  ;;  %v2047_v3 = vmax.f32 %v1919_v63, 0.0  ;;  %v2111_v4 = vmax.f32 %v1983_v0, 0.0  ;;  %v1785_v5 = vmul.f32 %v4073_v59, %v1411_v1  ;;  %v1849_v6 = vmul.f32 %v4073_v59, %v1667_v2 }
 0x1b6   : > { %v1413_v7 = vpop.f32.mrf.mxu0  ;;  %v1669_v8 = vpop.f32.mrf.mxu1 }
 0x1b7   : > { %v3217_v9 = vpack.c.bf16 %v2047_v3, %v2047_v3  ;;  %v3281_v10 = vpack.c.bf16 %v2111_v4, %v2111_v4  ;;  %v1920_v11 = vadd.f32 %v4063_v44, %v1785_v5  ;;  %v1984_v12 = vadd.f32 %v4063_v44, %v1849_v6 }
 0x1b8   : > { %v1414_v13 = vpop.f32.mrf.mxu0  ;;  %v1670_v14 = vpop.f32.mrf.mxu1 }
 0x1b9   : > { %2688 = vst.msk [vmem:[%s3779_s23 + $0xbc] sm:$0xf] %vm2640_vm3, %v3217_v9  ;;  %2752 = vst.msk [vmem:[%s3779_s23 + $0x1bc] sm:$0xf] %vm2640_vm3, %v3281_v10  ;;  %v2048_v15 = vmax.f32 %v1920_v11, 0.0  ;;  %v2112_v16 = vmax.f32 %v1984_v12, 0.0  ;;  %v1786_v17 = vmul.f32 %v4073_v59, %v1414_v13  ;;  %v1850_v18 = vmul.f32 %v4073_v59, %v1670_v14 }
 0x1ba   : > { %v1416_v19 = vpop.f32.mrf.mxu0  ;;  %v1672_v20 = vpop.f32.mrf.mxu1 }
 0x1bb   : > { %v3218_v21 = vpack.c.bf16 %v2048_v15, %v2048_v15  ;;  %v3282_v22 = vpack.c.bf16 %v2112_v16, %v2112_v16  ;;  %v1921_v23 = vadd.f32 %v4063_v44, %v1786_v17  ;;  %v1985_v24 = vadd.f32 %v4063_v44, %v1850_v18 }
 0x1bc   : > { %v1419_v25 = vpop.f32.mrf.mxu0  ;;  %v1675_v26 = vpop.f32.mrf.mxu1 }
 0x1bd   : > { %2689 = vst.msk [vmem:[%s3779_s23 + $0xc0] sm:$0xf] %vm2640_vm3, %v3218_v21  ;;  %2753 = vst.msk [vmem:[%s3779_s23 + $0x1c0] sm:$0xf] %vm2640_vm3, %v3282_v22  ;;  %v2049_v27 = vmax.f32 %v1921_v23, 0.0  ;;  %v2113_v28 = vmax.f32 %v1985_v24, 0.0  ;;  %v1787_v29 = vmul.f32 %v4073_v59, %v1419_v25  ;;  %v1851_v30 = vmul.f32 %v4073_v59, %v1675_v26 }
 0x1be   : > { %v1421_v31 = vpop.f32.mrf.mxu0  ;;  %v1677_v32 = vpop.f32.mrf.mxu1 }
 0x1bf   : > { %v3219_v33 = vpack.c.bf16 %v2049_v27, %v2049_v27  ;;  %v3283_v34 = vpack.c.bf16 %v2113_v28, %v2113_v28  ;;  %v1922_v35 = vadd.f32 %v4063_v44, %v1787_v29  ;;  %v1986_v36 = vadd.f32 %v4063_v44, %v1851_v30 }
 0x1c0   : > { %v1422_v37 = vpop.f32.mrf.mxu0  ;;  %v1678_v38 = vpop.f32.mrf.mxu1 }
 0x1c1   : > { %2690 = vst.msk [vmem:[%s3779_s23 + $0xc4] sm:$0xf] %vm2640_vm3, %v3219_v33  ;;  %2754 = vst.msk [vmem:[%s3779_s23 + $0x1c4] sm:$0xf] %vm2640_vm3, %v3283_v34  ;;  %v2050_v39 = vmax.f32 %v1922_v35, 0.0  ;;  %v2114_v40 = vmax.f32 %v1986_v36, 0.0  ;;  %v1788_v41 = vmul.f32 %v4073_v59, %v1422_v37  ;;  %v1852_v42 = vmul.f32 %v4073_v59, %v1678_v38 }
 0x1c2   : > { %v1424_v43 = vpop.f32.mrf.mxu0  ;;  %v1680_v45 = vpop.f32.mrf.mxu1 }
 0x1c3   : > { %v3220_v46 = vpack.c.bf16 %v2050_v39, %v2050_v39  ;;  %v3284_v47 = vpack.c.bf16 %v2114_v40, %v2114_v40  ;;  %v1923_v57 = vadd.f32 %v4063_v44, %v1788_v41  ;;  %v1987_v48 = vadd.f32 %v4063_v44, %v1852_v42 }
 0x1c4   : > { %v1427_v49 = vpop.f32.mrf.mxu0  ;;  %v1683_v50 = vpop.f32.mrf.mxu1 }
 0x1c5   : > { %2691 = vst.msk [vmem:[%s3779_s23 + $0xc8] sm:$0xf] %vm2640_vm3, %v3220_v46  ;;  %2755 = vst.msk [vmem:[%s3779_s23 + $0x1c8] sm:$0xf] %vm2640_vm3, %v3284_v47  ;;  %v2051_v51 = vmax.f32 %v1923_v57, 0.0  ;;  %v2115_v52 = vmax.f32 %v1987_v48, 0.0  ;;  %v1789_v53 = vmul.f32 %v4073_v59, %v1427_v49  ;;  %v1853_v54 = vmul.f32 %v4073_v59, %v1683_v50 }
 0x1c6   : > { %v1429_v55 = vpop.f32.mrf.mxu0  ;;  %v1685_v56 = vpop.f32.mrf.mxu1 }
 0x1c7   : > { %v3221_v58 = vpack.c.bf16 %v2051_v51, %v2051_v51  ;;  %v3285_v60 = vpack.c.bf16 %v2115_v52, %v2115_v52  ;;  %v1924_v61 = vadd.f32 %v4063_v44, %v1789_v53  ;;  %v1988_v62 = vadd.f32 %v4063_v44, %v1853_v54 }
 0x1c8   : > { %v1430_v63 = vpop.f32.mrf.mxu0  ;;  %v1686_v0 = vpop.f32.mrf.mxu1 }
 0x1c9   : > { %2692 = vst.msk [vmem:[%s3779_s23 + $0xcc] sm:$0xf] %vm2640_vm3, %v3221_v58  ;;  %2756 = vst.msk [vmem:[%s3779_s23 + $0x1cc] sm:$0xf] %vm2640_vm3, %v3285_v60  ;;  %v2052_v1 = vmax.f32 %v1924_v61, 0.0  ;;  %v2116_v2 = vmax.f32 %v1988_v62, 0.0  ;;  %v1790_v3 = vmul.f32 %v4073_v59, %v1430_v63  ;;  %v1854_v4 = vmul.f32 %v4073_v59, %v1686_v0 }
 0x1ca   : > { %v1432_v5 = vpop.f32.mrf.mxu0  ;;  %v1688_v6 = vpop.f32.mrf.mxu1 }
 0x1cb   : > { %v3222_v7 = vpack.c.bf16 %v2052_v1, %v2052_v1  ;;  %v3286_v8 = vpack.c.bf16 %v2116_v2, %v2116_v2  ;;  %v1925_v9 = vadd.f32 %v4063_v44, %v1790_v3  ;;  %v1989_v10 = vadd.f32 %v4063_v44, %v1854_v4 }
 0x1cc   : > { %v1435_v11 = vpop.f32.mrf.mxu0  ;;  %v1691_v12 = vpop.f32.mrf.mxu1 }
 0x1cd   : > { %2693 = vst.msk [vmem:[%s3779_s23 + $0xd0] sm:$0xf] %vm2640_vm3, %v3222_v7  ;;  %2757 = vst.msk [vmem:[%s3779_s23 + $0x1d0] sm:$0xf] %vm2640_vm3, %v3286_v8  ;;  %v2053_v13 = vmax.f32 %v1925_v9, 0.0  ;;  %v2117_v14 = vmax.f32 %v1989_v10, 0.0  ;;  %v1791_v15 = vmul.f32 %v4073_v59, %v1435_v11  ;;  %v1855_v16 = vmul.f32 %v4073_v59, %v1691_v12 }
 0x1ce   : > { %v1437_v17 = vpop.f32.mrf.mxu0  ;;  %v1693_v18 = vpop.f32.mrf.mxu1 }
 0x1cf   : > { %v3223_v19 = vpack.c.bf16 %v2053_v13, %v2053_v13  ;;  %v3287_v20 = vpack.c.bf16 %v2117_v14, %v2117_v14  ;;  %v1926_v21 = vadd.f32 %v4063_v44, %v1791_v15  ;;  %v1990_v22 = vadd.f32 %v4063_v44, %v1855_v16 }
 0x1d0   : > { %v1438_v23 = vpop.f32.mrf.mxu0  ;;  %v1694_v24 = vpop.f32.mrf.mxu1 }
 0x1d1   : > { %2694 = vst.msk [vmem:[%s3779_s23 + $0xd4] sm:$0xf] %vm2640_vm3, %v3223_v19  ;;  %2758 = vst.msk [vmem:[%s3779_s23 + $0x1d4] sm:$0xf] %vm2640_vm3, %v3287_v20  ;;  %v2054_v25 = vmax.f32 %v1926_v21, 0.0  ;;  %v2118_v26 = vmax.f32 %v1990_v22, 0.0  ;;  %v1792_v27 = vmul.f32 %v4073_v59, %v1438_v23  ;;  %v1856_v28 = vmul.f32 %v4073_v59, %v1694_v24 }
 0x1d2   : > { %v1440_v29 = vpop.f32.mrf.mxu0  ;;  %v1696_v30 = vpop.f32.mrf.mxu1 }
 0x1d3   : > { %v3224_v31 = vpack.c.bf16 %v2054_v25, %v2054_v25  ;;  %v3288_v32 = vpack.c.bf16 %v2118_v26, %v2118_v26  ;;  %v1927_v33 = vadd.f32 %v4063_v44, %v1792_v27  ;;  %v1991_v34 = vadd.f32 %v4063_v44, %v1856_v28 }
 0x1d4   : > { %v1443_v35 = vpop.f32.mrf.mxu0  ;;  %v1699_v36 = vpop.f32.mrf.mxu1 }
 0x1d5   : > { %2695 = vst.msk [vmem:[%s3779_s23 + $0xd8] sm:$0xf] %vm2640_vm3, %v3224_v31  ;;  %2759 = vst.msk [vmem:[%s3779_s23 + $0x1d8] sm:$0xf] %vm2640_vm3, %v3288_v32  ;;  %v2055_v37 = vmax.f32 %v1927_v33, 0.0  ;;  %v2119_v38 = vmax.f32 %v1991_v34, 0.0  ;;  %v1793_v39 = vmul.f32 %v4073_v59, %v1443_v35  ;;  %v1857_v40 = vmul.f32 %v4073_v59, %v1699_v36 }
 0x1d6   : > { %v1445_v41 = vpop.f32.mrf.mxu0  ;;  %v1701_v42 = vpop.f32.mrf.mxu1 }
 0x1d7   : > { %v3225_v43 = vpack.c.bf16 %v2055_v37, %v2055_v37  ;;  %v3289_v45 = vpack.c.bf16 %v2119_v38, %v2119_v38  ;;  %v1928_v46 = vadd.f32 %v4063_v44, %v1793_v39  ;;  %v1992_v47 = vadd.f32 %v4063_v44, %v1857_v40 }
 0x1d8   : > { %v1446_v57 = vpop.f32.mrf.mxu0  ;;  %v1702_v48 = vpop.f32.mrf.mxu1 }
 0x1d9   : > { %2696 = vst.msk [vmem:[%s3779_s23 + $0xdc] sm:$0xf] %vm2640_vm3, %v3225_v43  ;;  %2760 = vst.msk [vmem:[%s3779_s23 + $0x1dc] sm:$0xf] %vm2640_vm3, %v3289_v45  ;;  %v2056_v49 = vmax.f32 %v1928_v46, 0.0  ;;  %v2120_v50 = vmax.f32 %v1992_v47, 0.0  ;;  %v1794_v51 = vmul.f32 %v4073_v59, %v1446_v57  ;;  %v1858_v52 = vmul.f32 %v4073_v59, %v1702_v48 }
 0x1da   : > { %v1448_v53 = vpop.f32.mrf.mxu0  ;;  %v1704_v54 = vpop.f32.mrf.mxu1 }
 0x1db   : > { %v3226_v55 = vpack.c.bf16 %v2056_v49, %v2056_v49  ;;  %v3290_v56 = vpack.c.bf16 %v2120_v50, %v2120_v50  ;;  %v1929_v58 = vadd.f32 %v4063_v44, %v1794_v51  ;;  %v1993_v60 = vadd.f32 %v4063_v44, %v1858_v52 }
 0x1dc   : > { %v1451_v61 = vpop.f32.mrf.mxu0  ;;  %v1707_v62 = vpop.f32.mrf.mxu1 }
 0x1dd   : > { %2697 = vst.msk [vmem:[%s3779_s23 + $0xe0] sm:$0xf] %vm2640_vm3, %v3226_v55  ;;  %2761 = vst.msk [vmem:[%s3779_s23 + $0x1e0] sm:$0xf] %vm2640_vm3, %v3290_v56  ;;  %v2057_v63 = vmax.f32 %v1929_v58, 0.0  ;;  %v2121_v0 = vmax.f32 %v1993_v60, 0.0  ;;  %v1795_v1 = vmul.f32 %v4073_v59, %v1451_v61  ;;  %v1859_v2 = vmul.f32 %v4073_v59, %v1707_v62 }
 0x1de   : > { %v1453_v3 = vpop.f32.mrf.mxu0  ;;  %v1709_v4 = vpop.f32.mrf.mxu1 }
 0x1df   : > { %v3227_v5 = vpack.c.bf16 %v2057_v63, %v2057_v63  ;;  %v3291_v6 = vpack.c.bf16 %v2121_v0, %v2121_v0  ;;  %v1930_v7 = vadd.f32 %v4063_v44, %v1795_v1  ;;  %v1994_v8 = vadd.f32 %v4063_v44, %v1859_v2 }
 0x1e0   : > { %v1454_v9 = vpop.f32.mrf.mxu0  ;;  %v1710_v10 = vpop.f32.mrf.mxu1 }
 0x1e1   : > { %2698 = vst.msk [vmem:[%s3779_s23 + $0xe4] sm:$0xf] %vm2640_vm3, %v3227_v5  ;;  %2762 = vst.msk [vmem:[%s3779_s23 + $0x1e4] sm:$0xf] %vm2640_vm3, %v3291_v6  ;;  %v2058_v11 = vmax.f32 %v1930_v7, 0.0  ;;  %v2122_v12 = vmax.f32 %v1994_v8, 0.0  ;;  %v1796_v13 = vmul.f32 %v4073_v59, %v1454_v9  ;;  %v1860_v14 = vmul.f32 %v4073_v59, %v1710_v10 }
 0x1e2   : > { %v1456_v15 = vpop.f32.mrf.mxu0  ;;  %v1712_v16 = vpop.f32.mrf.mxu1 }
 0x1e3   : > { %v3228_v17 = vpack.c.bf16 %v2058_v11, %v2058_v11  ;;  %v3292_v18 = vpack.c.bf16 %v2122_v12, %v2122_v12  ;;  %v1931_v19 = vadd.f32 %v4063_v44, %v1796_v13  ;;  %v1995_v20 = vadd.f32 %v4063_v44, %v1860_v14 }
 0x1e4   : > { %v1459_v21 = vpop.f32.mrf.mxu0  ;;  %v1715_v22 = vpop.f32.mrf.mxu1 }
 0x1e5   : > { %2699 = vst.msk [vmem:[%s3779_s23 + $0xe8] sm:$0xf] %vm2640_vm3, %v3228_v17  ;;  %2763 = vst.msk [vmem:[%s3779_s23 + $0x1e8] sm:$0xf] %vm2640_vm3, %v3292_v18  ;;  %v2059_v23 = vmax.f32 %v1931_v19, 0.0  ;;  %v2123_v24 = vmax.f32 %v1995_v20, 0.0  ;;  %v1797_v25 = vmul.f32 %v4073_v59, %v1459_v21  ;;  %v1861_v26 = vmul.f32 %v4073_v59, %v1715_v22 }
 0x1e6   : > { %v1461_v27 = vpop.f32.mrf.mxu0  ;;  %v1717_v28 = vpop.f32.mrf.mxu1 }
 0x1e7   : > { %v3229_v29 = vpack.c.bf16 %v2059_v23, %v2059_v23  ;;  %v3293_v30 = vpack.c.bf16 %v2123_v24, %v2123_v24  ;;  %v1932_v31 = vadd.f32 %v4063_v44, %v1797_v25  ;;  %v1996_v32 = vadd.f32 %v4063_v44, %v1861_v26 }
 0x1e8   : > { %v1462_v33 = vpop.f32.mrf.mxu0  ;;  %v1718_v34 = vpop.f32.mrf.mxu1 }
 0x1e9   : > { %2700 = vst.msk [vmem:[%s3779_s23 + $0xec] sm:$0xf] %vm2640_vm3, %v3229_v29  ;;  %2764 = vst.msk [vmem:[%s3779_s23 + $0x1ec] sm:$0xf] %vm2640_vm3, %v3293_v30  ;;  %v2060_v35 = vmax.f32 %v1932_v31, 0.0  ;;  %v2124_v36 = vmax.f32 %v1996_v32, 0.0  ;;  %v1798_v37 = vmul.f32 %v4073_v59, %v1462_v33  ;;  %v1862_v38 = vmul.f32 %v4073_v59, %v1718_v34 }
 0x1ea   : > { %v1464_v39 = vpop.f32.mrf.mxu0  ;;  %v1720_v40 = vpop.f32.mrf.mxu1 }
 0x1eb   : > { %v3230_v41 = vpack.c.bf16 %v2060_v35, %v2060_v35  ;;  %v3294_v42 = vpack.c.bf16 %v2124_v36, %v2124_v36  ;;  %v1933_v43 = vadd.f32 %v4063_v44, %v1798_v37  ;;  %v1997_v45 = vadd.f32 %v4063_v44, %v1862_v38 }
 0x1ec   : > { %v1467_v46 = vpop.f32.mrf.mxu0  ;;  %v1723_v47 = vpop.f32.mrf.mxu1 }
 0x1ed   : > { %2701 = vst.msk [vmem:[%s3779_s23 + $0xf0] sm:$0xf] %vm2640_vm3, %v3230_v41  ;;  %2765 = vst.msk [vmem:[%s3779_s23 + $0x1f0] sm:$0xf] %vm2640_vm3, %v3294_v42  ;;  %v2061_v57 = vmax.f32 %v1933_v43, 0.0  ;;  %v2125_v48 = vmax.f32 %v1997_v45, 0.0  ;;  %v1799_v49 = vmul.f32 %v4073_v59, %v1467_v46  ;;  %v1863_v50 = vmul.f32 %v4073_v59, %v1723_v47 }
 0x1ee   : > { %v1469_v51 = vpop.f32.mrf.mxu0  ;;  %v1725_v52 = vpop.f32.mrf.mxu1 }
 0x1ef   : > { %v3231_v53 = vpack.c.bf16 %v2061_v57, %v2061_v57  ;;  %v3295_v54 = vpack.c.bf16 %v2125_v48, %v2125_v48  ;;  %v1934_v55 = vadd.f32 %v4063_v44, %v1799_v49  ;;  %v1998_v56 = vadd.f32 %v4063_v44, %v1863_v50 }
 0x1f0   : > { %v1470_v58 = vpop.f32.mrf.mxu0  ;;  %v1726_v60 = vpop.f32.mrf.mxu1 }
 0x1f1   : > { %2702 = vst.msk [vmem:[%s3779_s23 + $0xf4] sm:$0xf] %vm2640_vm3, %v3231_v53  ;;  %2766 = vst.msk [vmem:[%s3779_s23 + $0x1f4] sm:$0xf] %vm2640_vm3, %v3295_v54  ;;  %v2062_v61 = vmax.f32 %v1934_v55, 0.0  ;;  %v2126_v62 = vmax.f32 %v1998_v56, 0.0  ;;  %v1800_v63 = vmul.f32 %v4073_v59, %v1470_v58  ;;  %v1864_v0 = vmul.f32 %v4073_v59, %v1726_v60 }
 0x1f2   : > { %v1472_v1 = vpop.f32.mrf.mxu0  ;;  %v1728_v2 = vpop.f32.mrf.mxu1 }
 0x1f3   : > { %v3232_v3 = vpack.c.bf16 %v2062_v61, %v2062_v61  ;;  %v3296_v4 = vpack.c.bf16 %v2126_v62, %v2126_v62  ;;  %v1935_v5 = vadd.f32 %v4063_v44, %v1800_v63  ;;  %v1999_v6 = vadd.f32 %v4063_v44, %v1864_v0 }
 0x1f5   : > { %2703 = vst.msk [vmem:[%s3779_s23 + $0xf8] sm:$0xf] %vm2640_vm3, %v3232_v3  ;;  %2767 = vst.msk [vmem:[%s3779_s23 + $0x1f8] sm:$0xf] %vm2640_vm3, %v3296_v4  ;;  %v2063_v7 = vmax.f32 %v1935_v5, 0.0  ;;  %v2127_v8 = vmax.f32 %v1999_v6, 0.0 }
 0x1f7   : > { %v3233_v9 = vpack.c.bf16 %v2063_v7, %v2063_v7  ;;  %v3297_v10 = vpack.c.bf16 %v2127_v8, %v2127_v8 }
 0x1f9   : > { %2704 = vst.msk [vmem:[%s3779_s23 + $0xfc] sm:$0xf] %vm2640_vm3, %v3233_v9  ;;  %2768 = vst.msk [vmem:[%s3779_s23 + $0x1fc] sm:$0xf] %vm2640_vm3, %v3297_v10 }
 0x1fa PF: > { %s14_s15 = sadd.s32 1, %s3522_s15  }
 0x1fb   : > { %p11_p4 = scmp.ge.s32.totalorder %s14_s15, 4  }
 0x1fd   :  { %13 = sbr.rel (!%p11_p4) target bundleno = 1 (0x1), region = 66 }

// kernel: _lambda_.16
= control target key start
LH: loop header
LB: loop body
LE: loop exit
PB: predicated region body
PF: predicated region fallthrough
CT: control target
= control target key end

     0   :  { %s285_s0 = inlined_call_operand.vmem [shape: bf16[32,128], index: 0, kind: input, shape index: {}]   ;;  %s286_s1 = inlined_call_operand.vmem [shape: bf16[32,128], index: 1, kind: input, shape index: {}]   ;;  %s287_s2 = inlined_call_operand.vmem [shape: bf16[32,128], index: 2, kind: input, shape index: {}]   ;;  %s288_s3 = inlined_call_operand.vmem [shape: bf16[32,128], index: 3, kind: input, shape index: {}]   ;;  %s289_s4 = inlined_call_operand.vmem [shape: bf16[32,128], index: 4, kind: input, shape index: {}]   ;;  %s290_s5 = inlined_call_operand.vmem [shape: bf16[32,128], index: 5, kind: input, shape index: {}]   ;;  %s291_s6 = inlined_call_operand.vmem [shape: bf16[32,128], index: 6, kind: input, shape index: {}]   ;;  %s292_s7 = inlined_call_operand.vmem [shape: bf16[32,128], index: 7, kind: input, shape index: {}]   ;;  %s293_s8 = inlined_call_operand.vmem [shape: bf16[32,128], index: 8, kind: input, shape index: {}]   ;;  %s294_s9 = inlined_call_operand.vmem [shape: bf16[32,128], index: 9, kind: output, shape index: {}]  }
   0x1   :  { %v32_v0 = vld [vmem:[%s285_s0] sm:$0xf]  ;;  %v33_v1 = vld [vmem:[%s285_s0 + $0x4] sm:$0xf]  ;;  %v34_v18 = vld [vmem:[%s285_s0 + $0x8] sm:$0xf] }
   0x2   :  { %v36_v2 = vld [vmem:[%s286_s1] sm:$0xf]  ;;  %v37_v3 = vld [vmem:[%s286_s1 + $0x4] sm:$0xf]  ;;  %v35_v19 = vld [vmem:[%s285_s0 + $0xc] sm:$0xf] }
   0x3   :  { %v40_v4 = vmax.bf16 %v36_v2, %v32_v0  ;;  %v44_v5 = vld [vmem:[%s287_s2] sm:$0xf]  ;;  %v45_v6 = vld [vmem:[%s287_s2 + $0x4] sm:$0xf]  ;;  %v41_v7 = vmax.bf16 %v37_v3, %v33_v1  ;;  %v38_v20 = vld [vmem:[%s286_s1 + $0x8] sm:$0xf] }
   0x4   :  { %v52_v8 = vld [vmem:[%s288_s3] sm:$0xf]  ;;  %v53_v10 = vld [vmem:[%s288_s3 + $0x4] sm:$0xf]  ;;  %v39_v22 = vld [vmem:[%s286_s1 + $0xc] sm:$0xf]  ;;  %v42_v23 = vmax.bf16 %v38_v20, %v34_v18 }
   0x5   :  { %v48_v9 = vmax.bf16 %v44_v5, %v40_v4  ;;  %v49_v11 = vmax.bf16 %v45_v6, %v41_v7  ;;  %v60_v12 = vld [vmem:[%s289_s4] sm:$0xf]  ;;  %v61_v14 = vld [vmem:[%s289_s4 + $0x4] sm:$0xf]  ;;  %v46_v24 = vld [vmem:[%s287_s2 + $0x8] sm:$0xf]  ;;  %v43_v28 = vmax.bf16 %v39_v22, %v35_v19 }
   0x6   :  { %v68_v15 = vld [vmem:[%s290_s5] sm:$0xf]  ;;  %v69_v16 = vld [vmem:[%s290_s5 + $0x4] sm:$0xf]  ;;  %v47_v25 = vld [vmem:[%s287_s2 + $0xc] sm:$0xf]  ;;  %v50_v32 = vmax.bf16 %v46_v24, %v42_v23 }
   0x7   :  { %v56_v13 = vmax.bf16 %v52_v8, %v48_v9  ;;  %v57_v17 = vmax.bf16 %v53_v10, %v49_v11  ;;  %v76_v27 = vld [vmem:[%s291_s6] sm:$0xf]  ;;  %v54_v29 = vld [vmem:[%s288_s3 + $0x8] sm:$0xf]  ;;  %v77_v31 = vld [vmem:[%s291_s6 + $0x4] sm:$0xf]  ;;  %v51_v36 = vmax.bf16 %v47_v25, %v43_v28 }
   0x8   :  { %v55_v33 = vld [vmem:[%s288_s3 + $0xc] sm:$0xf]  ;;  %v84_v35 = vld [vmem:[%s292_s7] sm:$0xf]  ;;  %v62_v37 = vld [vmem:[%s289_s4 + $0x8] sm:$0xf]  ;;  %v58_v40 = vmax.bf16 %v54_v29, %v50_v32 }
   0x9   :  { %v64_v21 = vmax.bf16 %v60_v12, %v56_v13  ;;  %v65_v26 = vmax.bf16 %v61_v14, %v57_v17  ;;  %v85_v39 = vld [vmem:[%s292_s7 + $0x4] sm:$0xf]  ;;  %v63_v41 = vld [vmem:[%s289_s4 + $0xc] sm:$0xf]  ;;  %v92_v43 = vld [vmem:[%s293_s8] sm:$0xf]  ;;  %v59_v44 = vmax.bf16 %v55_v33, %v51_v36 }
   0xa   :  { %v70_v45 = vld [vmem:[%s290_s5 + $0x8] sm:$0xf]  ;;  %v93_v47 = vld [vmem:[%s293_s8 + $0x4] sm:$0xf]  ;;  %v66_v48 = vmax.bf16 %v62_v37, %v58_v40  ;;  %v71_v49 = vld [vmem:[%s290_s5 + $0xc] sm:$0xf] }
   0xb   :  { %v72_v30 = vmax.bf16 %v68_v15, %v64_v21  ;;  %v73_v34 = vmax.bf16 %v69_v16, %v65_v26  ;;  %v67_v51 = vmax.bf16 %v63_v41, %v59_v44  ;;  %v78_v52 = vld [vmem:[%s291_s6 + $0x8] sm:$0xf]  ;;  %v79_v55 = vld [vmem:[%s291_s6 + $0xc] sm:$0xf] }
   0xc   :  { %v74_v54 = vmax.bf16 %v70_v45, %v66_v48  ;;  %v86_v58 = vld [vmem:[%s292_s7 + $0x8] sm:$0xf]  ;;  %v87_v60 = vld [vmem:[%s292_s7 + $0xc] sm:$0xf] }
   0xd   :  { %v80_v38 = vmax.bf16 %v76_v27, %v72_v30  ;;  %v81_v42 = vmax.bf16 %v77_v31, %v73_v34  ;;  %v75_v57 = vmax.bf16 %v71_v49, %v67_v51  ;;  %v94_v63 = vld [vmem:[%s293_s8 + $0x8] sm:$0xf]  ;;  %v95_v1 = vld [vmem:[%s293_s8 + $0xc] sm:$0xf] }
   0xe   :  { %v82_v59 = vmax.bf16 %v78_v52, %v74_v54 }
   0xf   :  { %v88_v46 = vmax.bf16 %v84_v35, %v80_v38  ;;  %v89_v50 = vmax.bf16 %v85_v39, %v81_v42  ;;  %v83_v62 = vmax.bf16 %v79_v55, %v75_v57 }
  0x10   :  { %v90_v0 = vmax.bf16 %v86_v58, %v82_v59 }
  0x11   :  { %v96_v53 = vmax.bf16 %v92_v43, %v88_v46  ;;  %v97_v56 = vmax.bf16 %v93_v47, %v89_v50  ;;  %v91_v2 = vmax.bf16 %v87_v60, %v83_v62 }
  0x12   :  { %v98_v3 = vmax.bf16 %v94_v63, %v90_v0 }
  0x13   :  { %v118_v61 = vcombine.low %v96_v53, %v97_v56  ;;  %v99_v4 = vmax.bf16 %v95_v1, %v91_v2 }
  0x15   :  { %112 = vst [vmem:[%s294_s9] sm:$0xff] %v118_v61   ;;  %v119_v5 = vcombine.low %v98_v3, %v99_v4 }
  0x17   :  { %120 = vst [vmem:[%s294_s9 + $0x8] sm:$0xff] %v119_v5  }

// kernel: _lambda_.17
= control target key start
LH: loop header
LB: loop body
LE: loop exit
PB: predicated region body
PF: predicated region fallthrough
CT: control target
= control target key end

     0   :  { %s1142_s15 = smov 0   ;;  %s1355_s0 = inlined_call_operand.vmem [shape: bf16[512,72], index: 0, kind: input, shape index: {}]   ;;  %s1356_s1 = inlined_call_operand.vmem [shape: bf16[72,8], index: 1, kind: input, shape index: {}]   ;;  %s1357_s2 = inlined_call_operand.vmem [shape: f32[1,8], index: 2, kind: input, shape index: {}]   ;;  %s1358_s3 = inlined_call_operand.vmem [shape: f32[1,8], index: 3, kind: input, shape index: {}]   ;;  %s1359_s4 = inlined_call_operand.vmem [shape: bf16[512,8], index: 4, kind: output, shape index: {}]  }
   0x1 LB: > { %s891_s16 = sadd.s32 4294967295, %s1115_s15   ;;  %p895_p0 = scmp.ge.s32.totalorder %s1115_s15, 1  ;;  %s1115_s15 = sphi %s1142_s15, %s14_s15  }
   0x2   : > { %p163_p1 = scmp.lt.s32.totalorder %s1115_s15, 3 }
   0x4   : > { %p164_p2 = pnand %p895_p0, %p163_p1 }
   0x5   : > { %s896_s21 = sshll.u32 (!%p164_p2), %s891_s16, 5 }
   0x6   : > { %167 = sbr.rel (%p164_p2) target bundleno = 267 (0x10b), region = 36  ;;  %p190_p3 = scmp.lt.s32.totalorder (!%p164_p2), %s896_s21, 63 }
   0xb   : > { %v1088_v0 = vld [vmem:[%s1356_s1 + $0x20] ss:$0 sps:$4 sm:$0xff]   ;;  %vm399_vm0 = vcmask 1043456   ;;  %v1089_v1 = vld [vmem:[%s1356_s1 + $0x18] sm:$0xff]   ;;  %v1090_v3 = vld [vmem:[%s1356_s1 + $0x10] sm:$0xff]   ;;  %s1361_s21 = smov (!%p190_p3, %s896_s21), 63 }
   0xc   : > { %1078 = vmatprep.subr.msk.bf16.mxu0 %vm399_vm0, %v1088_v0  ;;  %1079 = vmatprep.subr.msk.bf16.mxu1 %vm399_vm0, %v1088_v0  ;;  %v401_v2 = vsel %vm399_vm0, %v1088_v0, 0  ;;  %v1091_v4 = vld [vmem:[%s1356_s1 + $0x8] sm:$0xff]   ;;  %s897_s26 = sshll.u32 %s1361_s21, 2  ;;  %vm350_vm1 = vcmask 588800   ;;  %v1092_v7 = vld [vmem:[%s1356_s1] sm:$0xff]   ;;  %vm802_vm2 = vcmask 60416  }
   0xd   : > { %1027 = vmatpush3.bf16.msra.mxu0 %v401_v2  ;;  %1073 = vmatpush3.bf16.msra.mxu1 %v401_v2  ;;  %s1170_s29 = scalar_lea.vmem %s1355_s0, %s897_s26  ;;  %v1210_v22 = vld [vmem:[%s1357_s2] ss:$0 sm:$0xff]  ;;  %s1230_s12 = scalar_lea.vmem %s1359_s4, %s897_s26 }
   0xe   : > { %1028 = vmatprep.subr.bf16.mxu0 %v1089_v1  ;;  %1069 = vmatprep.subr.bf16.mxu1 %v1089_v1  ;;  %v1093_v5 = vld [vmem:[%s1170_s29] sm:$0xff]   ;;  %v1095_v8 = vld [vmem:[%s1170_s29 + $0x8] sm:$0xff]   ;;  %v1097_v10 = vld [vmem:[%s1170_s29 + $0x10] sm:$0xff]  }
   0xf   : > { %v1094_v6 = vld [vmem:[%s1170_s29 + $0x40] sm:$0xff]   ;;  %1036 = vmatprep.mubr.msk.bf16.mxu0 %vm350_vm1, %v1093_v5  ;;  %v1096_v9 = vld [vmem:[%s1170_s29 + $0x48] sm:$0xff]   ;;  %v1098_v11 = vld [vmem:[%s1170_s29 + $0x50] sm:$0xff]  }
  0x10   : > { %1052 = vmatprep.mubr.msk.bf16.mxu1 %vm350_vm1, %v1094_v6  ;;  %v1099_v12 = vld [vmem:[%s1170_s29 + $0x18] sm:$0xff]   ;;  %v1101_v14 = vld [vmem:[%s1170_s29 + $0x20] sm:$0xff]   ;;  %v1103_v16 = vld [vmem:[%s1170_s29 + $0x28] sm:$0xff]  }
  0x11   : > { %1029 = vmatpush3.bf16.msra.mxu0 %v1089_v1  ;;  %1074 = vmatpush3.bf16.msra.mxu1 %v1089_v1  ;;  %v1100_v13 = vld [vmem:[%s1170_s29 + $0x58] sm:$0xff]   ;;  %v1102_v15 = vld [vmem:[%s1170_s29 + $0x60] sm:$0xff]   ;;  %v1104_v17 = vld [vmem:[%s1170_s29 + $0x68] sm:$0xff]  }
  0x12   : > { %1030 = vmatprep.subr.bf16.mxu0 %v1090_v3  ;;  %1070 = vmatprep.subr.bf16.mxu1 %v1090_v3  ;;  %v1105_v18 = vld [vmem:[%s1170_s29 + $0x30] sm:$0xff]   ;;  %v1107_v20 = vld [vmem:[%s1170_s29 + $0x38] sm:$0xff]   ;;  %v1215_v24 = vld [vmem:[%s1358_s3] ss:$0 sm:$0xff] }
  0x13   : > { %v1106_v19 = vld [vmem:[%s1170_s29 + $0x70] sm:$0xff]   ;;  %v1108_v21 = vld [vmem:[%s1170_s29 + $0x78] sm:$0xff]  }
  0x15   : > { %1031 = vmatpush3.bf16.msra.mxu0 %v1090_v3  ;;  %1075 = vmatpush3.bf16.msra.mxu1 %v1090_v3 }
  0x16   : > { %1032 = vmatprep.subr.bf16.mxu0 %v1091_v4  ;;  %1071 = vmatprep.subr.bf16.mxu1 %v1091_v4 }
  0x19   : > { %1033 = vmatpush3.bf16.msra.mxu0 %v1091_v4  ;;  %1076 = vmatpush3.bf16.msra.mxu1 %v1091_v4 }
  0x1a   : > { %1034 = vmatprep.subr.bf16.mxu0 %v1092_v7  ;;  %1072 = vmatprep.subr.bf16.mxu1 %v1092_v7 }
  0x1d   : > { %1035 = vmatpush3.bf16.msra.mxu0 %v1092_v7  ;;  %1077 = vmatpush3.bf16.msra.mxu1 %v1092_v7 }
  0x20   : > { %1037 = vmatmul.mubr.msk.bf16.vlgmr.msra.gmra.mxu0 %vm350_vm1, %v1095_v8  ;;  %1053 = vmatmul.mubr.msk.bf16.vlgmr.msra.gmra.mxu1 %vm350_vm1, %v1096_v9 }
  0x21   : > { %1040 = vmatprep.mubr.msk.bf16.mxu0 %vm350_vm1, %v1097_v10  ;;  %1056 = vmatprep.mubr.msk.bf16.mxu1 %vm350_vm1, %v1098_v11 }
  0x28   : > { %1041 = vmatmul.mubr.msk.bf16.gmra.mxu0 %vm350_vm1, %v1099_v12  ;;  %1057 = vmatmul.mubr.msk.bf16.gmra.mxu1 %vm350_vm1, %v1100_v13 }
  0x29   : > { %1044 = vmatprep.mubr.msk.bf16.mxu0 %vm350_vm1, %v1101_v14  ;;  %1060 = vmatprep.mubr.msk.bf16.mxu1 %vm350_vm1, %v1102_v15 }
  0x30   : > { %1045 = vmatmul.mubr.msk.bf16.gmra.mxu0 %vm350_vm1, %v1103_v16  ;;  %1061 = vmatmul.mubr.msk.bf16.gmra.mxu1 %vm350_vm1, %v1104_v17 }
  0x31   : > { %1048 = vmatprep.mubr.msk.bf16.mxu0 %vm350_vm1, %v1105_v18  ;;  %1064 = vmatprep.mubr.msk.bf16.mxu1 %vm350_vm1, %v1106_v19 }
  0x38   : > { %1049 = vmatmul.mubr.msk.bf16.gmra.mxu0 %vm350_vm1, %v1107_v20  ;;  %1065 = vmatmul.mubr.msk.bf16.gmra.mxu1 %vm350_vm1, %v1108_v21 }
  0xe0   : > { %v1038_v23 = vpop.f32.mrf.mxu0  ;;  %v1054_v25 = vpop.f32.mrf.mxu1 }
  0xe1   : > { %v573_v26 = vmul.f32 %v1038_v23, %v1210_v22  ;;  %v589_v27 = vmul.f32 %v1054_v25, %v1210_v22 }
  0xe2   : > { %v437_v28 = vpop.f32.mrf.mxu0  ;;  %v501_v29 = vpop.f32.mrf.mxu1 }
  0xe3   : > { %v612_v30 = vadd.f32 %v1215_v24, %v573_v26  ;;  %v628_v31 = vadd.f32 %v1215_v24, %v589_v27  ;;  %v571_v32 = vmul.f32 %v1210_v22, %v437_v28  ;;  %v587_v33 = vmul.f32 %v1210_v22, %v501_v29 }
  0xe4   : > { %v1039_v34 = vpop.f32.mrf.mxu0  ;;  %v1055_v35 = vpop.f32.mrf.mxu1 }
  0xe5   : > { %v644_v36 = vmax.f32 %v612_v30, 0.0  ;;  %v660_v37 = vmax.f32 %v628_v31, 0.0  ;;  %v610_v38 = vadd.f32 %v1215_v24, %v571_v32  ;;  %v626_v39 = vadd.f32 %v1215_v24, %v587_v33 }
  0xe6   : > { %v574_v40 = vmul.f32 %v1039_v34, %v1210_v22  ;;  %v590_v41 = vmul.f32 %v1055_v35, %v1210_v22  ;;  %v440_v42 = vpop.f32.mrf.mxu0  ;;  %v504_v43 = vpop.f32.mrf.mxu1 }
  0xe7   : > { %v975_v44 = vpack.c.bf16 %v644_v36, %v644_v36  ;;  %v991_v45 = vpack.c.bf16 %v660_v37, %v660_v37  ;;  %v642_v46 = vmax.f32 %v610_v38, 0.0  ;;  %v658_v47 = vmax.f32 %v626_v39, 0.0 }
  0xe8   : > { %v613_v48 = vadd.f32 %v1215_v24, %v574_v40  ;;  %v629_v49 = vadd.f32 %v1215_v24, %v590_v41  ;;  %v572_v50 = vmul.f32 %v1210_v22, %v440_v42  ;;  %v588_v51 = vmul.f32 %v1210_v22, %v504_v43  ;;  %v1042_v52 = vpop.f32.mrf.mxu0  ;;  %v1058_v53 = vpop.f32.mrf.mxu1 }
  0xe9   : > { %805 = vst.msk [vmem:[%s1230_s12 + $0x8] sm:$0xf] %vm802_vm2, %v975_v44  ;;  %821 = vst.msk [vmem:[%s1230_s12 + $0x48] sm:$0xf] %vm802_vm2, %v991_v45  ;;  %v973_v54 = vpack.c.bf16 %v642_v46, %v642_v46  ;;  %v989_v55 = vpack.c.bf16 %v658_v47, %v658_v47  ;;  %v577_v56 = vmul.f32 %v1042_v52, %v1210_v22 }
  0xea   : > { %v593_v57 = vmul.f32 %v1058_v53, %v1210_v22  ;;  %v645_v58 = vmax.f32 %v613_v48, 0.0  ;;  %v661_v59 = vmax.f32 %v629_v49, 0.0  ;;  %v611_v60 = vadd.f32 %v1215_v24, %v572_v50  ;;  %v453_v62 = vpop.f32.mrf.mxu0  ;;  %v517_v63 = vpop.f32.mrf.mxu1 }
  0xeb   : > { %v627_v61 = vadd.f32 %v1215_v24, %v588_v51  ;;  %803 = vst.msk [vmem:[%s1230_s12] sm:$0xf] %vm802_vm2, %v973_v54  ;;  %819 = vst.msk [vmem:[%s1230_s12 + $0x40] sm:$0xf] %vm802_vm2, %v989_v55  ;;  %v616_v0 = vadd.f32 %v1215_v24, %v577_v56  ;;  %v575_v2 = vmul.f32 %v1210_v22, %v453_v62 }
  0xec   : > { %v632_v1 = vadd.f32 %v1215_v24, %v593_v57  ;;  %v591_v3 = vmul.f32 %v1210_v22, %v517_v63  ;;  %v976_v4 = vpack.c.bf16 %v645_v58, %v645_v58  ;;  %v992_v5 = vpack.c.bf16 %v661_v59, %v661_v59  ;;  %v1043_v8 = vpop.f32.mrf.mxu0  ;;  %v1059_v9 = vpop.f32.mrf.mxu1 }
  0xed   : > { %v643_v6 = vmax.f32 %v611_v60, 0.0  ;;  %v659_v7 = vmax.f32 %v627_v61, 0.0  ;;  %v648_v10 = vmax.f32 %v616_v0, 0.0  ;;  %v614_v12 = vadd.f32 %v1215_v24, %v575_v2 }
  0xee   : > { %v664_v11 = vmax.f32 %v632_v1, 0.0  ;;  %v630_v13 = vadd.f32 %v1215_v24, %v591_v3  ;;  %806 = vst.msk [vmem:[%s1230_s12 + $0xc] sm:$0xf] %vm802_vm2, %v976_v4  ;;  %822 = vst.msk [vmem:[%s1230_s12 + $0x4c] sm:$0xf] %vm802_vm2, %v992_v5  ;;  %v578_v16 = vmul.f32 %v1043_v8, %v1210_v22  ;;  %v594_v17 = vmul.f32 %v1059_v9, %v1210_v22  ;;  %v456_v18 = vpop.f32.mrf.mxu0  ;;  %v520_v19 = vpop.f32.mrf.mxu1 }
  0xef   : > { %v974_v14 = vpack.c.bf16 %v643_v6, %v643_v6  ;;  %v990_v15 = vpack.c.bf16 %v659_v7, %v659_v7  ;;  %v979_v20 = vpack.c.bf16 %v648_v10, %v648_v10  ;;  %v646_v23 = vmax.f32 %v614_v12, 0.0 }
  0xf0   : > { %v995_v21 = vpack.c.bf16 %v664_v11, %v664_v11  ;;  %v662_v25 = vmax.f32 %v630_v13, 0.0  ;;  %v617_v26 = vadd.f32 %v1215_v24, %v578_v16  ;;  %v633_v27 = vadd.f32 %v1215_v24, %v594_v17  ;;  %v1046_v30 = vpop.f32.mrf.mxu0  ;;  %v1062_v31 = vpop.f32.mrf.mxu1 }
  0xf1   : > { %804 = vst.msk [vmem:[%s1230_s12 + $0x4] sm:$0xf] %vm802_vm2, %v974_v14  ;;  %820 = vst.msk [vmem:[%s1230_s12 + $0x44] sm:$0xf] %vm802_vm2, %v990_v15  ;;  %v576_v28 = vmul.f32 %v1210_v22, %v456_v18  ;;  %v592_v29 = vmul.f32 %v1210_v22, %v520_v19  ;;  %v977_v32 = vpack.c.bf16 %v646_v23, %v646_v23 }
  0xf2   : > { %809 = vst.msk [vmem:[%s1230_s12 + $0x18] sm:$0xf] %vm802_vm2, %v979_v20  ;;  %825 = vst.msk [vmem:[%s1230_s12 + $0x58] sm:$0xf] %vm802_vm2, %v995_v21  ;;  %v993_v33 = vpack.c.bf16 %v662_v25, %v662_v25  ;;  %v581_v34 = vmul.f32 %v1046_v30, %v1210_v22  ;;  %v597_v35 = vmul.f32 %v1062_v31, %v1210_v22  ;;  %v649_v36 = vmax.f32 %v617_v26, 0.0  ;;  %v469_v40 = vpop.f32.mrf.mxu0  ;;  %v533_v41 = vpop.f32.mrf.mxu1 }
  0xf3   : > { %v665_v37 = vmax.f32 %v633_v27, 0.0  ;;  %v615_v38 = vadd.f32 %v1215_v24, %v576_v28  ;;  %v631_v39 = vadd.f32 %v1215_v24, %v592_v29  ;;  %807 = vst.msk [vmem:[%s1230_s12 + $0x10] sm:$0xf] %vm802_vm2, %v977_v32  ;;  %v579_v44 = vmul.f32 %v1210_v22, %v469_v40 }
  0xf4   : > { %823 = vst.msk [vmem:[%s1230_s12 + $0x50] sm:$0xf] %vm802_vm2, %v993_v33  ;;  %v620_v42 = vadd.f32 %v1215_v24, %v581_v34  ;;  %v636_v43 = vadd.f32 %v1215_v24, %v597_v35  ;;  %v595_v45 = vmul.f32 %v1210_v22, %v533_v41  ;;  %v980_v46 = vpack.c.bf16 %v649_v36, %v649_v36  ;;  %v1047_v50 = vpop.f32.mrf.mxu0  ;;  %v1063_v51 = vpop.f32.mrf.mxu1 }
  0xf5   : > { %v996_v47 = vpack.c.bf16 %v665_v37, %v665_v37  ;;  %v647_v48 = vmax.f32 %v615_v38, 0.0  ;;  %v663_v49 = vmax.f32 %v631_v39, 0.0  ;;  %v618_v54 = vadd.f32 %v1215_v24, %v579_v44 }
  0xf6   : > { %v652_v52 = vmax.f32 %v620_v42, 0.0  ;;  %v668_v53 = vmax.f32 %v636_v43, 0.0  ;;  %v634_v55 = vadd.f32 %v1215_v24, %v595_v45  ;;  %810 = vst.msk [vmem:[%s1230_s12 + $0x1c] sm:$0xf] %vm802_vm2, %v980_v46  ;;  %v582_v58 = vmul.f32 %v1047_v50, %v1210_v22  ;;  %v472_v60 = vpop.f32.mrf.mxu0  ;;  %v536_v61 = vpop.f32.mrf.mxu1 }
  0xf7   : > { %826 = vst.msk [vmem:[%s1230_s12 + $0x5c] sm:$0xf] %vm802_vm2, %v996_v47  ;;  %v978_v56 = vpack.c.bf16 %v647_v48, %v647_v48  ;;  %v994_v57 = vpack.c.bf16 %v663_v49, %v663_v49  ;;  %v598_v59 = vmul.f32 %v1063_v51, %v1210_v22  ;;  %v650_v0 = vmax.f32 %v618_v54, 0.0 }
  0xf8   : > { %v983_v62 = vpack.c.bf16 %v652_v52, %v652_v52  ;;  %v999_v63 = vpack.c.bf16 %v668_v53, %v668_v53  ;;  %v666_v1 = vmax.f32 %v634_v55, 0.0  ;;  %v621_v2 = vadd.f32 %v1215_v24, %v582_v58  ;;  %v1050_v6 = vpop.f32.mrf.mxu0  ;;  %v1066_v7 = vpop.f32.mrf.mxu1 }
  0xf9   : > { %808 = vst.msk [vmem:[%s1230_s12 + $0x14] sm:$0xf] %vm802_vm2, %v978_v56  ;;  %824 = vst.msk [vmem:[%s1230_s12 + $0x54] sm:$0xf] %vm802_vm2, %v994_v57  ;;  %v637_v3 = vadd.f32 %v1215_v24, %v598_v59  ;;  %v580_v4 = vmul.f32 %v1210_v22, %v472_v60  ;;  %v596_v5 = vmul.f32 %v1210_v22, %v536_v61 }
  0xfa   : > { %813 = vst.msk [vmem:[%s1230_s12 + $0x28] sm:$0xf] %vm802_vm2, %v983_v62  ;;  %829 = vst.msk [vmem:[%s1230_s12 + $0x68] sm:$0xf] %vm802_vm2, %v999_v63  ;;  %v981_v8 = vpack.c.bf16 %v650_v0, %v650_v0  ;;  %v997_v9 = vpack.c.bf16 %v666_v1, %v666_v1  ;;  %v585_v10 = vmul.f32 %v1050_v6, %v1210_v22  ;;  %v653_v12 = vmax.f32 %v621_v2, 0.0  ;;  %v485_v16 = vpop.f32.mrf.mxu0  ;;  %v549_v17 = vpop.f32.mrf.mxu1 }
  0xfb   : > { %v601_v11 = vmul.f32 %v1066_v7, %v1210_v22  ;;  %v669_v13 = vmax.f32 %v637_v3, 0.0  ;;  %v619_v14 = vadd.f32 %v1215_v24, %v580_v4  ;;  %v635_v15 = vadd.f32 %v1215_v24, %v596_v5 }
  0xfc   : > { %811 = vst.msk [vmem:[%s1230_s12 + $0x20] sm:$0xf] %vm802_vm2, %v981_v8  ;;  %827 = vst.msk [vmem:[%s1230_s12 + $0x60] sm:$0xf] %vm802_vm2, %v997_v9  ;;  %v624_v18 = vadd.f32 %v1215_v24, %v585_v10  ;;  %v583_v20 = vmul.f32 %v1210_v22, %v485_v16  ;;  %v599_v21 = vmul.f32 %v1210_v22, %v549_v17  ;;  %v1051_v28 = vpop.f32.mrf.mxu0  ;;  %v1067_v29 = vpop.f32.mrf.mxu1 }
  0xfd   : > { %v640_v19 = vadd.f32 %v1215_v24, %v601_v11  ;;  %v984_v23 = vpack.c.bf16 %v653_v12, %v653_v12  ;;  %v1000_v25 = vpack.c.bf16 %v669_v13, %v669_v13  ;;  %v651_v26 = vmax.f32 %v619_v14, 0.0 }
  0xfe   : > { %v667_v27 = vmax.f32 %v635_v15, 0.0  ;;  %v656_v30 = vmax.f32 %v624_v18, 0.0  ;;  %v622_v32 = vadd.f32 %v1215_v24, %v583_v20  ;;  %v638_v33 = vadd.f32 %v1215_v24, %v599_v21  ;;  %v488_v38 = vpop.f32.mrf.mxu0  ;;  %v552_v39 = vpop.f32.mrf.mxu1 }
  0xff   : > { %v672_v31 = vmax.f32 %v640_v19, 0.0  ;;  %814 = vst.msk [vmem:[%s1230_s12 + $0x2c] sm:$0xf] %vm802_vm2, %v984_v23  ;;  %830 = vst.msk [vmem:[%s1230_s12 + $0x6c] sm:$0xf] %vm802_vm2, %v1000_v25  ;;  %v982_v34 = vpack.c.bf16 %v651_v26, %v651_v26  ;;  %v586_v36 = vmul.f32 %v1051_v28, %v1210_v22  ;;  %v602_v37 = vmul.f32 %v1067_v29, %v1210_v22 }
 0x100   : > { %v998_v35 = vpack.c.bf16 %v667_v27, %v667_v27  ;;  %v987_v40 = vpack.c.bf16 %v656_v30, %v656_v30  ;;  %v654_v42 = vmax.f32 %v622_v32, 0.0  ;;  %v670_v43 = vmax.f32 %v638_v33, 0.0 }
 0x101   : > { %v1003_v41 = vpack.c.bf16 %v672_v31, %v672_v31  ;;  %812 = vst.msk [vmem:[%s1230_s12 + $0x24] sm:$0xf] %vm802_vm2, %v982_v34  ;;  %v625_v44 = vadd.f32 %v1215_v24, %v586_v36  ;;  %v641_v45 = vadd.f32 %v1215_v24, %v602_v37  ;;  %v584_v46 = vmul.f32 %v1210_v22, %v488_v38 }
 0x102   : > { %828 = vst.msk [vmem:[%s1230_s12 + $0x64] sm:$0xf] %vm802_vm2, %v998_v35  ;;  %v600_v47 = vmul.f32 %v1210_v22, %v552_v39  ;;  %817 = vst.msk [vmem:[%s1230_s12 + $0x38] sm:$0xf] %vm802_vm2, %v987_v40  ;;  %v985_v48 = vpack.c.bf16 %v654_v42, %v654_v42  ;;  %v1001_v49 = vpack.c.bf16 %v670_v43, %v670_v43 }
 0x103   : > { %833 = vst.msk [vmem:[%s1230_s12 + $0x78] sm:$0xf] %vm802_vm2, %v1003_v41  ;;  %v657_v50 = vmax.f32 %v625_v44, 0.0  ;;  %v673_v51 = vmax.f32 %v641_v45, 0.0  ;;  %v623_v52 = vadd.f32 %v1215_v24, %v584_v46 }
 0x104   : > { %v639_v53 = vadd.f32 %v1215_v24, %v600_v47  ;;  %815 = vst.msk [vmem:[%s1230_s12 + $0x30] sm:$0xf] %vm802_vm2, %v985_v48  ;;  %831 = vst.msk [vmem:[%s1230_s12 + $0x70] sm:$0xf] %vm802_vm2, %v1001_v49 }
 0x105   : > { %v988_v22 = vpack.c.bf16 %v657_v50, %v657_v50  ;;  %v1004_v54 = vpack.c.bf16 %v673_v51, %v673_v51  ;;  %v655_v55 = vmax.f32 %v623_v52, 0.0 }
 0x106   : > { %v671_v56 = vmax.f32 %v639_v53, 0.0 }
 0x107   : > { %818 = vst.msk [vmem:[%s1230_s12 + $0x3c] sm:$0xf] %vm802_vm2, %v988_v22  ;;  %834 = vst.msk [vmem:[%s1230_s12 + $0x7c] sm:$0xf] %vm802_vm2, %v1004_v54  ;;  %v986_v57 = vpack.c.bf16 %v655_v55, %v655_v55 }
 0x108   : > { %v1002_v58 = vpack.c.bf16 %v671_v56, %v671_v56 }
 0x109   : > { %816 = vst.msk [vmem:[%s1230_s12 + $0x34] sm:$0xf] %vm802_vm2, %v986_v57 }
 0x10a   : > { %832 = vst.msk [vmem:[%s1230_s12 + $0x74] sm:$0xf] %vm802_vm2, %v1002_v58 }
 0x10b PF: > { %s14_s15 = sadd.s32 1, %s1115_s15  }
 0x10c   : > { %p11_p4 = scmp.ge.s32.totalorder %s14_s15, 4  }
 0x10e   :  { %13 = sbr.rel (!%p11_p4) target bundleno = 1 (0x1), region = 66 }

// kernel: _lambda_.18
= control target key start
LH: loop header
LB: loop body
LE: loop exit
PB: predicated region body
PF: predicated region fallthrough
CT: control target
= control target key end

     0   :  { %s1385_s18 = smov 0   ;;  %s1741_s0 = inlined_call_operand.vmem [shape: bf16[512,72], index: 0, kind: input, shape index: {}]   ;;  %s1742_s1 = inlined_call_operand.vmem [shape: bf16[72,8], index: 1, kind: input, shape index: {}]   ;;  %s1743_s2 = inlined_call_operand.vmem [shape: f32[1,8], index: 2, kind: input, shape index: {}]   ;;  %s1744_s3 = inlined_call_operand.vmem [shape: f32[1,8], index: 3, kind: input, shape index: {}]   ;;  %s1745_s4 = inlined_call_operand.vmem [shape: bf16[512,8], index: 4, kind: input, shape index: {}]   ;;  %s1746_s5 = inlined_call_operand.vmem [shape: bf16[512,8], index: 5, kind: output, shape index: {}]  }
   0x1 LB: > { %s1048_s19 = sadd.s32 4294967295, %s1353_s18   ;;  %p1052_p0 = scmp.ge.s32.totalorder %s1353_s18, 1  ;;  %s1353_s18 = sphi %s1385_s18, %s15_s18  }
   0x2   : > { %p199_p1 = scmp.lt.s32.totalorder %s1353_s18, 3 }
   0x4   : > { %p200_p2 = pnand %p1052_p0, %p199_p1 }
   0x5   : > { %s1053_s24 = sshll.u32 (!%p200_p2), %s1048_s19, 5 }
   0x6   : > { %203 = sbr.rel (%p200_p2) target bundleno = 276 (0x114), region = 40  ;;  %p233_p3 = scmp.lt.s32.totalorder (!%p200_p2), %s1053_s24, 63 }
   0xb   : > { %v1326_v0 = vld [vmem:[%s1742_s1 + $0x20] ss:$0 sps:$4 sm:$0xff]   ;;  %vm448_vm0 = vcmask 1043456   ;;  %v1327_v1 = vld [vmem:[%s1742_s1 + $0x18] sm:$0xff]   ;;  %v1328_v3 = vld [vmem:[%s1742_s1 + $0x10] sm:$0xff]   ;;  %s1750_s24 = smov (!%p233_p3, %s1053_s24), 63 }
   0xc   : > { %1316 = vmatprep.subr.msk.bf16.mxu0 %vm448_vm0, %v1326_v0  ;;  %1317 = vmatprep.subr.msk.bf16.mxu1 %vm448_vm0, %v1326_v0  ;;  %v450_v2 = vsel %vm448_vm0, %v1326_v0, 0  ;;  %v1329_v4 = vld [vmem:[%s1742_s1 + $0x8] sm:$0xff]   ;;  %s1405_s29 = sshll.u32 %s1750_s24, 2  ;;  %vm399_vm1 = vcmask 588800   ;;  %v1330_v7 = vld [vmem:[%s1742_s1] sm:$0xff]   ;;  %vm947_vm2 = vcmask 60416  }
   0xd   : > { %1265 = vmatpush3.bf16.msra.mxu0 %v450_v2  ;;  %1311 = vmatpush3.bf16.msra.mxu1 %v450_v2  ;;  %s1411_s7 = scalar_lea.vmem %s1741_s0, %s1405_s29  ;;  %s1452_s12 = scalar_lea.vmem %s1745_s4, %s1405_s29  ;;  %v1501_v42 = vld [vmem:[%s1743_s2] ss:$0 sm:$0xff] }
   0xe   : > { %1266 = vmatprep.subr.bf16.mxu0 %v1327_v1  ;;  %1307 = vmatprep.subr.bf16.mxu1 %v1327_v1  ;;  %v1331_v5 = vld [vmem:[%s1411_s7] sm:$0xff]   ;;  %v1333_v8 = vld [vmem:[%s1411_s7 + $0x8] sm:$0xff]   ;;  %v1335_v10 = vld [vmem:[%s1411_s7 + $0x10] sm:$0xff]   ;;  %s1562_s20 = scalar_lea.vmem %s1746_s5, %s1405_s29 }
   0xf   : > { %v1332_v6 = vld [vmem:[%s1411_s7 + $0x40] sm:$0xff]   ;;  %1274 = vmatprep.mubr.msk.bf16.mxu0 %vm399_vm1, %v1331_v5  ;;  %v1334_v9 = vld [vmem:[%s1411_s7 + $0x48] sm:$0xff]   ;;  %v1336_v11 = vld [vmem:[%s1411_s7 + $0x50] sm:$0xff]  }
  0x10   : > { %1290 = vmatprep.mubr.msk.bf16.mxu1 %vm399_vm1, %v1332_v6  ;;  %v1337_v12 = vld [vmem:[%s1411_s7 + $0x18] sm:$0xff]   ;;  %v1339_v14 = vld [vmem:[%s1411_s7 + $0x20] sm:$0xff]   ;;  %v1341_v16 = vld [vmem:[%s1411_s7 + $0x28] sm:$0xff]  }
  0x11   : > { %1267 = vmatpush3.bf16.msra.mxu0 %v1327_v1  ;;  %1312 = vmatpush3.bf16.msra.mxu1 %v1327_v1  ;;  %v1338_v13 = vld [vmem:[%s1411_s7 + $0x58] sm:$0xff]   ;;  %v1340_v15 = vld [vmem:[%s1411_s7 + $0x60] sm:$0xff]   ;;  %v1342_v17 = vld [vmem:[%s1411_s7 + $0x68] sm:$0xff]  }
  0x12   : > { %1268 = vmatprep.subr.bf16.mxu0 %v1328_v3  ;;  %1308 = vmatprep.subr.bf16.mxu1 %v1328_v3  ;;  %v1343_v18 = vld [vmem:[%s1411_s7 + $0x30] sm:$0xff]   ;;  %v1345_v20 = vld [vmem:[%s1411_s7 + $0x38] sm:$0xff]   ;;  %v1455_v22 = vld [vmem:[%s1452_s12 + $0x8] sm:$0xff]  }
  0x13   : > { %v1344_v19 = vld [vmem:[%s1411_s7 + $0x70] sm:$0xff]   ;;  %v1346_v21 = vld [vmem:[%s1411_s7 + $0x78] sm:$0xff]   ;;  %v1458_v23 = vld [vmem:[%s1452_s12 + $0x48] sm:$0xff]   ;;  %v1170_v30 = vunpack.c.l.bf16 %v1455_v22  ;;  %v1171_v35 = vunpack.c.h.bf16 %v1455_v22 }
  0x14   : > { %v1461_v24 = vld [vmem:[%s1452_s12] sm:$0xff]   ;;  %v1467_v26 = vld [vmem:[%s1452_s12 + $0x18] sm:$0xff]   ;;  %v1473_v28 = vld [vmem:[%s1452_s12 + $0x10] sm:$0xff]   ;;  %v1202_v31 = vunpack.c.l.bf16 %v1458_v23  ;;  %v1203_v36 = vunpack.c.h.bf16 %v1458_v23 }
  0x15   : > { %1269 = vmatpush3.bf16.msra.mxu0 %v1328_v3  ;;  %1313 = vmatpush3.bf16.msra.mxu1 %v1328_v3  ;;  %v1464_v25 = vld [vmem:[%s1452_s12 + $0x40] sm:$0xff]   ;;  %v1470_v27 = vld [vmem:[%s1452_s12 + $0x58] sm:$0xff]   ;;  %v1476_v29 = vld [vmem:[%s1452_s12 + $0x50] sm:$0xff]   ;;  %v1166_v32 = vunpack.c.l.bf16 %v1461_v24  ;;  %v1167_v37 = vunpack.c.h.bf16 %v1461_v24  ;;  %v1178_v43 = vunpack.c.l.bf16 %v1467_v26  ;;  %v1174_v45 = vunpack.c.l.bf16 %v1473_v28 }
  0x16   : > { %1270 = vmatprep.subr.bf16.mxu0 %v1329_v4  ;;  %1309 = vmatprep.subr.bf16.mxu1 %v1329_v4  ;;  %v1198_v33 = vunpack.c.l.bf16 %v1464_v25  ;;  %v1483_v34 = vld [vmem:[%s1452_s12 + $0x28] sm:$0xff]   ;;  %v1199_v38 = vunpack.c.h.bf16 %v1464_v25  ;;  %v1493_v40 = vld [vmem:[%s1452_s12 + $0x20] sm:$0xff]   ;;  %v1210_v44 = vunpack.c.l.bf16 %v1470_v27  ;;  %v1206_v46 = vunpack.c.l.bf16 %v1476_v29  ;;  %v1512_v51 = vld [vmem:[%s1452_s12 + $0x38] sm:$0xff]  }
  0x17   : > { %v1490_v39 = vld [vmem:[%s1452_s12 + $0x68] sm:$0xff]   ;;  %v1496_v41 = vld [vmem:[%s1452_s12 + $0x60] sm:$0xff]   ;;  %v1179_v47 = vunpack.c.h.bf16 %v1467_v26  ;;  %v1211_v48 = vunpack.c.h.bf16 %v1470_v27  ;;  %v1175_v49 = vunpack.c.h.bf16 %v1473_v28  ;;  %v1207_v50 = vunpack.c.h.bf16 %v1476_v29  ;;  %v1515_v52 = vld [vmem:[%s1452_s12 + $0x78] sm:$0xff]  }
  0x18   : > { %v1520_v54 = vld [vmem:[%s1744_s3] ss:$0 sm:$0xff]  ;;  %v1186_v56 = vunpack.c.l.bf16 %v1483_v34  ;;  %v1218_v57 = vunpack.c.l.bf16 %v1490_v39  ;;  %v1182_v58 = vunpack.c.l.bf16 %v1493_v40  ;;  %v1214_v59 = vunpack.c.l.bf16 %v1496_v41  ;;  %v1531_v0 = vld [vmem:[%s1452_s12 + $0x30] sm:$0xff]  }
  0x19   : > { %1271 = vmatpush3.bf16.msra.mxu0 %v1329_v4  ;;  %1314 = vmatpush3.bf16.msra.mxu1 %v1329_v4  ;;  %v1187_v62 = vunpack.c.h.bf16 %v1483_v34  ;;  %v1219_v63 = vunpack.c.h.bf16 %v1490_v39  ;;  %v1534_v1 = vld [vmem:[%s1452_s12 + $0x70] sm:$0xff]   ;;  %v1183_v4 = vunpack.c.h.bf16 %v1493_v40  ;;  %v1215_v5 = vunpack.c.h.bf16 %v1496_v41 }
  0x1a   : > { %1272 = vmatprep.subr.bf16.mxu0 %v1330_v7  ;;  %1310 = vmatprep.subr.bf16.mxu1 %v1330_v7  ;;  %v1194_v6 = vunpack.c.l.bf16 %v1512_v51 }
  0x1d   : > { %1273 = vmatpush3.bf16.msra.mxu0 %v1330_v7  ;;  %1315 = vmatpush3.bf16.msra.mxu1 %v1330_v7  ;;  %v1226_v7 = vunpack.c.l.bf16 %v1515_v52 }
  0x20   : > { %1275 = vmatmul.mubr.msk.bf16.vlgmr.msra.gmra.mxu0 %vm399_vm1, %v1333_v8  ;;  %1291 = vmatmul.mubr.msk.bf16.vlgmr.msra.gmra.mxu1 %vm399_vm1, %v1334_v9 }
  0x21   : > { %1278 = vmatprep.mubr.msk.bf16.mxu0 %vm399_vm1, %v1335_v10  ;;  %1294 = vmatprep.mubr.msk.bf16.mxu1 %vm399_vm1, %v1336_v11 }
  0x28   : > { %1279 = vmatmul.mubr.msk.bf16.gmra.mxu0 %vm399_vm1, %v1337_v12  ;;  %1295 = vmatmul.mubr.msk.bf16.gmra.mxu1 %vm399_vm1, %v1338_v13 }
  0x29   : > { %1282 = vmatprep.mubr.msk.bf16.mxu0 %vm399_vm1, %v1339_v14  ;;  %1298 = vmatprep.mubr.msk.bf16.mxu1 %vm399_vm1, %v1340_v15  ;;  %v1190_v14 = vunpack.c.l.bf16 %v1531_v0 }
  0x30   : > { %1283 = vmatmul.mubr.msk.bf16.gmra.mxu0 %vm399_vm1, %v1341_v16  ;;  %1299 = vmatmul.mubr.msk.bf16.gmra.mxu1 %vm399_vm1, %v1342_v17  ;;  %v1227_v17 = vunpack.c.h.bf16 %v1515_v52 }
  0x31   : > { %1286 = vmatprep.mubr.msk.bf16.mxu0 %vm399_vm1, %v1343_v18  ;;  %1302 = vmatprep.mubr.msk.bf16.mxu1 %vm399_vm1, %v1344_v19 }
  0x38   : > { %1287 = vmatmul.mubr.msk.bf16.gmra.mxu0 %vm399_vm1, %v1345_v20  ;;  %1303 = vmatmul.mubr.msk.bf16.gmra.mxu1 %vm399_vm1, %v1346_v21 }
  0xe0   : > { %v1276_v53 = vpop.f32.mrf.mxu0  ;;  %v1292_v55 = vpop.f32.mrf.mxu1 }
  0xe1   : > { %v622_v60 = vmul.f32 %v1276_v53, %v1501_v42  ;;  %v638_v61 = vmul.f32 %v1292_v55, %v1501_v42 }
  0xe2   : > { %v486_v2 = vpop.f32.mrf.mxu0  ;;  %v550_v3 = vpop.f32.mrf.mxu1 }
  0xe3   : > { %v661_v8 = vadd.f32 %v1520_v54, %v622_v60  ;;  %v677_v9 = vadd.f32 %v1520_v54, %v638_v61  ;;  %v620_v10 = vmul.f32 %v1501_v42, %v486_v2  ;;  %v636_v11 = vmul.f32 %v1501_v42, %v550_v3 }
  0xe4   : > { %v1277_v12 = vpop.f32.mrf.mxu0  ;;  %v1293_v13 = vpop.f32.mrf.mxu1  ;;  %v1191_v2 = vunpack.c.h.bf16 %v1531_v0  ;;  %v1223_v3 = vunpack.c.h.bf16 %v1534_v1 }
  0xe5   : > { %v757_v18 = vadd.f32 %v1170_v30, %v661_v8  ;;  %v773_v19 = vadd.f32 %v1202_v31, %v677_v9  ;;  %v659_v20 = vadd.f32 %v1520_v54, %v620_v10  ;;  %v675_v21 = vadd.f32 %v1520_v54, %v636_v11 }
  0xe6   : > { %v623_v53 = vmul.f32 %v1277_v12, %v1501_v42  ;;  %v639_v55 = vmul.f32 %v1293_v13, %v1501_v42  ;;  %v489_v60 = vpop.f32.mrf.mxu0  ;;  %v553_v61 = vpop.f32.mrf.mxu1 }
  0xe7   : > { %v789_v16 = vmax.f32 %v757_v18, 0.0  ;;  %v805_v15 = vmax.f32 %v773_v19, 0.0  ;;  %v755_v30 = vadd.f32 %v1166_v32, %v659_v20  ;;  %v771_v31 = vadd.f32 %v1198_v33, %v675_v21 }
  0xe8   : > { %v662_v8 = vadd.f32 %v1520_v54, %v623_v53  ;;  %v678_v9 = vadd.f32 %v1520_v54, %v639_v55  ;;  %v621_v10 = vmul.f32 %v1501_v42, %v489_v60  ;;  %v637_v11 = vmul.f32 %v1501_v42, %v553_v61  ;;  %v1280_v12 = vpop.f32.mrf.mxu0  ;;  %v1296_v32 = vpop.f32.mrf.mxu1 }
  0xe9   : > { %v1134_v13 = vpack.c.bf16 %v789_v16, %v789_v16  ;;  %v1150_v18 = vpack.c.bf16 %v805_v15, %v805_v15  ;;  %v787_v33 = vmax.f32 %v755_v30, 0.0  ;;  %v803_v19 = vmax.f32 %v771_v31, 0.0 }
  0xea   : > { %v758_v20 = vadd.f32 %v1171_v35, %v662_v8  ;;  %v774_v21 = vadd.f32 %v1203_v36, %v678_v9  ;;  %v660_v53 = vadd.f32 %v1520_v54, %v621_v10  ;;  %v676_v55 = vadd.f32 %v1520_v54, %v637_v11  ;;  %v502_v60 = vpop.f32.mrf.mxu0  ;;  %v566_v61 = vpop.f32.mrf.mxu1 }
  0xeb   : > { %950 = vst.msk [vmem:[%s1562_s20 + $0x8] sm:$0xf] %vm947_vm2, %v1134_v13  ;;  %966 = vst.msk [vmem:[%s1562_s20 + $0x48] sm:$0xf] %vm947_vm2, %v1150_v18  ;;  %v1132_v15 = vpack.c.bf16 %v787_v33, %v787_v33  ;;  %v1148_v16 = vpack.c.bf16 %v803_v19, %v803_v19  ;;  %v626_v22 = vmul.f32 %v1280_v12, %v1501_v42 }
  0xec   : > { %v642_v35 = vmul.f32 %v1296_v32, %v1501_v42  ;;  %v790_v23 = vmax.f32 %v758_v20, 0.0  ;;  %v806_v36 = vmax.f32 %v774_v21, 0.0  ;;  %v756_v30 = vadd.f32 %v1167_v37, %v660_v53  ;;  %v1281_v8 = vpop.f32.mrf.mxu0  ;;  %v1297_v9 = vpop.f32.mrf.mxu1 }
  0xed   : > { %v772_v31 = vadd.f32 %v1199_v38, %v676_v55  ;;  %948 = vst.msk [vmem:[%s1562_s20] sm:$0xf] %vm947_vm2, %v1132_v15  ;;  %964 = vst.msk [vmem:[%s1562_s20 + $0x40] sm:$0xf] %vm947_vm2, %v1148_v16  ;;  %v665_v10 = vadd.f32 %v1520_v54, %v626_v22  ;;  %v624_v12 = vmul.f32 %v1501_v42, %v502_v60 }
  0xee   : > { %v681_v11 = vadd.f32 %v1520_v54, %v642_v35  ;;  %v640_v24 = vmul.f32 %v1501_v42, %v566_v61  ;;  %v1135_v37 = vpack.c.bf16 %v790_v23, %v790_v23  ;;  %v1151_v32 = vpack.c.bf16 %v806_v36, %v806_v36  ;;  %v505_v13 = vpop.f32.mrf.mxu0  ;;  %v569_v18 = vpop.f32.mrf.mxu1 }
  0xef   : > { %v788_v25 = vmax.f32 %v756_v30, 0.0  ;;  %v804_v38 = vmax.f32 %v772_v31, 0.0  ;;  %v761_v33 = vadd.f32 %v1178_v43, %v665_v10  ;;  %v663_v20 = vadd.f32 %v1520_v54, %v624_v12 }
  0xf0   : > { %v777_v19 = vadd.f32 %v1210_v44, %v681_v11  ;;  %v679_v21 = vadd.f32 %v1520_v54, %v640_v24  ;;  %951 = vst.msk [vmem:[%s1562_s20 + $0xc] sm:$0xf] %vm947_vm2, %v1135_v37  ;;  %967 = vst.msk [vmem:[%s1562_s20 + $0x4c] sm:$0xf] %vm947_vm2, %v1151_v32  ;;  %v627_v60 = vmul.f32 %v1281_v8, %v1501_v42  ;;  %v1284_v43 = vpop.f32.mrf.mxu0  ;;  %v1300_v15 = vpop.f32.mrf.mxu1 }
  0xf1   : > { %v1133_v53 = vpack.c.bf16 %v788_v25, %v788_v25  ;;  %v1149_v55 = vpack.c.bf16 %v804_v38, %v804_v38  ;;  %v643_v61 = vmul.f32 %v1297_v9, %v1501_v42  ;;  %v793_v16 = vmax.f32 %v761_v33, 0.0 }
  0xf2   : > { %v809_v22 = vmax.f32 %v777_v19, 0.0  ;;  %v759_v44 = vadd.f32 %v1174_v45, %v663_v20  ;;  %v775_v35 = vadd.f32 %v1206_v46, %v679_v21  ;;  %v666_v23 = vadd.f32 %v1520_v54, %v627_v60  ;;  %v518_v8 = vpop.f32.mrf.mxu0  ;;  %v582_v9 = vpop.f32.mrf.mxu1 }
  0xf3   : > { %949 = vst.msk [vmem:[%s1562_s20 + $0x4] sm:$0xf] %vm947_vm2, %v1133_v53  ;;  %965 = vst.msk [vmem:[%s1562_s20 + $0x44] sm:$0xf] %vm947_vm2, %v1149_v55  ;;  %v682_v36 = vadd.f32 %v1520_v54, %v643_v61  ;;  %v625_v30 = vmul.f32 %v1501_v42, %v505_v13  ;;  %v641_v31 = vmul.f32 %v1501_v42, %v569_v18 }
  0xf4   : > { %v1138_v45 = vpack.c.bf16 %v793_v16, %v793_v16  ;;  %v1154_v10 = vpack.c.bf16 %v809_v22, %v809_v22  ;;  %v791_v11 = vmax.f32 %v759_v44, 0.0  ;;  %v807_v46 = vmax.f32 %v775_v35, 0.0  ;;  %v1285_v25 = vpop.f32.mrf.mxu0  ;;  %v1301_v38 = vpop.f32.mrf.mxu1 }
  0xf5   : > { %v762_v12 = vadd.f32 %v1179_v47, %v666_v23  ;;  %v778_v24 = vadd.f32 %v1211_v48, %v682_v36  ;;  %v664_v37 = vadd.f32 %v1520_v54, %v625_v30  ;;  %v680_v32 = vadd.f32 %v1520_v54, %v641_v31 }
  0xf6   : > { %954 = vst.msk [vmem:[%s1562_s20 + $0x18] sm:$0xf] %vm947_vm2, %v1138_v45  ;;  %970 = vst.msk [vmem:[%s1562_s20 + $0x58] sm:$0xf] %vm947_vm2, %v1154_v10  ;;  %v1136_v13 = vpack.c.bf16 %v791_v11, %v791_v11  ;;  %v1152_v18 = vpack.c.bf16 %v807_v46, %v807_v46  ;;  %v630_v26 = vmul.f32 %v1284_v43, %v1501_v42  ;;  %v521_v20 = vpop.f32.mrf.mxu0  ;;  %v585_v21 = vpop.f32.mrf.mxu1 }
  0xf7   : > { %v646_v47 = vmul.f32 %v1300_v15, %v1501_v42  ;;  %v794_v27 = vmax.f32 %v762_v12, 0.0  ;;  %v810_v48 = vmax.f32 %v778_v24, 0.0  ;;  %v760_v33 = vadd.f32 %v1175_v49, %v664_v37 }
  0xf8   : > { %v776_v19 = vadd.f32 %v1207_v50, %v680_v32  ;;  %952 = vst.msk [vmem:[%s1562_s20 + $0x10] sm:$0xf] %vm947_vm2, %v1136_v13  ;;  %968 = vst.msk [vmem:[%s1562_s20 + $0x50] sm:$0xf] %vm947_vm2, %v1152_v18  ;;  %v669_v53 = vadd.f32 %v1520_v54, %v630_v26  ;;  %v628_v60 = vmul.f32 %v1501_v42, %v518_v8  ;;  %v1288_v43 = vpop.f32.mrf.mxu0  ;;  %v1304_v15 = vpop.f32.mrf.mxu1 }
  0xf9   : > { %v685_v55 = vadd.f32 %v1520_v54, %v646_v47  ;;  %v644_v28 = vmul.f32 %v1501_v42, %v582_v9  ;;  %v1139_v49 = vpack.c.bf16 %v794_v27, %v794_v27  ;;  %v1155_v61 = vpack.c.bf16 %v810_v48, %v810_v48 }
  0xfa   : > { %v792_v29 = vmax.f32 %v760_v33, 0.0  ;;  %v808_v50 = vmax.f32 %v776_v19, 0.0  ;;  %v765_v16 = vadd.f32 %v1186_v56, %v669_v53  ;;  %v667_v44 = vadd.f32 %v1520_v54, %v628_v60  ;;  %v534_v45 = vpop.f32.mrf.mxu0  ;;  %v598_v10 = vpop.f32.mrf.mxu1 }
  0xfb   : > { %v781_v22 = vadd.f32 %v1218_v57, %v685_v55  ;;  %v683_v35 = vadd.f32 %v1520_v54, %v644_v28  ;;  %955 = vst.msk [vmem:[%s1562_s20 + $0x1c] sm:$0xf] %vm947_vm2, %v1139_v49  ;;  %971 = vst.msk [vmem:[%s1562_s20 + $0x5c] sm:$0xf] %vm947_vm2, %v1155_v61  ;;  %v631_v30 = vmul.f32 %v1285_v25, %v1501_v42 }
  0xfc   : > { %v1137_v23 = vpack.c.bf16 %v792_v29, %v792_v29  ;;  %v1153_v36 = vpack.c.bf16 %v808_v50, %v808_v50  ;;  %v647_v31 = vmul.f32 %v1301_v38, %v1501_v42  ;;  %v797_v56 = vmax.f32 %v765_v16, 0.0  ;;  %v1305_v48 = vpop.f32.mrf.mxu1 }
  0xfd   : > { %v813_v8 = vmax.f32 %v781_v22, 0.0  ;;  %v763_v57 = vadd.f32 %v1182_v58, %v667_v44  ;;  %v779_v9 = vadd.f32 %v1214_v59, %v683_v35  ;;  %v670_v11 = vadd.f32 %v1520_v54, %v631_v30 }
  0xfe   : > { %953 = vst.msk [vmem:[%s1562_s20 + $0x14] sm:$0xf] %vm947_vm2, %v1137_v23  ;;  %969 = vst.msk [vmem:[%s1562_s20 + $0x54] sm:$0xf] %vm947_vm2, %v1153_v36  ;;  %v686_v46 = vadd.f32 %v1520_v54, %v647_v31  ;;  %v629_v12 = vmul.f32 %v1501_v42, %v521_v20  ;;  %v645_v24 = vmul.f32 %v1501_v42, %v585_v21  ;;  %v601_v50 = vpop.f32.mrf.mxu1  ;;  %v1747_v35 = vunpack.c.l.bf16 %v1534_v1 }
  0xff   : > { %v1142_v58 = vpack.c.bf16 %v797_v56, %v797_v56  ;;  %v1158_v37 = vpack.c.bf16 %v813_v8, %v813_v8  ;;  %v795_v32 = vmax.f32 %v763_v57, 0.0  ;;  %v811_v59 = vmax.f32 %v779_v9, 0.0 }
 0x100   : > { %v766_v25 = vadd.f32 %v1187_v62, %v670_v11  ;;  %v782_v38 = vadd.f32 %v1219_v63, %v686_v46  ;;  %v668_v13 = vadd.f32 %v1520_v54, %v629_v12  ;;  %v684_v18 = vadd.f32 %v1520_v54, %v645_v24  ;;  %v1289_v62 = vpop.f32.mrf.mxu0 }
 0x101   : > { %958 = vst.msk [vmem:[%s1562_s20 + $0x28] sm:$0xf] %vm947_vm2, %v1142_v58  ;;  %974 = vst.msk [vmem:[%s1562_s20 + $0x68] sm:$0xf] %vm947_vm2, %v1158_v37  ;;  %v1140_v26 = vpack.c.bf16 %v795_v32, %v795_v32  ;;  %v1156_v47 = vpack.c.bf16 %v811_v59, %v811_v59  ;;  %v634_v27 = vmul.f32 %v1288_v43, %v1501_v42 }
 0x102   : > { %v650_v34 = vmul.f32 %v1304_v15, %v1501_v42  ;;  %v798_v39 = vmax.f32 %v766_v25, 0.0  ;;  %v814_v33 = vmax.f32 %v782_v38, 0.0  ;;  %v764_v63 = vadd.f32 %v1183_v4, %v668_v13  ;;  %v537_v29 = vpop.f32.mrf.mxu0 }
 0x103   : > { %v780_v19 = vadd.f32 %v1215_v5, %v684_v18  ;;  %956 = vst.msk [vmem:[%s1562_s20 + $0x20] sm:$0xf] %vm947_vm2, %v1140_v26  ;;  %972 = vst.msk [vmem:[%s1562_s20 + $0x60] sm:$0xf] %vm947_vm2, %v1156_v47  ;;  %v673_v20 = vadd.f32 %v1520_v54, %v634_v27  ;;  %v632_v53 = vmul.f32 %v1501_v42, %v534_v45  ;;  %v1748_v45 = vunpack.c.h.bf16 %v1512_v51 }
 0x104   : > { %v689_v21 = vadd.f32 %v1520_v54, %v650_v34  ;;  %v648_v55 = vmul.f32 %v1501_v42, %v598_v10  ;;  %v1143_v60 = vpack.c.bf16 %v798_v39, %v798_v39  ;;  %v1159_v40 = vpack.c.bf16 %v814_v33, %v814_v33 }
 0x105   : > { %v796_v4 = vmax.f32 %v764_v63, 0.0  ;;  %v812_v28 = vmax.f32 %v780_v19, 0.0  ;;  %v769_v41 = vadd.f32 %v1194_v6, %v673_v20  ;;  %v671_v49 = vadd.f32 %v1520_v54, %v632_v53 }
 0x106   : > { %v785_v5 = vadd.f32 %v1226_v7, %v689_v21  ;;  %v687_v61 = vadd.f32 %v1520_v54, %v648_v55  ;;  %959 = vst.msk [vmem:[%s1562_s20 + $0x2c] sm:$0xf] %vm947_vm2, %v1143_v60  ;;  %975 = vst.msk [vmem:[%s1562_s20 + $0x6c] sm:$0xf] %vm947_vm2, %v1159_v40  ;;  %v635_v16 = vmul.f32 %v1289_v62, %v1501_v42 }
 0x107   : > { %v1141_v43 = vpack.c.bf16 %v796_v4, %v796_v4  ;;  %v1157_v15 = vpack.c.bf16 %v812_v28, %v812_v28  ;;  %v651_v6 = vmul.f32 %v1305_v48, %v1501_v42  ;;  %v801_v22 = vmax.f32 %v769_v41, 0.0 }
 0x108   : > { %v817_v44 = vmax.f32 %v785_v5, 0.0  ;;  %v767_v7 = vadd.f32 %v1190_v14, %v671_v49  ;;  %v783_v23 = vadd.f32 %v1747_v35, %v687_v61  ;;  %v674_v36 = vadd.f32 %v1520_v54, %v635_v16 }
 0x109   : > { %957 = vst.msk [vmem:[%s1562_s20 + $0x24] sm:$0xf] %vm947_vm2, %v1141_v43  ;;  %973 = vst.msk [vmem:[%s1562_s20 + $0x64] sm:$0xf] %vm947_vm2, %v1157_v15  ;;  %v690_v30 = vadd.f32 %v1520_v54, %v651_v6  ;;  %v633_v31 = vmul.f32 %v1501_v42, %v537_v29  ;;  %v649_v56 = vmul.f32 %v1501_v42, %v601_v50 }
 0x10a   : > { %v1146_v8 = vpack.c.bf16 %v801_v22, %v801_v22  ;;  %v1162_v14 = vpack.c.bf16 %v817_v44, %v817_v44  ;;  %v799_v57 = vmax.f32 %v767_v7, 0.0  ;;  %v815_v9 = vmax.f32 %v783_v23, 0.0 }
 0x10b   : > { %v770_v10 = vadd.f32 %v1748_v45, %v674_v36  ;;  %v786_v11 = vadd.f32 %v1227_v17, %v690_v30  ;;  %v672_v46 = vadd.f32 %v1520_v54, %v633_v31  ;;  %v688_v12 = vadd.f32 %v1520_v54, %v649_v56 }
 0x10c   : > { %962 = vst.msk [vmem:[%s1562_s20 + $0x38] sm:$0xf] %vm947_vm2, %v1146_v8  ;;  %978 = vst.msk [vmem:[%s1562_s20 + $0x78] sm:$0xf] %vm947_vm2, %v1162_v14  ;;  %v1144_v42 = vpack.c.bf16 %v799_v57, %v799_v57  ;;  %v1160_v24 = vpack.c.bf16 %v815_v9, %v815_v9 }
 0x10d   : > { %v802_v58 = vmax.f32 %v770_v10, 0.0  ;;  %v818_v51 = vmax.f32 %v786_v11, 0.0  ;;  %v768_v52 = vadd.f32 %v1191_v2, %v672_v46  ;;  %v784_v17 = vadd.f32 %v1223_v3, %v688_v12 }
 0x10e   : > { %960 = vst.msk [vmem:[%s1562_s20 + $0x30] sm:$0xf] %vm947_vm2, %v1144_v42  ;;  %976 = vst.msk [vmem:[%s1562_s20 + $0x70] sm:$0xf] %vm947_vm2, %v1160_v24 }
 0x10f   : > { %v1147_v54 = vpack.c.bf16 %v802_v58, %v802_v58  ;;  %v1163_v37 = vpack.c.bf16 %v818_v51, %v818_v51  ;;  %v800_v32 = vmax.f32 %v768_v52, 0.0  ;;  %v816_v59 = vmax.f32 %v784_v17, 0.0 }
 0x111   : > { %963 = vst.msk [vmem:[%s1562_s20 + $0x3c] sm:$0xf] %vm947_vm2, %v1147_v54  ;;  %979 = vst.msk [vmem:[%s1562_s20 + $0x7c] sm:$0xf] %vm947_vm2, %v1163_v37  ;;  %v1145_v25 = vpack.c.bf16 %v800_v32, %v800_v32  ;;  %v1161_v38 = vpack.c.bf16 %v816_v59, %v816_v59 }
 0x113   : > { %961 = vst.msk [vmem:[%s1562_s20 + $0x34] sm:$0xf] %vm947_vm2, %v1145_v25  ;;  %977 = vst.msk [vmem:[%s1562_s20 + $0x74] sm:$0xf] %vm947_vm2, %v1161_v38 }
 0x114 PF: > { %s15_s18 = sadd.s32 1, %s1353_s18  }
 0x115   : > { %p12_p4 = scmp.ge.s32.totalorder %s15_s18, 4  }
 0x117   :  { %14 = sbr.rel (!%p12_p4) target bundleno = 1 (0x1), region = 73 }

// kernel: _lambda_.19
= control target key start
LH: loop header
LB: loop body
LE: loop exit
PB: predicated region body
PF: predicated region fallthrough
CT: control target
= control target key end

     0   :  { %9 = vsyncpa [#allocation3], 0  ;;  %s538_s15 = smov [#allocation2]   ;;  %s717_s0 = inlined_call_operand.vmem [shape: bf16[128,72], index: 0, kind: input, shape index: {}]   ;;  %s718_s1 = inlined_call_operand.vmem [shape: bf16[72,16], index: 1, kind: input, shape index: {}]   ;;  %s719_s2 = inlined_call_operand.vmem [shape: f32[1,16], index: 2, kind: input, shape index: {}]   ;;  %s720_s3 = inlined_call_operand.hbm [shape: f32[1,16], index: 3, kind: input, shape index: {}]   ;;  %s721_s4 = inlined_call_operand.vmem [shape: bf16[128,16], index: 4, kind: output, shape index: {}]  }
   0x1   :  { %s22_s16 = sshll.u32 %s538_s15, 4  ;;  %s23_s16 = int_to_ptr.vmem [resolvable:$true] %s22_s16 }
   0x2   :  { %s524_s17 = scalar_lea.vmem %s23_s16, 16  ;;  %s528_s18 = scalar_lea.vmem %s23_s16, 32 }
   0x3   :  { %p525_p0 = scmp.ne.s32.totalorder %s23_s16, %s524_s17  ;;  %p529_p1 = scmp.lt.s32.totalorder %s23_s16, %s23_s16 }
   0x4   :  { %p530_p2 = scmp.lt.s32.totalorder %s528_s18, %s524_s17 }
   0x6   :  { %p531_p3 = por %p530_p2, %p529_p1 }
   0x8   :  { %p532_p4 = pnand %p531_p3, %p525_p0 }
   0xa   :  { %535 = shalt.err (!%p532_p4)
}
   0xb   :  { %25 = dma.hbm_to_vmem [thread:$0]  %s720_s3, 16, %s23_s16, [#allocation3]  }
   0xc   :  { %536 = dma.done.wait [#allocation3], 16  }
   0xd   :  { %537 = vsyncadd [#allocation3], 4294967280  ;;  %vm147_vm0 = vcmask 1043456   ;;  %v503_v0 = vld [vmem:[%s718_s1 + $0x20] ss:$0 sps:$4 sm:$0xff]   ;;  %v504_v1 = vld [vmem:[%s718_s1 + $0x18] sm:$0xff]  }
   0xe   :  { %500 = vmatprep.subr.msk.bf16.mxu0 %vm147_vm0, %v503_v0  ;;  %501 = vmatprep.subr.msk.bf16.mxu1 %vm147_vm0, %v503_v0  ;;  %v149_v2 = vsel %vm147_vm0, %v503_v0, 0  ;;  %v505_v3 = vld [vmem:[%s718_s1 + $0x10] sm:$0xff]   ;;  %v508_v4 = vld [vmem:[%s717_s0] sm:$0xff]   ;;  %vm122_vm1 = vcmask 588800   ;;  %v506_v6 = vld [vmem:[%s718_s1 + $0x8] sm:$0xff]   ;;  %vm374_vm2 = vcmask 125952  }
   0xf   :  { %465 = vmatpush3.bf16.msra.mxu0 %v149_v2  ;;  %495 = vmatpush3.bf16.msra.mxu1 %v149_v2  ;;  %v509_v5 = vld [vmem:[%s717_s0 + $0x20] sm:$0xff]   ;;  %v510_v8 = vld [vmem:[%s717_s0 + $0x8] sm:$0xff]   ;;  %v512_v10 = vld [vmem:[%s717_s0 + $0x10] sm:$0xff]  }
  0x10   :  { %466 = vmatprep.subr.bf16.mxu0 %v504_v1  ;;  %491 = vmatprep.subr.bf16.mxu1 %v504_v1  ;;  %v507_v7 = vld [vmem:[%s718_s1] sm:$0xff]   ;;  %v511_v9 = vld [vmem:[%s717_s0 + $0x28] sm:$0xff]   ;;  %v513_v11 = vld [vmem:[%s717_s0 + $0x30] sm:$0xff]  }
  0x11   :  { %474 = vmatprep.mubr.msk.bf16.mxu0 %vm122_vm1, %v508_v4  ;;  %482 = vmatprep.mubr.msk.bf16.mxu1 %vm122_vm1, %v509_v5  ;;  %v514_v12 = vld [vmem:[%s717_s0 + $0x18] sm:$0xff]   ;;  %v617_v14 = vld [vmem:[%s719_s2] ss:$0 sm:$0xff] }
  0x12   :  { %v515_v13 = vld [vmem:[%s717_s0 + $0x38] sm:$0xff]   ;;  %v619_v16 = vld [vmem:[#allocation2] ss:$0 sm:$0xff] }
  0x13   :  { %467 = vmatpush3.bf16.msra.mxu0 %v504_v1  ;;  %496 = vmatpush3.bf16.msra.mxu1 %v504_v1 }
  0x14   :  { %468 = vmatprep.subr.bf16.mxu0 %v505_v3  ;;  %492 = vmatprep.subr.bf16.mxu1 %v505_v3 }
  0x17   :  { %469 = vmatpush3.bf16.msra.mxu0 %v505_v3  ;;  %497 = vmatpush3.bf16.msra.mxu1 %v505_v3 }
  0x18   :  { %470 = vmatprep.subr.bf16.mxu0 %v506_v6  ;;  %493 = vmatprep.subr.bf16.mxu1 %v506_v6 }
  0x1b   :  { %471 = vmatpush3.bf16.msra.mxu0 %v506_v6  ;;  %498 = vmatpush3.bf16.msra.mxu1 %v506_v6 }
  0x1c   :  { %472 = vmatprep.subr.bf16.mxu0 %v507_v7  ;;  %494 = vmatprep.subr.bf16.mxu1 %v507_v7 }
  0x1f   :  { %473 = vmatpush3.bf16.msra.mxu0 %v507_v7  ;;  %499 = vmatpush3.bf16.msra.mxu1 %v507_v7 }
  0x22   :  { %475 = vmatmul.mubr.msk.bf16.vlgmr.msra.gmra.mxu0 %vm122_vm1, %v510_v8  ;;  %483 = vmatmul.mubr.msk.bf16.vlgmr.msra.gmra.mxu1 %vm122_vm1, %v511_v9 }
  0x23   :  { %478 = vmatprep.mubr.msk.bf16.mxu0 %vm122_vm1, %v512_v10  ;;  %486 = vmatprep.mubr.msk.bf16.mxu1 %vm122_vm1, %v513_v11 }
  0x2a   :  { %479 = vmatmul.mubr.msk.bf16.gmra.mxu0 %vm122_vm1, %v514_v12  ;;  %487 = vmatmul.mubr.msk.bf16.gmra.mxu1 %vm122_vm1, %v515_v13 }
  0xe2   :  { %v476_v15 = vpop.f32.mrf.mxu0  ;;  %v484_v17 = vpop.f32.mrf.mxu1 }
  0xe3   :  { %v257_v18 = vmul.f32 %v476_v15, %v617_v14  ;;  %v265_v19 = vmul.f32 %v484_v17, %v617_v14 }
  0xe4   :  { %v185_v20 = vpop.f32.mrf.mxu0  ;;  %v217_v21 = vpop.f32.mrf.mxu1 }
  0xe5   :  { %v280_v22 = vadd.f32 %v619_v16, %v257_v18  ;;  %v288_v23 = vadd.f32 %v619_v16, %v265_v19  ;;  %v255_v24 = vmul.f32 %v617_v14, %v185_v20  ;;  %v263_v25 = vmul.f32 %v617_v14, %v217_v21 }
  0xe6   :  { %v477_v26 = vpop.f32.mrf.mxu0  ;;  %v485_v27 = vpop.f32.mrf.mxu1 }
  0xe7   :  { %v296_v28 = vmax.f32 %v280_v22, 0.0  ;;  %v304_v29 = vmax.f32 %v288_v23, 0.0  ;;  %v278_v30 = vadd.f32 %v619_v16, %v255_v24  ;;  %v286_v31 = vadd.f32 %v619_v16, %v263_v25 }
  0xe8   :  { %v258_v32 = vmul.f32 %v477_v26, %v617_v14  ;;  %v266_v33 = vmul.f32 %v485_v27, %v617_v14  ;;  %v188_v34 = vpop.f32.mrf.mxu0  ;;  %v220_v35 = vpop.f32.mrf.mxu1 }
  0xe9   :  { %v437_v36 = vpack.c.bf16 %v296_v28, %v296_v28  ;;  %v445_v37 = vpack.c.bf16 %v304_v29, %v304_v29  ;;  %v294_v38 = vmax.f32 %v278_v30, 0.0  ;;  %v302_v39 = vmax.f32 %v286_v31, 0.0 }
  0xea   :  { %v281_v40 = vadd.f32 %v619_v16, %v258_v32  ;;  %v289_v41 = vadd.f32 %v619_v16, %v266_v33  ;;  %v256_v42 = vmul.f32 %v617_v14, %v188_v34  ;;  %v264_v43 = vmul.f32 %v617_v14, %v220_v35  ;;  %v480_v44 = vpop.f32.mrf.mxu0  ;;  %v488_v45 = vpop.f32.mrf.mxu1 }
  0xeb   :  { %377 = vst.msk [vmem:[%s721_s4 + $0x8] sm:$0xf] %vm374_vm2, %v437_v36  ;;  %385 = vst.msk [vmem:[%s721_s4 + $0x28] sm:$0xf] %vm374_vm2, %v445_v37  ;;  %v435_v46 = vpack.c.bf16 %v294_v38, %v294_v38  ;;  %v443_v47 = vpack.c.bf16 %v302_v39, %v302_v39  ;;  %v261_v48 = vmul.f32 %v480_v44, %v617_v14 }
  0xec   :  { %v269_v49 = vmul.f32 %v488_v45, %v617_v14  ;;  %v297_v50 = vmax.f32 %v281_v40, 0.0  ;;  %v305_v51 = vmax.f32 %v289_v41, 0.0  ;;  %v279_v52 = vadd.f32 %v619_v16, %v256_v42  ;;  %v201_v54 = vpop.f32.mrf.mxu0  ;;  %v233_v55 = vpop.f32.mrf.mxu1 }
  0xed   :  { %v287_v53 = vadd.f32 %v619_v16, %v264_v43  ;;  %375 = vst.msk [vmem:[%s721_s4] sm:$0xf] %vm374_vm2, %v435_v46  ;;  %383 = vst.msk [vmem:[%s721_s4 + $0x20] sm:$0xf] %vm374_vm2, %v443_v47  ;;  %v284_v56 = vadd.f32 %v619_v16, %v261_v48  ;;  %v259_v58 = vmul.f32 %v617_v14, %v201_v54 }
  0xee   :  { %v292_v57 = vadd.f32 %v619_v16, %v269_v49  ;;  %v267_v59 = vmul.f32 %v617_v14, %v233_v55  ;;  %v438_v60 = vpack.c.bf16 %v297_v50, %v297_v50  ;;  %v446_v61 = vpack.c.bf16 %v305_v51, %v305_v51  ;;  %v481_v0 = vpop.f32.mrf.mxu0  ;;  %v489_v1 = vpop.f32.mrf.mxu1 }
  0xef   :  { %v295_v62 = vmax.f32 %v279_v52, 0.0  ;;  %v303_v63 = vmax.f32 %v287_v53, 0.0  ;;  %v300_v2 = vmax.f32 %v284_v56, 0.0  ;;  %v282_v4 = vadd.f32 %v619_v16, %v259_v58 }
  0xf0   :  { %v308_v3 = vmax.f32 %v292_v57, 0.0  ;;  %v290_v5 = vadd.f32 %v619_v16, %v267_v59  ;;  %378 = vst.msk [vmem:[%s721_s4 + $0xc] sm:$0xf] %vm374_vm2, %v438_v60  ;;  %386 = vst.msk [vmem:[%s721_s4 + $0x2c] sm:$0xf] %vm374_vm2, %v446_v61  ;;  %v262_v8 = vmul.f32 %v481_v0, %v617_v14  ;;  %v270_v9 = vmul.f32 %v489_v1, %v617_v14  ;;  %v204_v10 = vpop.f32.mrf.mxu0  ;;  %v236_v11 = vpop.f32.mrf.mxu1 }
  0xf1   :  { %v436_v6 = vpack.c.bf16 %v295_v62, %v295_v62  ;;  %v444_v7 = vpack.c.bf16 %v303_v63, %v303_v63  ;;  %v441_v12 = vpack.c.bf16 %v300_v2, %v300_v2  ;;  %v298_v15 = vmax.f32 %v282_v4, 0.0 }
  0xf2   :  { %v449_v13 = vpack.c.bf16 %v308_v3, %v308_v3  ;;  %v306_v17 = vmax.f32 %v290_v5, 0.0  ;;  %v285_v18 = vadd.f32 %v619_v16, %v262_v8  ;;  %v293_v19 = vadd.f32 %v619_v16, %v270_v9 }
  0xf3   :  { %376 = vst.msk [vmem:[%s721_s4 + $0x4] sm:$0xf] %vm374_vm2, %v436_v6  ;;  %384 = vst.msk [vmem:[%s721_s4 + $0x24] sm:$0xf] %vm374_vm2, %v444_v7  ;;  %v260_v20 = vmul.f32 %v617_v14, %v204_v10  ;;  %v268_v21 = vmul.f32 %v617_v14, %v236_v11  ;;  %v439_v22 = vpack.c.bf16 %v298_v15, %v298_v15 }
  0xf4   :  { %381 = vst.msk [vmem:[%s721_s4 + $0x18] sm:$0xf] %vm374_vm2, %v441_v12  ;;  %389 = vst.msk [vmem:[%s721_s4 + $0x38] sm:$0xf] %vm374_vm2, %v449_v13  ;;  %v447_v23 = vpack.c.bf16 %v306_v17, %v306_v17  ;;  %v301_v24 = vmax.f32 %v285_v18, 0.0  ;;  %v309_v25 = vmax.f32 %v293_v19, 0.0 }
  0xf5   :  { %v283_v26 = vadd.f32 %v619_v16, %v260_v20  ;;  %v291_v27 = vadd.f32 %v619_v16, %v268_v21  ;;  %379 = vst.msk [vmem:[%s721_s4 + $0x10] sm:$0xf] %vm374_vm2, %v439_v22 }
  0xf6   :  { %387 = vst.msk [vmem:[%s721_s4 + $0x30] sm:$0xf] %vm374_vm2, %v447_v23  ;;  %v442_v14 = vpack.c.bf16 %v301_v24, %v301_v24  ;;  %v450_v28 = vpack.c.bf16 %v309_v25, %v309_v25 }
  0xf7   :  { %v299_v29 = vmax.f32 %v283_v26, 0.0  ;;  %v307_v30 = vmax.f32 %v291_v27, 0.0 }
  0xf8   :  { %382 = vst.msk [vmem:[%s721_s4 + $0x1c] sm:$0xf] %vm374_vm2, %v442_v14  ;;  %390 = vst.msk [vmem:[%s721_s4 + $0x3c] sm:$0xf] %vm374_vm2, %v450_v28 }
  0xf9   :  { %v440_v16 = vpack.c.bf16 %v299_v29, %v299_v29  ;;  %v448_v31 = vpack.c.bf16 %v307_v30, %v307_v30 }
  0xfb   :  { %380 = vst.msk [vmem:[%s721_s4 + $0x14] sm:$0xf] %vm374_vm2, %v440_v16  ;;  %388 = vst.msk [vmem:[%s721_s4 + $0x34] sm:$0xf] %vm374_vm2, %v448_v31 }
  0xfc   :  { %395 = vsyncpa [#allocation3], 1 }

// kernel: _lambda_.20
= control target key start
LH: loop header
LB: loop body
LE: loop exit
PB: predicated region body
PF: predicated region fallthrough
CT: control target
= control target key end

     0   :  { %v877_v0 = vmov 0   ;;  %vm190_vm0 = vcmask 130048   ;;  %vm440_vm1 = vcmask 1043456   ;;  %vm415_vm2 = vcmask 64512   ;;  %s1201_s1 = inlined_call_operand.vmem [shape: bf16[144,16], index: 1, kind: input, shape index: {}]   ;;  %s1202_s0 = inlined_call_operand.vmem [shape: bf16[128,144], index: 0, kind: input, shape index: {}]   ;;  %s1203_s4 = inlined_call_operand.vmem [shape: bf16[128,8], index: 4, kind: input, shape index: {}]   ;;  %s1204_s5 = inlined_call_operand.vmem [shape: bf16[8,16], index: 5, kind: input, shape index: {}]   ;;  %s1205_s2 = inlined_call_operand.vmem [shape: f32[1,16], index: 2, kind: input, shape index: {}]   ;;  %s1206_s6 = inlined_call_operand.vmem [shape: f32[1,16], index: 6, kind: input, shape index: {}]   ;;  %s1207_s7 = inlined_call_operand.vmem [shape: f32[1,16], index: 7, kind: input, shape index: {}]   ;;  %s1208_s3 = inlined_call_operand.vmem [shape: f32[1,16], index: 3, kind: input, shape index: {}]   ;;  %s1209_s8 = inlined_call_operand.vmem [shape: bf16[128,16], index: 8, kind: output, shape index: {}]  }
   0x1   :  { %215 = vmatprep.subr.bf16.mxu0 %v877_v0  ;;  %816 = vmatprep.subr.bf16.mxu1 %v877_v0  ;;  %v836_v1 = vld [vmem:[%s1201_s1 + $0x38] sm:$0xff]   ;;  %v837_v2 = vld [vmem:[%s1201_s1 + $0x30] sm:$0xff]   ;;  %v838_v3 = vld [vmem:[%s1201_s1 + $0x28] sm:$0xff]   ;;  %vm683_vm3 = vcmask 125952  }
   0x2   :  { %216 = vmatpush1.bf16.msra.mxu0 %v836_v1  ;;  %825 = vmatpush1.bf16.msra.mxu1 %v836_v1  ;;  %v839_v4 = vld [vmem:[%s1201_s1 + $0x20] sm:$0xff]   ;;  %v840_v7 = vld [vmem:[%s1201_s1 + $0x18] sm:$0xff]   ;;  %v841_v8 = vld [vmem:[%s1201_s1 + $0x10] sm:$0xff]  }
   0x3   :  { %217 = vmatprep.subr.bf16.mxu0 %v877_v0  ;;  %817 = vmatprep.subr.bf16.mxu1 %v877_v0  ;;  %v847_v5 = vld [vmem:[%s1202_s0 + $0x4] ss:$8 sps:$4 sm:$0xff]   ;;  %v374_v12 = vld [vmem:[%s1204_s5] sm:$0xf]  ;;  %v851_v15 = vld [vmem:[%s1202_s0 + $0x14] ss:$8 sps:$4 sm:$0xff]  }
   0x4   :  { %v850_v6 = vld [vmem:[%s1202_s0 + $0x64] ss:$8 sps:$4 sm:$0xff]   ;;  %729 = vmatprep.mubr.msk.bf16.mxu0 %vm190_vm0, %v847_v5  ;;  %v845_v13 = vld [vmem:[%s1202_s0] ss:$8 sps:$4 sm:$0xff]   ;;  %v442_v16 = vsel %vm440_vm1, %v374_v12, 0  ;;  %v864_v25 = vld [vmem:[%s1203_s4 + $0x10] sm:$0xff]  }
   0x5   :  { %735 = vmatprep.mubr.msk.bf16.mxu1 %vm190_vm0, %v850_v6  ;;  %v842_v9 = vld [vmem:[%s1201_s1 + $0x8] sm:$0xff]   ;;  %v843_v10 = vld [vmem:[%s1201_s1] sm:$0xff]   ;;  %v853_v17 = vld [vmem:[%s1202_s0 + $0x74] ss:$8 sps:$4 sm:$0xff]  }
   0x6   :  { %218 = vmatpush1.bf16.msra.mxu0 %v837_v2  ;;  %826 = vmatpush1.bf16.msra.mxu1 %v837_v2  ;;  %v844_v11 = vld [vmem:[%s1201_s1 + $0x40] sm:$0xff]   ;;  %v855_v18 = vld [vmem:[%s1202_s0 + $0x10] ss:$8 sps:$4 sm:$0xff]   ;;  %v861_v23 = vld [vmem:[%s1203_s4 + $0x8] sm:$0xff]  }
   0x7   :  { %219 = vmatprep.subr.bf16.mxu0 %v877_v0  ;;  %818 = vmatprep.subr.bf16.mxu1 %v877_v0  ;;  %v848_v14 = vld [vmem:[%s1202_s0 + $0x60] ss:$8 sps:$4 sm:$0xff]   ;;  %v856_v19 = vld [vmem:[%s1202_s0 + $0x70] ss:$8 sps:$4 sm:$0xff]   ;;  %v857_v20 = vld [vmem:[%s1202_s0 + $0x24] ss:$8 sps:$4 sm:$0xff]  }
   0x8   :  { %v859_v21 = vld [vmem:[%s1203_s4] sm:$0xff]   ;;  %v862_v24 = vld [vmem:[%s1202_s0 + $0x34] ss:$8 sps:$4 sm:$0xff]   ;;  %v865_v26 = vld [vmem:[%s1202_s0 + $0x30] ss:$8 sps:$4 sm:$0xff]  }
   0x9   :  { %v860_v22 = vld [vmem:[%s1202_s0 + $0x20] ss:$8 sps:$4 sm:$0xff]   ;;  %v866_v27 = vld [vmem:[%s1203_s4 + $0x18] sm:$0xff]   ;;  %v867_v28 = vld [vmem:[%s1202_s0 + $0x44] ss:$8 sps:$4 sm:$0xff]  }
   0xa   :  { %220 = vmatpush1.bf16.msra.mxu0 %v838_v3  ;;  %827 = vmatpush1.bf16.msra.mxu1 %v838_v3  ;;  %v869_v29 = vld [vmem:[%s1203_s4 + $0x20] sm:$0xff]   ;;  %v871_v31 = vld [vmem:[%s1203_s4 + $0x28] sm:$0xff]   ;;  %v872_v32 = vld [vmem:[%s1202_s0 + $0x54] ss:$8 sps:$4 sm:$0xff]  }
   0xb   :  { %221 = vmatprep.subr.bf16.mxu0 %v877_v0  ;;  %819 = vmatprep.subr.bf16.mxu1 %v877_v0  ;;  %v870_v30 = vld [vmem:[%s1202_s0 + $0x40] ss:$8 sps:$4 sm:$0xff]   ;;  %v874_v33 = vld [vmem:[%s1203_s4 + $0x30] sm:$0xff]   ;;  %v876_v35 = vld [vmem:[%s1203_s4 + $0x38] sm:$0xff]  }
   0xc   :  { %v875_v34 = vld [vmem:[%s1202_s0 + $0x50] ss:$8 sps:$4 sm:$0xff]   ;;  %v1052_v50 = vld [vmem:[%s1205_s2] ss:$0 sm:$0xff] }
   0xd   :  { %v1057_v53 = vld [vmem:[%s1206_s6] ss:$0 sm:$0xff] }
   0xe   :  { %222 = vmatpush1.bf16.msra.mxu0 %v839_v4  ;;  %828 = vmatpush1.bf16.msra.mxu1 %v839_v4  ;;  %v1063_v57 = vld [vmem:[%s1207_s7] ss:$0 sm:$0xff] }
   0xf   :  { %223 = vmatprep.subr.bf16.mxu0 %v877_v0  ;;  %820 = vmatprep.subr.bf16.mxu1 %v877_v0  ;;  %v1070_v60 = vld [vmem:[%s1208_s3] ss:$0 sm:$0xff] }
  0x12   :  { %224 = vmatpush1.bf16.msra.mxu0 %v840_v7  ;;  %829 = vmatpush1.bf16.msra.mxu1 %v840_v7 }
  0x13   :  { %225 = vmatprep.subr.bf16.mxu0 %v877_v0  ;;  %821 = vmatprep.subr.bf16.mxu1 %v877_v0 }
  0x16   :  { %226 = vmatpush1.bf16.msra.mxu0 %v841_v8  ;;  %830 = vmatpush1.bf16.msra.mxu1 %v841_v8 }
  0x17   :  { %227 = vmatprep.subr.bf16.mxu0 %v877_v0  ;;  %822 = vmatprep.subr.bf16.mxu1 %v877_v0 }
  0x1a   :  { %228 = vmatpush1.bf16.msra.mxu0 %v842_v9  ;;  %831 = vmatpush1.bf16.msra.mxu1 %v842_v9 }
  0x1b   :  { %229 = vmatprep.subr.bf16.mxu0 %v877_v0  ;;  %823 = vmatprep.subr.bf16.mxu1 %v877_v0 }
  0x1e   :  { %230 = vmatpush1.bf16.msra.mxu0 %v843_v10  ;;  %832 = vmatpush1.bf16.msra.mxu1 %v843_v10 }
  0x1f   :  { %245 = vmatprep.subr.bf16.mxu0 %v877_v0  ;;  %824 = vmatprep.subr.bf16.mxu1 %v877_v0 }
  0x22   :  { %246 = vmatpush2.bf16.msra.mxu0 %v844_v11  ;;  %833 = vmatpush2.bf16.msra.mxu1 %v844_v11 }
  0x23   :  { %834 = vmatprep.subr.msk.bf16.mxu1 %vm440_vm1, %v374_v12 }
  0x25   :  { %248 = vmatmul.mubr.bf16.vlgmr.msra.gmra.mxu0 %v845_v13  ;;  %296 = vmatmul.mubr.bf16.vlgmr.msra.gmra.mxu1 %v848_v14 }
  0x26   :  { %799 = vmatpush3.bf16.msra.mxu1 %v442_v16  ;;  %730 = vmatprep.mubr.msk.bf16.mxu0 %vm190_vm0, %v851_v15 }
  0x27   :  { %736 = vmatprep.mubr.msk.bf16.mxu1 %vm190_vm0, %v853_v17 }
  0x2d   :  { %256 = vmatmul.mubr.bf16.gmra.mxu0 %v855_v18  ;;  %304 = vmatmul.mubr.bf16.gmra.mxu1 %v856_v19 }
  0x2e   :  { %731 = vmatprep.mubr.msk.bf16.mxu0 %vm190_vm0, %v857_v20  ;;  %800 = vmatprep.mubr.msk.bf16.mxu1 %vm415_vm2, %v859_v21 }
  0x35   :  { %264 = vmatmul.mubr.bf16.gmra.mxu0 %v860_v22  ;;  %801 = vmatmul.mubr.msk.bf16.vlgmr.msra.gmra.mxu1 %vm415_vm2, %v861_v23 }
  0x36   :  { %732 = vmatprep.mubr.msk.bf16.mxu0 %vm190_vm0, %v862_v24  ;;  %804 = vmatprep.mubr.msk.bf16.mxu1 %vm415_vm2, %v864_v25 }
  0x3d   :  { %272 = vmatmul.mubr.bf16.gmra.mxu0 %v865_v26  ;;  %805 = vmatmul.mubr.msk.bf16.gmra.mxu1 %vm415_vm2, %v866_v27 }
  0x3e   :  { %733 = vmatprep.mubr.msk.bf16.mxu0 %vm190_vm0, %v867_v28  ;;  %808 = vmatprep.mubr.msk.bf16.mxu1 %vm415_vm2, %v869_v29 }
  0x45   :  { %280 = vmatmul.mubr.bf16.gmra.mxu0 %v870_v30  ;;  %809 = vmatmul.mubr.msk.bf16.gmra.mxu1 %vm415_vm2, %v871_v31 }
  0x46   :  { %734 = vmatprep.mubr.msk.bf16.mxu0 %vm190_vm0, %v872_v32  ;;  %812 = vmatprep.mubr.msk.bf16.mxu1 %vm415_vm2, %v874_v33 }
  0x4d   :  { %288 = vmatmul.mubr.bf16.gmra.mxu0 %v875_v34  ;;  %813 = vmatmul.mubr.msk.bf16.gmra.mxu1 %vm415_vm2, %v876_v35 }
  0xe5   :  { %v249_v36 = vpop.f32.mrf.mxu0  ;;  %v1041_v37 = vpop.f32.mrf.mxu1 }
  0xe6   :  { %v319_v58 = vmul.f32 %v1052_v50, %v249_v36 }
  0xe7   :  { %v251_v38 = vpop.f32.mrf.mxu0  ;;  %v299_v39 = vpop.f32.mrf.mxu1 }
  0xe8   :  { %v342_v5 = vadd.f32 %v1070_v60, %v319_v58 }
  0xe9   :  { %v252_v40 = vpop.f32.mrf.mxu0  ;;  %v1043_v41 = vpop.f32.mrf.mxu1 }
  0xea   :  { %v320_v9 = vmul.f32 %v1052_v50, %v252_v40 }
  0xeb   :  { %v254_v42 = vpop.f32.mrf.mxu0  ;;  %v302_v43 = vpop.f32.mrf.mxu1 }
  0xec   :  { %v343_v24 = vadd.f32 %v1070_v60, %v320_v9 }
  0xed   :  { %v257_v44 = vpop.f32.mrf.mxu0  ;;  %v1045_v45 = vpop.f32.mrf.mxu1 }
  0xee   :  { %v321_v54 = vmul.f32 %v1052_v50, %v257_v44 }
  0xef   :  { %v259_v46 = vpop.f32.mrf.mxu0  ;;  %v307_v47 = vpop.f32.mrf.mxu1 }
  0xf0   :  { %v344_v63 = vadd.f32 %v1070_v60, %v321_v54 }
  0xf1   :  { %v260_v48 = vpop.f32.mrf.mxu0  ;;  %v1047_v49 = vpop.f32.mrf.mxu1 }
  0xf2   :  { %v322_v0 = vmul.f32 %v1052_v50, %v260_v48 }
  0xf3   :  { %v262_v51 = vpop.f32.mrf.mxu0  ;;  %v310_v52 = vpop.f32.mrf.mxu1 }
  0xf4   :  { %v345_v12 = vadd.f32 %v1070_v60, %v322_v0 }
  0xf5   :  { %v265_v55 = vpop.f32.mrf.mxu0  ;;  %v802_v56 = vpop.f32.mrf.mxu1 }
  0xf6   :  { %v550_v59 = vmul.f32 %v802_v56, %v1057_v53  ;;  %v323_v16 = vmul.f32 %v1052_v50, %v265_v55 }
  0xf7   :  { %v267_v61 = vpop.f32.mrf.mxu0  ;;  %v478_v62 = vpop.f32.mrf.mxu1 }
  0xf8   :  { %v573_v1 = vadd.f32 %v1063_v57, %v550_v59  ;;  %v548_v2 = vmul.f32 %v1057_v53, %v478_v62  ;;  %v346_v33 = vadd.f32 %v1070_v60, %v323_v16 }
  0xf9   :  { %v268_v3 = vpop.f32.mrf.mxu0  ;;  %v803_v4 = vpop.f32.mrf.mxu1 }
  0xfa   :  { %v589_v6 = vadd.f32 %v573_v1, %v344_v63  ;;  %v571_v7 = vadd.f32 %v1063_v57, %v548_v2  ;;  %v551_v8 = vmul.f32 %v803_v4, %v1057_v53  ;;  %v324_v34 = vmul.f32 %v1052_v50, %v268_v3 }
  0xfb   :  { %v270_v10 = vpop.f32.mrf.mxu0  ;;  %v481_v11 = vpop.f32.mrf.mxu1 }
  0xfc   :  { %v605_v13 = vmax.f32 %v589_v6, 0.0  ;;  %v587_v14 = vadd.f32 %v571_v7, %v342_v5  ;;  %v574_v15 = vadd.f32 %v1063_v57, %v551_v8  ;;  %v549_v17 = vmul.f32 %v1057_v53, %v481_v11 }
  0xfd   :  { %v273_v18 = vpop.f32.mrf.mxu0  ;;  %v806_v19 = vpop.f32.mrf.mxu1  ;;  %v347_v58 = vadd.f32 %v1070_v60, %v324_v34 }
  0xfe   :  { %v775_v20 = vpack.c.bf16 %v605_v13, %v605_v13  ;;  %v603_v21 = vmax.f32 %v587_v14, 0.0  ;;  %v590_v22 = vadd.f32 %v574_v15, %v345_v12  ;;  %v325_v23 = vmul.f32 %v1052_v50, %v273_v18 }
  0xff   :  { %v572_v25 = vadd.f32 %v1063_v57, %v549_v17  ;;  %v554_v26 = vmul.f32 %v806_v19, %v1057_v53  ;;  %v275_v27 = vpop.f32.mrf.mxu0  ;;  %v494_v28 = vpop.f32.mrf.mxu1  ;;  %v333_v17 = vmul.f32 %v1052_v50, %v1045_v45 }
 0x100   :  { %686 = vst.msk [vmem:[%s1209_s8 + $0x8] sm:$0xf] %vm683_vm3, %v775_v20  ;;  %v773_v29 = vpack.c.bf16 %v603_v21, %v603_v21  ;;  %v606_v30 = vmax.f32 %v590_v22, 0.0  ;;  %v348_v31 = vadd.f32 %v1070_v60, %v325_v23  ;;  %v552_v32 = vmul.f32 %v1057_v53, %v494_v28 }
 0x101   :  { %v588_v35 = vadd.f32 %v572_v25, %v343_v24  ;;  %v577_v36 = vadd.f32 %v1063_v57, %v554_v26  ;;  %v276_v38 = vpop.f32.mrf.mxu0  ;;  %v807_v39 = vpop.f32.mrf.mxu1  ;;  %v331_v24 = vmul.f32 %v1052_v50, %v1041_v37  ;;  %v334_v37 = vmul.f32 %v1052_v50, %v1047_v49 }
 0x102   :  { %684 = vst.msk [vmem:[%s1209_s8] sm:$0xf] %vm683_vm3, %v773_v29  ;;  %v776_v40 = vpack.c.bf16 %v606_v30, %v606_v30  ;;  %v575_v42 = vadd.f32 %v1063_v57, %v552_v32  ;;  %v326_v43 = vmul.f32 %v1052_v50, %v276_v38  ;;  %v555_v44 = vmul.f32 %v807_v39, %v1057_v53 }
 0x103   :  { %v604_v46 = vmax.f32 %v588_v35, 0.0  ;;  %v593_v47 = vadd.f32 %v577_v36, %v348_v31  ;;  %v278_v48 = vpop.f32.mrf.mxu0  ;;  %v497_v51 = vpop.f32.mrf.mxu1  ;;  %v356_v31 = vadd.f32 %v1070_v60, %v333_v17 }
 0x104   :  { %687 = vst.msk [vmem:[%s1209_s8 + $0xc] sm:$0xf] %vm683_vm3, %v776_v40  ;;  %v591_v52 = vadd.f32 %v575_v42, %v346_v33  ;;  %v349_v54 = vadd.f32 %v1070_v60, %v326_v43  ;;  %v578_v55 = vadd.f32 %v1063_v57, %v555_v44  ;;  %v553_v56 = vmul.f32 %v1057_v53, %v497_v51 }
 0x105   :  { %v774_v59 = vpack.c.bf16 %v604_v46, %v604_v46  ;;  %v609_v61 = vmax.f32 %v593_v47, 0.0  ;;  %v281_v62 = vpop.f32.mrf.mxu0  ;;  %v810_v63 = vpop.f32.mrf.mxu1  ;;  %v354_v42 = vadd.f32 %v1070_v60, %v331_v24 }
 0x106   :  { %v607_v0 = vmax.f32 %v591_v52, 0.0  ;;  %v594_v1 = vadd.f32 %v578_v55, %v349_v54  ;;  %v576_v2 = vadd.f32 %v1063_v57, %v553_v56  ;;  %v327_v3 = vmul.f32 %v1052_v50, %v281_v62 }
 0x107   :  { %685 = vst.msk [vmem:[%s1209_s8 + $0x4] sm:$0xf] %vm683_vm3, %v774_v59  ;;  %v779_v4 = vpack.c.bf16 %v609_v61, %v609_v61  ;;  %v283_v5 = vpop.f32.mrf.mxu0  ;;  %v510_v6 = vpop.f32.mrf.mxu1  ;;  %v558_v18 = vmul.f32 %v810_v63, %v1057_v53  ;;  %v332_v54 = vmul.f32 %v1052_v50, %v1043_v41  ;;  %v357_v55 = vadd.f32 %v1070_v60, %v334_v37 }
 0x108   :  { %v777_v7 = vpack.c.bf16 %v607_v0, %v607_v0  ;;  %v610_v8 = vmax.f32 %v594_v1, 0.0  ;;  %v592_v9 = vadd.f32 %v576_v2, %v347_v58  ;;  %v350_v10 = vadd.f32 %v1070_v60, %v327_v3 }
 0x109   :  { %690 = vst.msk [vmem:[%s1209_s8 + $0x18] sm:$0xf] %vm683_vm3, %v779_v4  ;;  %v556_v11 = vmul.f32 %v1057_v53, %v510_v6  ;;  %v284_v12 = vpop.f32.mrf.mxu0  ;;  %v811_v13 = vpop.f32.mrf.mxu1  ;;  %v581_v32 = vadd.f32 %v1063_v57, %v558_v18 }
 0x10a   :  { %688 = vst.msk [vmem:[%s1209_s8 + $0x10] sm:$0xf] %vm683_vm3, %v777_v7  ;;  %v780_v14 = vpack.c.bf16 %v610_v8, %v610_v8  ;;  %v608_v15 = vmax.f32 %v592_v9, 0.0  ;;  %v328_v16 = vmul.f32 %v1052_v50, %v284_v12  ;;  %v559_v44 = vmul.f32 %v811_v13, %v1057_v53 }
 0x10b   :  { %v579_v19 = vadd.f32 %v1063_v57, %v556_v11  ;;  %v286_v20 = vpop.f32.mrf.mxu0  ;;  %v513_v21 = vpop.f32.mrf.mxu1  ;;  %v355_v7 = vadd.f32 %v1070_v60, %v332_v54 }
 0x10c   :  { %691 = vst.msk [vmem:[%s1209_s8 + $0x1c] sm:$0xf] %vm683_vm3, %v780_v14  ;;  %v778_v22 = vpack.c.bf16 %v608_v15, %v608_v15  ;;  %v557_v23 = vmul.f32 %v1057_v53, %v513_v21  ;;  %v351_v27 = vadd.f32 %v1070_v60, %v328_v16  ;;  %v582_v2 = vadd.f32 %v1063_v57, %v559_v44 }
 0x10d   :  { %v595_v25 = vadd.f32 %v579_v19, %v350_v10  ;;  %v289_v26 = vpop.f32.mrf.mxu0  ;;  %v814_v45 = vpop.f32.mrf.mxu1 }
 0x10e   :  { %689 = vst.msk [vmem:[%s1209_s8 + $0x14] sm:$0xf] %vm683_vm3, %v778_v22  ;;  %v580_v28 = vadd.f32 %v1063_v57, %v557_v23  ;;  %v329_v29 = vmul.f32 %v1052_v50, %v289_v26  ;;  %v562_v30 = vmul.f32 %v814_v45, %v1057_v53 }
 0x10f   :  { %v611_v33 = vmax.f32 %v595_v25, 0.0  ;;  %v291_v34 = vpop.f32.mrf.mxu0  ;;  %v526_v35 = vpop.f32.mrf.mxu1 }
 0x110   :  { %v596_v36 = vadd.f32 %v580_v28, %v351_v27  ;;  %v352_v38 = vadd.f32 %v1070_v60, %v329_v29  ;;  %v585_v39 = vadd.f32 %v1063_v57, %v562_v30  ;;  %v560_v40 = vmul.f32 %v1057_v53, %v526_v35 }
 0x111   :  { %v781_v43 = vpack.c.bf16 %v611_v33, %v611_v33  ;;  %v292_v46 = vpop.f32.mrf.mxu0  ;;  %v815_v47 = vpop.f32.mrf.mxu1 }
 0x112   :  { %v612_v49 = vmax.f32 %v596_v36, 0.0  ;;  %v597_v48 = vadd.f32 %v581_v32, %v352_v38  ;;  %v601_v51 = vadd.f32 %v585_v39, %v356_v31  ;;  %v583_v52 = vadd.f32 %v1063_v57, %v560_v40 }
 0x113   :  { %692 = vst.msk [vmem:[%s1209_s8 + $0x20] sm:$0xf] %vm683_vm3, %v781_v43  ;;  %v330_v56 = vmul.f32 %v1052_v50, %v292_v46  ;;  %v563_v58 = vmul.f32 %v815_v47, %v1057_v53  ;;  %v294_v59 = vpop.f32.mrf.mxu0  ;;  %v529_v61 = vpop.f32.mrf.mxu1 }
 0x114   :  { %v782_v62 = vpack.c.bf16 %v612_v49, %v612_v49  ;;  %v613_v63 = vmax.f32 %v597_v48, 0.0  ;;  %v617_v0 = vmax.f32 %v601_v51, 0.0  ;;  %v599_v1 = vadd.f32 %v583_v52, %v354_v42 }
 0x115   :  { %v353_v41 = vadd.f32 %v1070_v60, %v330_v56  ;;  %v586_v3 = vadd.f32 %v1063_v57, %v563_v58  ;;  %v561_v4 = vmul.f32 %v1057_v53, %v529_v61 }
 0x116   :  { %693 = vst.msk [vmem:[%s1209_s8 + $0x24] sm:$0xf] %vm683_vm3, %v782_v62  ;;  %v783_v50 = vpack.c.bf16 %v613_v63, %v613_v63  ;;  %v787_v5 = vpack.c.bf16 %v617_v0, %v617_v0  ;;  %v615_v6 = vmax.f32 %v599_v1, 0.0 }
 0x117   :  { %v598_v8 = vadd.f32 %v582_v2, %v353_v41  ;;  %v602_v9 = vadd.f32 %v586_v3, %v357_v55  ;;  %v584_v10 = vadd.f32 %v1063_v57, %v561_v4 }
 0x118   :  { %694 = vst.msk [vmem:[%s1209_s8 + $0x28] sm:$0xf] %vm683_vm3, %v783_v50  ;;  %698 = vst.msk [vmem:[%s1209_s8 + $0x38] sm:$0xf] %vm683_vm3, %v787_v5  ;;  %v785_v53 = vpack.c.bf16 %v615_v6, %v615_v6 }
 0x119   :  { %v614_v11 = vmax.f32 %v598_v8, 0.0  ;;  %v618_v12 = vmax.f32 %v602_v9, 0.0  ;;  %v600_v13 = vadd.f32 %v584_v10, %v355_v7 }
 0x11a   :  { %696 = vst.msk [vmem:[%s1209_s8 + $0x30] sm:$0xf] %vm683_vm3, %v785_v53 }
 0x11b   :  { %v784_v57 = vpack.c.bf16 %v614_v11, %v614_v11  ;;  %v788_v60 = vpack.c.bf16 %v618_v12, %v618_v12  ;;  %v616_v14 = vmax.f32 %v600_v13, 0.0 }
 0x11d   :  { %695 = vst.msk [vmem:[%s1209_s8 + $0x2c] sm:$0xf] %vm683_vm3, %v784_v57  ;;  %699 = vst.msk [vmem:[%s1209_s8 + $0x3c] sm:$0xf] %vm683_vm3, %v788_v60  ;;  %v786_v15 = vpack.c.bf16 %v616_v14, %v616_v14 }
 0x11f   :  { %697 = vst.msk [vmem:[%s1209_s8 + $0x34] sm:$0xf] %vm683_vm3, %v786_v15 }

// kernel: _lambda_.21
= control target key start
LH: loop header
LB: loop body
LE: loop exit
PB: predicated region body
PF: predicated region fallthrough
CT: control target
= control target key end

     0   :  { %v278_v0 = vmov 0   ;;  %vm112_vm0 = vcmask 130048   ;;  %vm210_vm1 = vcmask 257024   ;;  %s361_s1 = inlined_call_operand.vmem [shape: bf16[144,32], index: 1, kind: input, shape index: {}]   ;;  %s362_s0 = inlined_call_operand.vmem [shape: bf16[32,144], index: 0, kind: input, shape index: {}]   ;;  %s363_s2 = inlined_call_operand.vmem [shape: f32[1,32], index: 2, kind: input, shape index: {}]   ;;  %s364_s3 = inlined_call_operand.vmem [shape: f32[1,32], index: 3, kind: input, shape index: {}]   ;;  %s365_s4 = inlined_call_operand.vmem [shape: bf16[32,32], index: 4, kind: output, shape index: {}]  }
   0x1   :  { %119 = vmatprep.subr.bf16.mxu0 %v278_v0  ;;  %244 = vmatprep.subr.bf16.mxu1 %v278_v0  ;;  %v263_v1 = vld [vmem:[%s361_s1 + $0x38] sm:$0xff]   ;;  %v264_v2 = vld [vmem:[%s361_s1 + $0x30] sm:$0xff]   ;;  %v265_v3 = vld [vmem:[%s361_s1 + $0x28] sm:$0xff]  }
   0x2   :  { %120 = vmatpush1.bf16.msra.mxu0 %v263_v1  ;;  %253 = vmatpush1.bf16.msra.mxu1 %v263_v1  ;;  %v266_v4 = vld [vmem:[%s361_s1 + $0x20] sm:$0xff]   ;;  %v277_v6 = vld [vmem:[%s362_s0 + $0x14] ss:$8 sps:$4 sm:$0xff]   ;;  %v269_v9 = vld [vmem:[%s361_s1 + $0x8] sm:$0xff]  }
   0x3   :  { %121 = vmatprep.subr.bf16.mxu0 %v278_v0  ;;  %245 = vmatprep.subr.bf16.mxu1 %v278_v0  ;;  %v274_v5 = vld [vmem:[%s362_s0 + $0x4] ss:$8 sps:$4 sm:$0xff]   ;;  %v267_v7 = vld [vmem:[%s361_s1 + $0x18] sm:$0xff]   ;;  %v268_v8 = vld [vmem:[%s361_s1 + $0x10] sm:$0xff]  }
   0x4   :  { %232 = vmatprep.mubr.msk.bf16.mxu0 %vm112_vm0, %v274_v5  ;;  %233 = vmatprep.mubr.msk.bf16.mxu1 %vm112_vm0, %v277_v6  ;;  %v270_v10 = vld [vmem:[%s361_s1] sm:$0xff]   ;;  %v275_v13 = vld [vmem:[%s362_s0 + $0x10] ss:$8 sps:$4 sm:$0xff]  }
   0x5   :  { %v271_v11 = vld [vmem:[%s361_s1 + $0x40] sm:$0xff]  }
   0x6   :  { %122 = vmatpush1.bf16.msra.mxu0 %v264_v2  ;;  %254 = vmatpush1.bf16.msra.mxu1 %v264_v2  ;;  %v272_v12 = vld [vmem:[%s362_s0] ss:$8 sps:$4 sm:$0xff]  }
   0x7   :  { %123 = vmatprep.subr.bf16.mxu0 %v278_v0  ;;  %246 = vmatprep.subr.bf16.mxu1 %v278_v0  ;;  %v234_v14 = vld [vmem:[%s363_s2] ss:$0 sm:$0xff] }
   0x8   :  { %v235_v16 = vld [vmem:[%s364_s3] ss:$0 sm:$0xff] }
   0xa   :  { %124 = vmatpush1.bf16.msra.mxu0 %v265_v3  ;;  %255 = vmatpush1.bf16.msra.mxu1 %v265_v3 }
   0xb   :  { %125 = vmatprep.subr.bf16.mxu0 %v278_v0  ;;  %247 = vmatprep.subr.bf16.mxu1 %v278_v0 }
   0xe   :  { %126 = vmatpush1.bf16.msra.mxu0 %v266_v4  ;;  %256 = vmatpush1.bf16.msra.mxu1 %v266_v4 }
   0xf   :  { %127 = vmatprep.subr.bf16.mxu0 %v278_v0  ;;  %248 = vmatprep.subr.bf16.mxu1 %v278_v0 }
  0x12   :  { %128 = vmatpush1.bf16.msra.mxu0 %v267_v7  ;;  %257 = vmatpush1.bf16.msra.mxu1 %v267_v7 }
  0x13   :  { %129 = vmatprep.subr.bf16.mxu0 %v278_v0  ;;  %249 = vmatprep.subr.bf16.mxu1 %v278_v0 }
  0x16   :  { %130 = vmatpush1.bf16.msra.mxu0 %v268_v8  ;;  %258 = vmatpush1.bf16.msra.mxu1 %v268_v8 }
  0x17   :  { %131 = vmatprep.subr.bf16.mxu0 %v278_v0  ;;  %250 = vmatprep.subr.bf16.mxu1 %v278_v0 }
  0x1a   :  { %132 = vmatpush1.bf16.msra.mxu0 %v269_v9  ;;  %259 = vmatpush1.bf16.msra.mxu1 %v269_v9 }
  0x1b   :  { %133 = vmatprep.subr.bf16.mxu0 %v278_v0  ;;  %251 = vmatprep.subr.bf16.mxu1 %v278_v0 }
  0x1e   :  { %134 = vmatpush1.bf16.msra.mxu0 %v270_v10  ;;  %260 = vmatpush1.bf16.msra.mxu1 %v270_v10 }
  0x1f   :  { %149 = vmatprep.subr.bf16.mxu0 %v278_v0  ;;  %252 = vmatprep.subr.bf16.mxu1 %v278_v0 }
  0x22   :  { %150 = vmatpush2.bf16.msra.mxu0 %v271_v11  ;;  %261 = vmatpush2.bf16.msra.mxu1 %v271_v11 }
  0x25   :  { %152 = vmatmul.mubr.bf16.vlgmr.msra.gmra.mxu0 %v272_v12  ;;  %160 = vmatmul.mubr.bf16.vlgmr.msra.gmra.mxu1 %v275_v13 }
  0xe5   :  { %v153_v15 = vpop.f32.mrf.mxu0  ;;  %v161_v17 = vpop.f32.mrf.mxu1 }
  0xe6   :  { %v175_v18 = vmul.f32 %v234_v14, %v153_v15  ;;  %v177_v19 = vmul.f32 %v234_v14, %v161_v17 }
  0xe7   :  { %v155_v20 = vpop.f32.mrf.mxu0  ;;  %v163_v21 = vpop.f32.mrf.mxu1 }
  0xe8   :  { %v186_v22 = vadd.f32 %v235_v16, %v175_v18  ;;  %v188_v23 = vadd.f32 %v235_v16, %v177_v19 }
  0xe9   :  { %v156_v24 = vpop.f32.mrf.mxu0  ;;  %v164_v25 = vpop.f32.mrf.mxu1 }
  0xea   :  { %v190_v26 = vmax.f32 %v186_v22, 0.0  ;;  %v192_v27 = vmax.f32 %v188_v23, 0.0  ;;  %v176_v28 = vmul.f32 %v234_v14, %v156_v24  ;;  %v178_v29 = vmul.f32 %v234_v14, %v164_v25 }
  0xeb   :  { %v158_v30 = vpop.f32.mrf.mxu0  ;;  %v166_v31 = vpop.f32.mrf.mxu1 }
  0xec   :  { %v240_v32 = vpack.c.bf16 %v190_v26, %v190_v26  ;;  %v242_v33 = vpack.c.bf16 %v192_v27, %v192_v27  ;;  %v187_v34 = vadd.f32 %v235_v16, %v176_v28  ;;  %v189_v35 = vadd.f32 %v235_v16, %v178_v29 }
  0xee   :  { %211 = vst.msk [vmem:[%s365_s4] sm:$0xf] %vm210_vm1, %v240_v32  ;;  %213 = vst.msk [vmem:[%s365_s4 + $0x8] sm:$0xf] %vm210_vm1, %v242_v33  ;;  %v191_v36 = vmax.f32 %v187_v34, 0.0  ;;  %v193_v37 = vmax.f32 %v189_v35, 0.0 }
  0xf0   :  { %v241_v38 = vpack.c.bf16 %v191_v36, %v191_v36  ;;  %v243_v39 = vpack.c.bf16 %v193_v37, %v193_v37 }
  0xf2   :  { %212 = vst.msk [vmem:[%s365_s4 + $0x4] sm:$0xf] %vm210_vm1, %v241_v38  ;;  %214 = vst.msk [vmem:[%s365_s4 + $0xc] sm:$0xf] %vm210_vm1, %v243_v39 }

// kernel: _lambda_.22
= control target key start
LH: loop header
LB: loop body
LE: loop exit
PB: predicated region body
PF: predicated region fallthrough
CT: control target
= control target key end

     0   :  { %vm212_vm0 = vcmask 261120   ;;  %vm361_vm1 = vcmask 130048   ;;  %vm463_vm2 = vcmask 257024   ;;  %s747_s1 = inlined_call_operand.vmem [shape: bf16[288,32], index: 1, kind: input, shape index: {}]   ;;  %s748_s0 = inlined_call_operand.vmem [shape: bf16[32,288], index: 0, kind: input, shape index: {}]   ;;  %s749_s5 = inlined_call_operand.vmem [shape: bf16[16,32], index: 5, kind: input, shape index: {}]   ;;  %s750_s4 = inlined_call_operand.vmem [shape: bf16[32,16], index: 4, kind: input, shape index: {}]   ;;  %s751_s6 = inlined_call_operand.vmem [shape: f32[1,32], index: 6, kind: input, shape index: {}]   ;;  %s752_s2 = inlined_call_operand.vmem [shape: f32[1,32], index: 2, kind: input, shape index: {}]   ;;  %s753_s7 = inlined_call_operand.vmem [shape: f32[1,32], index: 7, kind: input, shape index: {}]   ;;  %s754_s3 = inlined_call_operand.vmem [shape: f32[1,32], index: 3, kind: input, shape index: {}]   ;;  %s755_s8 = inlined_call_operand.vmem [shape: bf16[32,32], index: 8, kind: output, shape index: {}]  }
   0x1   :  { %v564_v0 = vld [vmem:[%s747_s1 + $0x78] sm:$0xff]   ;;  %v566_v2 = vld [vmem:[%s747_s1 + $0x70] sm:$0xff]   ;;  %v568_v4 = vld [vmem:[%s747_s1 + $0x68] sm:$0xff]  }
   0x2   :  { %v565_v1 = vld [vmem:[%s747_s1 + $0x38] sm:$0xff]   ;;  %515 = vmatprep.subr.bf16.mxu0 %v564_v0  ;;  %v567_v3 = vld [vmem:[%s747_s1 + $0x30] sm:$0xff]   ;;  %v569_v5 = vld [vmem:[%s747_s1 + $0x28] sm:$0xff]  }
   0x3   :  { %516 = vmatpush3.bf16.msra.mxu0 %v565_v1  ;;  %v570_v6 = vld [vmem:[%s747_s1 + $0x60] sm:$0xff]   ;;  %v575_v8 = vld [vmem:[%s747_s1 + $0x88] sm:$0xff]   ;;  %v572_v9 = vld [vmem:[%s747_s1 + $0x58] sm:$0xff]  }
   0x4   :  { %517 = vmatprep.subr.bf16.mxu0 %v566_v2  ;;  %v571_v7 = vld [vmem:[%s747_s1 + $0x20] sm:$0xff]   ;;  %v573_v10 = vld [vmem:[%s747_s1 + $0x18] sm:$0xff]   ;;  %550 = vmatprep.subr.bf16.mxu1 %v575_v8  ;;  %v574_v12 = vld [vmem:[%s747_s1 + $0x50] sm:$0xff]  }
   0x5   :  { %551 = vmatpush3.bf16.msra.mxu1 %v575_v8  ;;  %v578_v11 = vld [vmem:[%s747_s1 + $0x80] sm:$0xff]   ;;  %v580_v13 = vld [vmem:[%s748_s0 + $0x8] ss:$12 sps:$4 sm:$0xff]  }
   0x6   :  { %552 = vmatprep.subr.bf16.mxu1 %v578_v11  ;;  %554 = vmatprep.mubr.msk.bf16.mxu1 %vm212_vm0, %v580_v13  ;;  %v582_v14 = vld [vmem:[%s748_s0 + $0x20] ss:$12 sps:$4 sm:$0xff]   ;;  %v576_v15 = vld [vmem:[%s747_s1 + $0x10] sm:$0xff]   ;;  %v590_v25 = vld [vmem:[%s748_s0 + $0x1c] ss:$12 sps:$4 sm:$0xff]  }
   0x7   :  { %518 = vmatpush3.bf16.msra.mxu0 %v567_v3  ;;  %v577_v16 = vld [vmem:[%s747_s1 + $0x48] sm:$0xff]   ;;  %v586_v18 = vld [vmem:[%s748_s0 + $0x4] ss:$12 sps:$4 sm:$0xff]   ;;  %v505_v34 = vld [vmem:[%s751_s6] ss:$0 sm:$0xff] }
   0x8   :  { %519 = vmatprep.subr.bf16.mxu0 %v568_v4  ;;  %v579_v17 = vld [vmem:[%s747_s1 + $0x8] sm:$0xff]   ;;  %v587_v19 = vld [vmem:[%s749_s5] sm:$0xff]   ;;  %251 = vmatprep.mubr.bf16.mxu0 %v586_v18 }
   0x9   :  { %553 = vmatpush3.bf16.msra.mxu1 %v578_v11  ;;  %v588_v20 = vld [vmem:[%s750_s4] sm:$0xff]   ;;  %v589_v22 = vld [vmem:[%s750_s4 + $0x8] sm:$0xff]  }
   0xa   :  { %v581_v21 = vld [vmem:[%s747_s1 + $0x40] sm:$0xff]   ;;  %558 = vmatprep.subr.bf16.mxu1 %v587_v19 }
   0xb   :  { %520 = vmatpush3.bf16.msra.mxu0 %v569_v5  ;;  %v583_v23 = vld [vmem:[%s747_s1] sm:$0xff]  }
   0xc   :  { %521 = vmatprep.subr.bf16.mxu0 %v570_v6  ;;  %555 = vmatmul.mubr.msk.bf16.vlgmr.msra.gmra.mxu1 %vm212_vm0, %v582_v14  ;;  %v584_v24 = vld [vmem:[%s748_s0] ss:$12 sps:$4 sm:$0xff]   ;;  %v592_v26 = vld [vmem:[%s748_s0 + $0x18] ss:$12 sps:$4 sm:$0xff]  }
   0xd   :  { %559 = vmatpush3.bf16.msra.mxu1 %v587_v19  ;;  %560 = vmatprep.mubr.msk.bf16.mxu1 %vm361_vm1, %v588_v20  ;;  %v498_v39 = vld [vmem:[%s752_s2] ss:$0 sm:$0xff] }
   0xe   :  { %v506_v41 = vld [vmem:[%s753_s7] ss:$0 sm:$0xff] }
   0xf   :  { %522 = vmatpush3.bf16.msra.mxu0 %v571_v7  ;;  %v499_v45 = vld [vmem:[%s754_s3] ss:$0 sm:$0xff] }
  0x10   :  { %523 = vmatprep.subr.bf16.mxu0 %v572_v9 }
  0x13   :  { %524 = vmatpush3.bf16.msra.mxu0 %v573_v10 }
  0x14   :  { %525 = vmatprep.subr.bf16.mxu0 %v574_v12  ;;  %561 = vmatmul.mubr.msk.bf16.vlgmr.msra.gmra.mxu1 %vm361_vm1, %v589_v22 }
  0x17   :  { %526 = vmatpush3.bf16.msra.mxu0 %v576_v15 }
  0x18   :  { %527 = vmatprep.subr.bf16.mxu0 %v577_v16 }
  0x1b   :  { %528 = vmatpush3.bf16.msra.mxu0 %v579_v17 }
  0x1c   :  { %529 = vmatprep.subr.bf16.mxu0 %v581_v21 }
  0x1f   :  { %530 = vmatpush3.bf16.msra.mxu0 %v583_v23 }
  0x22   :  { %252 = vmatmul.mubr.bf16.vlgmr.msra.gmra.mxu0 %v584_v24 }
  0x23   :  { %259 = vmatprep.mubr.bf16.mxu0 %v590_v25 }
  0x2a   :  { %260 = vmatmul.mubr.bf16.gmra.mxu0 %v592_v26 }
  0xcc   :  { %v556_v27 = vpop.f32.mrf.mxu1 }
  0xce   :  { %v302_v28 = vpop.f32.mrf.mxu1 }
  0xd0   :  { %v557_v29 = vpop.f32.mrf.mxu1 }
  0xd2   :  { %v305_v30 = vpop.f32.mrf.mxu1 }
  0xd4   :  { %v562_v31 = vpop.f32.mrf.mxu1 }
  0xd5   :  { %v426_v58 = vmul.f32 %v562_v31, %v505_v34 }
  0xd6   :  { %v402_v32 = vpop.f32.mrf.mxu1 }
  0xd7   :  { %v424_v38 = vmul.f32 %v505_v34, %v402_v32  ;;  %v437_v4 = vadd.f32 %v506_v41, %v426_v58 }
  0xd8   :  { %v563_v35 = vpop.f32.mrf.mxu1 }
  0xd9   :  { %v435_v48 = vadd.f32 %v506_v41, %v424_v38  ;;  %v427_v5 = vmul.f32 %v563_v35, %v505_v34 }
  0xda   :  { %v405_v42 = vpop.f32.mrf.mxu1 }
  0xdb   :  { %v425_v49 = vmul.f32 %v505_v34, %v405_v42  ;;  %v438_v12 = vadd.f32 %v506_v41, %v427_v5 }
  0xdd   :  { %v436_v57 = vadd.f32 %v506_v41, %v425_v49 }
  0xe2   :  { %v531_v33 = vpop.f32.mrf.mxu0 }
  0xe4   :  { %v532_v36 = vpop.f32.mrf.mxu0 }
  0xe5   :  { %v533_v37 = vadd.f32 %v532_v36, %v531_v33 }
  0xe6   :  { %v534_v40 = vpop.f32.mrf.mxu0 }
  0xe7   :  { %v303_v43 = vadd.f32 %v533_v37, %v302_v28 }
  0xe8   :  { %v535_v44 = vpop.f32.mrf.mxu0 }
  0xe9   :  { %v324_v46 = vmul.f32 %v498_v39, %v303_v43  ;;  %v536_v47 = vadd.f32 %v535_v44, %v534_v40 }
  0xea   :  { %v537_v50 = vpop.f32.mrf.mxu0 }
  0xeb   :  { %v306_v51 = vadd.f32 %v536_v47, %v305_v30  ;;  %v335_v52 = vadd.f32 %v499_v45, %v324_v46 }
  0xec   :  { %v538_v53 = vpop.f32.mrf.mxu0 }
  0xed   :  { %v325_v54 = vmul.f32 %v498_v39, %v306_v51  ;;  %v439_v55 = vadd.f32 %v435_v48, %v335_v52  ;;  %v539_v56 = vadd.f32 %v538_v53, %v537_v50 }
  0xee   :  { %v540_v59 = vpop.f32.mrf.mxu0 }
  0xef   :  { %v443_v60 = vmax.f32 %v439_v55, 0.0  ;;  %v311_v61 = vadd.f32 %v556_v27, %v539_v56  ;;  %v336_v62 = vadd.f32 %v499_v45, %v325_v54 }
  0xf0   :  { %v541_v63 = vpop.f32.mrf.mxu0 }
  0xf1   :  { %v511_v0 = vpack.c.bf16 %v443_v60, %v443_v60  ;;  %v326_v1 = vmul.f32 %v498_v39, %v311_v61  ;;  %v440_v2 = vadd.f32 %v436_v57, %v336_v62  ;;  %v542_v3 = vadd.f32 %v541_v63, %v540_v59 }
  0xf3   :  { %464 = vst.msk [vmem:[%s755_s8] sm:$0xf] %vm463_vm2, %v511_v0  ;;  %v337_v6 = vadd.f32 %v499_v45, %v326_v1  ;;  %v444_v7 = vmax.f32 %v440_v2, 0.0  ;;  %v314_v8 = vadd.f32 %v557_v29, %v542_v3 }
  0xf5   :  { %v441_v9 = vadd.f32 %v437_v4, %v337_v6  ;;  %v512_v10 = vpack.c.bf16 %v444_v7, %v444_v7  ;;  %v327_v11 = vmul.f32 %v498_v39, %v314_v8 }
  0xf7   :  { %v445_v13 = vmax.f32 %v441_v9, 0.0  ;;  %465 = vst.msk [vmem:[%s755_s8 + $0x4] sm:$0xf] %vm463_vm2, %v512_v10  ;;  %v338_v14 = vadd.f32 %v499_v45, %v327_v11 }
  0xf9   :  { %v513_v15 = vpack.c.bf16 %v445_v13, %v445_v13  ;;  %v442_v16 = vadd.f32 %v438_v12, %v338_v14 }
  0xfb   :  { %466 = vst.msk [vmem:[%s755_s8 + $0x8] sm:$0xf] %vm463_vm2, %v513_v15  ;;  %v446_v17 = vmax.f32 %v442_v16, 0.0 }
  0xfd   :  { %v514_v18 = vpack.c.bf16 %v446_v17, %v446_v17 }
  0xff   :  { %467 = vst.msk [vmem:[%s755_s8 + $0xc] sm:$0xf] %vm463_vm2, %v514_v18 }

// kernel: _lambda_.23
= control target key start
LH: loop header
LB: loop body
LE: loop exit
PB: predicated region body
PF: predicated region fallthrough
CT: control target
= control target key end

     0   :  { %vm200_vm0 = vcmask 261120   ;;  %vm347_vm1 = vcmask 519168   ;;  %s577_s1 = inlined_call_operand.vmem [shape: bf16[288,64], index: 1, kind: input, shape index: {}]   ;;  %s578_s0 = inlined_call_operand.vmem [shape: bf16[32,288], index: 0, kind: input, shape index: {}]   ;;  %s579_s2 = inlined_call_operand.vmem [shape: f32[1,64], index: 2, kind: input, shape index: {}]   ;;  %s580_s3 = inlined_call_operand.vmem [shape: f32[1,64], index: 3, kind: input, shape index: {}]   ;;  %s581_s4 = inlined_call_operand.vmem [shape: bf16[32,64], index: 4, kind: output, shape index: {}]  }
   0x1   :  { %v432_v0 = vld [vmem:[%s577_s1 + $0x78] sm:$0xff]   ;;  %v434_v2 = vld [vmem:[%s577_s1 + $0x70] sm:$0xff]   ;;  %v436_v4 = vld [vmem:[%s577_s1 + $0x68] sm:$0xff]  }
   0x2   :  { %v433_v1 = vld [vmem:[%s577_s1 + $0x38] sm:$0xff]   ;;  %392 = vmatprep.subr.bf16.mxu0 %v432_v0  ;;  %v435_v3 = vld [vmem:[%s577_s1 + $0x30] sm:$0xff]   ;;  %v437_v5 = vld [vmem:[%s577_s1 + $0x28] sm:$0xff]  }
   0x3   :  { %393 = vmatpush3.bf16.msra.mxu0 %v433_v1  ;;  %v438_v6 = vld [vmem:[%s577_s1 + $0x60] sm:$0xff]   ;;  %v440_v8 = vld [vmem:[%s577_s1 + $0x58] sm:$0xff]   ;;  %v446_v9 = vld [vmem:[%s577_s1 + $0x88] sm:$0xff]  }
   0x4   :  { %394 = vmatprep.subr.bf16.mxu0 %v434_v2  ;;  %v439_v7 = vld [vmem:[%s577_s1 + $0x20] sm:$0xff]   ;;  %v441_v10 = vld [vmem:[%s577_s1 + $0x18] sm:$0xff]   ;;  %v442_v11 = vld [vmem:[%s577_s1 + $0x50] sm:$0xff]   ;;  %424 = vmatprep.subr.bf16.mxu1 %v446_v9 }
   0x5   :  { %v443_v12 = vld [vmem:[%s577_s1 + $0x10] sm:$0xff]   ;;  %425 = vmatpush3.bf16.msra.mxu1 %v446_v9  ;;  %v449_v13 = vld [vmem:[%s577_s1 + $0x80] sm:$0xff]   ;;  %v444_v14 = vld [vmem:[%s577_s1 + $0x48] sm:$0xff]  }
   0x6   :  { %426 = vmatprep.subr.bf16.mxu1 %v449_v13  ;;  %v452_v15 = vld [vmem:[%s578_s0 + $0x4] ss:$12 sps:$4 sm:$0xff]   ;;  %v453_v16 = vld [vmem:[%s578_s0 + $0x8] ss:$12 sps:$4 sm:$0xff]   ;;  %v454_v17 = vld [vmem:[%s578_s0 + $0x20] ss:$12 sps:$4 sm:$0xff]  }
   0x7   :  { %395 = vmatpush3.bf16.msra.mxu0 %v435_v3  ;;  %239 = vmatprep.mubr.bf16.mxu0 %v452_v15  ;;  %v445_v18 = vld [vmem:[%s577_s1 + $0x8] sm:$0xff]   ;;  %v447_v19 = vld [vmem:[%s577_s1 + $0x40] sm:$0xff]  }
   0x8   :  { %396 = vmatprep.subr.bf16.mxu0 %v436_v4  ;;  %428 = vmatprep.mubr.msk.bf16.mxu1 %vm200_vm0, %v453_v16  ;;  %v448_v20 = vld [vmem:[%s577_s1] sm:$0xff]   ;;  %v455_v22 = vld [vmem:[%s578_s0 + $0x1c] ss:$12 sps:$4 sm:$0xff]  }
   0x9   :  { %427 = vmatpush3.bf16.msra.mxu1 %v449_v13  ;;  %v450_v21 = vld [vmem:[%s578_s0] ss:$12 sps:$4 sm:$0xff]   ;;  %v457_v23 = vld [vmem:[%s578_s0 + $0x18] ss:$12 sps:$4 sm:$0xff]  }
   0xa   :  { %v382_v31 = vld [vmem:[%s579_s2] ss:$0 sm:$0xff] }
   0xb   :  { %397 = vmatpush3.bf16.msra.mxu0 %v437_v5  ;;  %v383_v33 = vld [vmem:[%s580_s3] ss:$0 sm:$0xff] }
   0xc   :  { %398 = vmatprep.subr.bf16.mxu0 %v438_v6  ;;  %429 = vmatmul.mubr.msk.bf16.vlgmr.msra.gmra.mxu1 %vm200_vm0, %v454_v17 }
   0xf   :  { %399 = vmatpush3.bf16.msra.mxu0 %v439_v7 }
  0x10   :  { %400 = vmatprep.subr.bf16.mxu0 %v440_v8 }
  0x13   :  { %401 = vmatpush3.bf16.msra.mxu0 %v441_v10 }
  0x14   :  { %402 = vmatprep.subr.bf16.mxu0 %v442_v11 }
  0x17   :  { %403 = vmatpush3.bf16.msra.mxu0 %v443_v12 }
  0x18   :  { %404 = vmatprep.subr.bf16.mxu0 %v444_v14 }
  0x1b   :  { %405 = vmatpush3.bf16.msra.mxu0 %v445_v18 }
  0x1c   :  { %406 = vmatprep.subr.bf16.mxu0 %v447_v19 }
  0x1f   :  { %407 = vmatpush3.bf16.msra.mxu0 %v448_v20 }
  0x22   :  { %240 = vmatmul.mubr.bf16.vlgmr.msra.gmra.mxu0 %v450_v21 }
  0x23   :  { %247 = vmatprep.mubr.bf16.mxu0 %v455_v22 }
  0x2a   :  { %248 = vmatmul.mubr.bf16.gmra.mxu0 %v457_v23 }
  0xcc   :  { %v430_v24 = vpop.f32.mrf.mxu1 }
  0xce   :  { %v290_v25 = vpop.f32.mrf.mxu1 }
  0xd0   :  { %v431_v28 = vpop.f32.mrf.mxu1 }
  0xd2   :  { %v293_v35 = vpop.f32.mrf.mxu1 }
  0xe2   :  { %v408_v26 = vpop.f32.mrf.mxu0 }
  0xe4   :  { %v409_v27 = vpop.f32.mrf.mxu0 }
  0xe5   :  { %v410_v29 = vadd.f32 %v409_v27, %v408_v26 }
  0xe6   :  { %v411_v30 = vpop.f32.mrf.mxu0 }
  0xe7   :  { %v291_v32 = vadd.f32 %v410_v29, %v290_v25 }
  0xe8   :  { %v412_v34 = vpop.f32.mrf.mxu0 }
  0xe9   :  { %v312_v36 = vmul.f32 %v382_v31, %v291_v32  ;;  %v413_v37 = vadd.f32 %v412_v34, %v411_v30 }
  0xea   :  { %v414_v38 = vpop.f32.mrf.mxu0 }
  0xeb   :  { %v323_v39 = vadd.f32 %v383_v33, %v312_v36  ;;  %v294_v40 = vadd.f32 %v413_v37, %v293_v35 }
  0xec   :  { %v415_v41 = vpop.f32.mrf.mxu0 }
  0xed   :  { %v327_v42 = vmax.f32 %v323_v39, 0.0  ;;  %v313_v43 = vmul.f32 %v382_v31, %v294_v40  ;;  %v416_v44 = vadd.f32 %v415_v41, %v414_v38 }
  0xee   :  { %v417_v45 = vpop.f32.mrf.mxu0 }
  0xef   :  { %v388_v46 = vpack.c.bf16 %v327_v42, %v327_v42  ;;  %v324_v47 = vadd.f32 %v383_v33, %v313_v43  ;;  %v299_v48 = vadd.f32 %v430_v24, %v416_v44 }
  0xf0   :  { %v418_v49 = vpop.f32.mrf.mxu0 }
  0xf1   :  { %348 = vst.msk [vmem:[%s581_s4] sm:$0xf] %vm347_vm1, %v388_v46  ;;  %v328_v50 = vmax.f32 %v324_v47, 0.0  ;;  %v314_v51 = vmul.f32 %v382_v31, %v299_v48  ;;  %v419_v52 = vadd.f32 %v418_v49, %v417_v45 }
  0xf3   :  { %v389_v53 = vpack.c.bf16 %v328_v50, %v328_v50  ;;  %v325_v54 = vadd.f32 %v383_v33, %v314_v51  ;;  %v302_v55 = vadd.f32 %v431_v28, %v419_v52 }
  0xf5   :  { %349 = vst.msk [vmem:[%s581_s4 + $0x4] sm:$0xf] %vm347_vm1, %v389_v53  ;;  %v329_v56 = vmax.f32 %v325_v54, 0.0  ;;  %v315_v57 = vmul.f32 %v382_v31, %v302_v55 }
  0xf7   :  { %v390_v58 = vpack.c.bf16 %v329_v56, %v329_v56  ;;  %v326_v59 = vadd.f32 %v383_v33, %v315_v57 }
  0xf9   :  { %350 = vst.msk [vmem:[%s581_s4 + $0x8] sm:$0xf] %vm347_vm1, %v390_v58  ;;  %v330_v60 = vmax.f32 %v326_v59, 0.0 }
  0xfb   :  { %v391_v61 = vpack.c.bf16 %v330_v60, %v330_v60 }
  0xfd   :  { %351 = vst.msk [vmem:[%s581_s4 + $0xc] sm:$0xf] %vm347_vm1, %v391_v61 }

// kernel: _lambda_.24
= control target key start
LH: loop header
LB: loop body
LE: loop exit
PB: predicated region body
PF: predicated region fallthrough
CT: control target
= control target key end

     0   :  { %vm380_vm0 = vcmask 523264   ;;  %vm586_vm1 = vcmask 261120   ;;  %vm688_vm2 = vcmask 519168   ;;  %s1122_s1 = inlined_call_operand.vmem [shape: bf16[576,64], index: 1, kind: input, shape index: {}]   ;;  %s1123_s0 = inlined_call_operand.vmem [shape: bf16[32,576], index: 0, kind: input, shape index: {}]   ;;  %s1124_s5 = inlined_call_operand.vmem [shape: bf16[32,64], index: 5, kind: input, shape index: {}]   ;;  %s1125_s4 = inlined_call_operand.vmem [shape: bf16[32,32], index: 4, kind: input, shape index: {}]   ;;  %s1126_s6 = inlined_call_operand.vmem [shape: f32[1,64], index: 6, kind: input, shape index: {}]   ;;  %s1127_s2 = inlined_call_operand.vmem [shape: f32[1,64], index: 2, kind: input, shape index: {}]   ;;  %s1128_s7 = inlined_call_operand.vmem [shape: f32[1,64], index: 7, kind: input, shape index: {}]   ;;  %s1129_s3 = inlined_call_operand.vmem [shape: f32[1,64], index: 3, kind: input, shape index: {}]   ;;  %s1130_s8 = inlined_call_operand.vmem [shape: bf16[32,64], index: 8, kind: output, shape index: {}]  }
   0x1   :  { %v849_v0 = vld [vmem:[%s1122_s1 + $0x78] sm:$0xff]   ;;  %v853_v4 = vld [vmem:[%s1122_s1 + $0x70] sm:$0xff]   ;;  %v857_v8 = vld [vmem:[%s1122_s1 + $0x68] sm:$0xff]  }
   0x2   :  { %v850_v1 = vld [vmem:[%s1122_s1 + $0xf8] sm:$0xff]   ;;  %763 = vmatprep.subr.bf16.mxu0 %v849_v0  ;;  %v854_v5 = vld [vmem:[%s1122_s1 + $0xf0] sm:$0xff]   ;;  %v858_v9 = vld [vmem:[%s1122_s1 + $0xe8] sm:$0xff]  }
   0x3   :  { %v851_v2 = vld [vmem:[%s1122_s1 + $0x38] sm:$0xff]   ;;  %791 = vmatprep.subr.bf16.mxu1 %v850_v1  ;;  %v855_v6 = vld [vmem:[%s1122_s1 + $0x30] sm:$0xff]   ;;  %v859_v10 = vld [vmem:[%s1122_s1 + $0x28] sm:$0xff]  }
   0x4   :  { %v852_v3 = vld [vmem:[%s1122_s1 + $0xb8] sm:$0xff]   ;;  %764 = vmatpush3.bf16.msra.mxu0 %v851_v2  ;;  %v856_v7 = vld [vmem:[%s1122_s1 + $0xb0] sm:$0xff]   ;;  %v860_v11 = vld [vmem:[%s1122_s1 + $0xa8] sm:$0xff]  }
   0x5   :  { %792 = vmatpush3.bf16.msra.mxu1 %v852_v3  ;;  %765 = vmatprep.subr.bf16.mxu0 %v853_v4  ;;  %v861_v12 = vld [vmem:[%s1122_s1 + $0x60] sm:$0xff]   ;;  %v865_v16 = vld [vmem:[%s1122_s1 + $0x58] sm:$0xff]   ;;  %v869_v20 = vld [vmem:[%s1122_s1 + $0x50] sm:$0xff]  }
   0x6   :  { %793 = vmatprep.subr.bf16.mxu1 %v854_v5  ;;  %v862_v13 = vld [vmem:[%s1122_s1 + $0xe0] sm:$0xff]   ;;  %v866_v17 = vld [vmem:[%s1122_s1 + $0xd8] sm:$0xff]   ;;  %v870_v21 = vld [vmem:[%s1122_s1 + $0xd0] sm:$0xff]  }
   0x7   :  { %v863_v14 = vld [vmem:[%s1122_s1 + $0x20] sm:$0xff]   ;;  %v867_v18 = vld [vmem:[%s1122_s1 + $0x18] sm:$0xff]   ;;  %v871_v22 = vld [vmem:[%s1122_s1 + $0x10] sm:$0xff]  }
   0x8   :  { %766 = vmatpush3.bf16.msra.mxu0 %v855_v6  ;;  %v864_v15 = vld [vmem:[%s1122_s1 + $0xa0] sm:$0xff]   ;;  %v868_v19 = vld [vmem:[%s1122_s1 + $0x98] sm:$0xff]   ;;  %v872_v23 = vld [vmem:[%s1122_s1 + $0x90] sm:$0xff]  }
   0x9   :  { %794 = vmatpush3.bf16.msra.mxu1 %v856_v7  ;;  %767 = vmatprep.subr.bf16.mxu0 %v857_v8  ;;  %v873_v24 = vld [vmem:[%s1122_s1 + $0x48] sm:$0xff]   ;;  %v877_v28 = vld [vmem:[%s1122_s1 + $0x40] sm:$0xff]   ;;  %v887_v36 = vld [vmem:[%s1122_s1 + $0x118] sm:$0xff]  }
   0xa   :  { %795 = vmatprep.subr.bf16.mxu1 %v858_v9  ;;  %v874_v25 = vld [vmem:[%s1122_s1 + $0xc8] sm:$0xff]   ;;  %v878_v29 = vld [vmem:[%s1122_s1 + $0xc0] sm:$0xff]   ;;  %v889_v38 = vld [vmem:[%s1122_s1 + $0x110] sm:$0xff]  }
   0xb   :  { %v875_v26 = vld [vmem:[%s1122_s1 + $0x8] sm:$0xff]   ;;  %v879_v30 = vld [vmem:[%s1122_s1] sm:$0xff]  }
   0xc   :  { %768 = vmatpush3.bf16.msra.mxu0 %v859_v10  ;;  %v876_v27 = vld [vmem:[%s1122_s1 + $0x88] sm:$0xff]   ;;  %v880_v31 = vld [vmem:[%s1122_s1 + $0x80] sm:$0xff]  }
   0xd   :  { %796 = vmatpush3.bf16.msra.mxu1 %v860_v11  ;;  %769 = vmatprep.subr.bf16.mxu0 %v861_v12  ;;  %v881_v32 = vld [vmem:[%s1123_s0] ss:$20 sps:$4 sm:$0xff]   ;;  %v883_v33 = vld [vmem:[%s1123_s0 + $0x4] ss:$20 sps:$4 sm:$0xff]   ;;  %v884_v34 = vld [vmem:[%s1123_s0 + $0x8] ss:$20 sps:$4 sm:$0xff]  }
   0xe   :  { %797 = vmatprep.subr.bf16.mxu1 %v862_v13  ;;  %v886_v35 = vld [vmem:[%s1123_s0 + $0xc] ss:$20 sps:$4 sm:$0xff]   ;;  %419 = vmatprep.mubr.bf16.mxu0 %v883_v33  ;;  %v892_v40 = vld [vmem:[%s1123_s0 + $0x34] ss:$20 sps:$4 sm:$0xff]   ;;  %v895_v42 = vld [vmem:[%s1123_s0 + $0x30] ss:$20 sps:$4 sm:$0xff]  }
   0xf   :  { %468 = vmatprep.mubr.bf16.mxu1 %v886_v35  ;;  %v888_v37 = vld [vmem:[%s1124_s5 + $0x8] sm:$0xff]   ;;  %v897_v44 = vld [vmem:[%s1124_s5] sm:$0xff]  }
  0x10   :  { %770 = vmatpush3.bf16.msra.mxu0 %v863_v14  ;;  %v890_v39 = vld [vmem:[%s1123_s0 + $0x2c] ss:$20 sps:$4 sm:$0xff]   ;;  %v894_v41 = vld [vmem:[%s1123_s0 + $0x28] ss:$20 sps:$4 sm:$0xff]   ;;  %v899_v46 = vld [vmem:[%s1123_s0 + $0x10] ss:$20 sps:$4 sm:$0xff]  }
  0x11   :  { %798 = vmatpush3.bf16.msra.mxu1 %v864_v15  ;;  %771 = vmatprep.subr.bf16.mxu0 %v865_v16  ;;  %v896_v43 = vld [vmem:[%s1122_s1 + $0x108] sm:$0xff]   ;;  %v898_v45 = vld [vmem:[%s1122_s1 + $0x100] sm:$0xff]  }
  0x12   :  { %799 = vmatprep.subr.bf16.mxu1 %v866_v17  ;;  %v900_v47 = vld [vmem:[%s1125_s4] sm:$0xff]   ;;  %v901_v48 = vld [vmem:[%s1123_s0 + $0x38] ss:$20 sps:$4 sm:$0xff]  }
  0x13   :  { %v902_v49 = vld [vmem:[%s1125_s4 + $0x8] sm:$0xff]   ;;  %v753_v7 = vld [vmem:[%s1126_s6] ss:$0 sm:$0xff] }
  0x14   :  { %772 = vmatpush3.bf16.msra.mxu0 %v867_v18  ;;  %v745_v11 = vld [vmem:[%s1127_s2] ss:$0 sm:$0xff] }
  0x15   :  { %800 = vmatpush3.bf16.msra.mxu1 %v868_v19  ;;  %773 = vmatprep.subr.bf16.mxu0 %v869_v20  ;;  %v754_v13 = vld [vmem:[%s1128_s7] ss:$0 sm:$0xff] }
  0x16   :  { %801 = vmatprep.subr.bf16.mxu1 %v870_v21  ;;  %v746_v19 = vld [vmem:[%s1129_s3] ss:$0 sm:$0xff] }
  0x18   :  { %774 = vmatpush3.bf16.msra.mxu0 %v871_v22 }
  0x19   :  { %802 = vmatpush3.bf16.msra.mxu1 %v872_v23  ;;  %775 = vmatprep.subr.bf16.mxu0 %v873_v24 }
  0x1a   :  { %803 = vmatprep.subr.bf16.mxu1 %v874_v25 }
  0x1c   :  { %776 = vmatpush3.bf16.msra.mxu0 %v875_v26 }
  0x1d   :  { %804 = vmatpush3.bf16.msra.mxu1 %v876_v27  ;;  %777 = vmatprep.subr.bf16.mxu0 %v877_v28 }
  0x1e   :  { %805 = vmatprep.subr.bf16.mxu1 %v878_v29 }
  0x20   :  { %778 = vmatpush3.bf16.msra.mxu0 %v879_v30 }
  0x21   :  { %806 = vmatpush3.bf16.msra.mxu1 %v880_v31  ;;  %829 = vmatprep.subr.bf16.mxu0 %v887_v36 }
  0x22   :  { %841 = vmatprep.subr.bf16.mxu1 %v888_v37 }
  0x23   :  { %420 = vmatmul.mubr.bf16.vlgmr.msra.gmra.mxu0 %v881_v32 }
  0x24   :  { %469 = vmatmul.mubr.bf16.vlgmr.msra.gmra.mxu1 %v884_v34  ;;  %830 = vmatpush3.bf16.msra.mxu0 %v887_v36 }
  0x25   :  { %842 = vmatpush3.bf16.msra.mxu1 %v888_v37  ;;  %831 = vmatprep.subr.bf16.mxu0 %v889_v38 }
  0x26   :  { %427 = vmatprep.mubr.bf16.mxu0 %v890_v39  ;;  %476 = vmatprep.mubr.bf16.mxu1 %v892_v40 }
  0x27   :  { %843 = vmatprep.subr.bf16.mxu1 %v897_v44 }
  0x28   :  { %832 = vmatpush3.bf16.msra.mxu0 %v889_v38 }
  0x29   :  { %833 = vmatprep.subr.bf16.mxu0 %v896_v43  ;;  %844 = vmatpush3.bf16.msra.mxu1 %v897_v44 }
  0x2b   :  { %428 = vmatmul.mubr.bf16.gmra.mxu0 %v894_v41 }
  0x2c   :  { %477 = vmatmul.mubr.bf16.gmra.mxu1 %v895_v42  ;;  %834 = vmatpush3.bf16.msra.mxu0 %v896_v43 }
  0x2d   :  { %835 = vmatprep.subr.bf16.mxu0 %v898_v45  ;;  %837 = vmatprep.mubr.msk.bf16.mxu0 %vm380_vm0, %v899_v46 }
  0x2e   :  { %845 = vmatprep.mubr.msk.bf16.mxu1 %vm586_vm1, %v900_v47 }
  0x30   :  { %836 = vmatpush3.bf16.msra.mxu0 %v898_v45 }
  0x33   :  { %838 = vmatmul.mubr.msk.bf16.vlgmr.msra.gmra.mxu0 %vm380_vm0, %v901_v48 }
  0x34   :  { %846 = vmatmul.mubr.msk.bf16.vlgmr.msra.gmra.mxu1 %vm586_vm1, %v902_v49 }
  0xe3   :  { %v779_v50 = vpop.f32.mrf.mxu0 }
  0xe4   :  { %v807_v51 = vpop.f32.mrf.mxu1 }
  0xe5   :  { %v780_v52 = vpop.f32.mrf.mxu0 }
  0xe6   :  { %v808_v53 = vpop.f32.mrf.mxu1  ;;  %v781_v1 = vadd.f32 %v780_v52, %v779_v50 }
  0xe7   :  { %v782_v54 = vpop.f32.mrf.mxu0  ;;  %v809_v2 = vadd.f32 %v808_v53, %v807_v51 }
  0xe8   :  { %v810_v55 = vpop.f32.mrf.mxu1 }
  0xe9   :  { %v783_v56 = vpop.f32.mrf.mxu0  ;;  %v471_v14 = vadd.f32 %v809_v2, %v781_v1 }
  0xea   :  { %v811_v57 = vpop.f32.mrf.mxu1  ;;  %v784_v15 = vadd.f32 %v783_v56, %v782_v54 }
  0xeb   :  { %v785_v58 = vpop.f32.mrf.mxu0  ;;  %v812_v16 = vadd.f32 %v811_v57, %v810_v55 }
  0xec   :  { %v813_v59 = vpop.f32.mrf.mxu1 }
  0xed   :  { %v786_v60 = vpop.f32.mrf.mxu0  ;;  %v474_v32 = vadd.f32 %v812_v16, %v784_v15 }
  0xee   :  { %v814_v61 = vpop.f32.mrf.mxu1  ;;  %v787_v62 = vadd.f32 %v786_v60, %v785_v58 }
  0xef   :  { %v815_v63 = vadd.f32 %v814_v61, %v813_v59  ;;  %v788_v0 = vpop.f32.mrf.mxu0 }
  0xf0   :  { %v816_v3 = vpop.f32.mrf.mxu1 }
  0xf1   :  { %v789_v4 = vpop.f32.mrf.mxu0  ;;  %v479_v9 = vadd.f32 %v815_v63, %v787_v62 }
  0xf2   :  { %v790_v5 = vadd.f32 %v789_v4, %v788_v0  ;;  %v817_v6 = vpop.f32.mrf.mxu1 }
  0xf3   :  { %v818_v8 = vadd.f32 %v817_v6, %v816_v3  ;;  %v839_v10 = vpop.f32.mrf.mxu0 }
  0xf4   :  { %v847_v12 = vpop.f32.mrf.mxu1  ;;  %v528_v17 = vadd.f32 %v839_v10, %v479_v9 }
  0xf5   :  { %v651_v18 = vmul.f32 %v847_v12, %v753_v7  ;;  %v519_v20 = vpop.f32.mrf.mxu0  ;;  %v482_v22 = vadd.f32 %v818_v8, %v790_v5 }
  0xf6   :  { %v627_v21 = vpop.f32.mrf.mxu1  ;;  %v543_v23 = vmul.f32 %v745_v11, %v528_v17  ;;  %v520_v25 = vadd.f32 %v519_v20, %v471_v14 }
  0xf7   :  { %v662_v24 = vadd.f32 %v754_v13, %v651_v18  ;;  %v649_v26 = vmul.f32 %v753_v7, %v627_v21  ;;  %v840_v27 = vpop.f32.mrf.mxu0 }
  0xf8   :  { %v848_v28 = vpop.f32.mrf.mxu1  ;;  %v554_v29 = vadd.f32 %v746_v19, %v543_v23  ;;  %v541_v30 = vmul.f32 %v745_v11, %v520_v25  ;;  %v531_v31 = vadd.f32 %v840_v27, %v482_v22 }
  0xf9   :  { %v660_v33 = vadd.f32 %v754_v13, %v649_v26  ;;  %v652_v34 = vmul.f32 %v848_v28, %v753_v7  ;;  %v522_v35 = vpop.f32.mrf.mxu0 }
  0xfa   :  { %v630_v36 = vpop.f32.mrf.mxu1  ;;  %v666_v37 = vadd.f32 %v662_v24, %v554_v29  ;;  %v552_v38 = vadd.f32 %v746_v19, %v541_v30  ;;  %v544_v39 = vmul.f32 %v745_v11, %v531_v31  ;;  %v523_v40 = vadd.f32 %v522_v35, %v474_v32 }
  0xfb   :  { %v663_v41 = vadd.f32 %v754_v13, %v652_v34  ;;  %v650_v42 = vmul.f32 %v753_v7, %v630_v36 }
  0xfc   :  { %v670_v43 = vmax.f32 %v666_v37, 0.0  ;;  %v664_v44 = vadd.f32 %v660_v33, %v552_v38  ;;  %v555_v45 = vadd.f32 %v746_v19, %v544_v39  ;;  %v542_v46 = vmul.f32 %v745_v11, %v523_v40 }
  0xfd   :  { %v661_v47 = vadd.f32 %v754_v13, %v650_v42 }
  0xfe   :  { %v761_v48 = vpack.c.bf16 %v670_v43, %v670_v43  ;;  %v668_v49 = vmax.f32 %v664_v44, 0.0  ;;  %v667_v50 = vadd.f32 %v663_v41, %v555_v45  ;;  %v553_v51 = vadd.f32 %v746_v19, %v542_v46 }
 0x100   :  { %691 = vst.msk [vmem:[%s1130_s8 + $0x8] sm:$0xf] %vm688_vm2, %v761_v48  ;;  %v759_v52 = vpack.c.bf16 %v668_v49, %v668_v49  ;;  %v671_v53 = vmax.f32 %v667_v50, 0.0  ;;  %v665_v54 = vadd.f32 %v661_v47, %v553_v51 }
 0x102   :  { %689 = vst.msk [vmem:[%s1130_s8] sm:$0xf] %vm688_vm2, %v759_v52  ;;  %v762_v55 = vpack.c.bf16 %v671_v53, %v671_v53  ;;  %v669_v56 = vmax.f32 %v665_v54, 0.0 }
 0x104   :  { %692 = vst.msk [vmem:[%s1130_s8 + $0xc] sm:$0xf] %vm688_vm2, %v762_v55  ;;  %v760_v57 = vpack.c.bf16 %v669_v56, %v669_v56 }
 0x106   :  { %690 = vst.msk [vmem:[%s1130_s8 + $0x4] sm:$0xf] %vm688_vm2, %v760_v57 }

// kernel: _lambda_.25
= control target key start
LH: loop header
LB: loop body
LE: loop exit
PB: predicated region body
PF: predicated region fallthrough
CT: control target
= control target key end

     0   :  { %vm368_vm0 = vcmask 523264   ;;  %vm564_vm1 = vcmask 519168   ;;  %s936_s1 = inlined_call_operand.vmem [shape: bf16[576,64], index: 1, kind: input, shape index: {}]   ;;  %s937_s0 = inlined_call_operand.vmem [shape: bf16[32,576], index: 0, kind: input, shape index: {}]   ;;  %s938_s2 = inlined_call_operand.vmem [shape: f32[1,64], index: 2, kind: input, shape index: {}]   ;;  %s939_s3 = inlined_call_operand.vmem [shape: f32[1,64], index: 3, kind: input, shape index: {}]   ;;  %s940_s4 = inlined_call_operand.vmem [shape: bf16[32,64], index: 4, kind: output, shape index: {}]  }
   0x1   :  { %v705_v0 = vld [vmem:[%s936_s1 + $0x78] sm:$0xff]   ;;  %v709_v4 = vld [vmem:[%s936_s1 + $0x70] sm:$0xff]   ;;  %v713_v8 = vld [vmem:[%s936_s1 + $0x68] sm:$0xff]  }
   0x2   :  { %v706_v1 = vld [vmem:[%s936_s1 + $0xf8] sm:$0xff]   ;;  %631 = vmatprep.subr.bf16.mxu0 %v705_v0  ;;  %v710_v5 = vld [vmem:[%s936_s1 + $0xf0] sm:$0xff]   ;;  %v714_v9 = vld [vmem:[%s936_s1 + $0xe8] sm:$0xff]  }
   0x3   :  { %v707_v2 = vld [vmem:[%s936_s1 + $0x38] sm:$0xff]   ;;  %659 = vmatprep.subr.bf16.mxu1 %v706_v1  ;;  %v711_v6 = vld [vmem:[%s936_s1 + $0x30] sm:$0xff]   ;;  %v715_v10 = vld [vmem:[%s936_s1 + $0x28] sm:$0xff]  }
   0x4   :  { %v708_v3 = vld [vmem:[%s936_s1 + $0xb8] sm:$0xff]   ;;  %632 = vmatpush3.bf16.msra.mxu0 %v707_v2  ;;  %v712_v7 = vld [vmem:[%s936_s1 + $0xb0] sm:$0xff]   ;;  %v716_v11 = vld [vmem:[%s936_s1 + $0xa8] sm:$0xff]  }
   0x5   :  { %660 = vmatpush3.bf16.msra.mxu1 %v708_v3  ;;  %633 = vmatprep.subr.bf16.mxu0 %v709_v4  ;;  %v717_v12 = vld [vmem:[%s936_s1 + $0x60] sm:$0xff]   ;;  %v721_v16 = vld [vmem:[%s936_s1 + $0x58] sm:$0xff]   ;;  %v725_v20 = vld [vmem:[%s936_s1 + $0x50] sm:$0xff]  }
   0x6   :  { %661 = vmatprep.subr.bf16.mxu1 %v710_v5  ;;  %v718_v13 = vld [vmem:[%s936_s1 + $0xe0] sm:$0xff]   ;;  %v722_v17 = vld [vmem:[%s936_s1 + $0xd8] sm:$0xff]   ;;  %v726_v21 = vld [vmem:[%s936_s1 + $0xd0] sm:$0xff]  }
   0x7   :  { %v719_v14 = vld [vmem:[%s936_s1 + $0x20] sm:$0xff]   ;;  %v723_v18 = vld [vmem:[%s936_s1 + $0x18] sm:$0xff]   ;;  %v727_v22 = vld [vmem:[%s936_s1 + $0x10] sm:$0xff]  }
   0x8   :  { %634 = vmatpush3.bf16.msra.mxu0 %v711_v6  ;;  %v720_v15 = vld [vmem:[%s936_s1 + $0xa0] sm:$0xff]   ;;  %v724_v19 = vld [vmem:[%s936_s1 + $0x98] sm:$0xff]   ;;  %v728_v23 = vld [vmem:[%s936_s1 + $0x90] sm:$0xff]  }
   0x9   :  { %662 = vmatpush3.bf16.msra.mxu1 %v712_v7  ;;  %635 = vmatprep.subr.bf16.mxu0 %v713_v8  ;;  %v729_v24 = vld [vmem:[%s936_s1 + $0x48] sm:$0xff]   ;;  %v733_v28 = vld [vmem:[%s936_s1 + $0x40] sm:$0xff]   ;;  %v743_v36 = vld [vmem:[%s936_s1 + $0x118] sm:$0xff]  }
   0xa   :  { %663 = vmatprep.subr.bf16.mxu1 %v714_v9  ;;  %v730_v25 = vld [vmem:[%s936_s1 + $0xc8] sm:$0xff]   ;;  %v734_v29 = vld [vmem:[%s936_s1 + $0xc0] sm:$0xff]   ;;  %v744_v37 = vld [vmem:[%s936_s1 + $0x110] sm:$0xff]  }
   0xb   :  { %v731_v26 = vld [vmem:[%s936_s1 + $0x8] sm:$0xff]   ;;  %v735_v30 = vld [vmem:[%s936_s1] sm:$0xff]  }
   0xc   :  { %636 = vmatpush3.bf16.msra.mxu0 %v715_v10  ;;  %v732_v27 = vld [vmem:[%s936_s1 + $0x88] sm:$0xff]   ;;  %v736_v31 = vld [vmem:[%s936_s1 + $0x80] sm:$0xff]  }
   0xd   :  { %664 = vmatpush3.bf16.msra.mxu1 %v716_v11  ;;  %637 = vmatprep.subr.bf16.mxu0 %v717_v12  ;;  %v737_v32 = vld [vmem:[%s937_s0] ss:$20 sps:$4 sm:$0xff]   ;;  %v739_v33 = vld [vmem:[%s937_s0 + $0x4] ss:$20 sps:$4 sm:$0xff]   ;;  %v740_v34 = vld [vmem:[%s937_s0 + $0x8] ss:$20 sps:$4 sm:$0xff]  }
   0xe   :  { %665 = vmatprep.subr.bf16.mxu1 %v718_v13  ;;  %v742_v35 = vld [vmem:[%s937_s0 + $0xc] ss:$20 sps:$4 sm:$0xff]   ;;  %407 = vmatprep.mubr.bf16.mxu0 %v739_v33  ;;  %v747_v39 = vld [vmem:[%s937_s0 + $0x34] ss:$20 sps:$4 sm:$0xff]   ;;  %v750_v42 = vld [vmem:[%s937_s0 + $0x30] ss:$20 sps:$4 sm:$0xff]  }
   0xf   :  { %456 = vmatprep.mubr.bf16.mxu1 %v742_v35  ;;  %v745_v38 = vld [vmem:[%s937_s0 + $0x2c] ss:$20 sps:$4 sm:$0xff]   ;;  %v749_v40 = vld [vmem:[%s937_s0 + $0x28] ss:$20 sps:$4 sm:$0xff]   ;;  %v753_v43 = vld [vmem:[%s937_s0 + $0x10] ss:$20 sps:$4 sm:$0xff]  }
  0x10   :  { %638 = vmatpush3.bf16.msra.mxu0 %v719_v14  ;;  %v751_v41 = vld [vmem:[%s936_s1 + $0x108] sm:$0xff]   ;;  %v752_v44 = vld [vmem:[%s936_s1 + $0x100] sm:$0xff]  }
  0x11   :  { %666 = vmatpush3.bf16.msra.mxu1 %v720_v15  ;;  %639 = vmatprep.subr.bf16.mxu0 %v721_v16  ;;  %v754_v45 = vld [vmem:[%s937_s0 + $0x38] ss:$20 sps:$4 sm:$0xff]   ;;  %v621_v6 = vld [vmem:[%s938_s2] ss:$0 sm:$0xff] }
  0x12   :  { %667 = vmatprep.subr.bf16.mxu1 %v722_v17  ;;  %v622_v11 = vld [vmem:[%s939_s3] ss:$0 sm:$0xff] }
  0x14   :  { %640 = vmatpush3.bf16.msra.mxu0 %v723_v18 }
  0x15   :  { %668 = vmatpush3.bf16.msra.mxu1 %v724_v19  ;;  %641 = vmatprep.subr.bf16.mxu0 %v725_v20 }
  0x16   :  { %669 = vmatprep.subr.bf16.mxu1 %v726_v21 }
  0x18   :  { %642 = vmatpush3.bf16.msra.mxu0 %v727_v22 }
  0x19   :  { %670 = vmatpush3.bf16.msra.mxu1 %v728_v23  ;;  %643 = vmatprep.subr.bf16.mxu0 %v729_v24 }
  0x1a   :  { %671 = vmatprep.subr.bf16.mxu1 %v730_v25 }
  0x1c   :  { %644 = vmatpush3.bf16.msra.mxu0 %v731_v26 }
  0x1d   :  { %672 = vmatpush3.bf16.msra.mxu1 %v732_v27  ;;  %645 = vmatprep.subr.bf16.mxu0 %v733_v28 }
  0x1e   :  { %673 = vmatprep.subr.bf16.mxu1 %v734_v29 }
  0x20   :  { %646 = vmatpush3.bf16.msra.mxu0 %v735_v30 }
  0x21   :  { %674 = vmatpush3.bf16.msra.mxu1 %v736_v31  ;;  %693 = vmatprep.subr.bf16.mxu0 %v743_v36 }
  0x23   :  { %408 = vmatmul.mubr.bf16.vlgmr.msra.gmra.mxu0 %v737_v32 }
  0x24   :  { %457 = vmatmul.mubr.bf16.vlgmr.msra.gmra.mxu1 %v740_v34  ;;  %694 = vmatpush3.bf16.msra.mxu0 %v743_v36 }
  0x25   :  { %695 = vmatprep.subr.bf16.mxu0 %v744_v37  ;;  %415 = vmatprep.mubr.bf16.mxu0 %v745_v38 }
  0x26   :  { %464 = vmatprep.mubr.bf16.mxu1 %v747_v39 }
  0x28   :  { %696 = vmatpush3.bf16.msra.mxu0 %v744_v37 }
  0x29   :  { %697 = vmatprep.subr.bf16.mxu0 %v751_v41 }
  0x2b   :  { %416 = vmatmul.mubr.bf16.gmra.mxu0 %v749_v40 }
  0x2c   :  { %465 = vmatmul.mubr.bf16.gmra.mxu1 %v750_v42  ;;  %701 = vmatprep.mubr.msk.bf16.mxu0 %vm368_vm0, %v753_v43 }
  0x2d   :  { %698 = vmatpush3.bf16.msra.mxu0 %v751_v41 }
  0x2e   :  { %699 = vmatprep.subr.bf16.mxu0 %v752_v44 }
  0x31   :  { %700 = vmatpush3.bf16.msra.mxu0 %v752_v44 }
  0x34   :  { %702 = vmatmul.mubr.msk.bf16.vlgmr.msra.gmra.mxu0 %vm368_vm0, %v754_v45 }
  0xe3   :  { %v647_v46 = vpop.f32.mrf.mxu0 }
  0xe4   :  { %v675_v47 = vpop.f32.mrf.mxu1 }
  0xe5   :  { %v648_v48 = vpop.f32.mrf.mxu0 }
  0xe6   :  { %v676_v49 = vpop.f32.mrf.mxu1  ;;  %v649_v62 = vadd.f32 %v648_v48, %v647_v46 }
  0xe7   :  { %v650_v50 = vpop.f32.mrf.mxu0  ;;  %v677_v63 = vadd.f32 %v676_v49, %v675_v47 }
  0xe8   :  { %v678_v51 = vpop.f32.mrf.mxu1 }
  0xe9   :  { %v651_v52 = vpop.f32.mrf.mxu0  ;;  %v459_v10 = vadd.f32 %v677_v63, %v649_v62 }
  0xea   :  { %v679_v53 = vpop.f32.mrf.mxu1  ;;  %v652_v7 = vadd.f32 %v651_v52, %v650_v50 }
  0xeb   :  { %v653_v54 = vpop.f32.mrf.mxu0  ;;  %v680_v8 = vadd.f32 %v679_v53, %v678_v51 }
  0xec   :  { %v681_v55 = vpop.f32.mrf.mxu1 }
  0xed   :  { %v654_v56 = vpop.f32.mrf.mxu0  ;;  %v462_v20 = vadd.f32 %v680_v8, %v652_v7 }
  0xee   :  { %v682_v57 = vpop.f32.mrf.mxu1  ;;  %v655_v58 = vadd.f32 %v654_v56, %v653_v54 }
  0xef   :  { %v683_v59 = vadd.f32 %v682_v57, %v681_v55  ;;  %v656_v60 = vpop.f32.mrf.mxu0 }
  0xf0   :  { %v684_v61 = vpop.f32.mrf.mxu1 }
  0xf1   :  { %v657_v0 = vpop.f32.mrf.mxu0  ;;  %v467_v4 = vadd.f32 %v683_v59, %v655_v58 }
  0xf2   :  { %v685_v1 = vpop.f32.mrf.mxu1  ;;  %v658_v2 = vadd.f32 %v657_v0, %v656_v60 }
  0xf3   :  { %v686_v3 = vadd.f32 %v685_v1, %v684_v61 }
  0xf4   :  { %v703_v5 = vpop.f32.mrf.mxu0 }
  0xf5   :  { %v516_v9 = vadd.f32 %v703_v5, %v467_v4  ;;  %v470_v15 = vadd.f32 %v686_v3, %v658_v2 }
  0xf6   :  { %v507_v12 = vpop.f32.mrf.mxu0 }
  0xf7   :  { %v531_v13 = vmul.f32 %v621_v6, %v516_v9  ;;  %v508_v14 = vadd.f32 %v507_v12, %v459_v10 }
  0xf8   :  { %v704_v16 = vpop.f32.mrf.mxu0 }
  0xf9   :  { %v542_v17 = vadd.f32 %v622_v11, %v531_v13  ;;  %v529_v18 = vmul.f32 %v621_v6, %v508_v14  ;;  %v519_v19 = vadd.f32 %v704_v16, %v470_v15 }
  0xfa   :  { %v510_v21 = vpop.f32.mrf.mxu0 }
  0xfb   :  { %v546_v22 = vmax.f32 %v542_v17, 0.0  ;;  %v540_v23 = vadd.f32 %v622_v11, %v529_v18  ;;  %v532_v24 = vmul.f32 %v621_v6, %v519_v19  ;;  %v511_v25 = vadd.f32 %v510_v21, %v462_v20 }
  0xfd   :  { %v629_v26 = vpack.c.bf16 %v546_v22, %v546_v22  ;;  %v544_v27 = vmax.f32 %v540_v23, 0.0  ;;  %v543_v28 = vadd.f32 %v622_v11, %v532_v24  ;;  %v530_v29 = vmul.f32 %v621_v6, %v511_v25 }
  0xff   :  { %567 = vst.msk [vmem:[%s940_s4 + $0x8] sm:$0xf] %vm564_vm1, %v629_v26  ;;  %v627_v30 = vpack.c.bf16 %v544_v27, %v544_v27  ;;  %v547_v31 = vmax.f32 %v543_v28, 0.0  ;;  %v541_v32 = vadd.f32 %v622_v11, %v530_v29 }
 0x101   :  { %565 = vst.msk [vmem:[%s940_s4] sm:$0xf] %vm564_vm1, %v627_v30  ;;  %v630_v33 = vpack.c.bf16 %v547_v31, %v547_v31  ;;  %v545_v34 = vmax.f32 %v541_v32, 0.0 }
 0x103   :  { %568 = vst.msk [vmem:[%s940_s4 + $0xc] sm:$0xf] %vm564_vm1, %v630_v33  ;;  %v628_v35 = vpack.c.bf16 %v545_v34, %v545_v34 }
 0x105   :  { %566 = vst.msk [vmem:[%s940_s4 + $0x4] sm:$0xf] %vm564_vm1, %v628_v35 }

// kernel: _lambda_.26
= control target key start
LH: loop header
LB: loop body
LE: loop exit
PB: predicated region body
PF: predicated region fallthrough
CT: control target
= control target key end

     0   :  { %vm371_vm0 = vcmask 523264   ;;  %vm579_vm1 = vcmask 519168   ;;  %s971_s1 = inlined_call_operand.vmem [shape: bf16[576,64], index: 1, kind: input, shape index: {}]   ;;  %s972_s0 = inlined_call_operand.vmem [shape: bf16[32,576], index: 0, kind: input, shape index: {}]   ;;  %s973_s2 = inlined_call_operand.vmem [shape: f32[1,64], index: 2, kind: input, shape index: {}]   ;;  %s974_s4 = inlined_call_operand.vmem [shape: bf16[32,64], index: 4, kind: input, shape index: {}]   ;;  %s975_s3 = inlined_call_operand.vmem [shape: f32[1,64], index: 3, kind: input, shape index: {}]   ;;  %s976_s5 = inlined_call_operand.vmem [shape: bf16[32,64], index: 5, kind: output, shape index: {}]  }
   0x1   :  { %v729_v0 = vld [vmem:[%s971_s1 + $0x78] sm:$0xff]   ;;  %v733_v4 = vld [vmem:[%s971_s1 + $0x70] sm:$0xff]   ;;  %v737_v8 = vld [vmem:[%s971_s1 + $0x68] sm:$0xff]  }
   0x2   :  { %v730_v1 = vld [vmem:[%s971_s1 + $0xf8] sm:$0xff]   ;;  %655 = vmatprep.subr.bf16.mxu0 %v729_v0  ;;  %v734_v5 = vld [vmem:[%s971_s1 + $0xf0] sm:$0xff]   ;;  %v738_v9 = vld [vmem:[%s971_s1 + $0xe8] sm:$0xff]  }
   0x3   :  { %v731_v2 = vld [vmem:[%s971_s1 + $0x38] sm:$0xff]   ;;  %683 = vmatprep.subr.bf16.mxu1 %v730_v1  ;;  %v735_v6 = vld [vmem:[%s971_s1 + $0x30] sm:$0xff]   ;;  %v739_v10 = vld [vmem:[%s971_s1 + $0x28] sm:$0xff]  }
   0x4   :  { %v732_v3 = vld [vmem:[%s971_s1 + $0xb8] sm:$0xff]   ;;  %656 = vmatpush3.bf16.msra.mxu0 %v731_v2  ;;  %v736_v7 = vld [vmem:[%s971_s1 + $0xb0] sm:$0xff]   ;;  %v740_v11 = vld [vmem:[%s971_s1 + $0xa8] sm:$0xff]  }
   0x5   :  { %684 = vmatpush3.bf16.msra.mxu1 %v732_v3  ;;  %657 = vmatprep.subr.bf16.mxu0 %v733_v4  ;;  %v741_v12 = vld [vmem:[%s971_s1 + $0x60] sm:$0xff]   ;;  %v745_v16 = vld [vmem:[%s971_s1 + $0x58] sm:$0xff]   ;;  %v749_v20 = vld [vmem:[%s971_s1 + $0x50] sm:$0xff]  }
   0x6   :  { %685 = vmatprep.subr.bf16.mxu1 %v734_v5  ;;  %v742_v13 = vld [vmem:[%s971_s1 + $0xe0] sm:$0xff]   ;;  %v746_v17 = vld [vmem:[%s971_s1 + $0xd8] sm:$0xff]   ;;  %v750_v21 = vld [vmem:[%s971_s1 + $0xd0] sm:$0xff]  }
   0x7   :  { %v743_v14 = vld [vmem:[%s971_s1 + $0x20] sm:$0xff]   ;;  %v747_v18 = vld [vmem:[%s971_s1 + $0x18] sm:$0xff]   ;;  %v751_v22 = vld [vmem:[%s971_s1 + $0x10] sm:$0xff]  }
   0x8   :  { %658 = vmatpush3.bf16.msra.mxu0 %v735_v6  ;;  %v744_v15 = vld [vmem:[%s971_s1 + $0xa0] sm:$0xff]   ;;  %v748_v19 = vld [vmem:[%s971_s1 + $0x98] sm:$0xff]   ;;  %v752_v23 = vld [vmem:[%s971_s1 + $0x90] sm:$0xff]  }
   0x9   :  { %686 = vmatpush3.bf16.msra.mxu1 %v736_v7  ;;  %659 = vmatprep.subr.bf16.mxu0 %v737_v8  ;;  %v753_v24 = vld [vmem:[%s971_s1 + $0x48] sm:$0xff]   ;;  %v757_v28 = vld [vmem:[%s971_s1 + $0x40] sm:$0xff]   ;;  %v767_v36 = vld [vmem:[%s971_s1 + $0x118] sm:$0xff]  }
   0xa   :  { %687 = vmatprep.subr.bf16.mxu1 %v738_v9  ;;  %v754_v25 = vld [vmem:[%s971_s1 + $0xc8] sm:$0xff]   ;;  %v758_v29 = vld [vmem:[%s971_s1 + $0xc0] sm:$0xff]   ;;  %v768_v37 = vld [vmem:[%s971_s1 + $0x110] sm:$0xff]  }
   0xb   :  { %v755_v26 = vld [vmem:[%s971_s1 + $0x8] sm:$0xff]   ;;  %v759_v30 = vld [vmem:[%s971_s1] sm:$0xff]  }
   0xc   :  { %660 = vmatpush3.bf16.msra.mxu0 %v739_v10  ;;  %v756_v27 = vld [vmem:[%s971_s1 + $0x88] sm:$0xff]   ;;  %v760_v31 = vld [vmem:[%s971_s1 + $0x80] sm:$0xff]  }
   0xd   :  { %688 = vmatpush3.bf16.msra.mxu1 %v740_v11  ;;  %661 = vmatprep.subr.bf16.mxu0 %v741_v12  ;;  %v761_v32 = vld [vmem:[%s972_s0] ss:$20 sps:$4 sm:$0xff]   ;;  %v763_v33 = vld [vmem:[%s972_s0 + $0x4] ss:$20 sps:$4 sm:$0xff]   ;;  %v764_v34 = vld [vmem:[%s972_s0 + $0x8] ss:$20 sps:$4 sm:$0xff]  }
   0xe   :  { %689 = vmatprep.subr.bf16.mxu1 %v742_v13  ;;  %v766_v35 = vld [vmem:[%s972_s0 + $0xc] ss:$20 sps:$4 sm:$0xff]   ;;  %410 = vmatprep.mubr.bf16.mxu0 %v763_v33  ;;  %v771_v39 = vld [vmem:[%s972_s0 + $0x34] ss:$20 sps:$4 sm:$0xff]   ;;  %v774_v42 = vld [vmem:[%s972_s0 + $0x30] ss:$20 sps:$4 sm:$0xff]  }
   0xf   :  { %459 = vmatprep.mubr.bf16.mxu1 %v766_v35  ;;  %v769_v38 = vld [vmem:[%s972_s0 + $0x2c] ss:$20 sps:$4 sm:$0xff]   ;;  %v773_v40 = vld [vmem:[%s972_s0 + $0x28] ss:$20 sps:$4 sm:$0xff]   ;;  %v777_v43 = vld [vmem:[%s972_s0 + $0x10] ss:$20 sps:$4 sm:$0xff]  }
  0x10   :  { %662 = vmatpush3.bf16.msra.mxu0 %v743_v14  ;;  %v775_v41 = vld [vmem:[%s971_s1 + $0x108] sm:$0xff]   ;;  %v776_v44 = vld [vmem:[%s971_s1 + $0x100] sm:$0xff]  }
  0x11   :  { %690 = vmatpush3.bf16.msra.mxu1 %v744_v15  ;;  %663 = vmatprep.subr.bf16.mxu0 %v745_v16  ;;  %v778_v45 = vld [vmem:[%s972_s0 + $0x38] ss:$20 sps:$4 sm:$0xff]   ;;  %v636_v6 = vld [vmem:[%s973_s2] ss:$0 sm:$0xff] }
  0x12   :  { %691 = vmatprep.subr.bf16.mxu1 %v746_v17  ;;  %v654_v7 = vld [vmem:[%s974_s4 + $0x8] sm:$0xff]   ;;  %v647_v12 = vld [vmem:[%s974_s4] sm:$0xff]  }
  0x13   :  { %v637_v13 = vld [vmem:[%s975_s3] ss:$0 sm:$0xff]  ;;  %v652_v16 = vunpack.c.l.bf16 %v654_v7 }
  0x14   :  { %664 = vmatpush3.bf16.msra.mxu0 %v747_v18 }
  0x15   :  { %692 = vmatpush3.bf16.msra.mxu1 %v748_v19  ;;  %665 = vmatprep.subr.bf16.mxu0 %v749_v20  ;;  %v648_v19 = vunpack.c.l.bf16 %v647_v12 }
  0x16   :  { %693 = vmatprep.subr.bf16.mxu1 %v750_v21 }
  0x18   :  { %666 = vmatpush3.bf16.msra.mxu0 %v751_v22 }
  0x19   :  { %694 = vmatpush3.bf16.msra.mxu1 %v752_v23  ;;  %667 = vmatprep.subr.bf16.mxu0 %v753_v24 }
  0x1a   :  { %695 = vmatprep.subr.bf16.mxu1 %v754_v25  ;;  %v653_v25 = vunpack.c.h.bf16 %v654_v7 }
  0x1c   :  { %668 = vmatpush3.bf16.msra.mxu0 %v755_v26 }
  0x1d   :  { %696 = vmatpush3.bf16.msra.mxu1 %v756_v27  ;;  %669 = vmatprep.subr.bf16.mxu0 %v757_v28 }
  0x1e   :  { %697 = vmatprep.subr.bf16.mxu1 %v758_v29 }
  0x20   :  { %670 = vmatpush3.bf16.msra.mxu0 %v759_v30 }
  0x21   :  { %698 = vmatpush3.bf16.msra.mxu1 %v760_v31  ;;  %717 = vmatprep.subr.bf16.mxu0 %v767_v36  ;;  %v649_v31 = vunpack.c.h.bf16 %v647_v12 }
  0x23   :  { %411 = vmatmul.mubr.bf16.vlgmr.msra.gmra.mxu0 %v761_v32 }
  0x24   :  { %460 = vmatmul.mubr.bf16.vlgmr.msra.gmra.mxu1 %v764_v34  ;;  %718 = vmatpush3.bf16.msra.mxu0 %v767_v36 }
  0x25   :  { %719 = vmatprep.subr.bf16.mxu0 %v768_v37  ;;  %418 = vmatprep.mubr.bf16.mxu0 %v769_v38 }
  0x26   :  { %467 = vmatprep.mubr.bf16.mxu1 %v771_v39 }
  0x28   :  { %720 = vmatpush3.bf16.msra.mxu0 %v768_v37 }
  0x29   :  { %721 = vmatprep.subr.bf16.mxu0 %v775_v41 }
  0x2b   :  { %419 = vmatmul.mubr.bf16.gmra.mxu0 %v773_v40 }
  0x2c   :  { %468 = vmatmul.mubr.bf16.gmra.mxu1 %v774_v42  ;;  %725 = vmatprep.mubr.msk.bf16.mxu0 %vm371_vm0, %v777_v43 }
  0x2d   :  { %722 = vmatpush3.bf16.msra.mxu0 %v775_v41 }
  0x2e   :  { %723 = vmatprep.subr.bf16.mxu0 %v776_v44 }
  0x31   :  { %724 = vmatpush3.bf16.msra.mxu0 %v776_v44 }
  0x34   :  { %726 = vmatmul.mubr.msk.bf16.vlgmr.msra.gmra.mxu0 %vm371_vm0, %v778_v45 }
  0xe3   :  { %v671_v46 = vpop.f32.mrf.mxu0 }
  0xe4   :  { %v699_v47 = vpop.f32.mrf.mxu1 }
  0xe5   :  { %v672_v48 = vpop.f32.mrf.mxu0 }
  0xe6   :  { %v700_v49 = vpop.f32.mrf.mxu1  ;;  %v673_v62 = vadd.f32 %v672_v48, %v671_v46 }
  0xe7   :  { %v674_v50 = vpop.f32.mrf.mxu0  ;;  %v701_v63 = vadd.f32 %v700_v49, %v699_v47 }
  0xe8   :  { %v702_v51 = vpop.f32.mrf.mxu1 }
  0xe9   :  { %v675_v52 = vpop.f32.mrf.mxu0  ;;  %v462_v11 = vadd.f32 %v701_v63, %v673_v62 }
  0xea   :  { %v703_v53 = vpop.f32.mrf.mxu1  ;;  %v676_v8 = vadd.f32 %v675_v52, %v674_v50 }
  0xeb   :  { %v677_v54 = vpop.f32.mrf.mxu0  ;;  %v704_v9 = vadd.f32 %v703_v53, %v702_v51 }
  0xec   :  { %v705_v55 = vpop.f32.mrf.mxu1 }
  0xed   :  { %v678_v56 = vpop.f32.mrf.mxu0  ;;  %v465_v24 = vadd.f32 %v704_v9, %v676_v8 }
  0xee   :  { %v706_v57 = vpop.f32.mrf.mxu1  ;;  %v679_v58 = vadd.f32 %v678_v56, %v677_v54 }
  0xef   :  { %v707_v59 = vadd.f32 %v706_v57, %v705_v55  ;;  %v680_v60 = vpop.f32.mrf.mxu0 }
  0xf0   :  { %v708_v61 = vpop.f32.mrf.mxu1 }
  0xf1   :  { %v681_v0 = vpop.f32.mrf.mxu0  ;;  %v470_v4 = vadd.f32 %v707_v59, %v679_v58 }
  0xf2   :  { %v709_v1 = vpop.f32.mrf.mxu1  ;;  %v682_v2 = vadd.f32 %v681_v0, %v680_v60 }
  0xf3   :  { %v710_v3 = vadd.f32 %v709_v1, %v708_v61 }
  0xf4   :  { %v727_v5 = vpop.f32.mrf.mxu0 }
  0xf5   :  { %v519_v10 = vadd.f32 %v727_v5, %v470_v4  ;;  %v473_v18 = vadd.f32 %v710_v3, %v682_v2 }
  0xf6   :  { %v510_v14 = vpop.f32.mrf.mxu0 }
  0xf7   :  { %v534_v15 = vmul.f32 %v636_v6, %v519_v10  ;;  %v511_v17 = vadd.f32 %v510_v14, %v462_v11 }
  0xf8   :  { %v728_v20 = vpop.f32.mrf.mxu0 }
  0xf9   :  { %v545_v21 = vadd.f32 %v637_v13, %v534_v15  ;;  %v532_v22 = vmul.f32 %v636_v6, %v511_v17  ;;  %v522_v23 = vadd.f32 %v728_v20, %v473_v18 }
  0xfa   :  { %v513_v26 = vpop.f32.mrf.mxu0 }
  0xfb   :  { %v557_v27 = vadd.f32 %v652_v16, %v545_v21  ;;  %v543_v28 = vadd.f32 %v637_v13, %v532_v22  ;;  %v535_v29 = vmul.f32 %v636_v6, %v522_v23  ;;  %v514_v30 = vadd.f32 %v513_v26, %v465_v24 }
  0xfd   :  { %v561_v32 = vmax.f32 %v557_v27, 0.0  ;;  %v555_v33 = vadd.f32 %v648_v19, %v543_v28  ;;  %v546_v34 = vadd.f32 %v637_v13, %v535_v29  ;;  %v533_v35 = vmul.f32 %v636_v6, %v514_v30 }
  0xff   :  { %v644_v36 = vpack.c.bf16 %v561_v32, %v561_v32  ;;  %v559_v37 = vmax.f32 %v555_v33, 0.0  ;;  %v558_v38 = vadd.f32 %v653_v25, %v546_v34  ;;  %v544_v39 = vadd.f32 %v637_v13, %v533_v35 }
 0x101   :  { %582 = vst.msk [vmem:[%s976_s5 + $0x8] sm:$0xf] %vm579_vm1, %v644_v36  ;;  %v642_v40 = vpack.c.bf16 %v559_v37, %v559_v37  ;;  %v562_v41 = vmax.f32 %v558_v38, 0.0  ;;  %v556_v42 = vadd.f32 %v649_v31, %v544_v39 }
 0x103   :  { %580 = vst.msk [vmem:[%s976_s5] sm:$0xf] %vm579_vm1, %v642_v40  ;;  %v645_v43 = vpack.c.bf16 %v562_v41, %v562_v41  ;;  %v560_v44 = vmax.f32 %v556_v42, 0.0 }
 0x105   :  { %583 = vst.msk [vmem:[%s976_s5 + $0xc] sm:$0xf] %vm579_vm1, %v645_v43  ;;  %v643_v45 = vpack.c.bf16 %v560_v44, %v560_v44 }
 0x107   :  { %581 = vst.msk [vmem:[%s976_s5 + $0x4] sm:$0xf] %vm579_vm1, %v643_v45 }

// kernel: _lambda_.27
= control target key start
LH: loop header
LB: loop body
LE: loop exit
PB: predicated region body
PF: predicated region fallthrough
CT: control target
= control target key end

     0   :  { %vm512_vm0 = vcmask 523264   ;;  %s1271_s1 = inlined_call_operand.vmem [shape: bf16[576,256], index: 1, kind: input, shape index: {}]   ;;  %s1272_s0 = inlined_call_operand.vmem [shape: bf16[32,576], index: 0, kind: input, shape index: {}]   ;;  %s1273_s2 = inlined_call_operand.vmem [shape: f32[1,256], index: 2, kind: input, shape index: {}]   ;;  %s1274_s3 = inlined_call_operand.vmem [shape: f32[1,256], index: 3, kind: input, shape index: {}]   ;;  %s1275_s4 = inlined_call_operand.vmem [shape: bf16[32,256], index: 4, kind: output, shape index: {}]  }
   0x1   :  { %v859_v0 = vld [vmem:[%s1271_s1 + $0x74] ss:$8 sps:$4 sm:$0xff]   ;;  %v863_v2 = vld [vmem:[%s1271_s1 + $0x70] ss:$8 sps:$4 sm:$0xff]   ;;  %v865_v4 = vld [vmem:[%s1271_s1 + $0x64] ss:$8 sps:$4 sm:$0xff]  }
   0x2   :  { %v861_v1 = vld [vmem:[%s1271_s1 + $0x174] ss:$8 sps:$4 sm:$0xff]   ;;  %519 = vmatprep.subr.bf16.mxu0 %v859_v0  ;;  %v864_v3 = vld [vmem:[%s1271_s1 + $0x170] ss:$8 sps:$4 sm:$0xff]   ;;  %v867_v5 = vld [vmem:[%s1271_s1 + $0x164] ss:$8 sps:$4 sm:$0xff]  }
   0x3   :  { %572 = vmatprep.subr.bf16.mxu1 %v861_v1  ;;  %520 = vmatpush1.bf16.msra.mxu0 %v863_v2  ;;  %v869_v6 = vld [vmem:[%s1271_s1 + $0x60] ss:$8 sps:$4 sm:$0xff]   ;;  %v871_v8 = vld [vmem:[%s1271_s1 + $0x54] ss:$8 sps:$4 sm:$0xff]   ;;  %v875_v10 = vld [vmem:[%s1271_s1 + $0x50] ss:$8 sps:$4 sm:$0xff]  }
   0x4   :  { %573 = vmatpush1.bf16.msra.mxu1 %v864_v3  ;;  %521 = vmatprep.subr.bf16.mxu0 %v865_v4  ;;  %v870_v7 = vld [vmem:[%s1271_s1 + $0x160] ss:$8 sps:$4 sm:$0xff]   ;;  %v873_v9 = vld [vmem:[%s1271_s1 + $0x154] ss:$8 sps:$4 sm:$0xff]   ;;  %v876_v11 = vld [vmem:[%s1271_s1 + $0x150] ss:$8 sps:$4 sm:$0xff]  }
   0x5   :  { %574 = vmatprep.subr.bf16.mxu1 %v867_v5  ;;  %v877_v12 = vld [vmem:[%s1271_s1 + $0x44] ss:$8 sps:$4 sm:$0xff]   ;;  %v881_v14 = vld [vmem:[%s1271_s1 + $0x40] ss:$8 sps:$4 sm:$0xff]   ;;  %v883_v16 = vld [vmem:[%s1271_s1 + $0x34] ss:$8 sps:$4 sm:$0xff]  }
   0x6   :  { %v879_v13 = vld [vmem:[%s1271_s1 + $0x144] ss:$8 sps:$4 sm:$0xff]   ;;  %v882_v15 = vld [vmem:[%s1271_s1 + $0x140] ss:$8 sps:$4 sm:$0xff]   ;;  %v885_v17 = vld [vmem:[%s1271_s1 + $0x134] ss:$8 sps:$4 sm:$0xff]  }
   0x7   :  { %522 = vmatpush1.bf16.msra.mxu0 %v869_v6  ;;  %v887_v18 = vld [vmem:[%s1271_s1 + $0x30] ss:$8 sps:$4 sm:$0xff]   ;;  %v889_v20 = vld [vmem:[%s1271_s1 + $0x24] ss:$8 sps:$4 sm:$0xff]   ;;  %v893_v22 = vld [vmem:[%s1271_s1 + $0x20] ss:$8 sps:$4 sm:$0xff]  }
   0x8   :  { %575 = vmatpush1.bf16.msra.mxu1 %v870_v7  ;;  %523 = vmatprep.subr.bf16.mxu0 %v871_v8  ;;  %v888_v19 = vld [vmem:[%s1271_s1 + $0x130] ss:$8 sps:$4 sm:$0xff]   ;;  %v891_v21 = vld [vmem:[%s1271_s1 + $0x124] ss:$8 sps:$4 sm:$0xff]   ;;  %v894_v23 = vld [vmem:[%s1271_s1 + $0x120] ss:$8 sps:$4 sm:$0xff]  }
   0x9   :  { %576 = vmatprep.subr.bf16.mxu1 %v873_v9  ;;  %v895_v24 = vld [vmem:[%s1271_s1 + $0x14] ss:$8 sps:$4 sm:$0xff]   ;;  %v899_v26 = vld [vmem:[%s1271_s1 + $0x10] ss:$8 sps:$4 sm:$0xff]   ;;  %v901_v28 = vld [vmem:[%s1271_s1 + $0x4] ss:$8 sps:$4 sm:$0xff]  }
   0xa   :  { %v897_v25 = vld [vmem:[%s1271_s1 + $0x114] ss:$8 sps:$4 sm:$0xff]   ;;  %v900_v27 = vld [vmem:[%s1271_s1 + $0x110] ss:$8 sps:$4 sm:$0xff]   ;;  %v903_v29 = vld [vmem:[%s1271_s1 + $0x104] ss:$8 sps:$4 sm:$0xff]  }
   0xb   :  { %524 = vmatpush1.bf16.msra.mxu0 %v875_v10  ;;  %v905_v30 = vld [vmem:[%s1271_s1] ss:$8 sps:$4 sm:$0xff]   ;;  %v907_v32 = vld [vmem:[%s1271_s1 + $0xf4] ss:$8 sps:$4 sm:$0xff]   ;;  %v911_v34 = vld [vmem:[%s1271_s1 + $0xf0] ss:$8 sps:$4 sm:$0xff]  }
   0xc   :  { %577 = vmatpush1.bf16.msra.mxu1 %v876_v11  ;;  %525 = vmatprep.subr.bf16.mxu0 %v877_v12  ;;  %v906_v31 = vld [vmem:[%s1271_s1 + $0x100] ss:$8 sps:$4 sm:$0xff]   ;;  %v909_v33 = vld [vmem:[%s1271_s1 + $0x1f4] ss:$8 sps:$4 sm:$0xff]   ;;  %v912_v35 = vld [vmem:[%s1271_s1 + $0x1f0] ss:$8 sps:$4 sm:$0xff]  }
   0xd   :  { %578 = vmatprep.subr.bf16.mxu1 %v879_v13  ;;  %v913_v36 = vld [vmem:[%s1271_s1 + $0xe4] ss:$8 sps:$4 sm:$0xff]   ;;  %v917_v38 = vld [vmem:[%s1271_s1 + $0xe0] ss:$8 sps:$4 sm:$0xff]   ;;  %v919_v40 = vld [vmem:[%s1271_s1 + $0xd4] ss:$8 sps:$4 sm:$0xff]  }
   0xe   :  { %v915_v37 = vld [vmem:[%s1271_s1 + $0x1e4] ss:$8 sps:$4 sm:$0xff]   ;;  %v918_v39 = vld [vmem:[%s1271_s1 + $0x1e0] ss:$8 sps:$4 sm:$0xff]   ;;  %v921_v41 = vld [vmem:[%s1271_s1 + $0x1d4] ss:$8 sps:$4 sm:$0xff]  }
   0xf   :  { %526 = vmatpush1.bf16.msra.mxu0 %v881_v14  ;;  %v923_v42 = vld [vmem:[%s1271_s1 + $0xd0] ss:$8 sps:$4 sm:$0xff]   ;;  %v925_v44 = vld [vmem:[%s1271_s1 + $0xc4] ss:$8 sps:$4 sm:$0xff]   ;;  %v929_v46 = vld [vmem:[%s1271_s1 + $0xc0] ss:$8 sps:$4 sm:$0xff]  }
  0x10   :  { %579 = vmatpush1.bf16.msra.mxu1 %v882_v15  ;;  %527 = vmatprep.subr.bf16.mxu0 %v883_v16  ;;  %v924_v43 = vld [vmem:[%s1271_s1 + $0x1d0] ss:$8 sps:$4 sm:$0xff]   ;;  %v927_v45 = vld [vmem:[%s1271_s1 + $0x1c4] ss:$8 sps:$4 sm:$0xff]   ;;  %v930_v47 = vld [vmem:[%s1271_s1 + $0x1c0] ss:$8 sps:$4 sm:$0xff]  }
  0x11   :  { %580 = vmatprep.subr.bf16.mxu1 %v885_v17  ;;  %v931_v48 = vld [vmem:[%s1271_s1 + $0xb4] ss:$8 sps:$4 sm:$0xff]   ;;  %v957_v49 = vld [vmem:[%s1272_s0 + $0x4] ss:$20 sps:$4 sm:$0xff]   ;;  %v960_v51 = vld [vmem:[%s1272_s0 + $0xc] ss:$20 sps:$4 sm:$0xff]  }
  0x12   :  { %v933_v50 = vld [vmem:[%s1271_s1 + $0x1b4] ss:$8 sps:$4 sm:$0xff]   ;;  %551 = vmatprep.mubr.bf16.mxu0 %v957_v49  ;;  %v935_v52 = vld [vmem:[%s1271_s1 + $0xb0] ss:$8 sps:$4 sm:$0xff]   ;;  %604 = vmatprep.mubr.bf16.mxu1 %v960_v51  ;;  %v937_v54 = vld [vmem:[%s1271_s1 + $0xa4] ss:$8 sps:$4 sm:$0xff]  }
  0x13   :  { %528 = vmatpush1.bf16.msra.mxu0 %v887_v18  ;;  %v936_v53 = vld [vmem:[%s1271_s1 + $0x1b0] ss:$8 sps:$4 sm:$0xff]   ;;  %v939_v55 = vld [vmem:[%s1271_s1 + $0x1a4] ss:$8 sps:$4 sm:$0xff]   ;;  %v941_v56 = vld [vmem:[%s1271_s1 + $0xa0] ss:$8 sps:$4 sm:$0xff]  }
  0x14   :  { %581 = vmatpush1.bf16.msra.mxu1 %v888_v19  ;;  %529 = vmatprep.subr.bf16.mxu0 %v889_v20  ;;  %v942_v57 = vld [vmem:[%s1271_s1 + $0x1a0] ss:$8 sps:$4 sm:$0xff]   ;;  %v943_v58 = vld [vmem:[%s1271_s1 + $0x94] ss:$8 sps:$4 sm:$0xff]   ;;  %v947_v60 = vld [vmem:[%s1271_s1 + $0x90] ss:$8 sps:$4 sm:$0xff]  }
  0x15   :  { %582 = vmatprep.subr.bf16.mxu1 %v891_v21  ;;  %v945_v59 = vld [vmem:[%s1271_s1 + $0x194] ss:$8 sps:$4 sm:$0xff]   ;;  %v948_v61 = vld [vmem:[%s1271_s1 + $0x190] ss:$8 sps:$4 sm:$0xff]   ;;  %v949_v62 = vld [vmem:[%s1271_s1 + $0x84] ss:$8 sps:$4 sm:$0xff]  }
  0x16   :  { %v951_v63 = vld [vmem:[%s1271_s1 + $0x184] ss:$8 sps:$4 sm:$0xff]   ;;  %v953_v0 = vld [vmem:[%s1271_s1 + $0x80] ss:$8 sps:$4 sm:$0xff]   ;;  %v963_v2 = vld [vmem:[%s1271_s1 + $0x234] ss:$8 sps:$4 sm:$0xff]  }
  0x17   :  { %530 = vmatpush1.bf16.msra.mxu0 %v893_v22  ;;  %v954_v1 = vld [vmem:[%s1271_s1 + $0x180] ss:$8 sps:$4 sm:$0xff]   ;;  %v961_v5 = vld [vmem:[%s1271_s1 + $0x230] ss:$8 sps:$4 sm:$0xff]   ;;  %v966_v6 = vld [vmem:[%s1271_s1 + $0x224] ss:$8 sps:$4 sm:$0xff]  }
  0x18   :  { %583 = vmatpush1.bf16.msra.mxu1 %v894_v23  ;;  %531 = vmatprep.subr.bf16.mxu0 %v895_v24  ;;  %v955_v3 = vld [vmem:[%s1272_s0] ss:$20 sps:$4 sm:$0xff]   ;;  %v958_v4 = vld [vmem:[%s1272_s0 + $0x8] ss:$20 sps:$4 sm:$0xff]   ;;  %v972_v12 = vld [vmem:[%s1272_s0 + $0x30] ss:$20 sps:$4 sm:$0xff]   ;;  %v680_v23 = vlaneseq }
  0x19   :  { %584 = vmatprep.subr.bf16.mxu1 %v897_v25  ;;  %v967_v7 = vld [vmem:[%s1272_s0 + $0x2c] ss:$20 sps:$4 sm:$0xff]   ;;  %v969_v8 = vld [vmem:[%s1272_s0 + $0x34] ss:$20 sps:$4 sm:$0xff]   ;;  %v973_v13 = vld [vmem:[%s1271_s1 + $0x210] ss:$8 sps:$4 sm:$0xff]  }
  0x1a   :  { %v964_v9 = vld [vmem:[%s1271_s1 + $0x220] ss:$8 sps:$4 sm:$0xff]   ;;  %v975_v10 = vld [vmem:[%s1271_s1 + $0x214] ss:$8 sps:$4 sm:$0xff]   ;;  %v978_v14 = vld [vmem:[%s1271_s1 + $0x204] ss:$8 sps:$4 sm:$0xff]  }
  0x1b   :  { %532 = vmatpush1.bf16.msra.mxu0 %v899_v26  ;;  %v971_v11 = vld [vmem:[%s1272_s0 + $0x28] ss:$20 sps:$4 sm:$0xff]   ;;  %v981_v16 = vmov 0   ;;  %v979_v17 = vld [vmem:[%s1272_s0 + $0x10] ss:$20 sps:$4 sm:$0xff]  }
  0x1c   :  { %585 = vmatpush1.bf16.msra.mxu1 %v900_v27  ;;  %533 = vmatprep.subr.bf16.mxu0 %v901_v28  ;;  %v976_v15 = vld [vmem:[%s1271_s1 + $0x200] ss:$8 sps:$4 sm:$0xff]   ;;  %v980_v18 = vld [vmem:[%s1272_s0 + $0x38] ss:$20 sps:$4 sm:$0xff]   ;;  %v681_v28 = vshrl.u32 %v680_v23, 7 }
  0x1d   :  { %586 = vmatprep.subr.bf16.mxu1 %v903_v29 }
  0x1f   :  { %534 = vmatpush1.bf16.msra.mxu0 %v905_v30 }
  0x20   :  { %587 = vmatpush1.bf16.msra.mxu1 %v906_v31  ;;  %535 = vmatprep.subr.bf16.mxu0 %v907_v32 }
  0x21   :  { %588 = vmatprep.subr.bf16.mxu1 %v909_v33  ;;  %v682_v33 = vsub.s32 0, %v681_v28 }
  0x23   :  { %536 = vmatpush2.bf16.msra.mxu0 %v911_v34 }
  0x24   :  { %589 = vmatpush2.bf16.msra.mxu1 %v912_v35  ;;  %537 = vmatprep.subr.bf16.mxu0 %v913_v36  ;;  %v678_v36 = vld [vmem:[%s1273_s2] sm:$0x3] }
  0x25   :  { %590 = vmatprep.subr.bf16.mxu1 %v915_v37  ;;  %v686_v37 = vsub.s32 1, %v681_v28 }
  0x27   :  { %538 = vmatpush2.bf16.msra.mxu0 %v917_v38  ;;  %v698_v38 = vld [vmem:[%s1274_s3] sm:$0x3] }
  0x28   :  { %591 = vmatpush2.bf16.msra.mxu1 %v918_v39  ;;  %539 = vmatprep.subr.bf16.mxu0 %v919_v40 }
  0x29   :  { %592 = vmatprep.subr.bf16.mxu1 %v921_v41 }
  0x2b   :  { %540 = vmatpush2.bf16.msra.mxu0 %v923_v42 }
  0x2c   :  { %593 = vmatpush2.bf16.msra.mxu1 %v924_v43  ;;  %541 = vmatprep.subr.bf16.mxu0 %v925_v44  ;;  %v683_v43 = vrot.slane %v678_v36, %v682_v33 }
  0x2d   :  { %594 = vmatprep.subr.bf16.mxu1 %v927_v45  ;;  %v703_v45 = vrot.slane %v698_v38, %v682_v33 }
  0x2f   :  { %542 = vmatpush2.bf16.msra.mxu0 %v929_v46 }
  0x30   :  { %595 = vmatpush2.bf16.msra.mxu1 %v930_v47  ;;  %543 = vmatprep.subr.bf16.mxu0 %v931_v48  ;;  %v687_v47 = vrot.slane %v678_v36, %v686_v37 }
  0x31   :  { %596 = vmatprep.subr.bf16.mxu1 %v933_v50 }
  0x33   :  { %544 = vmatpush2.bf16.msra.mxu0 %v935_v52 }
  0x34   :  { %597 = vmatpush2.bf16.msra.mxu1 %v936_v53  ;;  %545 = vmatprep.subr.bf16.mxu0 %v937_v54  ;;  %v707_v53 = vrot.slane %v698_v38, %v686_v37 }
  0x35   :  { %598 = vmatprep.subr.bf16.mxu1 %v939_v55 }
  0x37   :  { %546 = vmatpush2.bf16.msra.mxu0 %v941_v56 }
  0x38   :  { %599 = vmatpush2.bf16.msra.mxu1 %v942_v57  ;;  %547 = vmatprep.subr.bf16.mxu0 %v943_v58 }
  0x39   :  { %600 = vmatprep.subr.bf16.mxu1 %v945_v59 }
  0x3b   :  { %548 = vmatpush2.bf16.msra.mxu0 %v947_v60 }
  0x3c   :  { %601 = vmatpush2.bf16.msra.mxu1 %v948_v61  ;;  %549 = vmatprep.subr.bf16.mxu0 %v949_v62 }
  0x3d   :  { %602 = vmatprep.subr.bf16.mxu1 %v951_v63 }
  0x3f   :  { %550 = vmatpush2.bf16.msra.mxu0 %v953_v0 }
  0x40   :  { %603 = vmatpush2.bf16.msra.mxu1 %v954_v1  ;;  %633 = vmatprep.subr.bf16.mxu0 %v963_v2 }
  0x41   :  { %850 = vmatprep.subr.bf16.mxu1 %v963_v2 }
  0x42   :  { %552 = vmatmul.mubr.bf16.vlgmr.msra.gmra.mxu0 %v955_v3 }
  0x43   :  { %605 = vmatmul.mubr.bf16.vlgmr.msra.gmra.mxu1 %v958_v4  ;;  %634 = vmatpush1.bf16.msra.mxu0 %v961_v5 }
  0x44   :  { %854 = vmatpush1.bf16.msra.mxu1 %v961_v5  ;;  %635 = vmatprep.subr.bf16.mxu0 %v966_v6 }
  0x45   :  { %851 = vmatprep.subr.bf16.mxu1 %v966_v6  ;;  %561 = vmatprep.mubr.bf16.mxu0 %v967_v7 }
  0x46   :  { %614 = vmatprep.mubr.bf16.mxu1 %v969_v8 }
  0x47   :  { %636 = vmatpush1.bf16.msra.mxu0 %v964_v9 }
  0x48   :  { %855 = vmatpush1.bf16.msra.mxu1 %v964_v9  ;;  %637 = vmatprep.subr.bf16.mxu0 %v975_v10 }
  0x49   :  { %852 = vmatprep.subr.bf16.mxu1 %v975_v10 }
  0x4a   :  { %562 = vmatmul.mubr.bf16.gmra.mxu0 %v971_v11 }
  0x4b   :  { %615 = vmatmul.mubr.bf16.gmra.mxu1 %v972_v12  ;;  %638 = vmatpush1.bf16.msra.mxu0 %v973_v13 }
  0x4c   :  { %856 = vmatpush1.bf16.msra.mxu1 %v973_v13  ;;  %639 = vmatprep.subr.bf16.mxu0 %v978_v14 }
  0x4d   :  { %853 = vmatprep.subr.bf16.mxu1 %v978_v14  ;;  %657 = vmatprep.mubr.bf16.mxu0 %v981_v16 }
  0x4e   :  { %667 = vmatprep.mubr.bf16.mxu1 %v981_v16 }
  0x4f   :  { %640 = vmatpush1.bf16.msra.mxu0 %v976_v15 }
  0x50   :  { %857 = vmatpush1.bf16.msra.mxu1 %v976_v15 }
  0x52   :  { %840 = vmatmul.mubr.msk.bf16.vlgmr.msra.gmra.mxu0 %vm512_vm0, %v979_v17 }
  0x53   :  { %841 = vmatmul.mubr.msk.bf16.vlgmr.msra.gmra.mxu1 %vm512_vm0, %v980_v18 }
 0x102   :  { %v553_v19 = vpop.f32.mrf.mxu0 }
 0x103   :  { %v606_v20 = vpop.f32.mrf.mxu1 }
 0x104   :  { %v555_v21 = vpop.f32.mrf.mxu0  ;;  %v607_v41 = vadd.f32 %v606_v20, %v553_v19 }
 0x105   :  { %v608_v22 = vpop.f32.mrf.mxu1 }
 0x106   :  { %v557_v24 = vpop.f32.mrf.mxu0  ;;  %v609_v48 = vadd.f32 %v608_v22, %v555_v21 }
 0x107   :  { %v610_v25 = vpop.f32.mrf.mxu1 }
 0x108   :  { %v559_v26 = vpop.f32.mrf.mxu0  ;;  %v611_v59 = vadd.f32 %v610_v25, %v557_v24 }
 0x109   :  { %v612_v27 = vpop.f32.mrf.mxu1 }
 0x10a   :  { %v563_v29 = vpop.f32.mrf.mxu0  ;;  %v613_v3 = vadd.f32 %v612_v27, %v559_v26 }
 0x10b   :  { %v616_v30 = vpop.f32.mrf.mxu1 }
 0x10c   :  { %v565_v31 = vpop.f32.mrf.mxu0  ;;  %v617_v42 = vadd.f32 %v616_v30, %v563_v29 }
 0x10d   :  { %v618_v32 = vpop.f32.mrf.mxu1 }
 0x10e   :  { %v567_v34 = vpop.f32.mrf.mxu0  ;;  %v619_v49 = vadd.f32 %v618_v32, %v565_v31 }
 0x10f   :  { %v620_v35 = vpop.f32.mrf.mxu1 }
 0x110   :  { %v569_v39 = vpop.f32.mrf.mxu0  ;;  %v621_v60 = vadd.f32 %v620_v35, %v567_v34 }
 0x111   :  { %v622_v40 = vpop.f32.mrf.mxu1 }
 0x112   :  { %v659_v44 = vpop.f32.mrf.mxu0  ;;  %v623_v4 = vadd.f32 %v622_v40, %v569_v39 }
 0x113   :  { %v669_v46 = vpop.f32.mrf.mxu1  ;;  %v660_v50 = vadd.f32 %v659_v44, %v607_v41 }
 0x114   :  { %v670_v51 = vadd.f32 %v669_v46, %v617_v42  ;;  %v661_v52 = vpop.f32.mrf.mxu0 }
 0x115   :  { %v671_v54 = vpop.f32.mrf.mxu1  ;;  %v690_v55 = vmul.f32 %v683_v43, %v660_v50  ;;  %v662_v57 = vadd.f32 %v661_v52, %v609_v48 }
 0x116   :  { %v694_v56 = vmul.f32 %v683_v43, %v670_v51  ;;  %v672_v58 = vadd.f32 %v671_v54, %v619_v49  ;;  %v663_v61 = vpop.f32.mrf.mxu0 }
 0x117   :  { %v673_v62 = vpop.f32.mrf.mxu1  ;;  %v710_v63 = vadd.f32 %v703_v45, %v690_v55  ;;  %v691_v1 = vmul.f32 %v687_v47, %v662_v57  ;;  %v664_v5 = vadd.f32 %v663_v61, %v611_v59 }
 0x118   :  { %v714_v0 = vadd.f32 %v703_v45, %v694_v56  ;;  %v695_v2 = vmul.f32 %v687_v47, %v672_v58  ;;  %v674_v6 = vadd.f32 %v673_v62, %v621_v60  ;;  %v665_v7 = vpop.f32.mrf.mxu0 }
 0x119   :  { %v675_v8 = vpop.f32.mrf.mxu1  ;;  %v711_v9 = vadd.f32 %v707_v53, %v691_v1  ;;  %v692_v11 = vmul.f32 %v683_v43, %v664_v5  ;;  %v666_v13 = vadd.f32 %v665_v7, %v613_v3  ;;  %v718_v15 = vmax.f32 %v710_v63, 0.0 }
 0x11a   :  { %v715_v10 = vadd.f32 %v707_v53, %v695_v2  ;;  %v696_v12 = vmul.f32 %v683_v43, %v674_v6  ;;  %v676_v14 = vadd.f32 %v675_v8, %v623_v4  ;;  %v722_v16 = vmax.f32 %v714_v0, 0.0 }
 0x11b   :  { %v719_v17 = vmax.f32 %v711_v9, 0.0  ;;  %v712_v19 = vadd.f32 %v703_v45, %v692_v11  ;;  %v693_v21 = vmul.f32 %v687_v47, %v666_v13 }
 0x11c   :  { %v723_v18 = vmax.f32 %v715_v10, 0.0  ;;  %v716_v20 = vadd.f32 %v703_v45, %v696_v12  ;;  %v697_v22 = vmul.f32 %v687_v47, %v676_v14 }
 0x11d   :  { %v846_v23 = vpack.c.bf16 %v719_v17, %v718_v15  ;;  %v713_v25 = vadd.f32 %v707_v53, %v693_v21  ;;  %v720_v27 = vmax.f32 %v712_v19, 0.0 }
 0x11e   :  { %v848_v24 = vpack.c.bf16 %v723_v18, %v722_v16  ;;  %v717_v26 = vadd.f32 %v707_v53, %v697_v22  ;;  %v724_v28 = vmax.f32 %v716_v20, 0.0 }
 0x11f   :  { %750 = vst [vmem:[%s1275_s4] sm:$0xff] %v846_v23  ;;  %v721_v29 = vmax.f32 %v713_v25, 0.0 }
 0x120   :  { %752 = vst [vmem:[%s1275_s4 + $0x10] sm:$0xff] %v848_v24  ;;  %v725_v30 = vmax.f32 %v717_v26, 0.0 }
 0x121   :  { %v847_v31 = vpack.c.bf16 %v721_v29, %v720_v27 }
 0x122   :  { %v849_v32 = vpack.c.bf16 %v725_v30, %v724_v28 }
 0x123   :  { %751 = vst [vmem:[%s1275_s4 + $0x8] sm:$0xff] %v847_v31 }
 0x124   :  { %753 = vst [vmem:[%s1275_s4 + $0x18] sm:$0xff] %v849_v32 }

// kernel: _lambda_.29
= control target key start
LH: loop header
LB: loop body
LE: loop exit
PB: predicated region body
PF: predicated region fallthrough
CT: control target
= control target key end

     0   :  { %vm31_vm0 = vcmask 64512   ;;  %vm283_vm1 = vcmask 1043456   ;;  %v796_v26 = vmov 0.0   ;;  %vm234_vm2 = vcmask 162816   ;;  %s1123_s0 = inlined_call_operand.vmem [shape: f32[8,20], index: 0, kind: input, shape index: {}]   ;;  %s1124_s1 = inlined_call_operand.vmem [shape: f32[128,8], index: 1, kind: input, shape index: {}]   ;;  %s1125_s2 = inlined_call_operand.vmem [shape: f32[20,320], index: 2, kind: input, shape index: {}]   ;;  %s1126_s3 = inlined_call_operand.vmem [shape: f32[128,320], index: 3, kind: output, shape index: {}]  }
   0x1   :  { %v30_v0 = vld [vmem:[%s1123_s0] sm:$0xff]  ;;  %v15_v2 = vld [vmem:[%s1124_s1 + $0x8] sm:$0xff]  ;;  %v16_v3 = vld [vmem:[%s1124_s1 + $0x10] sm:$0xff]  ;;  %357 = vmatprep.mubr.f32.mxu1 %v796_v26  ;;  %vm601_vm3 = vcmask 523264  }
   0x2   :  { %v14_v1 = vld [vmem:[%s1124_s1] sm:$0xff]  ;;  %739 = vmatprep.subr.mxu0 %v30_v0  ;;  %v17_v4 = vld [vmem:[%s1124_s1 + $0x18] sm:$0xff]  ;;  %v231_v7 = vld [vmem:[%s1125_s2 + $0x30] sm:$0xf] }
   0x3   :  { %741 = vmatprep.mubr.msk.f32.mxu0 %vm31_vm0, %v14_v1  ;;  %740 = vmatpush3.msra.mxu0 %v30_v0  ;;  %v18_v5 = vld [vmem:[%s1124_s1 + $0x20] sm:$0xff]  ;;  %v232_v6 = vld [vmem:[%s1125_s2 + $0x38] sm:$0xf]  ;;  %v19_v10 = vld [vmem:[%s1124_s1 + $0x28] sm:$0xff] }
   0x4   :  { %742 = vmatmul.mubr.msk.f32.vlgmr.msra.gmra.mxu0 %vm31_vm0, %v15_v2  ;;  %668 = vmatprep.subr.msk.mxu1 %vm283_vm1, %v232_v6  ;;  %v233_v8 = vld [vmem:[%s1125_s2 + $0x40] sm:$0xf]  ;;  %v20_v11 = vld [vmem:[%s1124_s1 + $0x30] sm:$0xff]  ;;  %v21_v12 = vld [vmem:[%s1124_s1 + $0x38] sm:$0xff] }
   0x5   :  { %744 = vmatprep.mubr.msk.f32.mxu0 %vm31_vm0, %v16_v3  ;;  %v229_v9 = vld [vmem:[%s1125_s2 + $0x20] sm:$0xff]  ;;  %669 = vmatpush1.msk.msra.mxu1 %vm283_vm1, %v231_v7  ;;  %v23_v14 = vld [vmem:[%s1124_s1 + $0x48] sm:$0xff]  ;;  %v24_v15 = vld [vmem:[%s1124_s1 + $0x50] sm:$0xff] }
   0x6   :  { %765 = vmatprep.subr.msk.mxu0 %vm283_vm1, %v233_v8  ;;  %321 = vmatprep.subr.mxu1 %v229_v9  ;;  %v22_v13 = vld [vmem:[%s1124_s1 + $0x40] sm:$0xff]  ;;  %v25_v16 = vld [vmem:[%s1124_s1 + $0x58] sm:$0xff]  ;;  %v27_v18 = vld [vmem:[%s1124_s1 + $0x68] sm:$0xff] }
   0x7   :  { %766 = vmatpush3.msk.msra.mxu0 %vm283_vm1, %v233_v8  ;;  %v26_v17 = vld [vmem:[%s1124_s1 + $0x60] sm:$0xff]  ;;  %v28_v19 = vld [vmem:[%s1124_s1 + $0x70] sm:$0xff]  ;;  %v29_v20 = vld [vmem:[%s1124_s1 + $0x78] sm:$0xff] }
   0x8   :  { %745 = vmatmul.mubr.msk.f32.gmra.mxu0 %vm31_vm0, %v17_v4  ;;  %v228_v21 = vld [vmem:[%s1125_s2 + $0x18] sm:$0xff]  ;;  %v230_v22 = vld [vmem:[%s1125_s2 + $0x28] sm:$0xff]  ;;  %v225_v24 = vld [vmem:[%s1125_s2] sm:$0xff] }
   0x9   :  { %747 = vmatprep.mubr.msk.f32.mxu0 %vm31_vm0, %v18_v5  ;;  %322 = vmatpush1.msra.mxu1 %v228_v21  ;;  %v226_v23 = vld [vmem:[%s1125_s2 + $0x8] sm:$0xff]  ;;  %v227_v25 = vld [vmem:[%s1125_s2 + $0x10] sm:$0xff] }
   0xa   :  { %767 = vmatprep.subr.mxu0 %v230_v22  ;;  %323 = vmatprep.subr.mxu1 %v226_v23 }
   0xb   :  { %768 = vmatpush3.msra.mxu0 %v230_v22  ;;  %324 = vmatpush1.msra.mxu1 %v225_v24 }
   0xc   :  { %748 = vmatmul.mubr.msk.f32.gmra.mxu0 %vm31_vm0, %v19_v10  ;;  %769 = vmatprep.subr.mxu0 %v227_v25 }
   0xd   :  { %750 = vmatprep.mubr.msk.f32.mxu0 %vm31_vm0, %v20_v11  ;;  %770 = vmatpush3.msra.mxu0 %v227_v25 }
  0x10   :  { %751 = vmatmul.mubr.msk.f32.gmra.mxu0 %vm31_vm0, %v21_v12 }
  0x11   :  { %753 = vmatprep.mubr.msk.f32.mxu0 %vm31_vm0, %v22_v13 }
  0x14   :  { %754 = vmatmul.mubr.msk.f32.gmra.mxu0 %vm31_vm0, %v23_v14 }
  0x15   :  { %756 = vmatprep.mubr.msk.f32.mxu0 %vm31_vm0, %v24_v15 }
  0x18   :  { %757 = vmatmul.mubr.msk.f32.gmra.mxu0 %vm31_vm0, %v25_v16 }
  0x19   :  { %759 = vmatprep.mubr.msk.f32.mxu0 %vm31_vm0, %v26_v17 }
  0x1c   :  { %760 = vmatmul.mubr.msk.f32.gmra.mxu0 %vm31_vm0, %v27_v18 }
  0x1d   :  { %762 = vmatprep.mubr.msk.f32.mxu0 %vm31_vm0, %v28_v19 }
  0x20   :  { %763 = vmatmul.mubr.msk.f32.gmra.mxu0 %vm31_vm0, %v29_v20 }
  0xc4   :  { %v743_v27 = vpop.f32.mrf.mxu0 }
  0xc6   :  { %v146_v28 = vpop.f32.mrf.mxu0 }
  0xc7   :  { %670 = vmatmul.mubr.msk.f32.vlgmr.msra.gmra.mxu1 %vm234_vm2, %v146_v28  ;;  %771 = vmatprep.mubr.msk.f32.mxu0 %vm234_vm2, %v146_v28 }
  0xc8   :  { %v746_v29 = vpop.f32.mrf.mxu0  ;;  %772 = vmatmul.mubr.msk.f32.vlgmr.msra.gmra.mxu0 %vm234_vm2, %v743_v27  ;;  %363 = vmatprep.mubr.f32.mxu1 %v796_v26 }
  0xca   :  { %v156_v30 = vpop.f32.mrf.mxu0 }
  0xcb   :  { %671 = vmatmul.mubr.msk.f32.gmra.mxu1 %vm234_vm2, %v743_v27  ;;  %774 = vmatprep.mubr.msk.f32.mxu0 %vm234_vm2, %v156_v30 }
  0xcc   :  { %775 = vmatmul.mubr.msk.f32.gmra.mxu0 %vm234_vm2, %v746_v29  ;;  %369 = vmatprep.mubr.f32.mxu1 %v796_v26  ;;  %v749_v31 = vpop.f32.mrf.mxu0 }
  0xce   :  { %v166_v32 = vpop.f32.mrf.mxu0 }
  0xcf   :  { %672 = vmatmul.mubr.msk.f32.gmra.mxu1 %vm234_vm2, %v156_v30  ;;  %777 = vmatprep.mubr.msk.f32.mxu0 %vm234_vm2, %v166_v32 }
  0xd0   :  { %375 = vmatprep.mubr.f32.mxu1 %v796_v26  ;;  %778 = vmatmul.mubr.msk.f32.gmra.mxu0 %vm234_vm2, %v749_v31  ;;  %v752_v33 = vpop.f32.mrf.mxu0 }
  0xd2   :  { %v176_v34 = vpop.f32.mrf.mxu0 }
  0xd3   :  { %673 = vmatmul.mubr.msk.f32.gmra.mxu1 %vm234_vm2, %v746_v29  ;;  %780 = vmatprep.mubr.msk.f32.mxu0 %vm234_vm2, %v176_v34 }
  0xd4   :  { %381 = vmatprep.mubr.f32.mxu1 %v796_v26  ;;  %781 = vmatmul.mubr.msk.f32.gmra.mxu0 %vm234_vm2, %v752_v33  ;;  %v755_v35 = vpop.f32.mrf.mxu0 }
  0xd6   :  { %v186_v36 = vpop.f32.mrf.mxu0 }
  0xd7   :  { %674 = vmatmul.mubr.msk.f32.gmra.mxu1 %vm234_vm2, %v166_v32  ;;  %783 = vmatprep.mubr.msk.f32.mxu0 %vm234_vm2, %v186_v36 }
  0xd8   :  { %387 = vmatprep.mubr.f32.mxu1 %v796_v26  ;;  %784 = vmatmul.mubr.msk.f32.gmra.mxu0 %vm234_vm2, %v755_v35  ;;  %v758_v37 = vpop.f32.mrf.mxu0 }
  0xda   :  { %v196_v38 = vpop.f32.mrf.mxu0 }
  0xdb   :  { %675 = vmatmul.mubr.msk.f32.gmra.mxu1 %vm234_vm2, %v749_v31  ;;  %786 = vmatprep.mubr.msk.f32.mxu0 %vm234_vm2, %v196_v38 }
  0xdc   :  { %393 = vmatprep.mubr.f32.mxu1 %v796_v26  ;;  %787 = vmatmul.mubr.msk.f32.gmra.mxu0 %vm234_vm2, %v758_v37  ;;  %v761_v39 = vpop.f32.mrf.mxu0 }
  0xde   :  { %v206_v40 = vpop.f32.mrf.mxu0 }
  0xdf   :  { %676 = vmatmul.mubr.msk.f32.gmra.mxu1 %vm234_vm2, %v176_v34  ;;  %789 = vmatprep.mubr.msk.f32.mxu0 %vm234_vm2, %v206_v40 }
  0xe0   :  { %399 = vmatprep.mubr.f32.mxu1 %v796_v26  ;;  %790 = vmatmul.mubr.msk.f32.gmra.mxu0 %vm234_vm2, %v761_v39  ;;  %v764_v41 = vpop.f32.mrf.mxu0 }
  0xe2   :  { %v216_v42 = vpop.f32.mrf.mxu0 }
  0xe3   :  { %677 = vmatmul.mubr.msk.f32.gmra.mxu1 %vm234_vm2, %v752_v33  ;;  %792 = vmatprep.mubr.msk.f32.mxu0 %vm234_vm2, %v216_v42 }
  0xe4   :  { %405 = vmatprep.mubr.f32.mxu1 %v796_v26  ;;  %793 = vmatmul.mubr.msk.f32.gmra.mxu0 %vm234_vm2, %v764_v41 }
  0xe7   :  { %678 = vmatmul.mubr.msk.f32.gmra.mxu1 %vm234_vm2, %v186_v36 }
  0xe8   :  { %411 = vmatprep.mubr.f32.mxu1 %v796_v26 }
  0xeb   :  { %679 = vmatmul.mubr.msk.f32.gmra.mxu1 %vm234_vm2, %v755_v35 }
  0xec   :  { %417 = vmatprep.mubr.f32.mxu1 %v796_v26 }
  0xef   :  { %680 = vmatmul.mubr.msk.f32.gmra.mxu1 %vm234_vm2, %v196_v38 }
  0xf0   :  { %423 = vmatprep.mubr.f32.mxu1 %v796_v26 }
  0xf3   :  { %681 = vmatmul.mubr.msk.f32.gmra.mxu1 %vm234_vm2, %v758_v37 }
  0xf4   :  { %429 = vmatprep.mubr.f32.mxu1 %v796_v26 }
  0xf7   :  { %682 = vmatmul.mubr.msk.f32.gmra.mxu1 %vm234_vm2, %v206_v40 }
  0xf8   :  { %435 = vmatprep.mubr.f32.mxu1 %v796_v26 }
  0xfb   :  { %683 = vmatmul.mubr.msk.f32.gmra.mxu1 %vm234_vm2, %v761_v39 }
  0xfc   :  { %441 = vmatprep.mubr.f32.mxu1 %v796_v26 }
  0xff   :  { %684 = vmatmul.mubr.msk.f32.gmra.mxu1 %vm234_vm2, %v216_v42 }
 0x100   :  { %447 = vmatprep.mubr.f32.mxu1 %v796_v26 }
 0x103   :  { %685 = vmatmul.mubr.msk.f32.gmra.mxu1 %vm234_vm2, %v764_v41 }
 0x187   :  { %v359_v43 = vpop.f32.mrf.mxu1 }
 0x188   :  { %599 = vst [vmem:[%s1126_s3] sm:$0xff] %v359_v43  ;;  %v773_v44 = vpop.f32.mrf.mxu0 }
 0x189   :  { %605 = vst.msk [vmem:[%s1126_s3 + $0x28] sm:$0xff] %vm601_vm3, %v773_v44  ;;  %v361_v45 = vpop.f32.mrf.mxu1 }
 0x18a   :  { %600 = vst [vmem:[%s1126_s3 + $0x8] sm:$0xff] %v361_v45  ;;  %v520_v46 = vpop.f32.mrf.mxu0 }
 0x18b   :  { %602 = vst.msk [vmem:[%s1126_s3 + $0x10] sm:$0xff] %vm601_vm3, %v520_v46  ;;  %v365_v47 = vpop.f32.mrf.mxu1 }
 0x18c   :  { %603 = vst [vmem:[%s1126_s3 + $0x18] sm:$0xff] %v365_v47  ;;  %v776_v48 = vpop.f32.mrf.mxu0 }
 0x18d   :  { %611 = vst.msk [vmem:[%s1126_s3 + $0x58] sm:$0xff] %vm601_vm3, %v776_v48  ;;  %v367_v49 = vpop.f32.mrf.mxu1 }
 0x18e   :  { %604 = vst [vmem:[%s1126_s3 + $0x20] sm:$0xff] %v367_v49  ;;  %v530_v50 = vpop.f32.mrf.mxu0 }
 0x18f   :  { %608 = vst.msk [vmem:[%s1126_s3 + $0x40] sm:$0xff] %vm601_vm3, %v530_v50  ;;  %v371_v51 = vpop.f32.mrf.mxu1 }
 0x190   :  { %606 = vst [vmem:[%s1126_s3 + $0x30] sm:$0xff] %v371_v51  ;;  %v779_v52 = vpop.f32.mrf.mxu0 }
 0x191   :  { %v373_v53 = vpop.f32.mrf.mxu1  ;;  %617 = vst.msk [vmem:[%s1126_s3 + $0x88] sm:$0xff] %vm601_vm3, %v779_v52 }
 0x192   :  { %607 = vst [vmem:[%s1126_s3 + $0x38] sm:$0xff] %v373_v53  ;;  %v540_v54 = vpop.f32.mrf.mxu0 }
 0x193   :  { %v377_v55 = vpop.f32.mrf.mxu1  ;;  %614 = vst.msk [vmem:[%s1126_s3 + $0x70] sm:$0xff] %vm601_vm3, %v540_v54 }
 0x194   :  { %609 = vst [vmem:[%s1126_s3 + $0x48] sm:$0xff] %v377_v55  ;;  %v782_v56 = vpop.f32.mrf.mxu0 }
 0x195   :  { %v379_v57 = vpop.f32.mrf.mxu1  ;;  %623 = vst.msk [vmem:[%s1126_s3 + $0xb8] sm:$0xff] %vm601_vm3, %v782_v56 }
 0x196   :  { %610 = vst [vmem:[%s1126_s3 + $0x50] sm:$0xff] %v379_v57  ;;  %v550_v58 = vpop.f32.mrf.mxu0 }
 0x197   :  { %v383_v59 = vpop.f32.mrf.mxu1  ;;  %620 = vst.msk [vmem:[%s1126_s3 + $0xa0] sm:$0xff] %vm601_vm3, %v550_v58 }
 0x198   :  { %612 = vst [vmem:[%s1126_s3 + $0x60] sm:$0xff] %v383_v59  ;;  %v785_v60 = vpop.f32.mrf.mxu0 }
 0x199   :  { %v385_v61 = vpop.f32.mrf.mxu1  ;;  %629 = vst.msk [vmem:[%s1126_s3 + $0xe8] sm:$0xff] %vm601_vm3, %v785_v60 }
 0x19a   :  { %613 = vst [vmem:[%s1126_s3 + $0x68] sm:$0xff] %v385_v61  ;;  %v560_v62 = vpop.f32.mrf.mxu0 }
 0x19b   :  { %v389_v63 = vpop.f32.mrf.mxu1  ;;  %626 = vst.msk [vmem:[%s1126_s3 + $0xd0] sm:$0xff] %vm601_vm3, %v560_v62 }
 0x19c   :  { %615 = vst [vmem:[%s1126_s3 + $0x78] sm:$0xff] %v389_v63  ;;  %v788_v0 = vpop.f32.mrf.mxu0 }
 0x19d   :  { %v391_v1 = vpop.f32.mrf.mxu1  ;;  %635 = vst.msk [vmem:[%s1126_s3 + $0x118] sm:$0xff] %vm601_vm3, %v788_v0 }
 0x19e   :  { %616 = vst [vmem:[%s1126_s3 + $0x80] sm:$0xff] %v391_v1  ;;  %v570_v2 = vpop.f32.mrf.mxu0 }
 0x19f   :  { %v395_v3 = vpop.f32.mrf.mxu1  ;;  %632 = vst.msk [vmem:[%s1126_s3 + $0x100] sm:$0xff] %vm601_vm3, %v570_v2 }
 0x1a0   :  { %618 = vst [vmem:[%s1126_s3 + $0x90] sm:$0xff] %v395_v3  ;;  %v791_v4 = vpop.f32.mrf.mxu0 }
 0x1a1   :  { %v397_v5 = vpop.f32.mrf.mxu1  ;;  %641 = vst.msk [vmem:[%s1126_s3 + $0x148] sm:$0xff] %vm601_vm3, %v791_v4 }
 0x1a2   :  { %619 = vst [vmem:[%s1126_s3 + $0x98] sm:$0xff] %v397_v5  ;;  %v580_v6 = vpop.f32.mrf.mxu0 }
 0x1a3   :  { %v401_v7 = vpop.f32.mrf.mxu1  ;;  %638 = vst.msk [vmem:[%s1126_s3 + $0x130] sm:$0xff] %vm601_vm3, %v580_v6 }
 0x1a4   :  { %621 = vst [vmem:[%s1126_s3 + $0xa8] sm:$0xff] %v401_v7  ;;  %v794_v8 = vpop.f32.mrf.mxu0 }
 0x1a5   :  { %v403_v9 = vpop.f32.mrf.mxu1  ;;  %647 = vst.msk [vmem:[%s1126_s3 + $0x178] sm:$0xff] %vm601_vm3, %v794_v8 }
 0x1a6   :  { %622 = vst [vmem:[%s1126_s3 + $0xb0] sm:$0xff] %v403_v9  ;;  %v590_v10 = vpop.f32.mrf.mxu0 }
 0x1a7   :  { %v407_v11 = vpop.f32.mrf.mxu1  ;;  %644 = vst.msk [vmem:[%s1126_s3 + $0x160] sm:$0xff] %vm601_vm3, %v590_v10 }
 0x1a8   :  { %624 = vst [vmem:[%s1126_s3 + $0xc0] sm:$0xff] %v407_v11 }
 0x1a9   :  { %v409_v12 = vpop.f32.mrf.mxu1 }
 0x1aa   :  { %625 = vst [vmem:[%s1126_s3 + $0xc8] sm:$0xff] %v409_v12 }
 0x1ab   :  { %v413_v13 = vpop.f32.mrf.mxu1 }
 0x1ac   :  { %627 = vst [vmem:[%s1126_s3 + $0xd8] sm:$0xff] %v413_v13 }
 0x1ad   :  { %v415_v14 = vpop.f32.mrf.mxu1 }
 0x1ae   :  { %628 = vst [vmem:[%s1126_s3 + $0xe0] sm:$0xff] %v415_v14 }
 0x1af   :  { %v419_v15 = vpop.f32.mrf.mxu1 }
 0x1b0   :  { %630 = vst [vmem:[%s1126_s3 + $0xf0] sm:$0xff] %v419_v15 }
 0x1b1   :  { %v421_v16 = vpop.f32.mrf.mxu1 }
 0x1b2   :  { %631 = vst [vmem:[%s1126_s3 + $0xf8] sm:$0xff] %v421_v16 }
 0x1b3   :  { %v425_v17 = vpop.f32.mrf.mxu1 }
 0x1b4   :  { %633 = vst [vmem:[%s1126_s3 + $0x108] sm:$0xff] %v425_v17 }
 0x1b5   :  { %v427_v18 = vpop.f32.mrf.mxu1 }
 0x1b6   :  { %634 = vst [vmem:[%s1126_s3 + $0x110] sm:$0xff] %v427_v18 }
 0x1b7   :  { %v431_v19 = vpop.f32.mrf.mxu1 }
 0x1b8   :  { %636 = vst [vmem:[%s1126_s3 + $0x120] sm:$0xff] %v431_v19 }
 0x1b9   :  { %v433_v20 = vpop.f32.mrf.mxu1 }
 0x1ba   :  { %637 = vst [vmem:[%s1126_s3 + $0x128] sm:$0xff] %v433_v20 }
 0x1bb   :  { %v437_v21 = vpop.f32.mrf.mxu1 }
 0x1bc   :  { %639 = vst [vmem:[%s1126_s3 + $0x138] sm:$0xff] %v437_v21 }
 0x1bd   :  { %v439_v22 = vpop.f32.mrf.mxu1 }
 0x1be   :  { %640 = vst [vmem:[%s1126_s3 + $0x140] sm:$0xff] %v439_v22 }
 0x1bf   :  { %v443_v23 = vpop.f32.mrf.mxu1 }
 0x1c0   :  { %642 = vst [vmem:[%s1126_s3 + $0x150] sm:$0xff] %v443_v23 }
 0x1c1   :  { %v445_v24 = vpop.f32.mrf.mxu1 }
 0x1c2   :  { %643 = vst [vmem:[%s1126_s3 + $0x158] sm:$0xff] %v445_v24 }
 0x1c3   :  { %v449_v25 = vpop.f32.mrf.mxu1 }
 0x1c4   :  { %645 = vst [vmem:[%s1126_s3 + $0x168] sm:$0xff] %v449_v25 }
 0x1c5   :  { %v451_v26 = vpop.f32.mrf.mxu1 }
 0x1c6   :  { %646 = vst [vmem:[%s1126_s3 + $0x170] sm:$0xff] %v451_v26 }

// kernel: _lambda_.28
= control target key start
LH: loop header
LB: loop body
LE: loop exit
PB: predicated region body
PF: predicated region fallthrough
CT: control target
= control target key end

     0   :  { %vm2671_vm0 = vcmask 39936   ;;  %s4648_s1 = inlined_call_operand.vmem [shape: bf16[2304,256], index: 1, kind: input, shape index: {}]   ;;  %s4649_s0 = inlined_call_operand.vmem [shape: bf16[32,2304], index: 0, kind: input, shape index: {}]   ;;  %s4650_s4 = inlined_call_operand.vmem [shape: bf16[256,5], index: 4, kind: input, shape index: {}]   ;;  %s4651_s2 = inlined_call_operand.vmem [shape: f32[1,256], index: 2, kind: input, shape index: {}]   ;;  %s4652_s3 = inlined_call_operand.vmem [shape: f32[1,256], index: 3, kind: input, shape index: {}]   ;;  %s4653_s5 = inlined_call_operand.vmem [shape: f32[32,5], index: 5, kind: output, shape index: {}]  }
   0x1   :  { %v3048_v0 = vld [vmem:[%s4648_s1 + $0x74] ss:$8 sps:$4 sm:$0xff]   ;;  %v3052_v2 = vld [vmem:[%s4648_s1 + $0x70] ss:$8 sps:$4 sm:$0xff]   ;;  %v3054_v4 = vld [vmem:[%s4648_s1 + $0x64] ss:$8 sps:$4 sm:$0xff]  }
   0x2   :  { %v3050_v1 = vld [vmem:[%s4648_s1 + $0x174] ss:$8 sps:$4 sm:$0xff]   ;;  %1965 = vmatprep.subr.bf16.mxu0 %v3048_v0  ;;  %v3053_v3 = vld [vmem:[%s4648_s1 + $0x170] ss:$8 sps:$4 sm:$0xff]   ;;  %v3056_v5 = vld [vmem:[%s4648_s1 + $0x164] ss:$8 sps:$4 sm:$0xff]  }
   0x3   :  { %2018 = vmatprep.subr.bf16.mxu1 %v3050_v1  ;;  %1966 = vmatpush1.bf16.msra.mxu0 %v3052_v2  ;;  %v3058_v6 = vld [vmem:[%s4648_s1 + $0x60] ss:$8 sps:$4 sm:$0xff]   ;;  %v3060_v8 = vld [vmem:[%s4648_s1 + $0x54] ss:$8 sps:$4 sm:$0xff]   ;;  %v3064_v10 = vld [vmem:[%s4648_s1 + $0x50] ss:$8 sps:$4 sm:$0xff]  }
   0x4   :  { %2019 = vmatpush1.bf16.msra.mxu1 %v3053_v3  ;;  %1967 = vmatprep.subr.bf16.mxu0 %v3054_v4  ;;  %v3059_v7 = vld [vmem:[%s4648_s1 + $0x160] ss:$8 sps:$4 sm:$0xff]   ;;  %v3062_v9 = vld [vmem:[%s4648_s1 + $0x154] ss:$8 sps:$4 sm:$0xff]   ;;  %v3065_v11 = vld [vmem:[%s4648_s1 + $0x150] ss:$8 sps:$4 sm:$0xff]  }
   0x5   :  { %2020 = vmatprep.subr.bf16.mxu1 %v3056_v5  ;;  %v3066_v12 = vld [vmem:[%s4648_s1 + $0x44] ss:$8 sps:$4 sm:$0xff]   ;;  %v3070_v14 = vld [vmem:[%s4648_s1 + $0x40] ss:$8 sps:$4 sm:$0xff]   ;;  %v3072_v16 = vld [vmem:[%s4648_s1 + $0x34] ss:$8 sps:$4 sm:$0xff]  }
   0x6   :  { %v3068_v13 = vld [vmem:[%s4648_s1 + $0x144] ss:$8 sps:$4 sm:$0xff]   ;;  %v3071_v15 = vld [vmem:[%s4648_s1 + $0x140] ss:$8 sps:$4 sm:$0xff]   ;;  %v3074_v17 = vld [vmem:[%s4648_s1 + $0x134] ss:$8 sps:$4 sm:$0xff]  }
   0x7   :  { %1968 = vmatpush1.bf16.msra.mxu0 %v3058_v6  ;;  %v3076_v18 = vld [vmem:[%s4648_s1 + $0x30] ss:$8 sps:$4 sm:$0xff]   ;;  %v3078_v20 = vld [vmem:[%s4648_s1 + $0x24] ss:$8 sps:$4 sm:$0xff]   ;;  %v3082_v22 = vld [vmem:[%s4648_s1 + $0x20] ss:$8 sps:$4 sm:$0xff]  }
   0x8   :  { %2021 = vmatpush1.bf16.msra.mxu1 %v3059_v7  ;;  %1969 = vmatprep.subr.bf16.mxu0 %v3060_v8  ;;  %v3077_v19 = vld [vmem:[%s4648_s1 + $0x130] ss:$8 sps:$4 sm:$0xff]   ;;  %v3080_v21 = vld [vmem:[%s4648_s1 + $0x124] ss:$8 sps:$4 sm:$0xff]   ;;  %v3083_v23 = vld [vmem:[%s4648_s1 + $0x120] ss:$8 sps:$4 sm:$0xff]  }
   0x9   :  { %2022 = vmatprep.subr.bf16.mxu1 %v3062_v9  ;;  %v3084_v24 = vld [vmem:[%s4648_s1 + $0x14] ss:$8 sps:$4 sm:$0xff]   ;;  %v3088_v26 = vld [vmem:[%s4648_s1 + $0x10] ss:$8 sps:$4 sm:$0xff]   ;;  %v3090_v28 = vld [vmem:[%s4648_s1 + $0x4] ss:$8 sps:$4 sm:$0xff]  }
   0xa   :  { %v3086_v25 = vld [vmem:[%s4648_s1 + $0x114] ss:$8 sps:$4 sm:$0xff]   ;;  %v3089_v27 = vld [vmem:[%s4648_s1 + $0x110] ss:$8 sps:$4 sm:$0xff]   ;;  %v3092_v29 = vld [vmem:[%s4648_s1 + $0x104] ss:$8 sps:$4 sm:$0xff]  }
   0xb   :  { %1970 = vmatpush1.bf16.msra.mxu0 %v3064_v10  ;;  %v3094_v30 = vld [vmem:[%s4648_s1] ss:$8 sps:$4 sm:$0xff]   ;;  %v3096_v32 = vld [vmem:[%s4648_s1 + $0xf4] ss:$8 sps:$4 sm:$0xff]   ;;  %v3100_v34 = vld [vmem:[%s4648_s1 + $0xf0] ss:$8 sps:$4 sm:$0xff]  }
   0xc   :  { %2023 = vmatpush1.bf16.msra.mxu1 %v3065_v11  ;;  %1971 = vmatprep.subr.bf16.mxu0 %v3066_v12  ;;  %v3095_v31 = vld [vmem:[%s4648_s1 + $0x100] ss:$8 sps:$4 sm:$0xff]   ;;  %v3098_v33 = vld [vmem:[%s4648_s1 + $0x1f4] ss:$8 sps:$4 sm:$0xff]   ;;  %v3101_v35 = vld [vmem:[%s4648_s1 + $0x1f0] ss:$8 sps:$4 sm:$0xff]  }
   0xd   :  { %2024 = vmatprep.subr.bf16.mxu1 %v3068_v13  ;;  %v3102_v36 = vld [vmem:[%s4648_s1 + $0xe4] ss:$8 sps:$4 sm:$0xff]   ;;  %v3106_v38 = vld [vmem:[%s4648_s1 + $0xe0] ss:$8 sps:$4 sm:$0xff]   ;;  %v3108_v40 = vld [vmem:[%s4648_s1 + $0xd4] ss:$8 sps:$4 sm:$0xff]  }
   0xe   :  { %v3104_v37 = vld [vmem:[%s4648_s1 + $0x1e4] ss:$8 sps:$4 sm:$0xff]   ;;  %v3107_v39 = vld [vmem:[%s4648_s1 + $0x1e0] ss:$8 sps:$4 sm:$0xff]   ;;  %v3110_v41 = vld [vmem:[%s4648_s1 + $0x1d4] ss:$8 sps:$4 sm:$0xff]  }
   0xf   :  { %1972 = vmatpush1.bf16.msra.mxu0 %v3070_v14  ;;  %v3112_v42 = vld [vmem:[%s4648_s1 + $0xd0] ss:$8 sps:$4 sm:$0xff]   ;;  %v3114_v44 = vld [vmem:[%s4648_s1 + $0xc4] ss:$8 sps:$4 sm:$0xff]   ;;  %v3118_v46 = vld [vmem:[%s4648_s1 + $0xc0] ss:$8 sps:$4 sm:$0xff]  }
  0x10   :  { %2025 = vmatpush1.bf16.msra.mxu1 %v3071_v15  ;;  %1973 = vmatprep.subr.bf16.mxu0 %v3072_v16  ;;  %v3113_v43 = vld [vmem:[%s4648_s1 + $0x1d0] ss:$8 sps:$4 sm:$0xff]   ;;  %v3116_v45 = vld [vmem:[%s4648_s1 + $0x1c4] ss:$8 sps:$4 sm:$0xff]   ;;  %v3119_v47 = vld [vmem:[%s4648_s1 + $0x1c0] ss:$8 sps:$4 sm:$0xff]  }
  0x11   :  { %2026 = vmatprep.subr.bf16.mxu1 %v3074_v17  ;;  %v3120_v48 = vld [vmem:[%s4648_s1 + $0xb4] ss:$8 sps:$4 sm:$0xff]   ;;  %v3146_v49 = vld [vmem:[%s4649_s0 + $0x4] ss:$72 sps:$4 sm:$0xff]   ;;  %v3124_v52 = vld [vmem:[%s4648_s1 + $0xb0] ss:$8 sps:$4 sm:$0xff]  }
  0x12   :  { %v3122_v50 = vld [vmem:[%s4648_s1 + $0x1b4] ss:$8 sps:$4 sm:$0xff]   ;;  %1997 = vmatprep.mubr.bf16.mxu0 %v3146_v49  ;;  %v3125_v53 = vld [vmem:[%s4648_s1 + $0x1b0] ss:$8 sps:$4 sm:$0xff]   ;;  %v3126_v54 = vld [vmem:[%s4648_s1 + $0xa4] ss:$8 sps:$4 sm:$0xff]  }
  0x13   :  { %1974 = vmatpush1.bf16.msra.mxu0 %v3076_v18  ;;  %v3149_v51 = vld [vmem:[%s4649_s0 + $0xc] ss:$72 sps:$4 sm:$0xff]   ;;  %v3130_v56 = vld [vmem:[%s4648_s1 + $0xa0] ss:$8 sps:$4 sm:$0xff]   ;;  %v3136_v60 = vld [vmem:[%s4648_s1 + $0x90] ss:$8 sps:$4 sm:$0xff]  }
  0x14   :  { %2027 = vmatpush1.bf16.msra.mxu1 %v3077_v19  ;;  %1975 = vmatprep.subr.bf16.mxu0 %v3078_v20  ;;  %v3128_v55 = vld [vmem:[%s4648_s1 + $0x1a4] ss:$8 sps:$4 sm:$0xff]   ;;  %v3131_v57 = vld [vmem:[%s4648_s1 + $0x1a0] ss:$8 sps:$4 sm:$0xff]   ;;  %v3132_v58 = vld [vmem:[%s4648_s1 + $0x94] ss:$8 sps:$4 sm:$0xff]  }
  0x15   :  { %2028 = vmatprep.subr.bf16.mxu1 %v3080_v21  ;;  %2050 = vmatprep.mubr.bf16.mxu1 %v3149_v51  ;;  %v3134_v59 = vld [vmem:[%s4648_s1 + $0x194] ss:$8 sps:$4 sm:$0xff]   ;;  %v3137_v61 = vld [vmem:[%s4648_s1 + $0x190] ss:$8 sps:$4 sm:$0xff]   ;;  %v3138_v62 = vld [vmem:[%s4648_s1 + $0x84] ss:$8 sps:$4 sm:$0xff]  }
  0x16   :  { %v3140_v63 = vld [vmem:[%s4648_s1 + $0x184] ss:$8 sps:$4 sm:$0xff]   ;;  %v3142_v0 = vld [vmem:[%s4648_s1 + $0x80] ss:$8 sps:$4 sm:$0xff]   ;;  %v3152_v2 = vld [vmem:[%s4648_s1 + $0x274] ss:$8 sps:$4 sm:$0xff]  }
  0x17   :  { %1976 = vmatpush1.bf16.msra.mxu0 %v3082_v22  ;;  %v3143_v1 = vld [vmem:[%s4648_s1 + $0x180] ss:$8 sps:$4 sm:$0xff]   ;;  %v3155_v3 = vld [vmem:[%s4648_s1 + $0x374] ss:$8 sps:$4 sm:$0xff]   ;;  %v3150_v6 = vld [vmem:[%s4648_s1 + $0x270] ss:$8 sps:$4 sm:$0xff]  }
  0x18   :  { %2029 = vmatpush1.bf16.msra.mxu1 %v3083_v23  ;;  %1977 = vmatprep.subr.bf16.mxu0 %v3084_v24  ;;  %v3144_v4 = vld [vmem:[%s4649_s0] ss:$72 sps:$4 sm:$0xff]   ;;  %v3153_v7 = vld [vmem:[%s4648_s1 + $0x370] ss:$8 sps:$4 sm:$0xff]   ;;  %v3158_v8 = vld [vmem:[%s4648_s1 + $0x264] ss:$8 sps:$4 sm:$0xff]  }
  0x19   :  { %2030 = vmatprep.subr.bf16.mxu1 %v3086_v25  ;;  %v3147_v5 = vld [vmem:[%s4649_s0 + $0x8] ss:$72 sps:$4 sm:$0xff]   ;;  %v3161_v9 = vld [vmem:[%s4648_s1 + $0x364] ss:$8 sps:$4 sm:$0xff]   ;;  %v3164_v12 = vld [vmem:[%s4648_s1 + $0x254] ss:$8 sps:$4 sm:$0xff]  }
  0x1a   :  { %v3156_v10 = vld [vmem:[%s4648_s1 + $0x260] ss:$8 sps:$4 sm:$0xff]   ;;  %v3167_v13 = vld [vmem:[%s4648_s1 + $0x354] ss:$8 sps:$4 sm:$0xff]   ;;  %v3162_v14 = vld [vmem:[%s4648_s1 + $0x250] ss:$8 sps:$4 sm:$0xff]  }
  0x1b   :  { %1978 = vmatpush1.bf16.msra.mxu0 %v3088_v26  ;;  %v3159_v11 = vld [vmem:[%s4648_s1 + $0x360] ss:$8 sps:$4 sm:$0xff]   ;;  %v3165_v15 = vld [vmem:[%s4648_s1 + $0x350] ss:$8 sps:$4 sm:$0xff]   ;;  %v3170_v16 = vld [vmem:[%s4648_s1 + $0x244] ss:$8 sps:$4 sm:$0xff]  }
  0x1c   :  { %2031 = vmatpush1.bf16.msra.mxu1 %v3089_v27  ;;  %1979 = vmatprep.subr.bf16.mxu0 %v3090_v28  ;;  %v3173_v17 = vld [vmem:[%s4648_s1 + $0x344] ss:$8 sps:$4 sm:$0xff]   ;;  %v3168_v18 = vld [vmem:[%s4648_s1 + $0x240] ss:$8 sps:$4 sm:$0xff]   ;;  %v3176_v20 = vld [vmem:[%s4648_s1 + $0x234] ss:$8 sps:$4 sm:$0xff]  }
  0x1d   :  { %2032 = vmatprep.subr.bf16.mxu1 %v3092_v29  ;;  %v3171_v19 = vld [vmem:[%s4648_s1 + $0x340] ss:$8 sps:$4 sm:$0xff]   ;;  %v3179_v21 = vld [vmem:[%s4648_s1 + $0x334] ss:$8 sps:$4 sm:$0xff]   ;;  %v3174_v22 = vld [vmem:[%s4648_s1 + $0x230] ss:$8 sps:$4 sm:$0xff]  }
  0x1e   :  { %v3177_v23 = vld [vmem:[%s4648_s1 + $0x330] ss:$8 sps:$4 sm:$0xff]   ;;  %v3225_v24 = vld [vmem:[%s4649_s0 + $0x94] ss:$72 sps:$4 sm:$0xff]   ;;  %v3182_v26 = vld [vmem:[%s4648_s1 + $0x224] ss:$8 sps:$4 sm:$0xff]  }
  0x1f   :  { %1980 = vmatpush1.bf16.msra.mxu0 %v3094_v30  ;;  %v3227_v25 = vld [vmem:[%s4649_s0 + $0x9c] ss:$72 sps:$4 sm:$0xff]   ;;  %v3232_v28 = vld [vmem:[%s4649_s0 + $0x90] ss:$72 sps:$4 sm:$0xff]   ;;  %v3180_v30 = vld [vmem:[%s4648_s1 + $0x220] ss:$8 sps:$4 sm:$0xff]  }
  0x20   :  { %2033 = vmatpush1.bf16.msra.mxu1 %v3095_v31  ;;  %1981 = vmatprep.subr.bf16.mxu0 %v3096_v32  ;;  %v3185_v27 = vld [vmem:[%s4648_s1 + $0x324] ss:$8 sps:$4 sm:$0xff]   ;;  %v3233_v29 = vld [vmem:[%s4649_s0 + $0x98] ss:$72 sps:$4 sm:$0xff]   ;;  %v3188_v32 = vld [vmem:[%s4648_s1 + $0x214] ss:$8 sps:$4 sm:$0xff]  }
  0x21   :  { %2034 = vmatprep.subr.bf16.mxu1 %v3098_v33  ;;  %v3183_v31 = vld [vmem:[%s4648_s1 + $0x320] ss:$8 sps:$4 sm:$0xff]   ;;  %v3191_v33 = vld [vmem:[%s4648_s1 + $0x314] ss:$8 sps:$4 sm:$0xff]  }
  0x22   :  { %v3207_v49 = vld [vmem:[%s4648_s1 + $0x3e0] ss:$8 sps:$4 sm:$0xff]   ;;  %v3215_v51 = vld [vmem:[%s4648_s1 + $0x3d4] ss:$8 sps:$4 sm:$0xff]  }
  0x23   :  { %1982 = vmatpush2.bf16.msra.mxu0 %v3100_v34  ;;  %v3186_v34 = vld [vmem:[%s4648_s1 + $0x210] ss:$8 sps:$4 sm:$0xff]  }
  0x24   :  { %2035 = vmatpush2.bf16.msra.mxu1 %v3101_v35  ;;  %1983 = vmatprep.subr.bf16.mxu0 %v3102_v36  ;;  %v3189_v35 = vld [vmem:[%s4648_s1 + $0x310] ss:$8 sps:$4 sm:$0xff]   ;;  %v3194_v36 = vld [vmem:[%s4648_s1 + $0x204] ss:$8 sps:$4 sm:$0xff]  }
  0x25   :  { %2036 = vmatprep.subr.bf16.mxu1 %v3104_v37  ;;  %v3197_v37 = vld [vmem:[%s4648_s1 + $0x304] ss:$8 sps:$4 sm:$0xff]  }
  0x27   :  { %1984 = vmatpush2.bf16.msra.mxu0 %v3106_v38  ;;  %v3192_v38 = vld [vmem:[%s4648_s1 + $0x200] ss:$8 sps:$4 sm:$0xff]  }
  0x28   :  { %2037 = vmatpush2.bf16.msra.mxu1 %v3107_v39  ;;  %1985 = vmatprep.subr.bf16.mxu0 %v3108_v40  ;;  %v3195_v39 = vld [vmem:[%s4648_s1 + $0x300] ss:$8 sps:$4 sm:$0xff]   ;;  %v3254_v40 = vld [vmem:[%s4649_s0 + $0x14] ss:$72 sps:$4 sm:$0xff]  }
  0x29   :  { %2038 = vmatprep.subr.bf16.mxu1 %v3110_v41  ;;  %v3200_v41 = vld [vmem:[%s4648_s1 + $0x2f4] ss:$8 sps:$4 sm:$0xff]  }
  0x2b   :  { %1986 = vmatpush2.bf16.msra.mxu0 %v3112_v42  ;;  %v3203_v42 = vld [vmem:[%s4648_s1 + $0x3f4] ss:$8 sps:$4 sm:$0xff]  }
  0x2c   :  { %2039 = vmatpush2.bf16.msra.mxu1 %v3113_v43  ;;  %1987 = vmatprep.subr.bf16.mxu0 %v3114_v44  ;;  %v3260_v43 = vld [vmem:[%s4649_s0 + $0x1c] ss:$72 sps:$4 sm:$0xff]   ;;  %v3198_v44 = vld [vmem:[%s4648_s1 + $0x2f0] ss:$8 sps:$4 sm:$0xff]  }
  0x2d   :  { %2040 = vmatprep.subr.bf16.mxu1 %v3116_v45  ;;  %v3201_v45 = vld [vmem:[%s4648_s1 + $0x3f0] ss:$8 sps:$4 sm:$0xff]  }
  0x2f   :  { %1988 = vmatpush2.bf16.msra.mxu0 %v3118_v46  ;;  %v3206_v46 = vld [vmem:[%s4648_s1 + $0x2e4] ss:$8 sps:$4 sm:$0xff]  }
  0x30   :  { %2041 = vmatpush2.bf16.msra.mxu1 %v3119_v47  ;;  %1989 = vmatprep.subr.bf16.mxu0 %v3120_v48  ;;  %v3209_v47 = vld [vmem:[%s4648_s1 + $0x3e4] ss:$8 sps:$4 sm:$0xff]   ;;  %v3204_v48 = vld [vmem:[%s4648_s1 + $0x2e0] ss:$8 sps:$4 sm:$0xff]  }
  0x31   :  { %2042 = vmatprep.subr.bf16.mxu1 %v3122_v50  ;;  %v3212_v50 = vld [vmem:[%s4648_s1 + $0x2d4] ss:$8 sps:$4 sm:$0xff]  }
  0x33   :  { %1990 = vmatpush2.bf16.msra.mxu0 %v3124_v52  ;;  %v3210_v52 = vld [vmem:[%s4648_s1 + $0x2d0] ss:$8 sps:$4 sm:$0xff]  }
  0x34   :  { %2043 = vmatpush2.bf16.msra.mxu1 %v3125_v53  ;;  %1991 = vmatprep.subr.bf16.mxu0 %v3126_v54  ;;  %v3213_v53 = vld [vmem:[%s4648_s1 + $0x3d0] ss:$8 sps:$4 sm:$0xff]   ;;  %v3218_v54 = vld [vmem:[%s4648_s1 + $0x2c4] ss:$8 sps:$4 sm:$0xff]  }
  0x35   :  { %2044 = vmatprep.subr.bf16.mxu1 %v3128_v55  ;;  %v3221_v55 = vld [vmem:[%s4648_s1 + $0x3c4] ss:$8 sps:$4 sm:$0xff]  }
  0x37   :  { %1992 = vmatpush2.bf16.msra.mxu0 %v3130_v56  ;;  %v3216_v56 = vld [vmem:[%s4648_s1 + $0x2c0] ss:$8 sps:$4 sm:$0xff]  }
  0x38   :  { %2045 = vmatpush2.bf16.msra.mxu1 %v3131_v57  ;;  %1993 = vmatprep.subr.bf16.mxu0 %v3132_v58  ;;  %v3219_v57 = vld [vmem:[%s4648_s1 + $0x3c0] ss:$8 sps:$4 sm:$0xff]   ;;  %v3224_v58 = vld [vmem:[%s4648_s1 + $0x2b4] ss:$8 sps:$4 sm:$0xff]  }
  0x39   :  { %2046 = vmatprep.subr.bf16.mxu1 %v3134_v59  ;;  %v3231_v59 = vld [vmem:[%s4648_s1 + $0x3b4] ss:$8 sps:$4 sm:$0xff]  }
  0x3b   :  { %1994 = vmatpush2.bf16.msra.mxu0 %v3136_v60  ;;  %v3222_v60 = vld [vmem:[%s4648_s1 + $0x2b0] ss:$8 sps:$4 sm:$0xff]  }
  0x3c   :  { %2047 = vmatpush2.bf16.msra.mxu1 %v3137_v61  ;;  %1995 = vmatprep.subr.bf16.mxu0 %v3138_v62  ;;  %v3229_v61 = vld [vmem:[%s4648_s1 + $0x3b0] ss:$8 sps:$4 sm:$0xff]   ;;  %v3236_v62 = vld [vmem:[%s4648_s1 + $0x2a4] ss:$8 sps:$4 sm:$0xff]  }
  0x3d   :  { %2048 = vmatprep.subr.bf16.mxu1 %v3140_v63  ;;  %v3239_v63 = vld [vmem:[%s4648_s1 + $0x3a4] ss:$8 sps:$4 sm:$0xff]  }
  0x3f   :  { %1996 = vmatpush2.bf16.msra.mxu0 %v3142_v0  ;;  %v3234_v0 = vld [vmem:[%s4648_s1 + $0x2a0] ss:$8 sps:$4 sm:$0xff]  }
  0x40   :  { %2049 = vmatpush2.bf16.msra.mxu1 %v3143_v1  ;;  %2071 = vmatprep.subr.bf16.mxu0 %v3152_v2  ;;  %v3237_v1 = vld [vmem:[%s4648_s1 + $0x3a0] ss:$8 sps:$4 sm:$0xff]   ;;  %v3242_v2 = vld [vmem:[%s4648_s1 + $0x294] ss:$8 sps:$4 sm:$0xff]  }
  0x41   :  { %2124 = vmatprep.subr.bf16.mxu1 %v3155_v3  ;;  %v3245_v3 = vld [vmem:[%s4648_s1 + $0x394] ss:$8 sps:$4 sm:$0xff]  }
  0x42   :  { %1998 = vmatmul.mubr.bf16.vlgmr.msra.gmra.mxu0 %v3144_v4  ;;  %v3240_v4 = vld [vmem:[%s4648_s1 + $0x290] ss:$8 sps:$4 sm:$0xff]  }
  0x43   :  { %2051 = vmatmul.mubr.bf16.vlgmr.msra.gmra.mxu1 %v3147_v5  ;;  %2072 = vmatpush1.bf16.msra.mxu0 %v3150_v6  ;;  %v3243_v5 = vld [vmem:[%s4648_s1 + $0x390] ss:$8 sps:$4 sm:$0xff]   ;;  %v3248_v6 = vld [vmem:[%s4648_s1 + $0x284] ss:$8 sps:$4 sm:$0xff]  }
  0x44   :  { %2125 = vmatpush1.bf16.msra.mxu1 %v3153_v7  ;;  %2073 = vmatprep.subr.bf16.mxu0 %v3158_v8  ;;  %v3251_v7 = vld [vmem:[%s4648_s1 + $0x384] ss:$8 sps:$4 sm:$0xff]   ;;  %v3246_v8 = vld [vmem:[%s4648_s1 + $0x280] ss:$8 sps:$4 sm:$0xff]  }
  0x45   :  { %2126 = vmatprep.subr.bf16.mxu1 %v3161_v9  ;;  %2007 = vmatprep.mubr.bf16.mxu0 %v3225_v24  ;;  %v3249_v9 = vld [vmem:[%s4648_s1 + $0x380] ss:$8 sps:$4 sm:$0xff]  }
  0x46   :  { %2060 = vmatprep.mubr.bf16.mxu1 %v3227_v25  ;;  %v3272_v24 = vld [vmem:[%s4649_s0 + $0xa0] ss:$72 sps:$4 sm:$0xff]   ;;  %v3273_v25 = vld [vmem:[%s4648_s1 + $0x450] ss:$8 sps:$4 sm:$0xff]  }
  0x47   :  { %2074 = vmatpush1.bf16.msra.mxu0 %v3156_v10  ;;  %v3257_v10 = vld [vmem:[%s4648_s1 + $0x474] ss:$8 sps:$4 sm:$0xff]  }
  0x48   :  { %2127 = vmatpush1.bf16.msra.mxu1 %v3159_v11  ;;  %2075 = vmatprep.subr.bf16.mxu0 %v3164_v12  ;;  %v3263_v11 = vld [vmem:[%s4648_s1 + $0x574] ss:$8 sps:$4 sm:$0xff]   ;;  %v3252_v12 = vld [vmem:[%s4649_s0 + $0x10] ss:$72 sps:$4 sm:$0xff]  }
  0x49   :  { %2128 = vmatprep.subr.bf16.mxu1 %v3167_v13  ;;  %v3255_v13 = vld [vmem:[%s4648_s1 + $0x470] ss:$8 sps:$4 sm:$0xff]  }
  0x4a   :  { %2008 = vmatmul.mubr.bf16.gmra.mxu0 %v3232_v28  ;;  %v3284_v28 = vld [vmem:[%s4648_s1 + $0x444] ss:$8 sps:$4 sm:$0xff]  }
  0x4b   :  { %2076 = vmatpush1.bf16.msra.mxu0 %v3162_v14  ;;  %2061 = vmatmul.mubr.bf16.gmra.mxu1 %v3233_v29  ;;  %v3258_v14 = vld [vmem:[%s4649_s0 + $0x18] ss:$72 sps:$4 sm:$0xff]   ;;  %v3287_v29 = vld [vmem:[%s4648_s1 + $0x544] ss:$8 sps:$4 sm:$0xff]  }
  0x4c   :  { %2129 = vmatpush1.bf16.msra.mxu1 %v3165_v15  ;;  %2077 = vmatprep.subr.bf16.mxu0 %v3170_v16  ;;  %v3261_v15 = vld [vmem:[%s4648_s1 + $0x570] ss:$8 sps:$4 sm:$0xff]   ;;  %v3266_v16 = vld [vmem:[%s4648_s1 + $0x464] ss:$8 sps:$4 sm:$0xff]  }
  0x4d   :  { %2130 = vmatprep.subr.bf16.mxu1 %v3173_v17  ;;  %2103 = vmatprep.mubr.bf16.mxu0 %v3254_v40  ;;  %v3269_v17 = vld [vmem:[%s4648_s1 + $0x564] ss:$8 sps:$4 sm:$0xff]   ;;  %v3294_v40 = vld [vmem:[%s4648_s1 + $0x420] ss:$8 sps:$4 sm:$0xff]  }
  0x4e   :  { %2156 = vmatprep.mubr.bf16.mxu1 %v3260_v43  ;;  %v3305_v43 = vld [vmem:[%s4648_s1 + $0x514] ss:$8 sps:$4 sm:$0xff]  }
  0x4f   :  { %2078 = vmatpush1.bf16.msra.mxu0 %v3168_v18  ;;  %v3270_v18 = vld [vmem:[%s4649_s0 + $0xa4] ss:$72 sps:$4 sm:$0xff]  }
  0x50   :  { %2131 = vmatpush1.bf16.msra.mxu1 %v3171_v19  ;;  %2079 = vmatprep.subr.bf16.mxu0 %v3176_v20  ;;  %v3276_v19 = vld [vmem:[%s4649_s0 + $0xac] ss:$72 sps:$4 sm:$0xff]   ;;  %v3264_v20 = vld [vmem:[%s4648_s1 + $0x460] ss:$8 sps:$4 sm:$0xff]  }
  0x51   :  { %2132 = vmatprep.subr.bf16.mxu1 %v3179_v21  ;;  %v3267_v21 = vld [vmem:[%s4648_s1 + $0x560] ss:$8 sps:$4 sm:$0xff]  }
  0x53   :  { %2080 = vmatpush1.bf16.msra.mxu0 %v3174_v22  ;;  %v3275_v22 = vld [vmem:[%s4648_s1 + $0x454] ss:$8 sps:$4 sm:$0xff]  }
  0x54   :  { %2133 = vmatpush1.bf16.msra.mxu1 %v3177_v23  ;;  %2081 = vmatprep.subr.bf16.mxu0 %v3182_v26  ;;  %v3281_v23 = vld [vmem:[%s4648_s1 + $0x554] ss:$8 sps:$4 sm:$0xff]   ;;  %v3278_v26 = vld [vmem:[%s4649_s0 + $0xa8] ss:$72 sps:$4 sm:$0xff]  }
  0x55   :  { %2134 = vmatprep.subr.bf16.mxu1 %v3185_v27  ;;  %v3279_v27 = vld [vmem:[%s4648_s1 + $0x550] ss:$8 sps:$4 sm:$0xff]  }
  0x57   :  { %2082 = vmatpush1.bf16.msra.mxu0 %v3180_v30  ;;  %v3282_v30 = vld [vmem:[%s4648_s1 + $0x440] ss:$8 sps:$4 sm:$0xff]  }
  0x58   :  { %2135 = vmatpush1.bf16.msra.mxu1 %v3183_v31  ;;  %2083 = vmatprep.subr.bf16.mxu0 %v3188_v32  ;;  %v3285_v31 = vld [vmem:[%s4648_s1 + $0x540] ss:$8 sps:$4 sm:$0xff]   ;;  %v3362_v32 = vld [vmem:[%s4649_s0 + $0x24] ss:$72 sps:$4 sm:$0xff]  }
  0x59   :  { %2136 = vmatprep.subr.bf16.mxu1 %v3191_v33  ;;  %v3290_v33 = vld [vmem:[%s4648_s1 + $0x434] ss:$8 sps:$4 sm:$0xff]  }
  0x5b   :  { %2084 = vmatpush1.bf16.msra.mxu0 %v3186_v34  ;;  %v3293_v34 = vld [vmem:[%s4648_s1 + $0x534] ss:$8 sps:$4 sm:$0xff]  }
  0x5c   :  { %2137 = vmatpush1.bf16.msra.mxu1 %v3189_v35  ;;  %2085 = vmatprep.subr.bf16.mxu0 %v3194_v36  ;;  %v3368_v35 = vld [vmem:[%s4649_s0 + $0x2c] ss:$72 sps:$4 sm:$0xff]   ;;  %v3288_v36 = vld [vmem:[%s4648_s1 + $0x430] ss:$8 sps:$4 sm:$0xff]  }
  0x5d   :  { %2138 = vmatprep.subr.bf16.mxu1 %v3197_v37  ;;  %v3291_v37 = vld [vmem:[%s4648_s1 + $0x530] ss:$8 sps:$4 sm:$0xff]  }
  0x5f   :  { %2086 = vmatpush1.bf16.msra.mxu0 %v3192_v38  ;;  %v3296_v38 = vld [vmem:[%s4648_s1 + $0x424] ss:$8 sps:$4 sm:$0xff]  }
  0x60   :  { %2139 = vmatpush1.bf16.msra.mxu1 %v3195_v39  ;;  %2087 = vmatprep.subr.bf16.mxu0 %v3200_v41  ;;  %v3299_v39 = vld [vmem:[%s4648_s1 + $0x524] ss:$8 sps:$4 sm:$0xff]   ;;  %v3297_v41 = vld [vmem:[%s4648_s1 + $0x520] ss:$8 sps:$4 sm:$0xff]  }
  0x61   :  { %2140 = vmatprep.subr.bf16.mxu1 %v3203_v42  ;;  %v3302_v42 = vld [vmem:[%s4648_s1 + $0x414] ss:$8 sps:$4 sm:$0xff]  }
  0x63   :  { %2088 = vmatpush2.bf16.msra.mxu0 %v3198_v44  ;;  %v3300_v44 = vld [vmem:[%s4648_s1 + $0x410] ss:$8 sps:$4 sm:$0xff]  }
  0x64   :  { %2141 = vmatpush2.bf16.msra.mxu1 %v3201_v45  ;;  %2089 = vmatprep.subr.bf16.mxu0 %v3206_v46  ;;  %v3303_v45 = vld [vmem:[%s4648_s1 + $0x510] ss:$8 sps:$4 sm:$0xff]   ;;  %v3308_v46 = vld [vmem:[%s4648_s1 + $0x404] ss:$8 sps:$4 sm:$0xff]  }
  0x65   :  { %2142 = vmatprep.subr.bf16.mxu1 %v3209_v47  ;;  %v3311_v47 = vld [vmem:[%s4648_s1 + $0x504] ss:$8 sps:$4 sm:$0xff]  }
  0x67   :  { %2090 = vmatpush2.bf16.msra.mxu0 %v3204_v48  ;;  %v3306_v48 = vld [vmem:[%s4648_s1 + $0x400] ss:$8 sps:$4 sm:$0xff]  }
  0x68   :  { %2143 = vmatpush2.bf16.msra.mxu1 %v3207_v49  ;;  %2091 = vmatprep.subr.bf16.mxu0 %v3212_v50  ;;  %v3309_v49 = vld [vmem:[%s4648_s1 + $0x500] ss:$8 sps:$4 sm:$0xff]   ;;  %v3314_v50 = vld [vmem:[%s4648_s1 + $0x4f4] ss:$8 sps:$4 sm:$0xff]  }
  0x69   :  { %2144 = vmatprep.subr.bf16.mxu1 %v3215_v51  ;;  %v3317_v51 = vld [vmem:[%s4648_s1 + $0x5f4] ss:$8 sps:$4 sm:$0xff]  }
  0x6b   :  { %2092 = vmatpush2.bf16.msra.mxu0 %v3210_v52  ;;  %v3312_v52 = vld [vmem:[%s4648_s1 + $0x4f0] ss:$8 sps:$4 sm:$0xff]  }
  0x6c   :  { %2145 = vmatpush2.bf16.msra.mxu1 %v3213_v53  ;;  %2093 = vmatprep.subr.bf16.mxu0 %v3218_v54  ;;  %v3315_v53 = vld [vmem:[%s4648_s1 + $0x5f0] ss:$8 sps:$4 sm:$0xff]   ;;  %v3320_v54 = vld [vmem:[%s4648_s1 + $0x4e4] ss:$8 sps:$4 sm:$0xff]  }
  0x6d   :  { %2146 = vmatprep.subr.bf16.mxu1 %v3221_v55  ;;  %v3323_v55 = vld [vmem:[%s4648_s1 + $0x5e4] ss:$8 sps:$4 sm:$0xff]  }
  0x6f   :  { %2094 = vmatpush2.bf16.msra.mxu0 %v3216_v56  ;;  %v3318_v56 = vld [vmem:[%s4648_s1 + $0x4e0] ss:$8 sps:$4 sm:$0xff]  }
  0x70   :  { %2147 = vmatpush2.bf16.msra.mxu1 %v3219_v57  ;;  %2095 = vmatprep.subr.bf16.mxu0 %v3224_v58  ;;  %v3321_v57 = vld [vmem:[%s4648_s1 + $0x5e0] ss:$8 sps:$4 sm:$0xff]   ;;  %v3326_v58 = vld [vmem:[%s4648_s1 + $0x4d4] ss:$8 sps:$4 sm:$0xff]  }
  0x71   :  { %2148 = vmatprep.subr.bf16.mxu1 %v3231_v59  ;;  %v3329_v59 = vld [vmem:[%s4648_s1 + $0x5d4] ss:$8 sps:$4 sm:$0xff]  }
  0x73   :  { %2096 = vmatpush2.bf16.msra.mxu0 %v3222_v60  ;;  %v3324_v60 = vld [vmem:[%s4648_s1 + $0x4d0] ss:$8 sps:$4 sm:$0xff]  }
  0x74   :  { %2149 = vmatpush2.bf16.msra.mxu1 %v3229_v61  ;;  %2097 = vmatprep.subr.bf16.mxu0 %v3236_v62  ;;  %v3327_v61 = vld [vmem:[%s4648_s1 + $0x5d0] ss:$8 sps:$4 sm:$0xff]   ;;  %v3332_v62 = vld [vmem:[%s4648_s1 + $0x4c4] ss:$8 sps:$4 sm:$0xff]  }
  0x75   :  { %2150 = vmatprep.subr.bf16.mxu1 %v3239_v63  ;;  %v3335_v63 = vld [vmem:[%s4648_s1 + $0x5c4] ss:$8 sps:$4 sm:$0xff]  }
  0x77   :  { %2098 = vmatpush2.bf16.msra.mxu0 %v3234_v0  ;;  %v3330_v0 = vld [vmem:[%s4648_s1 + $0x4c0] ss:$8 sps:$4 sm:$0xff]  }
  0x78   :  { %2151 = vmatpush2.bf16.msra.mxu1 %v3237_v1  ;;  %2099 = vmatprep.subr.bf16.mxu0 %v3242_v2  ;;  %v3333_v1 = vld [vmem:[%s4648_s1 + $0x5c0] ss:$8 sps:$4 sm:$0xff]   ;;  %v3338_v2 = vld [vmem:[%s4648_s1 + $0x4b4] ss:$8 sps:$4 sm:$0xff]  }
  0x79   :  { %2152 = vmatprep.subr.bf16.mxu1 %v3245_v3  ;;  %v3341_v3 = vld [vmem:[%s4648_s1 + $0x5b4] ss:$8 sps:$4 sm:$0xff]  }
  0x7b   :  { %2100 = vmatpush2.bf16.msra.mxu0 %v3240_v4  ;;  %v3336_v4 = vld [vmem:[%s4648_s1 + $0x4b0] ss:$8 sps:$4 sm:$0xff]  }
  0x7c   :  { %2153 = vmatpush2.bf16.msra.mxu1 %v3243_v5  ;;  %2101 = vmatprep.subr.bf16.mxu0 %v3248_v6  ;;  %v3339_v5 = vld [vmem:[%s4648_s1 + $0x5b0] ss:$8 sps:$4 sm:$0xff]   ;;  %v3344_v6 = vld [vmem:[%s4648_s1 + $0x4a4] ss:$8 sps:$4 sm:$0xff]  }
  0x7d   :  { %2154 = vmatprep.subr.bf16.mxu1 %v3251_v7  ;;  %v3347_v7 = vld [vmem:[%s4648_s1 + $0x5a4] ss:$8 sps:$4 sm:$0xff]  }
  0x7f   :  { %2102 = vmatpush2.bf16.msra.mxu0 %v3246_v8  ;;  %v3342_v8 = vld [vmem:[%s4648_s1 + $0x4a0] ss:$8 sps:$4 sm:$0xff]  }
  0x80   :  { %2155 = vmatpush2.bf16.msra.mxu1 %v3249_v9  ;;  %2177 = vmatprep.subr.bf16.mxu0 %v3257_v10  ;;  %v3345_v9 = vld [vmem:[%s4648_s1 + $0x5a0] ss:$8 sps:$4 sm:$0xff]   ;;  %v3350_v10 = vld [vmem:[%s4648_s1 + $0x494] ss:$8 sps:$4 sm:$0xff]  }
  0x81   :  { %2230 = vmatprep.subr.bf16.mxu1 %v3263_v11  ;;  %v3353_v11 = vld [vmem:[%s4648_s1 + $0x594] ss:$8 sps:$4 sm:$0xff]  }
  0x82   :  { %2104 = vmatmul.mubr.bf16.vlgmr.msra.gmra.mxu0 %v3252_v12  ;;  %v3348_v12 = vld [vmem:[%s4648_s1 + $0x490] ss:$8 sps:$4 sm:$0xff]  }
  0x83   :  { %2157 = vmatmul.mubr.bf16.vlgmr.msra.gmra.mxu1 %v3258_v14  ;;  %2178 = vmatpush1.bf16.msra.mxu0 %v3255_v13  ;;  %v3351_v13 = vld [vmem:[%s4648_s1 + $0x590] ss:$8 sps:$4 sm:$0xff]   ;;  %v3356_v14 = vld [vmem:[%s4648_s1 + $0x484] ss:$8 sps:$4 sm:$0xff]  }
  0x84   :  { %2231 = vmatpush1.bf16.msra.mxu1 %v3261_v15  ;;  %2179 = vmatprep.subr.bf16.mxu0 %v3266_v16  ;;  %v3359_v15 = vld [vmem:[%s4648_s1 + $0x584] ss:$8 sps:$4 sm:$0xff]   ;;  %v3354_v16 = vld [vmem:[%s4648_s1 + $0x480] ss:$8 sps:$4 sm:$0xff]  }
  0x85   :  { %2232 = vmatprep.subr.bf16.mxu1 %v3269_v17  ;;  %2113 = vmatprep.mubr.bf16.mxu0 %v3270_v18  ;;  %v3357_v17 = vld [vmem:[%s4648_s1 + $0x580] ss:$8 sps:$4 sm:$0xff]   ;;  %v3365_v18 = vld [vmem:[%s4648_s1 + $0x674] ss:$8 sps:$4 sm:$0xff]  }
  0x86   :  { %2166 = vmatprep.mubr.bf16.mxu1 %v3276_v19  ;;  %v3371_v19 = vld [vmem:[%s4648_s1 + $0x774] ss:$8 sps:$4 sm:$0xff]  }
  0x87   :  { %2180 = vmatpush1.bf16.msra.mxu0 %v3264_v20  ;;  %v3360_v20 = vld [vmem:[%s4649_s0 + $0x20] ss:$72 sps:$4 sm:$0xff]  }
  0x88   :  { %2233 = vmatpush1.bf16.msra.mxu1 %v3267_v21  ;;  %2181 = vmatprep.subr.bf16.mxu0 %v3275_v22  ;;  %v3363_v21 = vld [vmem:[%s4648_s1 + $0x670] ss:$8 sps:$4 sm:$0xff]  }
  0x89   :  { %2234 = vmatprep.subr.bf16.mxu1 %v3281_v23  ;;  %v3366_v22 = vld [vmem:[%s4649_s0 + $0x28] ss:$72 sps:$4 sm:$0xff]  }
  0x8a   :  { %2114 = vmatmul.mubr.bf16.gmra.mxu0 %v3272_v24  ;;  %v3369_v23 = vld [vmem:[%s4648_s1 + $0x770] ss:$8 sps:$4 sm:$0xff]   ;;  %v3374_v24 = vld [vmem:[%s4648_s1 + $0x664] ss:$8 sps:$4 sm:$0xff]  }
  0x8b   :  { %2167 = vmatmul.mubr.bf16.gmra.mxu1 %v3278_v26  ;;  %2182 = vmatpush1.bf16.msra.mxu0 %v3273_v25  ;;  %v3377_v25 = vld [vmem:[%s4648_s1 + $0x764] ss:$8 sps:$4 sm:$0xff]   ;;  %v3378_v26 = vld [vmem:[%s4649_s0 + $0xb4] ss:$72 sps:$4 sm:$0xff]  }
  0x8c   :  { %2235 = vmatpush1.bf16.msra.mxu1 %v3279_v27  ;;  %2183 = vmatprep.subr.bf16.mxu0 %v3284_v28  ;;  %v3384_v27 = vld [vmem:[%s4649_s0 + $0xbc] ss:$72 sps:$4 sm:$0xff]   ;;  %v3372_v28 = vld [vmem:[%s4648_s1 + $0x660] ss:$8 sps:$4 sm:$0xff]  }
  0x8d   :  { %2236 = vmatprep.subr.bf16.mxu1 %v3287_v29  ;;  %2209 = vmatprep.mubr.bf16.mxu0 %v3362_v32  ;;  %v3375_v29 = vld [vmem:[%s4648_s1 + $0x760] ss:$8 sps:$4 sm:$0xff]   ;;  %v3380_v32 = vld [vmem:[%s4649_s0 + $0xb0] ss:$72 sps:$4 sm:$0xff]  }
  0x8e   :  { %2262 = vmatprep.mubr.bf16.mxu1 %v3368_v35  ;;  %v3387_v35 = vld [vmem:[%s4648_s1 + $0x750] ss:$8 sps:$4 sm:$0xff]  }
  0x8f   :  { %2184 = vmatpush1.bf16.msra.mxu0 %v3282_v30  ;;  %v3383_v30 = vld [vmem:[%s4648_s1 + $0x654] ss:$8 sps:$4 sm:$0xff]  }
  0x90   :  { %2237 = vmatpush1.bf16.msra.mxu1 %v3285_v31  ;;  %2185 = vmatprep.subr.bf16.mxu0 %v3290_v33  ;;  %v3389_v31 = vld [vmem:[%s4648_s1 + $0x754] ss:$8 sps:$4 sm:$0xff]   ;;  %v3381_v33 = vld [vmem:[%s4648_s1 + $0x650] ss:$8 sps:$4 sm:$0xff]  }
  0x91   :  { %2238 = vmatprep.subr.bf16.mxu1 %v3293_v34  ;;  %v3386_v34 = vld [vmem:[%s4649_s0 + $0xb8] ss:$72 sps:$4 sm:$0xff]  }
  0x93   :  { %2186 = vmatpush1.bf16.msra.mxu0 %v3288_v36  ;;  %v3392_v36 = vld [vmem:[%s4648_s1 + $0x644] ss:$8 sps:$4 sm:$0xff]  }
  0x94   :  { %2239 = vmatpush1.bf16.msra.mxu1 %v3291_v37  ;;  %2187 = vmatprep.subr.bf16.mxu0 %v3296_v38  ;;  %v3395_v37 = vld [vmem:[%s4648_s1 + $0x744] ss:$8 sps:$4 sm:$0xff]   ;;  %v3470_v38 = vld [vmem:[%s4649_s0 + $0x34] ss:$72 sps:$4 sm:$0xff]  }
  0x95   :  { %2240 = vmatprep.subr.bf16.mxu1 %v3299_v39  ;;  %v3476_v39 = vld [vmem:[%s4649_s0 + $0x3c] ss:$72 sps:$4 sm:$0xff]  }
  0x97   :  { %2188 = vmatpush1.bf16.msra.mxu0 %v3294_v40  ;;  %v3390_v40 = vld [vmem:[%s4648_s1 + $0x640] ss:$8 sps:$4 sm:$0xff]  }
  0x98   :  { %2241 = vmatpush1.bf16.msra.mxu1 %v3297_v41  ;;  %2189 = vmatprep.subr.bf16.mxu0 %v3302_v42  ;;  %v3393_v41 = vld [vmem:[%s4648_s1 + $0x740] ss:$8 sps:$4 sm:$0xff]   ;;  %v3398_v42 = vld [vmem:[%s4648_s1 + $0x634] ss:$8 sps:$4 sm:$0xff]  }
  0x99   :  { %2242 = vmatprep.subr.bf16.mxu1 %v3305_v43  ;;  %v3401_v43 = vld [vmem:[%s4648_s1 + $0x734] ss:$8 sps:$4 sm:$0xff]  }
  0x9b   :  { %2190 = vmatpush1.bf16.msra.mxu0 %v3300_v44  ;;  %v3396_v44 = vld [vmem:[%s4648_s1 + $0x630] ss:$8 sps:$4 sm:$0xff]  }
  0x9c   :  { %2243 = vmatpush1.bf16.msra.mxu1 %v3303_v45  ;;  %2191 = vmatprep.subr.bf16.mxu0 %v3308_v46  ;;  %v3399_v45 = vld [vmem:[%s4648_s1 + $0x730] ss:$8 sps:$4 sm:$0xff]   ;;  %v3404_v46 = vld [vmem:[%s4648_s1 + $0x624] ss:$8 sps:$4 sm:$0xff]  }
  0x9d   :  { %2244 = vmatprep.subr.bf16.mxu1 %v3311_v47  ;;  %v3407_v47 = vld [vmem:[%s4648_s1 + $0x724] ss:$8 sps:$4 sm:$0xff]  }
  0x9f   :  { %2192 = vmatpush1.bf16.msra.mxu0 %v3306_v48  ;;  %v3402_v48 = vld [vmem:[%s4648_s1 + $0x620] ss:$8 sps:$4 sm:$0xff]  }
  0xa0   :  { %2245 = vmatpush1.bf16.msra.mxu1 %v3309_v49  ;;  %2193 = vmatprep.subr.bf16.mxu0 %v3314_v50  ;;  %v3405_v49 = vld [vmem:[%s4648_s1 + $0x720] ss:$8 sps:$4 sm:$0xff]   ;;  %v3410_v50 = vld [vmem:[%s4648_s1 + $0x614] ss:$8 sps:$4 sm:$0xff]  }
  0xa1   :  { %2246 = vmatprep.subr.bf16.mxu1 %v3317_v51  ;;  %v3413_v51 = vld [vmem:[%s4648_s1 + $0x714] ss:$8 sps:$4 sm:$0xff]  }
  0xa3   :  { %2194 = vmatpush2.bf16.msra.mxu0 %v3312_v52  ;;  %v3408_v52 = vld [vmem:[%s4648_s1 + $0x610] ss:$8 sps:$4 sm:$0xff]  }
  0xa4   :  { %2247 = vmatpush2.bf16.msra.mxu1 %v3315_v53  ;;  %2195 = vmatprep.subr.bf16.mxu0 %v3320_v54  ;;  %v3411_v53 = vld [vmem:[%s4648_s1 + $0x710] ss:$8 sps:$4 sm:$0xff]   ;;  %v3416_v54 = vld [vmem:[%s4648_s1 + $0x604] ss:$8 sps:$4 sm:$0xff]  }
  0xa5   :  { %2248 = vmatprep.subr.bf16.mxu1 %v3323_v55  ;;  %v3419_v55 = vld [vmem:[%s4648_s1 + $0x704] ss:$8 sps:$4 sm:$0xff]  }
  0xa7   :  { %2196 = vmatpush2.bf16.msra.mxu0 %v3318_v56  ;;  %v3414_v56 = vld [vmem:[%s4648_s1 + $0x600] ss:$8 sps:$4 sm:$0xff]  }
  0xa8   :  { %2249 = vmatpush2.bf16.msra.mxu1 %v3321_v57  ;;  %2197 = vmatprep.subr.bf16.mxu0 %v3326_v58  ;;  %v3417_v57 = vld [vmem:[%s4648_s1 + $0x700] ss:$8 sps:$4 sm:$0xff]   ;;  %v3422_v58 = vld [vmem:[%s4648_s1 + $0x6f4] ss:$8 sps:$4 sm:$0xff]  }
  0xa9   :  { %2250 = vmatprep.subr.bf16.mxu1 %v3329_v59  ;;  %v3425_v59 = vld [vmem:[%s4648_s1 + $0x7f4] ss:$8 sps:$4 sm:$0xff]  }
  0xab   :  { %2198 = vmatpush2.bf16.msra.mxu0 %v3324_v60  ;;  %v3420_v60 = vld [vmem:[%s4648_s1 + $0x6f0] ss:$8 sps:$4 sm:$0xff]  }
  0xac   :  { %2251 = vmatpush2.bf16.msra.mxu1 %v3327_v61  ;;  %2199 = vmatprep.subr.bf16.mxu0 %v3332_v62  ;;  %v3423_v61 = vld [vmem:[%s4648_s1 + $0x7f0] ss:$8 sps:$4 sm:$0xff]   ;;  %v3428_v62 = vld [vmem:[%s4648_s1 + $0x6e4] ss:$8 sps:$4 sm:$0xff]  }
  0xad   :  { %2252 = vmatprep.subr.bf16.mxu1 %v3335_v63  ;;  %v3431_v63 = vld [vmem:[%s4648_s1 + $0x7e4] ss:$8 sps:$4 sm:$0xff]  }
  0xaf   :  { %2200 = vmatpush2.bf16.msra.mxu0 %v3330_v0  ;;  %v3426_v0 = vld [vmem:[%s4648_s1 + $0x6e0] ss:$8 sps:$4 sm:$0xff]  }
  0xb0   :  { %2253 = vmatpush2.bf16.msra.mxu1 %v3333_v1  ;;  %2201 = vmatprep.subr.bf16.mxu0 %v3338_v2  ;;  %v3429_v1 = vld [vmem:[%s4648_s1 + $0x7e0] ss:$8 sps:$4 sm:$0xff]   ;;  %v3434_v2 = vld [vmem:[%s4648_s1 + $0x6d4] ss:$8 sps:$4 sm:$0xff]  }
  0xb1   :  { %2254 = vmatprep.subr.bf16.mxu1 %v3341_v3  ;;  %v3437_v3 = vld [vmem:[%s4648_s1 + $0x7d4] ss:$8 sps:$4 sm:$0xff]  }
  0xb3   :  { %2202 = vmatpush2.bf16.msra.mxu0 %v3336_v4  ;;  %v3432_v4 = vld [vmem:[%s4648_s1 + $0x6d0] ss:$8 sps:$4 sm:$0xff]  }
  0xb4   :  { %2255 = vmatpush2.bf16.msra.mxu1 %v3339_v5  ;;  %2203 = vmatprep.subr.bf16.mxu0 %v3344_v6  ;;  %v3435_v5 = vld [vmem:[%s4648_s1 + $0x7d0] ss:$8 sps:$4 sm:$0xff]   ;;  %v3440_v6 = vld [vmem:[%s4648_s1 + $0x6c4] ss:$8 sps:$4 sm:$0xff]  }
  0xb5   :  { %2256 = vmatprep.subr.bf16.mxu1 %v3347_v7  ;;  %v3443_v7 = vld [vmem:[%s4648_s1 + $0x7c4] ss:$8 sps:$4 sm:$0xff]  }
  0xb7   :  { %2204 = vmatpush2.bf16.msra.mxu0 %v3342_v8  ;;  %v3438_v8 = vld [vmem:[%s4648_s1 + $0x6c0] ss:$8 sps:$4 sm:$0xff]  }
  0xb8   :  { %2257 = vmatpush2.bf16.msra.mxu1 %v3345_v9  ;;  %2205 = vmatprep.subr.bf16.mxu0 %v3350_v10  ;;  %v3441_v9 = vld [vmem:[%s4648_s1 + $0x7c0] ss:$8 sps:$4 sm:$0xff]   ;;  %v3446_v10 = vld [vmem:[%s4648_s1 + $0x6b4] ss:$8 sps:$4 sm:$0xff]  }
  0xb9   :  { %2258 = vmatprep.subr.bf16.mxu1 %v3353_v11  ;;  %v3449_v11 = vld [vmem:[%s4648_s1 + $0x7b4] ss:$8 sps:$4 sm:$0xff]  }
  0xbb   :  { %2206 = vmatpush2.bf16.msra.mxu0 %v3348_v12  ;;  %v3444_v12 = vld [vmem:[%s4648_s1 + $0x6b0] ss:$8 sps:$4 sm:$0xff]  }
  0xbc   :  { %2259 = vmatpush2.bf16.msra.mxu1 %v3351_v13  ;;  %2207 = vmatprep.subr.bf16.mxu0 %v3356_v14  ;;  %v3447_v13 = vld [vmem:[%s4648_s1 + $0x7b0] ss:$8 sps:$4 sm:$0xff]   ;;  %v3452_v14 = vld [vmem:[%s4648_s1 + $0x6a4] ss:$8 sps:$4 sm:$0xff]  }
  0xbd   :  { %2260 = vmatprep.subr.bf16.mxu1 %v3359_v15  ;;  %v3455_v15 = vld [vmem:[%s4648_s1 + $0x7a4] ss:$8 sps:$4 sm:$0xff]  }
  0xbf   :  { %2208 = vmatpush2.bf16.msra.mxu0 %v3354_v16  ;;  %v3450_v16 = vld [vmem:[%s4648_s1 + $0x6a0] ss:$8 sps:$4 sm:$0xff]  }
  0xc0   :  { %2261 = vmatpush2.bf16.msra.mxu1 %v3357_v17  ;;  %2283 = vmatprep.subr.bf16.mxu0 %v3365_v18  ;;  %v3453_v17 = vld [vmem:[%s4648_s1 + $0x7a0] ss:$8 sps:$4 sm:$0xff]   ;;  %v3458_v18 = vld [vmem:[%s4648_s1 + $0x694] ss:$8 sps:$4 sm:$0xff]  }
  0xc1   :  { %2336 = vmatprep.subr.bf16.mxu1 %v3371_v19  ;;  %v3461_v19 = vld [vmem:[%s4648_s1 + $0x794] ss:$8 sps:$4 sm:$0xff]  }
  0xc2   :  { %2210 = vmatmul.mubr.bf16.vlgmr.msra.gmra.mxu0 %v3360_v20  ;;  %v3456_v20 = vld [vmem:[%s4648_s1 + $0x690] ss:$8 sps:$4 sm:$0xff]  }
  0xc3   :  { %2263 = vmatmul.mubr.bf16.vlgmr.msra.gmra.mxu1 %v3366_v22  ;;  %2284 = vmatpush1.bf16.msra.mxu0 %v3363_v21  ;;  %v3459_v21 = vld [vmem:[%s4648_s1 + $0x790] ss:$8 sps:$4 sm:$0xff]   ;;  %v3464_v22 = vld [vmem:[%s4648_s1 + $0x684] ss:$8 sps:$4 sm:$0xff]  }
  0xc4   :  { %2337 = vmatpush1.bf16.msra.mxu1 %v3369_v23  ;;  %2285 = vmatprep.subr.bf16.mxu0 %v3374_v24  ;;  %v3467_v23 = vld [vmem:[%s4648_s1 + $0x784] ss:$8 sps:$4 sm:$0xff]   ;;  %v3462_v24 = vld [vmem:[%s4648_s1 + $0x680] ss:$8 sps:$4 sm:$0xff]  }
  0xc5   :  { %2338 = vmatprep.subr.bf16.mxu1 %v3377_v25  ;;  %2219 = vmatprep.mubr.bf16.mxu0 %v3378_v26  ;;  %v3465_v25 = vld [vmem:[%s4648_s1 + $0x780] ss:$8 sps:$4 sm:$0xff]   ;;  %v3473_v26 = vld [vmem:[%s4648_s1 + $0x874] ss:$8 sps:$4 sm:$0xff]  }
  0xc6   :  { %2272 = vmatprep.mubr.bf16.mxu1 %v3384_v27  ;;  %v3468_v27 = vld [vmem:[%s4649_s0 + $0x30] ss:$72 sps:$4 sm:$0xff]  }
  0xc7   :  { %2286 = vmatpush1.bf16.msra.mxu0 %v3372_v28  ;;  %v3474_v28 = vld [vmem:[%s4649_s0 + $0x38] ss:$72 sps:$4 sm:$0xff]  }
  0xc8   :  { %2339 = vmatpush1.bf16.msra.mxu1 %v3375_v29  ;;  %2287 = vmatprep.subr.bf16.mxu0 %v3383_v30  ;;  %v3471_v29 = vld [vmem:[%s4648_s1 + $0x870] ss:$8 sps:$4 sm:$0xff]   ;;  %v3480_v30 = vld [vmem:[%s4649_s0 + $0xc4] ss:$72 sps:$4 sm:$0xff]  }
  0xc9   :  { %2340 = vmatprep.subr.bf16.mxu1 %v3389_v31  ;;  %v3479_v31 = vld [vmem:[%s4648_s1 + $0x864] ss:$8 sps:$4 sm:$0xff]  }
  0xca   :  { %2220 = vmatmul.mubr.bf16.gmra.mxu0 %v3380_v32  ;;  %v3486_v32 = vld [vmem:[%s4649_s0 + $0xcc] ss:$72 sps:$4 sm:$0xff]  }
  0xcb   :  { %2273 = vmatmul.mubr.bf16.gmra.mxu1 %v3386_v34  ;;  %2288 = vmatpush1.bf16.msra.mxu0 %v3381_v33  ;;  %v3477_v33 = vld [vmem:[%s4648_s1 + $0x860] ss:$8 sps:$4 sm:$0xff]   ;;  %v3485_v34 = vld [vmem:[%s4648_s1 + $0x854] ss:$8 sps:$4 sm:$0xff]  }
  0xcc   :  { %2341 = vmatpush1.bf16.msra.mxu1 %v3387_v35  ;;  %2289 = vmatprep.subr.bf16.mxu0 %v3392_v36  ;;  %v3482_v35 = vld [vmem:[%s4649_s0 + $0xc0] ss:$72 sps:$4 sm:$0xff]  }
  0xcd   :  { %2342 = vmatprep.subr.bf16.mxu1 %v3395_v37  ;;  %2315 = vmatprep.mubr.bf16.mxu0 %v3470_v38  ;;  %v3488_v36 = vld [vmem:[%s4649_s0 + $0xc8] ss:$72 sps:$4 sm:$0xff]   ;;  %v3530_v38 = vld [vmem:[%s4649_s0 + $0x44] ss:$72 sps:$4 sm:$0xff]  }
  0xce   :  { %2368 = vmatprep.mubr.bf16.mxu1 %v3476_v39  ;;  %v3483_v37 = vld [vmem:[%s4648_s1 + $0x850] ss:$8 sps:$4 sm:$0xff]   ;;  %v3491_v39 = vld [vmem:[%s4648_s1 + $0x844] ss:$8 sps:$4 sm:$0xff]  }
  0xcf   :  { %2290 = vmatpush1.bf16.msra.mxu0 %v3390_v40  ;;  %v3489_v40 = vld [vmem:[%s4648_s1 + $0x840] ss:$8 sps:$4 sm:$0xff]  }
  0xd0   :  { %2343 = vmatpush1.bf16.msra.mxu1 %v3393_v41  ;;  %2291 = vmatprep.subr.bf16.mxu0 %v3398_v42  ;;  %v3494_v41 = vld [vmem:[%s4648_s1 + $0x834] ss:$8 sps:$4 sm:$0xff]   ;;  %v3492_v42 = vld [vmem:[%s4648_s1 + $0x830] ss:$8 sps:$4 sm:$0xff]  }
  0xd1   :  { %2344 = vmatprep.subr.bf16.mxu1 %v3401_v43  ;;  %v3497_v43 = vld [vmem:[%s4648_s1 + $0x824] ss:$8 sps:$4 sm:$0xff]  }
  0xd3   :  { %2292 = vmatpush1.bf16.msra.mxu0 %v3396_v44  ;;  %v3495_v44 = vld [vmem:[%s4648_s1 + $0x820] ss:$8 sps:$4 sm:$0xff]  }
  0xd4   :  { %2345 = vmatpush1.bf16.msra.mxu1 %v3399_v45  ;;  %2293 = vmatprep.subr.bf16.mxu0 %v3404_v46  ;;  %v3500_v45 = vld [vmem:[%s4648_s1 + $0x814] ss:$8 sps:$4 sm:$0xff]   ;;  %v3498_v46 = vld [vmem:[%s4648_s1 + $0x810] ss:$8 sps:$4 sm:$0xff]  }
  0xd5   :  { %2346 = vmatprep.subr.bf16.mxu1 %v3407_v47  ;;  %v3503_v47 = vld [vmem:[%s4648_s1 + $0x804] ss:$8 sps:$4 sm:$0xff]  }
  0xd7   :  { %2294 = vmatpush1.bf16.msra.mxu0 %v3402_v48  ;;  %v3501_v48 = vld [vmem:[%s4648_s1 + $0x800] ss:$8 sps:$4 sm:$0xff]  }
  0xd8   :  { %2347 = vmatpush1.bf16.msra.mxu1 %v3405_v49  ;;  %2295 = vmatprep.subr.bf16.mxu0 %v3410_v50  ;;  %v3506_v49 = vld [vmem:[%s4648_s1 + $0x8f4] ss:$8 sps:$4 sm:$0xff]   ;;  %v3504_v50 = vld [vmem:[%s4648_s1 + $0x8f0] ss:$8 sps:$4 sm:$0xff]  }
  0xd9   :  { %2348 = vmatprep.subr.bf16.mxu1 %v3413_v51  ;;  %v3509_v51 = vld [vmem:[%s4648_s1 + $0x8e4] ss:$8 sps:$4 sm:$0xff]  }
  0xdb   :  { %2296 = vmatpush1.bf16.msra.mxu0 %v3408_v52  ;;  %v3507_v52 = vld [vmem:[%s4648_s1 + $0x8e0] ss:$8 sps:$4 sm:$0xff]  }
  0xdc   :  { %2349 = vmatpush1.bf16.msra.mxu1 %v3411_v53  ;;  %2297 = vmatprep.subr.bf16.mxu0 %v3416_v54  ;;  %v3512_v53 = vld [vmem:[%s4648_s1 + $0x8d4] ss:$8 sps:$4 sm:$0xff]   ;;  %v3510_v54 = vld [vmem:[%s4648_s1 + $0x8d0] ss:$8 sps:$4 sm:$0xff]  }
  0xdd   :  { %2350 = vmatprep.subr.bf16.mxu1 %v3419_v55  ;;  %v3515_v55 = vld [vmem:[%s4648_s1 + $0x8c4] ss:$8 sps:$4 sm:$0xff]  }
  0xdf   :  { %2298 = vmatpush1.bf16.msra.mxu0 %v3414_v56  ;;  %v3513_v56 = vld [vmem:[%s4648_s1 + $0x8c0] ss:$8 sps:$4 sm:$0xff]  }
  0xe0   :  { %2351 = vmatpush1.bf16.msra.mxu1 %v3417_v57  ;;  %2299 = vmatprep.subr.bf16.mxu0 %v3422_v58  ;;  %v3518_v57 = vld [vmem:[%s4648_s1 + $0x8b4] ss:$8 sps:$4 sm:$0xff]   ;;  %v3516_v58 = vld [vmem:[%s4648_s1 + $0x8b0] ss:$8 sps:$4 sm:$0xff]  }
  0xe1   :  { %2352 = vmatprep.subr.bf16.mxu1 %v3425_v59  ;;  %v3521_v59 = vld [vmem:[%s4648_s1 + $0x8a4] ss:$8 sps:$4 sm:$0xff]  }
  0xe3   :  { %2300 = vmatpush2.bf16.msra.mxu0 %v3420_v60  ;;  %v3519_v60 = vld [vmem:[%s4648_s1 + $0x8a0] ss:$8 sps:$4 sm:$0xff]  }
  0xe4   :  { %2353 = vmatpush2.bf16.msra.mxu1 %v3423_v61  ;;  %2301 = vmatprep.subr.bf16.mxu0 %v3428_v62  ;;  %v3524_v61 = vld [vmem:[%s4648_s1 + $0x894] ss:$8 sps:$4 sm:$0xff]   ;;  %v3522_v62 = vld [vmem:[%s4648_s1 + $0x890] ss:$8 sps:$4 sm:$0xff]  }
  0xe5   :  { %2354 = vmatprep.subr.bf16.mxu1 %v3431_v63  ;;  %v3527_v63 = vld [vmem:[%s4648_s1 + $0x884] ss:$8 sps:$4 sm:$0xff]  }
  0xe7   :  { %2302 = vmatpush2.bf16.msra.mxu0 %v3426_v0  ;;  %v3525_v0 = vld [vmem:[%s4648_s1 + $0x880] ss:$8 sps:$4 sm:$0xff]  }
  0xe8   :  { %2355 = vmatpush2.bf16.msra.mxu1 %v3429_v1  ;;  %2303 = vmatprep.subr.bf16.mxu0 %v3434_v2  ;;  %v3528_v1 = vld [vmem:[%s4649_s0 + $0x40] ss:$72 sps:$4 sm:$0xff]   ;;  %v3531_v2 = vld [vmem:[%s4649_s0 + $0xd4] ss:$72 sps:$4 sm:$0xff]  }
  0xe9   :  { %2356 = vmatprep.subr.bf16.mxu1 %v3437_v3  ;;  %v3533_v3 = vld [vmem:[%s4649_s0 + $0xd0] ss:$72 sps:$4 sm:$0xff]  }
  0xeb   :  { %2304 = vmatpush2.bf16.msra.mxu0 %v3432_v4  ;;  %v3534_v4 = vld [vmem:[%s4650_s4 + $0x78] sm:$0xff]  }
  0xec   :  { %2357 = vmatpush2.bf16.msra.mxu1 %v3435_v5  ;;  %2305 = vmatprep.subr.bf16.mxu0 %v3440_v6  ;;  %v3535_v5 = vld [vmem:[%s4650_s4 + $0x38] sm:$0xff]   ;;  %v3536_v6 = vld [vmem:[%s4650_s4 + $0x70] sm:$0xff]  }
  0xed   :  { %2358 = vmatprep.subr.bf16.mxu1 %v3443_v7  ;;  %v3537_v7 = vld [vmem:[%s4650_s4 + $0x30] sm:$0xff]  }
  0xef   :  { %2306 = vmatpush2.bf16.msra.mxu0 %v3438_v8  ;;  %v3538_v8 = vld [vmem:[%s4650_s4 + $0x68] sm:$0xff]  }
  0xf0   :  { %2359 = vmatpush2.bf16.msra.mxu1 %v3441_v9  ;;  %2307 = vmatprep.subr.bf16.mxu0 %v3446_v10  ;;  %v3539_v9 = vld [vmem:[%s4650_s4 + $0x28] sm:$0xff]   ;;  %v3540_v10 = vld [vmem:[%s4650_s4 + $0x60] sm:$0xff]  }
  0xf1   :  { %2360 = vmatprep.subr.bf16.mxu1 %v3449_v11  ;;  %v3541_v11 = vld [vmem:[%s4650_s4 + $0x20] sm:$0xff]  }
  0xf3   :  { %2308 = vmatpush2.bf16.msra.mxu0 %v3444_v12  ;;  %v3542_v12 = vld [vmem:[%s4650_s4 + $0x58] sm:$0xff]  }
  0xf4   :  { %2361 = vmatpush2.bf16.msra.mxu1 %v3447_v13  ;;  %2309 = vmatprep.subr.bf16.mxu0 %v3452_v14  ;;  %v3543_v13 = vld [vmem:[%s4650_s4 + $0x18] sm:$0xff]   ;;  %v3544_v14 = vld [vmem:[%s4650_s4 + $0x50] sm:$0xff]  }
  0xf5   :  { %2362 = vmatprep.subr.bf16.mxu1 %v3455_v15  ;;  %v3545_v15 = vld [vmem:[%s4650_s4 + $0x10] sm:$0xff]  }
  0xf7   :  { %2310 = vmatpush2.bf16.msra.mxu0 %v3450_v16  ;;  %v3546_v16 = vld [vmem:[%s4650_s4 + $0x48] sm:$0xff]  }
  0xf8   :  { %2363 = vmatpush2.bf16.msra.mxu1 %v3453_v17  ;;  %2311 = vmatprep.subr.bf16.mxu0 %v3458_v18  ;;  %v3547_v17 = vld [vmem:[%s4650_s4 + $0x8] sm:$0xff]  }
  0xf9   :  { %2364 = vmatprep.subr.bf16.mxu1 %v3461_v19  ;;  %v3548_v19 = vld [vmem:[%s4650_s4 + $0x40] sm:$0xff]  }
  0xfb   :  { %2312 = vmatpush2.bf16.msra.mxu0 %v3456_v20 }
  0xfc   :  { %2365 = vmatpush2.bf16.msra.mxu1 %v3459_v21  ;;  %2313 = vmatprep.subr.bf16.mxu0 %v3464_v22  ;;  %v3549_v21 = vld [vmem:[%s4650_s4] sm:$0xff]  }
  0xfd   :  { %2366 = vmatprep.subr.bf16.mxu1 %v3467_v23 }
  0xff   :  { %2314 = vmatpush2.bf16.msra.mxu0 %v3462_v24 }
 0x100   :  { %2367 = vmatpush2.bf16.msra.mxu1 %v3465_v25  ;;  %2389 = vmatprep.subr.bf16.mxu0 %v3473_v26 }
 0x101   :  { %3020 = vmatprep.subr.bf16.mxu1 %v3534_v4 }
 0x102   :  { %2316 = vmatmul.mubr.bf16.vlgmr.msra.gmra.mxu0 %v3468_v27  ;;  %v1999_v18 = vpop.f32.mrf.mxu0 }
 0x103   :  { %2369 = vmatmul.mubr.bf16.vlgmr.msra.gmra.mxu1 %v3474_v28  ;;  %2390 = vmatpush1.bf16.msra.mxu0 %v3471_v29  ;;  %v2052_v23 = vpop.f32.mrf.mxu1 }
 0x104   :  { %2325 = vmatprep.mubr.bf16.mxu0 %v3480_v30  ;;  %2391 = vmatprep.subr.bf16.mxu0 %v3479_v31  ;;  %v2001_v20 = vpop.f32.mrf.mxu0 }
 0x105   :  { %2378 = vmatprep.mubr.bf16.mxu1 %v3486_v32  ;;  %3021 = vmatpush3.bf16.msra.mxu1 %v3535_v5  ;;  %v2054_v26 = vpop.f32.mrf.mxu1 }
 0x106   :  { %3022 = vmatprep.subr.bf16.mxu1 %v3536_v6  ;;  %v2003_v22 = vpop.f32.mrf.mxu0 }
 0x107   :  { %2392 = vmatpush1.bf16.msra.mxu0 %v3477_v33  ;;  %v2056_v28 = vpop.f32.mrf.mxu1 }
 0x108   :  { %2393 = vmatprep.subr.bf16.mxu0 %v3485_v34  ;;  %v2005_v24 = vpop.f32.mrf.mxu0 }
 0x109   :  { %3023 = vmatpush3.bf16.msra.mxu1 %v3537_v7  ;;  %v2058_v30 = vpop.f32.mrf.mxu1  ;;  %v2053_v7 = vadd.f32 %v2052_v23, %v1999_v18 }
 0x10a   :  { %2326 = vmatmul.mubr.bf16.gmra.mxu0 %v3482_v35  ;;  %3024 = vmatprep.subr.bf16.mxu1 %v3538_v8  ;;  %v2009_v25 = vpop.f32.mrf.mxu0 }
 0x10b   :  { %2379 = vmatmul.mubr.bf16.gmra.mxu1 %v3488_v36  ;;  %2394 = vmatpush1.bf16.msra.mxu0 %v3483_v37  ;;  %v2062_v31 = vpop.f32.mrf.mxu1 }
 0x10c   :  { %2421 = vmatprep.mubr.bf16.mxu0 %v3530_v38  ;;  %2395 = vmatprep.subr.bf16.mxu0 %v3491_v39  ;;  %v2011_v27 = vpop.f32.mrf.mxu0 }
 0x10d   :  { %3025 = vmatpush3.bf16.msra.mxu1 %v3539_v9  ;;  %v2064_v34 = vpop.f32.mrf.mxu1 }
 0x10e   :  { %3026 = vmatprep.subr.bf16.mxu1 %v3540_v10  ;;  %v4600_v29 = vpop.f32.mrf.mxu0  ;;  %v2055_v10 = vadd.f32 %v2054_v26, %v2001_v20 }
 0x10f   :  { %2396 = vmatpush1.bf16.msra.mxu0 %v3489_v40  ;;  %v2066_v36 = vpop.f32.mrf.mxu1 }
 0x110   :  { %2397 = vmatprep.subr.bf16.mxu0 %v3494_v41  ;;  %v4602_v32 = vpop.f32.mrf.mxu0 }
 0x111   :  { %3027 = vmatpush3.bf16.msra.mxu1 %v3541_v11  ;;  %v2068_v38 = vpop.f32.mrf.mxu1 }
 0x112   :  { %3028 = vmatprep.subr.bf16.mxu1 %v3542_v12  ;;  %v2057_v12 = vadd.f32 %v2056_v28, %v2003_v22 }
 0x113   :  { %2398 = vmatpush1.bf16.msra.mxu0 %v3492_v42 }
 0x114   :  { %2399 = vmatprep.subr.bf16.mxu0 %v3497_v43 }
 0x115   :  { %3029 = vmatpush3.bf16.msra.mxu1 %v3543_v13 }
 0x116   :  { %3030 = vmatprep.subr.bf16.mxu1 %v3544_v14 }
 0x117   :  { %2400 = vmatpush1.bf16.msra.mxu0 %v3495_v44 }
 0x118   :  { %2401 = vmatprep.subr.bf16.mxu0 %v3500_v45 }
 0x119   :  { %3031 = vmatpush3.bf16.msra.mxu1 %v3545_v15 }
 0x11a   :  { %3032 = vmatprep.subr.bf16.mxu1 %v3546_v16  ;;  %v2059_v16 = vadd.f32 %v2058_v30, %v2005_v24  ;;  %v2069_v24 = vadd.f32 %v2068_v38, %v4602_v32  ;;  %v2442_v32 = vld [vmem:[%s4651_s2] sm:$0x3] }
 0x11b   :  { %2402 = vmatpush1.bf16.msra.mxu0 %v3498_v46 }
 0x11c   :  { %2403 = vmatprep.subr.bf16.mxu0 %v3503_v47 }
 0x11d   :  { %3033 = vmatpush3.bf16.msra.mxu1 %v3547_v17 }
 0x11e   :  { %3034 = vmatprep.subr.bf16.mxu1 %v3548_v19 }
 0x11f   :  { %2404 = vmatpush1.bf16.msra.mxu0 %v3501_v48 }
 0x120   :  { %2405 = vmatprep.subr.bf16.mxu0 %v3506_v49 }
 0x121   :  { %3035 = vmatpush3.bf16.msra.mxu1 %v3549_v21  ;;  %v2063_v21 = vadd.f32 %v2062_v31, %v2009_v25 }
 0x123   :  { %2406 = vmatpush2.bf16.msra.mxu0 %v3504_v50 }
 0x124   :  { %2407 = vmatprep.subr.bf16.mxu0 %v3509_v51 }
 0x127   :  { %2408 = vmatpush2.bf16.msra.mxu0 %v3507_v52 }
 0x128   :  { %2409 = vmatprep.subr.bf16.mxu0 %v3512_v53 }
 0x12b   :  { %2410 = vmatpush2.bf16.msra.mxu0 %v3510_v54 }
 0x12c   :  { %2411 = vmatprep.subr.bf16.mxu0 %v3515_v55 }
 0x12f   :  { %2412 = vmatpush2.bf16.msra.mxu0 %v3513_v56 }
 0x130   :  { %2413 = vmatprep.subr.bf16.mxu0 %v3518_v57 }
 0x133   :  { %2414 = vmatpush2.bf16.msra.mxu0 %v3516_v58 }
 0x134   :  { %2415 = vmatprep.subr.bf16.mxu0 %v3521_v59 }
 0x137   :  { %2416 = vmatpush2.bf16.msra.mxu0 %v3519_v60 }
 0x138   :  { %2417 = vmatprep.subr.bf16.mxu0 %v3524_v61 }
 0x13b   :  { %2418 = vmatpush2.bf16.msra.mxu0 %v3522_v62 }
 0x13c   :  { %2419 = vmatprep.subr.bf16.mxu0 %v3527_v63 }
 0x13f   :  { %2420 = vmatpush2.bf16.msra.mxu0 %v3525_v0 }
 0x142   :  { %2422 = vmatmul.mubr.bf16.vlgmr.msra.gmra.mxu0 %v3528_v1  ;;  %v2105_v33 = vpop.f32.mrf.mxu0 }
 0x143   :  { %2431 = vmatprep.mubr.bf16.mxu0 %v3531_v2  ;;  %v2158_v39 = vpop.f32.mrf.mxu1  ;;  %v2106_v11 = vadd.f32 %v2105_v33, %v2053_v7  ;;  %v2067_v33 = vadd.f32 %v2066_v36, %v4600_v29 }
 0x144   :  { %v2107_v35 = vpop.f32.mrf.mxu0 }
 0x145   :  { %v2160_v41 = vpop.f32.mrf.mxu1  ;;  %v2108_v13 = vadd.f32 %v2107_v35, %v2055_v10  ;;  %v2159_v19 = vadd.f32 %v2158_v39, %v2106_v11 }
 0x146   :  { %v2109_v37 = vpop.f32.mrf.mxu0 }
 0x147   :  { %v2162_v43 = vpop.f32.mrf.mxu1  ;;  %v2110_v17 = vadd.f32 %v2109_v37, %v2057_v12 }
 0x148   :  { %v2111_v40 = vpop.f32.mrf.mxu0 }
 0x149   :  { %v2164_v45 = vpop.f32.mrf.mxu1  ;;  %v2163_v18 = vadd.f32 %v2162_v43, %v2110_v17 }
 0x14a   :  { %2432 = vmatmul.mubr.bf16.gmra.mxu0 %v3533_v3  ;;  %v2115_v42 = vpop.f32.mrf.mxu0 }
 0x14b   :  { %v2168_v47 = vpop.f32.mrf.mxu1  ;;  %v2116_v23 = vadd.f32 %v2115_v42, %v2063_v21 }
 0x14c   :  { %v2117_v44 = vpop.f32.mrf.mxu0 }
 0x14d   :  { %v2170_v50 = vpop.f32.mrf.mxu1  ;;  %v2169_v35 = vadd.f32 %v2168_v47, %v2116_v23 }
 0x14e   :  { %v2119_v46 = vpop.f32.mrf.mxu0 }
 0x14f   :  { %v4604_v52 = vpop.f32.mrf.mxu1 }
 0x150   :  { %v2121_v48 = vpop.f32.mrf.mxu0  ;;  %4654 = vst [vmem:[#allocation2_spill] sm:$0xff] %v4604_v52 }
 0x151   :  { %v4606_v54 = vpop.f32.mrf.mxu1 }
 0x152   :  { %4655 = vst [vmem:[#allocation3_spill] sm:$0xff] %v4606_v54 }
 0x157   :  { %v4662_v47 = vld [vmem:[#allocation2_spill] sm:$0xff] }
 0x182   :  { %v2211_v49 = vpop.f32.mrf.mxu0 }
 0x183   :  { %v2264_v55 = vpop.f32.mrf.mxu1 }
 0x184   :  { %v2213_v51 = vpop.f32.mrf.mxu0 }
 0x185   :  { %v2266_v57 = vpop.f32.mrf.mxu1 }
 0x186   :  { %v2215_v53 = vpop.f32.mrf.mxu0 }
 0x187   :  { %v2268_v59 = vpop.f32.mrf.mxu1  ;;  %v2216_v22 = vadd.f32 %v2215_v53, %v2163_v18 }
 0x188   :  { %v2217_v56 = vpop.f32.mrf.mxu0 }
 0x189   :  { %v2270_v61 = vpop.f32.mrf.mxu1  ;;  %v2269_v42 = vadd.f32 %v2268_v59, %v2216_v22 }
 0x18a   :  { %v2221_v58 = vpop.f32.mrf.mxu0 }
 0x18b   :  { %v4610_v63 = vpop.f32.mrf.mxu1 }
 0x18c   :  { %v2223_v60 = vpop.f32.mrf.mxu0  ;;  %4657 = vst [vmem:[#allocation5_spill] sm:$0xff] %v4610_v63  ;;  %v2212_v63 = vadd.f32 %v2211_v49, %v2159_v19  ;;  %v2222_v49 = vadd.f32 %v2221_v58, %v2169_v35 }
 0x18d   :  { %v4614_v2 = vpop.f32.mrf.mxu1 }
 0x18e   :  { %v4608_v62 = vpop.f32.mrf.mxu0  ;;  %4659 = vst [vmem:[#allocation7_spill] sm:$0xff] %v4614_v2  ;;  %v2112_v2 = vadd.f32 %v2111_v40, %v2059_v16  ;;  %v2265_v30 = vadd.f32 %v2264_v55, %v2212_v63  ;;  %v2122_v40 = vadd.f32 %v2121_v48, %v2069_v24 }
 0x18f   :  { %4656 = vst [vmem:[#allocation4_spill] sm:$0xff] %v4608_v62  ;;  %v4616_v4 = vpop.f32.mrf.mxu1  ;;  %v2444_v62 = vlaneseq }
 0x190   :  { %v4612_v0 = vpop.f32.mrf.mxu0  ;;  %4660 = vst [vmem:[#allocation8_spill] sm:$0xff] %v4616_v4  ;;  %v2065_v4 = vadd.f32 %v2064_v34, %v2011_v27  ;;  %v2165_v26 = vadd.f32 %v2164_v45, %v2112_v2  ;;  %v2120_v34 = vadd.f32 %v2119_v46, %v2067_v33  ;;  %v4663_v46 = vld [vmem:[#allocation3_spill] sm:$0xff] }
 0x191   :  { %4658 = vst [vmem:[#allocation6_spill] sm:$0xff] %v4612_v0  ;;  %v4618_v6 = vpop.f32.mrf.mxu1  ;;  %v2161_v0 = vadd.f32 %v2160_v41, %v2108_v13  ;;  %v2445_v28 = vshrl.u32 %v2444_v62, 7 }
 0x192   :  { %4661 = vst [vmem:[#allocation9_spill] sm:$0xff] %v4618_v6  ;;  %v2118_v20 = vadd.f32 %v2117_v44, %v2065_v4  ;;  %v2218_v27 = vadd.f32 %v2217_v56, %v2165_v26 }
 0x193   :  { %v2214_v52 = vadd.f32 %v2213_v51, %v2161_v0  ;;  %v2446_v44 = vsub.s32 0, %v2445_v28  ;;  %v2450_v45 = vsub.s32 1, %v2445_v28  ;;  %v4664_v58 = vld [vmem:[#allocation5_spill] sm:$0xff] }
 0x194   :  { %v2171_v39 = vadd.f32 %v2170_v50, %v2118_v20  ;;  %v2271_v36 = vadd.f32 %v2270_v61, %v2218_v27  ;;  %v2175_v50 = vadd.f32 %v4663_v46, %v2122_v40 }
 0x195   :  { %v2267_v37 = vadd.f32 %v2266_v57, %v2214_v52  ;;  %v2173_v52 = vadd.f32 %v4662_v47, %v2120_v34  ;;  %v2447_v59 = vrot.slane %v2442_v32, %v2446_v44  ;;  %v2451_v62 = vrot.slane %v2442_v32, %v2450_v45 }
 0x196   :  { %v2224_v51 = vadd.f32 %v2223_v60, %v2171_v39  ;;  %v2275_v60 = vadd.f32 %v4664_v58, %v2222_v49  ;;  %v4665_v63 = vld [vmem:[#allocation4_spill] sm:$0xff] }
 0x197   :  { %v2226_v0 = vadd.f32 %v4665_v63, %v2173_v52  ;;  %v4668_v21 = vld [vmem:[#allocation8_spill] sm:$0xff] }
 0x199   :  { %v2279_v18 = vadd.f32 %v4668_v21, %v2226_v0  ;;  %v4669_v28 = vld [vmem:[#allocation9_spill] sm:$0xff] }
 0x1c2   :  { %v2317_v1 = vpop.f32.mrf.mxu0 }
 0x1c3   :  { %v2370_v8 = vpop.f32.mrf.mxu1  ;;  %v2318_v41 = vadd.f32 %v2317_v1, %v2265_v30  ;;  %v4666_v1 = vld [vmem:[#allocation7_spill] sm:$0xff] }
 0x1c4   :  { %v2319_v3 = vpop.f32.mrf.mxu0  ;;  %v2277_v2 = vadd.f32 %v4666_v1, %v2224_v51 }
 0x1c5   :  { %v2372_v14 = vpop.f32.mrf.mxu1  ;;  %v2320_v43 = vadd.f32 %v2319_v3, %v2267_v37  ;;  %v2371_v48 = vadd.f32 %v2370_v8, %v2318_v41  ;;  %v2462_v8 = vld [vmem:[%s4652_s3] sm:$0x3] }
 0x1c6   :  { %v2321_v5 = vpop.f32.mrf.mxu0  ;;  %v2471_v17 = vrot.slane %v2462_v8, %v2450_v45  ;;  %v2467_v26 = vrot.slane %v2462_v8, %v2446_v44 }
 0x1c7   :  { %v2374_v54 = vpop.f32.mrf.mxu1  ;;  %v2322_v38 = vadd.f32 %v2321_v5, %v2269_v42  ;;  %v2373_v56 = vadd.f32 %v2372_v14, %v2320_v43  ;;  %v4667_v5 = vld [vmem:[#allocation6_spill] sm:$0xff] }
 0x1c8   :  { %v2323_v9 = vpop.f32.mrf.mxu0  ;;  %v2228_v7 = vadd.f32 %v4667_v5, %v2175_v50 }
 0x1c9   :  { %v2376_v25 = vpop.f32.mrf.mxu1  ;;  %v2324_v57 = vadd.f32 %v2323_v9, %v2271_v36  ;;  %v2375_v10 = vadd.f32 %v2374_v54, %v2322_v38 }
 0x1ca   :  { %v2327_v15 = vpop.f32.mrf.mxu0  ;;  %v2281_v54 = vadd.f32 %v4669_v28, %v2228_v7 }
 0x1cb   :  { %v2380_v53 = vpop.f32.mrf.mxu1  ;;  %v2328_v9 = vadd.f32 %v2327_v15, %v2275_v60  ;;  %v2377_v14 = vadd.f32 %v2376_v25, %v2324_v57 }
 0x1cc   :  { %v2329_v6 = vpop.f32.mrf.mxu0 }
 0x1cd   :  { %v2382_v3 = vpop.f32.mrf.mxu1  ;;  %v2330_v12 = vadd.f32 %v2329_v6, %v2277_v2  ;;  %v2381_v30 = vadd.f32 %v2380_v53, %v2328_v9 }
 0x1ce   :  { %v2331_v31 = vpop.f32.mrf.mxu0 }
 0x1cf   :  { %v2384_v23 = vpop.f32.mrf.mxu1  ;;  %v2332_v35 = vadd.f32 %v2331_v31, %v2279_v18  ;;  %v2383_v37 = vadd.f32 %v2382_v3, %v2330_v12 }
 0x1d0   :  { %v2333_v29 = vpop.f32.mrf.mxu0 }
 0x1d1   :  { %v2334_v6 = vadd.f32 %v2333_v29, %v2281_v54  ;;  %v2386_v39 = vpop.f32.mrf.mxu1  ;;  %v2385_v44 = vadd.f32 %v2384_v23, %v2332_v35 }
 0x1d3   :  { %v2387_v32 = vadd.f32 %v2386_v39, %v2334_v6 }
 0x202   :  { %v2423_v55 = vpop.f32.mrf.mxu0 }
 0x203   :  { %v2424_v4 = vadd.f32 %v2423_v55, %v2371_v48 }
 0x204   :  { %v2425_v61 = vpop.f32.mrf.mxu0 }
 0x205   :  { %v2426_v11 = vadd.f32 %v2425_v61, %v2373_v56  ;;  %v2454_v20 = vmul.f32 %v2447_v59, %v2424_v4 }
 0x206   :  { %v2427_v13 = vpop.f32.mrf.mxu0 }
 0x207   :  { %v2455_v16 = vmul.f32 %v2451_v62, %v2426_v11  ;;  %v2428_v19 = vadd.f32 %v2427_v13, %v2375_v10  ;;  %v2474_v40 = vadd.f32 %v2467_v26, %v2454_v20 }
 0x208   :  { %v2429_v22 = vpop.f32.mrf.mxu0 }
 0x209   :  { %v2456_v33 = vmul.f32 %v2447_v59, %v2428_v19  ;;  %v2430_v24 = vadd.f32 %v2429_v22, %v2377_v14  ;;  %v2475_v27 = vadd.f32 %v2471_v17, %v2455_v16  ;;  %v2482_v31 = vmax.f32 %v2474_v40, 0.0 }
 0x20a   :  { %v2433_v15 = vpop.f32.mrf.mxu0 }
 0x20b   :  { %v2476_v25 = vadd.f32 %v2467_v26, %v2456_v33  ;;  %v2457_v34 = vmul.f32 %v2451_v62, %v2430_v24  ;;  %v2434_v41 = vadd.f32 %v2433_v15, %v2381_v30  ;;  %v2483_v36 = vmax.f32 %v2475_v27, 0.0 }
 0x20c   :  { %v2435_v42 = vpop.f32.mrf.mxu0 }
 0x20d   :  { %v2477_v43 = vadd.f32 %v2471_v17, %v2457_v34  ;;  %v2436_v45 = vadd.f32 %v2435_v42, %v2383_v37  ;;  %v2484_v49 = vmax.f32 %v2476_v25, 0.0  ;;  %v2458_v47 = vmul.f32 %v2447_v59, %v2434_v41 }
 0x20e   :  { %v2437_v51 = vpop.f32.mrf.mxu0 }
 0x20f   :  { %v2485_v38 = vmax.f32 %v2477_v43, 0.0  ;;  %v2459_v53 = vmul.f32 %v2451_v62, %v2436_v45  ;;  %v2438_v52 = vadd.f32 %v2437_v51, %v2385_v44  ;;  %v2490_v48 = vpack.c.bf16 %v2484_v49, %v2482_v31 }
 0x210   :  { %v2439_v29 = vpop.f32.mrf.mxu0  ;;  %v2478_v58 = vadd.f32 %v2467_v26, %v2458_v47 }
 0x211   :  { %v2440_v46 = vadd.f32 %v2439_v29, %v2387_v32  ;;  %v2491_v50 = vpack.c.bf16 %v2485_v38, %v2483_v36  ;;  %v2460_v55 = vmul.f32 %v2447_v59, %v2438_v52  ;;  %v2479_v56 = vadd.f32 %v2471_v17, %v2459_v53 }
 0x212   :  { %v2486_v3 = vmax.f32 %v2478_v58, 0.0 }
 0x213   :  { %v2461_v57 = vmul.f32 %v2451_v62, %v2440_v46  ;;  %2654 = vmatprep.mubr.bf16.mxu1 %v2491_v50  ;;  %v2480_v60 = vadd.f32 %v2467_v26, %v2460_v55  ;;  %v2487_v1 = vmax.f32 %v2479_v56, 0.0 }
 0x214   :  { %2655 = vmatmul.mubr.bf16.vlgmr.msra.gmra.mxu1 %v2490_v48 }
 0x215   :  { %v2481_v63 = vadd.f32 %v2471_v17, %v2461_v57  ;;  %v2488_v0 = vmax.f32 %v2480_v60, 0.0 }
 0x217   :  { %v2489_v2 = vmax.f32 %v2481_v63, 0.0  ;;  %v2492_v61 = vpack.c.bf16 %v2488_v0, %v2486_v3 }
 0x219   :  { %v2493_v4 = vpack.c.bf16 %v2489_v2, %v2487_v1 }
 0x21b   :  { %2662 = vmatprep.mubr.bf16.mxu1 %v2493_v4 }
 0x21c   :  { %2663 = vmatmul.mubr.bf16.gmra.mxu1 %v2492_v61 }
 0x2d4   :  { %v3036_v5 = vpop.f32.mrf.mxu1 }
 0x2d6   :  { %v3037_v7 = vpop.f32.mrf.mxu1 }
 0x2d7   :  { %v3038_v10 = vadd.f32 %v3037_v7, %v3036_v5 }
 0x2d8   :  { %v3039_v59 = vpop.f32.mrf.mxu1 }
 0x2d9   :  { %2672 = vst.msk [vmem:[%s4653_s5] sm:$0xff] %vm2671_vm0, %v3038_v10 }
 0x2da   :  { %v3040_v62 = vpop.f32.mrf.mxu1 }
 0x2db   :  { %v3041_v8 = vadd.f32 %v3040_v62, %v3039_v59 }
 0x2dc   :  { %v3042_v11 = vpop.f32.mrf.mxu1 }
 0x2dd   :  { %2673 = vst.msk [vmem:[%s4653_s5 + $0x8] sm:$0xff] %vm2671_vm0, %v3041_v8 }
 0x2de   :  { %v3043_v9 = vpop.f32.mrf.mxu1 }
 0x2df   :  { %v3044_v12 = vadd.f32 %v3043_v9, %v3042_v11 }
 0x2e0   :  { %v3045_v13 = vpop.f32.mrf.mxu1 }
 0x2e1   :  { %2674 = vst.msk [vmem:[%s4653_s5 + $0x10] sm:$0xff] %vm2671_vm0, %v3044_v12 }
 0x2e2   :  { %v3046_v14 = vpop.f32.mrf.mxu1 }
 0x2e3   :  { %v3047_v16 = vadd.f32 %v3046_v14, %v3045_v13 }
 0x2e5   :  { %2675 = vst.msk [vmem:[%s4653_s5 + $0x18] sm:$0xff] %vm2671_vm0, %v3047_v16 }

</bundles_post_ra>
